<compile_context>
chip_gen: v7x
topology: tpu7x:2x2x1
jax: 0.10.0
libtpu: 0.0.40
codegen_flags: <defaults>
</compile_context>

<pallas_src>
import functools

import jax
import jax.numpy as jnp
from jax.experimental import pallas as pl
from jax.experimental.pallas import tpu as pltpu


HIDDEN_DIMS = (4096, 1024, 256, 64, 16, 2)   # fixed by the PyTorch module
NEG_SLOPE = 0.3
H1_TILE = 2048           # width of each streamed fc1-output / fc2-contraction tile
NUM_CORE_SPLITS = 2      # leading "parallel" grid axis (maps to v7x's 2 TensorCores)


def _epilogue(z, aux, neg_slope):
    """bias -> LeakyReLU(neg_slope) -> folded eval-mode BN. aux rows: [b, scale, shift]."""
    z = z + aux[0:1, :]
    z = jnp.where(z > 0, z, neg_slope * z)
    return z * aux[1:2, :] + aux[2:3, :]


# ---------------------------------------------------------------------------
# Kernel 1: stream W1 (tile-major) and W2 over the hidden1 (4096) axis and
# produce one partial fc2 accumulator per core split.
# ---------------------------------------------------------------------------
def _mlp2_stream_kernel(x_ref, w1_ref, aux1_ref, w2_ref, part_ref, acc_ref,
                        *, neg_slope):
    j = pl.program_id(1)

    @pl.when(j == 0)
    def _():
        acc_ref[...] = jnp.zeros_like(acc_ref)

    # fc1 column tile: h1_t = BN(LeakyReLU(x @ W1_tile + b1_tile)); x is bf16.
    z1 = jnp.dot(x_ref[...], w1_ref[0], preferred_element_type=jnp.float32)
    h1 = _epilogue(z1, aux1_ref[...], neg_slope)

    # fc2 partial product for this hidden1 tile, accumulated in f32 VMEM.
    acc_ref[...] += jnp.dot(h1.astype(jnp.bfloat16), w2_ref[...],
                            preferred_element_type=jnp.float32)

    @pl.when(j == pl.num_programs(1) - 1)
    def _():
        part_ref[0] = acc_ref[...]


# ---------------------------------------------------------------------------
# Kernel 2: combine the per-core partials, apply the fc2 epilogue, then run the
# tiny fc3..fc6 tail (bf16 matmuls, f32 accumulation) + sigmoid, VMEM-resident.
# ---------------------------------------------------------------------------
def _mlp2_tail_kernel(part_ref, aux2_ref, w3_ref, aux3_ref, w4_ref, aux4_ref,
                      w5_ref, aux5_ref, w6_ref, aux6_ref, o_ref, *, neg_slope):
    z2 = jnp.sum(part_ref[...], axis=0)                 # cross-split partial sum
    h = _epilogue(z2, aux2_ref[...], neg_slope)
    for w_ref, aux_ref in ((w3_ref, aux3_ref), (w4_ref, aux4_ref),
                           (w5_ref, aux5_ref), (w6_ref, aux6_ref)):
        z = jnp.dot(h.astype(jnp.bfloat16), w_ref[...],
                    preferred_element_type=jnp.float32)
        h = _epilogue(z, aux_ref[...], neg_slope)
    o_ref[...] = jax.nn.sigmoid(h).astype(o_ref.dtype)


def mlp2_forward(x, kparams):
    """x: [B, input_dim].  kparams: output of prepare_mlp2_params()."""
    (w1t, aux1), (w2, aux2), (w3, aux3), (w4, aux4), (w5, aux5), (w6, aux6) = kparams
    B = x.shape[0]
    x = x.astype(jnp.bfloat16)                  # cast once, outside the grid loop

    n_tiles, K1, th = w1t.shape
    H1, H2 = w2.shape
    H3, H4, H5, NC = w3.shape[1], w4.shape[1], w5.shape[1], w6.shape[1]
    assert x.shape[1] == K1
    assert n_tiles * th == H1 and n_tiles % NUM_CORE_SPLITS == 0
    n_j = n_tiles // NUM_CORE_SPLITS            # hidden1 tiles per core split

    flops = 2 * B * (K1 * H1 + H1 * H2)
    bytes_accessed = (x.size * 2 + w1t.size * 2 + aux1.size * 4 + w2.size * 2
                      + NUM_CORE_SPLITS * B * H2 * 4)

    # --- big streaming kernel: fc1 + fc2 partial sums --------------------
    partials = pl.pallas_call(
        functools.partial(_mlp2_stream_kernel, neg_slope=NEG_SLOPE),
        out_shape=jax.ShapeDtypeStruct((NUM_CORE_SPLITS, B, H2), jnp.float32),
        grid_spec=pltpu.PrefetchScalarGridSpec(
            num_scalar_prefetch=0,
            grid=(NUM_CORE_SPLITS, n_j),
            in_specs=[
                pl.BlockSpec((B, K1), lambda c, j: (0, 0)),                   # x (resident)
                pl.BlockSpec((1, K1, th), lambda c, j: (c * n_j + j, 0, 0)),  # W1 tile (contiguous)
                pl.BlockSpec((3, th), lambda c, j: (0, c * n_j + j)),         # fc1 aux tile
                pl.BlockSpec((th, H2), lambda c, j: (c * n_j + j, 0)),        # W2 row tile
            ],
            out_specs=pl.BlockSpec((1, B, H2), lambda c, j: (c, 0, 0)),
            scratch_shapes=[pltpu.VMEM((B, H2), jnp.float32)],   # fc2 accumulator
        ),
        compiler_params=pltpu.CompilerParams(
            dimension_semantics=("parallel", "arbitrary"),
            vmem_limit_bytes=48 * 1024 * 1024,
        ),
        cost_estimate=pl.CostEstimate(flops=flops, transcendentals=0,
                                      bytes_accessed=bytes_accessed),
    )(x, w1t, aux1, w2)

    # --- tiny tail kernel: combine partials + fc3..fc6 + sigmoid ---------
    return pl.pallas_call(
        functools.partial(_mlp2_tail_kernel, neg_slope=NEG_SLOPE),
        out_shape=jax.ShapeDtypeStruct((B, NC), jnp.float32),
        grid_spec=pltpu.PrefetchScalarGridSpec(
            num_scalar_prefetch=0,
            grid=(1,),
            in_specs=[
                pl.BlockSpec((NUM_CORE_SPLITS, B, H2), lambda i: (0, 0, 0)),
                pl.BlockSpec((3, H2), lambda i: (0, 0)),
                pl.BlockSpec((H2, H3), lambda i: (0, 0)),
                pl.BlockSpec((3, H3), lambda i: (0, 0)),
                pl.BlockSpec((H3, H4), lambda i: (0, 0)),
                pl.BlockSpec((3, H4), lambda i: (0, 0)),
                pl.BlockSpec((H4, H5), lambda i: (0, 0)),
                pl.BlockSpec((3, H5), lambda i: (0, 0)),
                pl.BlockSpec((H5, NC), lambda i: (0, 0)),
                pl.BlockSpec((3, NC), lambda i: (0, 0)),
            ],
            out_specs=pl.BlockSpec((B, NC), lambda i: (0, 0)),
        ),
        compiler_params=pltpu.CompilerParams(
            dimension_semantics=("arbitrary",),
        ),
    )(partials, aux2, w3, aux3, w4, aux4, w5, aux5, w6, aux6)


def _bn_fold(gamma, beta, running_mean, running_var, eps=1e-5):
    """Fold eval-mode BatchNorm1d params into per-feature scale & shift."""
    scale = gamma / jnp.sqrt(running_var + eps)
    shift = beta - running_mean * scale
    return scale, shift


def init_mlp2_params(key, input_dim):
    """Logical layout: 6 tuples (w [in, out] bf16, aux [3, out] f32 = [bias; scale; shift])."""
    dims = [input_dim] + list(HIDDEN_DIMS)
    params = []
    for i in range(6):
        fan_in, fan_out = dims[i], dims[i + 1]
        key, kw, kb, kg, kbt, km, kv = jax.random.split(key, 7)
        bound = 1.0 / jnp.sqrt(fan_in)
        w = jax.random.uniform(kw, (fan_in, fan_out), jnp.float32, -bound, bound)
        b = jax.random.uniform(kb, (fan_out,), jnp.float32, -bound, bound)
        gamma = jax.random.uniform(kg, (fan_out,), jnp.float32, 0.5, 1.5)
        beta = jax.random.uniform(kbt, (fan_out,), jnp.float32, -0.1, 0.1)
        rmean = jax.random.uniform(km, (fan_out,), jnp.float32, -0.1, 0.1)
        rvar = jax.random.uniform(kv, (fan_out,), jnp.float32, 0.5, 1.5)
        scale, shift = _bn_fold(gamma, beta, rmean, rvar)
        aux = jnp.stack([b, scale, shift], axis=0)          # [3, fan_out] f32
        params.append((w.astype(jnp.bfloat16), aux))
    return params


def prepare_mlp2_params(params, h1_tile=H1_TILE):
    """One-time relayout: W1 -> tile-major [n_tiles, input_dim, h1_tile] so each
    streamed W1 tile is a single contiguous HBM read.  Other layers unchanged."""
    w1, aux1 = params[0]
    K1, H1 = w1.shape
    assert H1 % h1_tile == 0, "hidden1 must divide evenly by the tile"
    n_tiles = H1 // h1_tile
    w1t = jnp.transpose(w1.reshape(K1, n_tiles, h1_tile), (1, 0, 2))
    return [(w1t, aux1)] + list(params[1:])


def mlp2_reference(x, params):
    """Pure-JAX reference matching the kernel numerics: bf16 operands for every
    matmul, f32 accumulation, f32 bias/LeakyReLU/eval-BN epilogues, sigmoid."""
    h = x
    for w, aux in params:
        z = jnp.dot(h.astype(jnp.bfloat16), w, preferred_element_type=jnp.float32)
        z = z + aux[0]
        z = jnp.where(z > 0, z, NEG_SLOPE * z)
        h = z * aux[1] + aux[2]
    return jax.nn.sigmoid(h)


if __name__ == "__main__":
    key = jax.random.PRNGKey(0)
    k_in, k_params = jax.random.split(key)

    B, input_dim = 8, 512
    x = jax.random.normal(k_in, (B, input_dim), jnp.float32)
    params = init_mlp2_params(k_params, input_dim)   # logical layout (for reference)
    kparams = prepare_mlp2_params(params)            # kernel-ready layout

    out = jax.jit(mlp2_forward)(x, kparams)
    out = jax.block_until_ready(out)

    ref = mlp2_reference(x, params)
    assert out.shape == (B, 2), out.shape
    max_err = jnp.max(jnp.abs(out - ref))
    assert jnp.allclose(out, ref, atol=2e-3, rtol=2e-3), f"max err {max_err}"

    print("KERNEL_OK")
</pallas_src>

<mosaic_0001>
module attributes {stable_mosaic.version = 11 : i64} {
  func.func @_mlp2_tail_kernel(%arg0: i32, %arg1: memref<2x8x1024xf32, #tpu.memory_space<vmem>>, %arg2: memref<3x1024xf32, #tpu.memory_space<vmem>>, %arg3: memref<1024x256xbf16, #tpu.memory_space<vmem>>, %arg4: memref<3x256xf32, #tpu.memory_space<vmem>>, %arg5: memref<256x64xbf16, #tpu.memory_space<vmem>>, %arg6: memref<3x64xf32, #tpu.memory_space<vmem>>, %arg7: memref<64x16xbf16, #tpu.memory_space<vmem>>, %arg8: memref<3x16xf32, #tpu.memory_space<vmem>>, %arg9: memref<16x2xbf16, #tpu.memory_space<vmem>>, %arg10: memref<3x2xf32, #tpu.memory_space<vmem>>, %arg11: memref<8x2xf32, #tpu.memory_space<vmem>>) attributes {dimension_semantics = [#tpu.dimension_semantics<arbitrary>], iteration_bounds = array<i64: 1>, scalar_prefetch = 0 : i64, scratch_operands = 0 : i64, tpu.core_type = #tpu.core_type<tc>, window_params = [{pipeline_mode = #tpu.pipeline_mode<synchronous>, transform_indices = @transform_0, window_bounds = array<i64: 2, 8, 1024>}, {pipeline_mode = #tpu.pipeline_mode<synchronous>, transform_indices = @transform_1, window_bounds = array<i64: 3, 1024>}, {pipeline_mode = #tpu.pipeline_mode<synchronous>, transform_indices = @transform_2, window_bounds = array<i64: 1024, 256>}, {pipeline_mode = #tpu.pipeline_mode<synchronous>, transform_indices = @transform_3, window_bounds = array<i64: 3, 256>}, {pipeline_mode = #tpu.pipeline_mode<synchronous>, transform_indices = @transform_4, window_bounds = array<i64: 256, 64>}, {pipeline_mode = #tpu.pipeline_mode<synchronous>, transform_indices = @transform_5, window_bounds = array<i64: 3, 64>}, {pipeline_mode = #tpu.pipeline_mode<synchronous>, transform_indices = @transform_6, window_bounds = array<i64: 64, 16>}, {pipeline_mode = #tpu.pipeline_mode<synchronous>, transform_indices = @transform_7, window_bounds = array<i64: 3, 16>}, {pipeline_mode = #tpu.pipeline_mode<synchronous>, transform_indices = @transform_8, window_bounds = array<i64: 16, 2>}, {pipeline_mode = #tpu.pipeline_mode<synchronous>, transform_indices = @transform_9, window_bounds = array<i64: 3, 2>}, {pipeline_mode = #tpu.pipeline_mode<synchronous>, transform_indices = @transform_10, window_bounds = array<i64: 8, 2>}]} {
    %c0 = arith.constant 0 : index
    %c0_0 = arith.constant 0 : index
    %c0_1 = arith.constant 0 : index
    %0 = vector.load %arg1[%c0, %c0_0, %c0_1] : memref<2x8x1024xf32, #tpu.memory_space<vmem>>, vector<2x8x1024xf32>
    %cst = arith.constant dense<0.000000e+00> : vector<8x1024xf32>
    %1 = vector.multi_reduction <add>, %0, %cst [0] : vector<2x8x1024xf32> to vector<8x1024xf32>
    %c0_2 = arith.constant 0 : index
    %c0_3 = arith.constant 0 : index
    %2 = vector.load %arg2[%c0_2, %c0_3] : memref<3x1024xf32, #tpu.memory_space<vmem>>, vector<3x1024xf32>
    %3 = vector.extract_strided_slice %2 {offsets = [0, 0], sizes = [1, 1024], strides = [1, 1]} : vector<3x1024xf32> to vector<1x1024xf32>
    %4 = vector.broadcast %3 : vector<1x1024xf32> to vector<8x1024xf32>
    %5 = arith.addf %1, %4 : vector<8x1024xf32>
    %cst_4 = arith.constant 0.000000e+00 : f32
    %6 = vector.broadcast %cst_4 : f32 to vector<8x1024xf32>
    %7 = arith.cmpf ogt, %5, %6 : vector<8x1024xf32>
    %cst_5 = arith.constant 3.000000e-01 : f32
    %8 = vector.broadcast %cst_5 : f32 to vector<8x1024xf32>
    %9 = arith.mulf %8, %5 : vector<8x1024xf32>
    %10 = arith.select %7, %5, %9 : vector<8x1024xi1>, vector<8x1024xf32>
    %11 = vector.extract_strided_slice %2 {offsets = [1, 0], sizes = [1, 1024], strides = [1, 1]} : vector<3x1024xf32> to vector<1x1024xf32>
    %12 = vector.broadcast %11 : vector<1x1024xf32> to vector<8x1024xf32>
    %13 = arith.mulf %10, %12 : vector<8x1024xf32>
    %14 = vector.extract_strided_slice %2 {offsets = [2, 0], sizes = [1, 1024], strides = [1, 1]} : vector<3x1024xf32> to vector<1x1024xf32>
    %15 = vector.broadcast %14 : vector<1x1024xf32> to vector<8x1024xf32>
    %16 = arith.addf %13, %15 : vector<8x1024xf32>
    %17 = arith.truncf %16 : vector<8x1024xf32> to vector<8x1024xbf16>
    %c0_6 = arith.constant 0 : index
    %c0_7 = arith.constant 0 : index
    %18 = vector.load %arg3[%c0_6, %c0_7] : memref<1024x256xbf16, #tpu.memory_space<vmem>>, vector<1024x256xbf16>
    %cst_8 = arith.constant dense<0.000000e+00> : vector<8x256xf32>
    %19 = tpu.matmul %17, %18, %cst_8 {dimension_numbers = #tpu.dot_dimension_numbers<[1], [0], [0], [1], [0, 0, 1, 1], [], []>} : vector<8x1024xbf16>, vector<1024x256xbf16>, vector<8x256xf32> -> vector<8x256xf32>
    %c0_9 = arith.constant 0 : index
    %c0_10 = arith.constant 0 : index
    %20 = vector.load %arg4[%c0_9, %c0_10] : memref<3x256xf32, #tpu.memory_space<vmem>>, vector<3x256xf32>
    %21 = vector.extract_strided_slice %20 {offsets = [0, 0], sizes = [1, 256], strides = [1, 1]} : vector<3x256xf32> to vector<1x256xf32>
    %22 = vector.broadcast %21 : vector<1x256xf32> to vector<8x256xf32>
    %23 = arith.addf %19, %22 : vector<8x256xf32>
    %cst_11 = arith.constant 0.000000e+00 : f32
    %24 = vector.broadcast %cst_11 : f32 to vector<8x256xf32>
    %25 = arith.cmpf ogt, %23, %24 : vector<8x256xf32>
    %cst_12 = arith.constant 3.000000e-01 : f32
    %26 = vector.broadcast %cst_12 : f32 to vector<8x256xf32>
    %27 = arith.mulf %26, %23 : vector<8x256xf32>
    %28 = arith.select %25, %23, %27 : vector<8x256xi1>, vector<8x256xf32>
    %29 = vector.extract_strided_slice %20 {offsets = [1, 0], sizes = [1, 256], strides = [1, 1]} : vector<3x256xf32> to vector<1x256xf32>
    %30 = vector.broadcast %29 : vector<1x256xf32> to vector<8x256xf32>
    %31 = arith.mulf %28, %30 : vector<8x256xf32>
    %32 = vector.extract_strided_slice %20 {offsets = [2, 0], sizes = [1, 256], strides = [1, 1]} : vector<3x256xf32> to vector<1x256xf32>
    %33 = vector.broadcast %32 : vector<1x256xf32> to vector<8x256xf32>
    %34 = arith.addf %31, %33 : vector<8x256xf32>
    %35 = arith.truncf %34 : vector<8x256xf32> to vector<8x256xbf16>
    %c0_13 = arith.constant 0 : index
    %c0_14 = arith.constant 0 : index
    %36 = vector.load %arg5[%c0_13, %c0_14] : memref<256x64xbf16, #tpu.memory_space<vmem>>, vector<256x64xbf16>
    %cst_15 = arith.constant dense<0.000000e+00> : vector<8x64xf32>
    %37 = tpu.matmul %35, %36, %cst_15 {dimension_numbers = #tpu.dot_dimension_numbers<[1], [0], [0], [1], [0, 0, 1, 1], [], []>} : vector<8x256xbf16>, vector<256x64xbf16>, vector<8x64xf32> -> vector<8x64xf32>
    %c0_16 = arith.constant 0 : index
    %c0_17 = arith.constant 0 : index
    %38 = vector.load %arg6[%c0_16, %c0_17] : memref<3x64xf32, #tpu.memory_space<vmem>>, vector<3x64xf32>
    %39 = vector.extract_strided_slice %38 {offsets = [0, 0], sizes = [1, 64], strides = [1, 1]} : vector<3x64xf32> to vector<1x64xf32>
    %40 = vector.broadcast %39 : vector<1x64xf32> to vector<8x64xf32>
    %41 = arith.addf %37, %40 : vector<8x64xf32>
    %cst_18 = arith.constant 0.000000e+00 : f32
    %42 = vector.broadcast %cst_18 : f32 to vector<8x64xf32>
    %43 = arith.cmpf ogt, %41, %42 : vector<8x64xf32>
    %cst_19 = arith.constant 3.000000e-01 : f32
    %44 = vector.broadcast %cst_19 : f32 to vector<8x64xf32>
    %45 = arith.mulf %44, %41 : vector<8x64xf32>
    %46 = arith.select %43, %41, %45 : vector<8x64xi1>, vector<8x64xf32>
    %47 = vector.extract_strided_slice %38 {offsets = [1, 0], sizes = [1, 64], strides = [1, 1]} : vector<3x64xf32> to vector<1x64xf32>
    %48 = vector.broadcast %47 : vector<1x64xf32> to vector<8x64xf32>
    %49 = arith.mulf %46, %48 : vector<8x64xf32>
    %50 = vector.extract_strided_slice %38 {offsets = [2, 0], sizes = [1, 64], strides = [1, 1]} : vector<3x64xf32> to vector<1x64xf32>
    %51 = vector.broadcast %50 : vector<1x64xf32> to vector<8x64xf32>
    %52 = arith.addf %49, %51 : vector<8x64xf32>
    %53 = arith.truncf %52 : vector<8x64xf32> to vector<8x64xbf16>
    %c0_20 = arith.constant 0 : index
    %c0_21 = arith.constant 0 : index
    %54 = vector.load %arg7[%c0_20, %c0_21] : memref<64x16xbf16, #tpu.memory_space<vmem>>, vector<64x16xbf16>
    %cst_22 = arith.constant dense<0.000000e+00> : vector<8x16xf32>
    %55 = tpu.matmul %53, %54, %cst_22 {dimension_numbers = #tpu.dot_dimension_numbers<[1], [0], [0], [1], [0, 0, 1, 1], [], []>} : vector<8x64xbf16>, vector<64x16xbf16>, vector<8x16xf32> -> vector<8x16xf32>
    %c0_23 = arith.constant 0 : index
    %c0_24 = arith.constant 0 : index
    %56 = vector.load %arg8[%c0_23, %c0_24] : memref<3x16xf32, #tpu.memory_space<vmem>>, vector<3x16xf32>
    %57 = vector.extract_strided_slice %56 {offsets = [0, 0], sizes = [1, 16], strides = [1, 1]} : vector<3x16xf32> to vector<1x16xf32>
    %58 = vector.broadcast %57 : vector<1x16xf32> to vector<8x16xf32>
    %59 = arith.addf %55, %58 : vector<8x16xf32>
    %cst_25 = arith.constant 0.000000e+00 : f32
    %60 = vector.broadcast %cst_25 : f32 to vector<8x16xf32>
    %61 = arith.cmpf ogt, %59, %60 : vector<8x16xf32>
    %cst_26 = arith.constant 3.000000e-01 : f32
    %62 = vector.broadcast %cst_26 : f32 to vector<8x16xf32>
    %63 = arith.mulf %62, %59 : vector<8x16xf32>
    %64 = arith.select %61, %59, %63 : vector<8x16xi1>, vector<8x16xf32>
    %65 = vector.extract_strided_slice %56 {offsets = [1, 0], sizes = [1, 16], strides = [1, 1]} : vector<3x16xf32> to vector<1x16xf32>
    %66 = vector.broadcast %65 : vector<1x16xf32> to vector<8x16xf32>
    %67 = arith.mulf %64, %66 : vector<8x16xf32>
    %68 = vector.extract_strided_slice %56 {offsets = [2, 0], sizes = [1, 16], strides = [1, 1]} : vector<3x16xf32> to vector<1x16xf32>
    %69 = vector.broadcast %68 : vector<1x16xf32> to vector<8x16xf32>
    %70 = arith.addf %67, %69 : vector<8x16xf32>
    %71 = arith.truncf %70 : vector<8x16xf32> to vector<8x16xbf16>
    %c0_27 = arith.constant 0 : index
    %c0_28 = arith.constant 0 : index
    %72 = vector.load %arg9[%c0_27, %c0_28] : memref<16x2xbf16, #tpu.memory_space<vmem>>, vector<16x2xbf16>
    %cst_29 = arith.constant dense<0.000000e+00> : vector<8x2xf32>
    %73 = tpu.matmul %71, %72, %cst_29 {dimension_numbers = #tpu.dot_dimension_numbers<[1], [0], [0], [1], [0, 0, 1, 1], [], []>} : vector<8x16xbf16>, vector<16x2xbf16>, vector<8x2xf32> -> vector<8x2xf32>
    %c0_30 = arith.constant 0 : index
    %c0_31 = arith.constant 0 : index
    %74 = vector.load %arg10[%c0_30, %c0_31] : memref<3x2xf32, #tpu.memory_space<vmem>>, vector<3x2xf32>
    %75 = vector.extract_strided_slice %74 {offsets = [0, 0], sizes = [1, 2], strides = [1, 1]} : vector<3x2xf32> to vector<1x2xf32>
    %76 = vector.broadcast %75 : vector<1x2xf32> to vector<8x2xf32>
    %77 = arith.addf %73, %76 : vector<8x2xf32>
    %cst_32 = arith.constant 0.000000e+00 : f32
    %78 = vector.broadcast %cst_32 : f32 to vector<8x2xf32>
    %79 = arith.cmpf ogt, %77, %78 : vector<8x2xf32>
    %cst_33 = arith.constant 3.000000e-01 : f32
    %80 = vector.broadcast %cst_33 : f32 to vector<8x2xf32>
    %81 = arith.mulf %80, %77 : vector<8x2xf32>
    %82 = arith.select %79, %77, %81 : vector<8x2xi1>, vector<8x2xf32>
    %83 = vector.extract_strided_slice %74 {offsets = [1, 0], sizes = [1, 2], strides = [1, 1]} : vector<3x2xf32> to vector<1x2xf32>
    %84 = vector.broadcast %83 : vector<1x2xf32> to vector<8x2xf32>
    %85 = arith.mulf %82, %84 : vector<8x2xf32>
    %86 = vector.extract_strided_slice %74 {offsets = [2, 0], sizes = [1, 2], strides = [1, 1]} : vector<3x2xf32> to vector<1x2xf32>
    %87 = vector.broadcast %86 : vector<1x2xf32> to vector<8x2xf32>
    %88 = arith.addf %85, %87 : vector<8x2xf32>
    %89 = arith.negf %88 : vector<8x2xf32>
    %90 = math.exp %89 : vector<8x2xf32>
    %cst_34 = arith.constant 1.000000e+00 : f32
    %91 = vector.broadcast %cst_34 : f32 to vector<8x2xf32>
    %92 = arith.addf %91, %90 : vector<8x2xf32>
    %93 = arith.divf %91, %92 : vector<8x2xf32>
    %c0_35 = arith.constant 0 : index
    %c0_36 = arith.constant 0 : index
    %94 = vector.load %arg11[%c0_35, %c0_36] : memref<8x2xf32, #tpu.memory_space<vmem>>, vector<8x2xf32>
    tpu.vector_store %arg11[%c0_35, %c0_36], %93 {strides = array<i32>} : memref<8x2xf32, #tpu.memory_space<vmem>>, vector<8x2xf32>,
    return
  }
  func.func @transform_0(%arg0: i32) -> (i32, i32, i32) {
    %c0_i32 = arith.constant 0 : i32
    %c0_i32_0 = arith.constant 0 : i32
    %c0_i32_1 = arith.constant 0 : i32
    %c0_i32_2 = arith.constant 0 : i32
    return %c0_i32, %c0_i32_0, %c0_i32_1 : i32, i32, i32
  }
  func.func @transform_1(%arg0: i32) -> (i32, i32) {
    %c0_i32 = arith.constant 0 : i32
    %c0_i32_0 = arith.constant 0 : i32
    %c0_i32_1 = arith.constant 0 : i32
    return %c0_i32, %c0_i32_0 : i32, i32
  }
  func.func @transform_2(%arg0: i32) -> (i32, i32) {
    %c0_i32 = arith.constant 0 : i32
    %c0_i32_0 = arith.constant 0 : i32
    %c0_i32_1 = arith.constant 0 : i32
    return %c0_i32, %c0_i32_0 : i32, i32
  }
  func.func @transform_3(%arg0: i32) -> (i32, i32) {
    %c0_i32 = arith.constant 0 : i32
    %c0_i32_0 = arith.constant 0 : i32
    %c0_i32_1 = arith.constant 0 : i32
    return %c0_i32, %c0_i32_0 : i32, i32
  }
  func.func @transform_4(%arg0: i32) -> (i32, i32) {
    %c0_i32 = arith.constant 0 : i32
    %c0_i32_0 = arith.constant 0 : i32
    %c0_i32_1 = arith.constant 0 : i32
    return %c0_i32, %c0_i32_0 : i32, i32
  }
  func.func @transform_5(%arg0: i32) -> (i32, i32) {
    %c0_i32 = arith.constant 0 : i32
    %c0_i32_0 = arith.constant 0 : i32
    %c0_i32_1 = arith.constant 0 : i32
    return %c0_i32, %c0_i32_0 : i32, i32
  }
  func.func @transform_6(%arg0: i32) -> (i32, i32) {
    %c0_i32 = arith.constant 0 : i32
    %c0_i32_0 = arith.constant 0 : i32
    %c0_i32_1 = arith.constant 0 : i32
    return %c0_i32, %c0_i32_0 : i32, i32
  }
  func.func @transform_7(%arg0: i32) -> (i32, i32) {
    %c0_i32 = arith.constant 0 : i32
    %c0_i32_0 = arith.constant 0 : i32
    %c0_i32_1 = arith.constant 0 : i32
    return %c0_i32, %c0_i32_0 : i32, i32
  }
  func.func @transform_8(%arg0: i32) -> (i32, i32) {
    %c0_i32 = arith.constant 0 : i32
    %c0_i32_0 = arith.constant 0 : i32
    %c0_i32_1 = arith.constant 0 : i32
    return %c0_i32, %c0_i32_0 : i32, i32
  }
  func.func @transform_9(%arg0: i32) -> (i32, i32) {
    %c0_i32 = arith.constant 0 : i32
    %c0_i32_0 = arith.constant 0 : i32
    %c0_i32_1 = arith.constant 0 : i32
    return %c0_i32, %c0_i32_0 : i32, i32
  }
  func.func @transform_10(%arg0: i32) -> (i32, i32) {
    %c0_i32 = arith.constant 0 : i32
    %c0_i32_0 = arith.constant 0 : i32
    %c0_i32_1 = arith.constant 0 : i32
    return %c0_i32, %c0_i32_0 : i32, i32
  }
}

module attributes {stable_mosaic.version = 11 : i64} {
  func.func @_mlp2_stream_kernel(%arg0: i32, %arg1: i32, %arg2: memref<8x512xbf16, #tpu.memory_space<vmem>>, %arg3: memref<1x512x2048xbf16, #tpu.memory_space<vmem>>, %arg4: memref<3x2048xf32, #tpu.memory_space<vmem>>, %arg5: memref<2048x1024xbf16, #tpu.memory_space<vmem>>, %arg6: memref<1x8x1024xf32, #tpu.memory_space<vmem>>, %arg7: memref<8x1024xf32, #tpu.memory_space<vmem>>) attributes {dimension_semantics = [#tpu.dimension_semantics<parallel>, #tpu.dimension_semantics<arbitrary>], iteration_bounds = array<i64: 2, 1>, scalar_prefetch = 0 : i64, scratch_operands = 1 : i64, tpu.core_type = #tpu.core_type<tc>, window_params = [{pipeline_mode = #tpu.pipeline_mode<synchronous>, transform_indices = @transform_0, window_bounds = array<i64: 8, 512>}, {transform_indices = @transform_1, window_bounds = array<i64: 1, 512, 2048>}, {transform_indices = @transform_2, window_bounds = array<i64: 3, 2048>}, {transform_indices = @transform_3, window_bounds = array<i64: 2048, 1024>}, {transform_indices = @transform_4, window_bounds = array<i64: 1, 8, 1024>}]} {
    %c0_i32 = arith.constant 0 : i32
    %0 = arith.cmpi eq, %arg1, %c0_i32 : i32
    %1 = arith.extui %0 : i1 to i32
    %c0_i32_0 = arith.constant 0 : i32
    %2 = arith.cmpi ne, %1, %c0_i32_0 : i32
    scf.if %2 {
      %cst_18 = arith.constant 0.000000e+00 : f32
      %31 = vector.broadcast %cst_18 : f32 to vector<8x1024xf32>
      %c0_19 = arith.constant 0 : index
      %c0_20 = arith.constant 0 : index
      %32 = vector.load %arg7[%c0_19, %c0_20] : memref<8x1024xf32, #tpu.memory_space<vmem>>, vector<8x1024xf32>
      tpu.vector_store %arg7[%c0_19, %c0_20], %31 {strides = array<i32>} : memref<8x1024xf32, #tpu.memory_space<vmem>>, vector<8x1024xf32>,
    } else {
    }
    %c0 = arith.constant 0 : index
    %c0_1 = arith.constant 0 : index
    %3 = vector.load %arg2[%c0, %c0_1] : memref<8x512xbf16, #tpu.memory_space<vmem>>, vector<8x512xbf16>
    %c0_2 = arith.constant 0 : index
    %c0_3 = arith.constant 0 : index
    %c0_4 = arith.constant 0 : index
    %4 = vector.load %arg3[%c0_2, %c0_3, %c0_4] : memref<1x512x2048xbf16, #tpu.memory_space<vmem>>, vector<1x512x2048xbf16>
    %5 = vector.shape_cast %4 : vector<1x512x2048xbf16> to vector<512x2048xbf16>
    %cst = arith.constant dense<0.000000e+00> : vector<8x2048xf32>
    %6 = tpu.matmul %3, %5, %cst {dimension_numbers = #tpu.dot_dimension_numbers<[1], [0], [0], [1], [0, 0, 1, 1], [], []>} : vector<8x512xbf16>, vector<512x2048xbf16>, vector<8x2048xf32> -> vector<8x2048xf32>
    %c0_5 = arith.constant 0 : index
    %c0_6 = arith.constant 0 : index
    %7 = vector.load %arg4[%c0_5, %c0_6] : memref<3x2048xf32, #tpu.memory_space<vmem>>, vector<3x2048xf32>
    %8 = vector.extract_strided_slice %7 {offsets = [0, 0], sizes = [1, 2048], strides = [1, 1]} : vector<3x2048xf32> to vector<1x2048xf32>
    %9 = vector.broadcast %8 : vector<1x2048xf32> to vector<8x2048xf32>
    %10 = arith.addf %6, %9 : vector<8x2048xf32>
    %cst_7 = arith.constant 0.000000e+00 : f32
    %11 = vector.broadcast %cst_7 : f32 to vector<8x2048xf32>
    %12 = arith.cmpf ogt, %10, %11 : vector<8x2048xf32>
    %cst_8 = arith.constant 3.000000e-01 : f32
    %13 = vector.broadcast %cst_8 : f32 to vector<8x2048xf32>
    %14 = arith.mulf %13, %10 : vector<8x2048xf32>
    %15 = arith.select %12, %10, %14 : vector<8x2048xi1>, vector<8x2048xf32>
    %16 = vector.extract_strided_slice %7 {offsets = [1, 0], sizes = [1, 2048], strides = [1, 1]} : vector<3x2048xf32> to vector<1x2048xf32>
    %17 = vector.broadcast %16 : vector<1x2048xf32> to vector<8x2048xf32>
    %18 = arith.mulf %15, %17 : vector<8x2048xf32>
    %19 = vector.extract_strided_slice %7 {offsets = [2, 0], sizes = [1, 2048], strides = [1, 1]} : vector<3x2048xf32> to vector<1x2048xf32>
    %20 = vector.broadcast %19 : vector<1x2048xf32> to vector<8x2048xf32>
    %21 = arith.addf %18, %20 : vector<8x2048xf32>
    %c0_9 = arith.constant 0 : index
    %c0_10 = arith.constant 0 : index
    %22 = vector.load %arg7[%c0_9, %c0_10] : memref<8x1024xf32, #tpu.memory_space<vmem>>, vector<8x1024xf32>
    %23 = arith.truncf %21 : vector<8x2048xf32> to vector<8x2048xbf16>
    %c0_11 = arith.constant 0 : index
    %c0_12 = arith.constant 0 : index
    %24 = vector.load %arg5[%c0_11, %c0_12] : memref<2048x1024xbf16, #tpu.memory_space<vmem>>, vector<2048x1024xbf16>
    %cst_13 = arith.constant dense<0.000000e+00> : vector<8x1024xf32>
    %25 = tpu.matmul %23, %24, %cst_13 {dimension_numbers = #tpu.dot_dimension_numbers<[1], [0], [0], [1], [0, 0, 1, 1], [], []>} : vector<8x2048xbf16>, vector<2048x1024xbf16>, vector<8x1024xf32> -> vector<8x1024xf32>
    %26 = arith.addf %22, %25 : vector<8x1024xf32>
    %c0_14 = arith.constant 0 : index
    %c0_15 = arith.constant 0 : index
    %27 = vector.load %arg7[%c0_14, %c0_15] : memref<8x1024xf32, #tpu.memory_space<vmem>>, vector<8x1024xf32>
    tpu.vector_store %arg7[%c0_14, %c0_15], %26 {strides = array<i32>} : memref<8x1024xf32, #tpu.memory_space<vmem>>, vector<8x1024xf32>,
    %c0_i32_16 = arith.constant 0 : i32
    %28 = arith.cmpi eq, %arg1, %c0_i32_16 : i32
    %29 = arith.extui %28 : i1 to i32
    %c0_i32_17 = arith.constant 0 : i32
    %30 = arith.cmpi ne, %29, %c0_i32_17 : i32
    scf.if %30 {
      %c0_18 = arith.constant 0 : index
      %c0_19 = arith.constant 0 : index
      %31 = vector.load %arg7[%c0_18, %c0_19] : memref<8x1024xf32, #tpu.memory_space<vmem>>, vector<8x1024xf32>
      %c0_20 = arith.constant 0 : index
      %c0_21 = arith.constant 0 : index
      %c0_22 = arith.constant 0 : index
      %32 = vector.load %arg6[%c0_20, %c0_21, %c0_22] : memref<1x8x1024xf32, #tpu.memory_space<vmem>>, vector<1x8x1024xf32>
      %33 = vector.shape_cast %32 : vector<1x8x1024xf32> to vector<8x1024xf32>
      %34 = vector.shape_cast %31 : vector<8x1024xf32> to vector<1x8x1024xf32>
      tpu.vector_store %arg6[%c0_20, %c0_21, %c0_22], %34 {strides = array<i32>} : memref<1x8x1024xf32, #tpu.memory_space<vmem>>, vector<1x8x1024xf32>,
    } else {
    }
    return
  }
  func.func @transform_0(%arg0: i32, %arg1: i32) -> (i32, i32) {
    %c0_i32 = arith.constant 0 : i32
    %c0_i32_0 = arith.constant 0 : i32
    %c0_i32_1 = arith.constant 0 : i32
    return %c0_i32, %c0_i32_0 : i32, i32
  }
  func.func @transform_1(%arg0: i32, %arg1: i32) -> (i32, i32, i32) {
    %c1_i32 = arith.constant 1 : i32
    %0 = arith.muli %arg0, %c1_i32 : i32
    %1 = arith.addi %0, %arg1 : i32
    %c0_i32 = arith.constant 0 : i32
    %c0_i32_0 = arith.constant 0 : i32
    %c0_i32_1 = arith.constant 0 : i32
    return %1, %c0_i32, %c0_i32_0 : i32, i32, i32
  }
  func.func @transform_2(%arg0: i32, %arg1: i32) -> (i32, i32) {
    %c1_i32 = arith.constant 1 : i32
    %0 = arith.muli %arg0, %c1_i32 : i32
    %1 = arith.addi %0, %arg1 : i32
    %c0_i32 = arith.constant 0 : i32
    %c0_i32_0 = arith.constant 0 : i32
    return %c0_i32, %1 : i32, i32
  }
  func.func @transform_3(%arg0: i32, %arg1: i32) -> (i32, i32) {
    %c1_i32 = arith.constant 1 : i32
    %0 = arith.muli %arg0, %c1_i32 : i32
    %1 = arith.addi %0, %arg1 : i32
    %c0_i32 = arith.constant 0 : i32
    %c0_i32_0 = arith.constant 0 : i32
    return %1, %c0_i32 : i32, i32
  }
  func.func @transform_4(%arg0: i32, %arg1: i32) -> (i32, i32, i32) {
    %c0_i32 = arith.constant 0 : i32
    %c0_i32_0 = arith.constant 0 : i32
    %c0_i32_1 = arith.constant 0 : i32
    return %arg0, %c0_i32, %c0_i32_0 : i32, i32, i32
  }
}

</mosaic_0001>

<bundles_post_ra>
// kernel: mlp2_forward.3
= control target key start
LH: loop header
LB: loop body
LE: loop exit
PB: predicated region body
PF: predicated region fallthrough
CT: control target
= control target key end

     0   :  { %v68_v36 = vlaneseq  ;;  %vm2135_vm10 = vmmov 0   ;;  %vm1564_vm12 = vcmask 523264   ;;  %vm1635_vm14 = vcmask 130048   ;;  %s2835_s2 = inlined_call_operand.vmem [shape: bf16[1024,256], index: 2, kind: input, shape index: {}]   ;;  %s2836_s0 = inlined_call_operand.vmem [shape: f32[2,8,1024], index: 0, kind: input, shape index: {}]   ;;  %s2837_s1 = inlined_call_operand.vmem [shape: f32[3,1024], index: 1, kind: input, shape index: {}]   ;;  %s2838_s4 = inlined_call_operand.vmem [shape: bf16[256,64], index: 4, kind: input, shape index: {}]   ;;  %s2839_s3 = inlined_call_operand.vmem [shape: f32[3,256], index: 3, kind: input, shape index: {}]   ;;  %s2840_s6 = inlined_call_operand.vmem [shape: bf16[64,16], index: 6, kind: input, shape index: {}]   ;;  %s2841_s5 = inlined_call_operand.vmem [shape: f32[3,64], index: 5, kind: input, shape index: {}]   ;;  %s2842_s8 = inlined_call_operand.vmem [shape: bf16[16,2], index: 8, kind: input, shape index: {}]   ;;  %s2843_s7 = inlined_call_operand.vmem [shape: f32[3,16], index: 7, kind: input, shape index: {}]   ;;  %s2844_s9 = inlined_call_operand.vmem [shape: f32[3,2], index: 9, kind: input, shape index: {}]   ;;  %s2845_s10 = inlined_call_operand.vmem [shape: f32[8,2], index: 10, kind: output, shape index: {}]  }
   0x1   :  { %v1917_v0 = vld [vmem:[%s2835_s2 + $0x4] ss:$8 sps:$4 sm:$0xff]   ;;  %v1921_v2 = vld [vmem:[%s2835_s2] ss:$8 sps:$4 sm:$0xff]   ;;  %v1923_v4 = vld [vmem:[%s2835_s2 + $0x14] ss:$8 sps:$4 sm:$0xff]  }
   0x2   :  { %v1919_v1 = vld [vmem:[%s2835_s2 + $0x204] ss:$8 sps:$4 sm:$0xff]   ;;  %1128 = vmatprep.subr.bf16.mxu1 %v1917_v0  ;;  %v1922_v3 = vld [vmem:[%s2835_s2 + $0x200] ss:$8 sps:$4 sm:$0xff]   ;;  %v1925_v5 = vld [vmem:[%s2835_s2 + $0x214] ss:$8 sps:$4 sm:$0xff]  }
   0x3   :  { %1210 = vmatprep.subr.bf16.mxu0 %v1919_v1  ;;  %1129 = vmatpush1.bf16.msra.mxu1 %v1921_v2  ;;  %v1927_v6 = vld [vmem:[%s2835_s2 + $0x10] ss:$8 sps:$4 sm:$0xff]   ;;  %v1929_v8 = vld [vmem:[%s2835_s2 + $0x24] ss:$8 sps:$4 sm:$0xff]   ;;  %v1933_v10 = vld [vmem:[%s2835_s2 + $0x20] ss:$8 sps:$4 sm:$0xff]  }
   0x4   :  { %1211 = vmatpush1.bf16.msra.mxu0 %v1922_v3  ;;  %1130 = vmatprep.subr.bf16.mxu1 %v1923_v4  ;;  %v1928_v7 = vld [vmem:[%s2835_s2 + $0x210] ss:$8 sps:$4 sm:$0xff]   ;;  %v1931_v9 = vld [vmem:[%s2835_s2 + $0x224] ss:$8 sps:$4 sm:$0xff]   ;;  %v1934_v11 = vld [vmem:[%s2835_s2 + $0x220] ss:$8 sps:$4 sm:$0xff]  }
   0x5   :  { %1212 = vmatprep.subr.bf16.mxu0 %v1925_v5  ;;  %v1935_v12 = vld [vmem:[%s2835_s2 + $0x34] ss:$8 sps:$4 sm:$0xff]   ;;  %v1939_v14 = vld [vmem:[%s2835_s2 + $0x30] ss:$8 sps:$4 sm:$0xff]   ;;  %v1941_v16 = vld [vmem:[%s2835_s2 + $0x44] ss:$8 sps:$4 sm:$0xff]  }
   0x6   :  { %v1937_v13 = vld [vmem:[%s2835_s2 + $0x234] ss:$8 sps:$4 sm:$0xff]   ;;  %v1940_v15 = vld [vmem:[%s2835_s2 + $0x230] ss:$8 sps:$4 sm:$0xff]   ;;  %v1943_v17 = vld [vmem:[%s2835_s2 + $0x244] ss:$8 sps:$4 sm:$0xff]  }
   0x7   :  { %1131 = vmatpush1.bf16.msra.mxu1 %v1927_v6  ;;  %v1945_v18 = vld [vmem:[%s2835_s2 + $0x40] ss:$8 sps:$4 sm:$0xff]   ;;  %v1947_v20 = vld [vmem:[%s2835_s2 + $0x54] ss:$8 sps:$4 sm:$0xff]   ;;  %v1951_v22 = vld [vmem:[%s2835_s2 + $0x50] ss:$8 sps:$4 sm:$0xff]  }
   0x8   :  { %1213 = vmatpush1.bf16.msra.mxu0 %v1928_v7  ;;  %1132 = vmatprep.subr.bf16.mxu1 %v1929_v8  ;;  %v1946_v19 = vld [vmem:[%s2835_s2 + $0x240] ss:$8 sps:$4 sm:$0xff]   ;;  %v1949_v21 = vld [vmem:[%s2835_s2 + $0x254] ss:$8 sps:$4 sm:$0xff]   ;;  %v1952_v23 = vld [vmem:[%s2835_s2 + $0x250] ss:$8 sps:$4 sm:$0xff]  }
   0x9   :  { %1214 = vmatprep.subr.bf16.mxu0 %v1931_v9  ;;  %v1953_v24 = vld [vmem:[%s2835_s2 + $0x64] ss:$8 sps:$4 sm:$0xff]   ;;  %v1957_v26 = vld [vmem:[%s2835_s2 + $0x60] ss:$8 sps:$4 sm:$0xff]   ;;  %v1959_v28 = vld [vmem:[%s2835_s2 + $0x74] ss:$8 sps:$4 sm:$0xff]  }
   0xa   :  { %v1955_v25 = vld [vmem:[%s2835_s2 + $0x264] ss:$8 sps:$4 sm:$0xff]   ;;  %v1958_v27 = vld [vmem:[%s2835_s2 + $0x260] ss:$8 sps:$4 sm:$0xff]   ;;  %v1961_v29 = vld [vmem:[%s2835_s2 + $0x274] ss:$8 sps:$4 sm:$0xff]  }
   0xb   :  { %1133 = vmatpush1.bf16.msra.mxu1 %v1933_v10  ;;  %v1963_v30 = vld [vmem:[%s2835_s2 + $0x70] ss:$8 sps:$4 sm:$0xff]   ;;  %v1965_v32 = vld [vmem:[%s2835_s2 + $0x84] ss:$8 sps:$4 sm:$0xff]   ;;  %v1969_v34 = vld [vmem:[%s2835_s2 + $0x80] ss:$8 sps:$4 sm:$0xff]  }
   0xc   :  { %1215 = vmatpush1.bf16.msra.mxu0 %v1934_v11  ;;  %1134 = vmatprep.subr.bf16.mxu1 %v1935_v12  ;;  %v1964_v31 = vld [vmem:[%s2835_s2 + $0x270] ss:$8 sps:$4 sm:$0xff]   ;;  %v1967_v33 = vld [vmem:[%s2835_s2 + $0x284] ss:$8 sps:$4 sm:$0xff]   ;;  %v1970_v35 = vld [vmem:[%s2835_s2 + $0x280] ss:$8 sps:$4 sm:$0xff]  }
   0xd   :  { %1216 = vmatprep.subr.bf16.mxu0 %v1937_v13  ;;  %v1971_v37 = vld [vmem:[%s2835_s2 + $0x94] ss:$8 sps:$4 sm:$0xff]   ;;  %v1975_v39 = vld [vmem:[%s2835_s2 + $0x90] ss:$8 sps:$4 sm:$0xff]   ;;  %v69_v40 = vshrl.u32 %v68_v36, 7  ;;  %v37_v55 = vld [vmem:[%s2836_s0 + $0x8] sm:$0xff] }
   0xe   :  { %v1973_v38 = vld [vmem:[%s2835_s2 + $0x294] ss:$8 sps:$4 sm:$0xff]   ;;  %v1976_v41 = vld [vmem:[%s2835_s2 + $0x290] ss:$8 sps:$4 sm:$0xff]   ;;  %v1977_v42 = vld [vmem:[%s2835_s2 + $0xa4] ss:$8 sps:$4 sm:$0xff]  }
   0xf   :  { %1135 = vmatpush1.bf16.msra.mxu1 %v1939_v14  ;;  %v1979_v43 = vld [vmem:[%s2835_s2 + $0x2a4] ss:$8 sps:$4 sm:$0xff]   ;;  %v1981_v44 = vld [vmem:[%s2835_s2 + $0xa0] ss:$8 sps:$4 sm:$0xff]   ;;  %v2323_v46 = vsub.s32 0, %v69_v40  ;;  %v2328_v48 = vsub.s32 4, %v69_v40 }
  0x10   :  { %1217 = vmatpush1.bf16.msra.mxu0 %v1940_v15  ;;  %1136 = vmatprep.subr.bf16.mxu1 %v1941_v16  ;;  %v1982_v45 = vld [vmem:[%s2835_s2 + $0x2a0] ss:$8 sps:$4 sm:$0xff]   ;;  %v1983_v47 = vld [vmem:[%s2835_s2 + $0xb4] ss:$8 sps:$4 sm:$0xff]   ;;  %v2330_v49 = vsub.s32 5, %v69_v40  ;;  %v2335_v51 = vsub.s32 1, %v69_v40 }
  0x11   :  { %1218 = vmatprep.subr.bf16.mxu0 %v1943_v17  ;;  %v1985_v50 = vld [vmem:[%s2835_s2 + $0x2b4] ss:$8 sps:$4 sm:$0xff]   ;;  %v2337_v52 = vsub.s32 6, %v69_v40  ;;  %v1987_v53 = vld [vmem:[%s2835_s2 + $0xb0] ss:$8 sps:$4 sm:$0xff]   ;;  %v45_v56 = vld [vmem:[%s2836_s0 + $0x48] sm:$0xff] }
  0x12   :  { %v1988_v54 = vld [vmem:[%s2835_s2 + $0x2b0] ss:$8 sps:$4 sm:$0xff]   ;;  %v2354_v57 = vld [vmem:[%s2837_s1] sm:$0x77]  ;;  %v2356_v58 = vsub.s32 2, %v69_v40  ;;  %v53_v61 = vadd.f32 %v45_v56, %v37_v55  ;;  %v41_v1 = vld [vmem:[%s2836_s0 + $0x28] sm:$0xff] }
  0x13   :  { %1137 = vmatpush1.bf16.msra.mxu1 %v1945_v18  ;;  %v1989_v59 = vld [vmem:[%s2835_s2 + $0xc4] ss:$8 sps:$4 sm:$0xff]   ;;  %v75_v62 = vrot.slane %v2354_v57, %v2328_v48  ;;  %v179_v63 = vrot.slane %v2354_v57, %v2330_v49  ;;  %v259_v0 = vrot.slane %v2354_v57, %v2337_v52  ;;  %v2379_v3 = vld [vmem:[%s2837_s1 + $0x10] sm:$0x77]  ;;  %v71_v4 = vrot.slane %v2354_v57, %v2323_v46  ;;  %v1993_v6 = vld [vmem:[%s2835_s2 + $0xc0] ss:$8 sps:$4 sm:$0xff]  }
  0x14   :  { %1219 = vmatpush1.bf16.msra.mxu0 %v1946_v19  ;;  %1138 = vmatprep.subr.bf16.mxu1 %v1947_v20  ;;  %v1991_v60 = vld [vmem:[%s2835_s2 + $0x2c4] ss:$8 sps:$4 sm:$0xff]   ;;  %v175_v5 = vrot.slane %v2354_v57, %v2335_v51  ;;  %v91_v9 = vrot.slane %v2379_v3, %v2328_v48  ;;  %v1994_v10 = vld [vmem:[%s2835_s2 + $0x2c0] ss:$8 sps:$4 sm:$0xff]   ;;  %v195_v13 = vrot.slane %v2379_v3, %v2330_v49 }
  0x15   :  { %1220 = vmatprep.subr.bf16.mxu0 %v1949_v21  ;;  %v49_v2 = vld [vmem:[%s2836_s0 + $0x68] sm:$0xff]  ;;  %v115_v7 = vrot.slane %v75_v62, %v2323_v46  ;;  %v219_v11 = vrot.slane %v179_v63, %v2335_v51  ;;  %v299_v12 = vrot.slane %v259_v0, %v2356_v58  ;;  %v36_v14 = vld [vmem:[%s2836_s0] sm:$0xff]  ;;  %v111_v16 = vrot.slane %v71_v4, %v2323_v46  ;;  %v2009_v62 = vld [vmem:[%s2835_s2 + $0x2f4] ss:$8 sps:$4 sm:$0xff]  }
  0x16   :  { %v57_v8 = vadd.f32 %v49_v2, %v41_v1  ;;  %v44_v15 = vld [vmem:[%s2836_s0 + $0x40] sm:$0xff]  ;;  %v131_v18 = vrot.slane %v91_v9, %v2323_v46 }
  0x17   :  { %1139 = vmatpush1.bf16.msra.mxu1 %v1951_v22  ;;  %v141_v17 = vadd.f32 %v115_v7, %v53_v61  ;;  %v52_v19 = vadd.f32 %v44_v15, %v36_v14  ;;  %v40_v20 = vld [vmem:[%s2836_s0 + $0x20] sm:$0xff]  ;;  %v1995_v22 = vld [vmem:[%s2835_s2 + $0xd4] ss:$8 sps:$4 sm:$0xff]   ;;  %v2012_v7 = vld [vmem:[%s2835_s2 + $0x2f0] ss:$8 sps:$4 sm:$0xff]  }
  0x18   :  { %1221 = vmatpush1.bf16.msra.mxu0 %v1952_v23  ;;  %1140 = vmatprep.subr.bf16.mxu1 %v1953_v24  ;;  %v48_v21 = vld [vmem:[%s2836_s0 + $0x60] sm:$0xff]  ;;  %v1997_v23 = vld [vmem:[%s2835_s2 + $0x2d4] ss:$8 sps:$4 sm:$0xff]   ;;  %v235_v24 = vrot.slane %v195_v13, %v2335_v51 }
  0x19   :  { %1222 = vmatprep.subr.bf16.mxu0 %v1955_v25  ;;  %v275_v25 = vrot.slane %v2379_v3, %v2337_v52  ;;  %vm149_vm0 = vcmp.gt.f32.partialorder %v141_v17, 0.0  ;;  %v2001_v36 = vld [vmem:[%s2835_s2 + $0xe4] ss:$8 sps:$4 sm:$0xff]   ;;  %v2016_v14 = vld [vmem:[%s2835_s2 + $0x300] ss:$8 sps:$4 sm:$0xff]  }
  0x1a   :  { %v2015_v9 = vld [vmem:[%s2835_s2 + $0x104] ss:$8 sps:$4 sm:$0xff]  }
  0x1b   :  { %1141 = vmatpush1.bf16.msra.mxu1 %v1957_v26  ;;  %v215_v26 = vrot.slane %v175_v5, %v2335_v51 }
  0x1c   :  { %1223 = vmatpush1.bf16.msra.mxu0 %v1958_v27  ;;  %1142 = vmatprep.subr.bf16.mxu1 %v1959_v28  ;;  %v157_v27 = vmul.f32 0.3, %v141_v17  ;;  %v145_v28 = vadd.f32 %v131_v18, %v57_v8  ;;  %v2019_v18 = vld [vmem:[%s2835_s2 + $0x110] ss:$8 sps:$4 sm:$0xff]  }
  0x1d   :  { %1224 = vmatprep.subr.bf16.mxu0 %v1961_v29  ;;  %v140_v29 = vadd.f32 %v111_v16, %v52_v19  ;;  %v2021_v16 = vld [vmem:[%s2835_s2 + $0x114] ss:$8 sps:$4 sm:$0xff]   ;;  %v2022_v19 = vld [vmem:[%s2835_s2 + $0x310] ss:$8 sps:$4 sm:$0xff]  }
  0x1e   :  { %vm153_vm1 = vcmp.gt.f32.partialorder %v145_v28, 0.0 }
  0x1f   :  { %1143 = vmatpush1.bf16.msra.mxu1 %v1963_v30  ;;  %v1999_v30 = vld [vmem:[%s2835_s2 + $0xd0] ss:$8 sps:$4 sm:$0xff]   ;;  %vm148_vm2 = vcmp.gt.f32.partialorder %v140_v29, 0.0 }
  0x20   :  { %1225 = vmatpush1.bf16.msra.mxu0 %v1964_v31  ;;  %1144 = vmatprep.subr.bf16.mxu1 %v1965_v32  ;;  %v2000_v31 = vld [vmem:[%s2835_s2 + $0x2d0] ss:$8 sps:$4 sm:$0xff]   ;;  %v255_v32 = vrot.slane %v2354_v57, %v2356_v58 }
  0x21   :  { %1226 = vmatprep.subr.bf16.mxu0 %v1967_v33  ;;  %v56_v33 = vadd.f32 %v48_v21, %v40_v20  ;;  %v2027_v20 = vld [vmem:[%s2835_s2 + $0x124] ss:$8 sps:$4 sm:$0xff]  }
  0x22   :  { %v2030_v21 = vld [vmem:[%s2835_s2 + $0x324] ss:$8 sps:$4 sm:$0xff]  }
  0x23   :  { %1145 = vmatpush1.bf16.msra.mxu1 %v1969_v34  ;;  %v87_v34 = vrot.slane %v2379_v3, %v2323_v46 }
  0x24   :  { %1227 = vmatpush1.bf16.msra.mxu0 %v1970_v35  ;;  %1146 = vmatprep.subr.bf16.mxu1 %v1971_v37  ;;  %v191_v35 = vrot.slane %v2379_v3, %v2335_v51  ;;  %v165_v37 = vsel %vm149_vm0, %v141_v17, %v157_v27  ;;  %v2024_v17 = vld [vmem:[%s2835_s2 + $0x314] ss:$8 sps:$4 sm:$0xff]   ;;  %v2034_v27 = vld [vmem:[%s2835_s2 + $0x330] ss:$8 sps:$4 sm:$0xff]   ;;  %vm1698_vm0 = vcmask 15360  }
  0x25   :  { %1228 = vmatprep.subr.bf16.mxu0 %v1973_v38  ;;  %v161_v38 = vmul.f32 0.3, %v145_v28  ;;  %v245_v40 = vmul.f32 %v219_v11, %v165_v37  ;;  %v2054_v37 = vld [vmem:[%s2835_s2 + $0x364] ss:$8 sps:$4 sm:$0xff]  }
  0x26   :  { %v231_v61 = vrot.slane %v191_v35, %v2335_v51  ;;  %v2046_v35 = vld [vmem:[%s2835_s2 + $0x350] ss:$8 sps:$4 sm:$0xff]  }
  0x27   :  { %1147 = vmatpush1.bf16.msra.mxu1 %v1975_v39  ;;  %v2003_v39 = vld [vmem:[%s2835_s2 + $0x2e4] ss:$8 sps:$4 sm:$0xff]  }
  0x28   :  { %1229 = vmatpush1.bf16.msra.mxu0 %v1976_v41  ;;  %1148 = vmatprep.subr.bf16.mxu1 %v1977_v42  ;;  %v315_v41 = vrot.slane %v275_v25, %v2356_v58  ;;  %v156_v42 = vmul.f32 0.3, %v140_v29  ;;  %v2036_v25 = vld [vmem:[%s2835_s2 + $0x334] ss:$8 sps:$4 sm:$0xff]  }
  0x29   :  { %1230 = vmatprep.subr.bf16.mxu0 %v1979_v43  ;;  %v127_v43 = vrot.slane %v87_v34, %v2323_v46  ;;  %v2043_v34 = vld [vmem:[%s2835_s2 + $0x150] ss:$8 sps:$4 sm:$0xff]  }
  0x2a   :  { %v164_v56 = vsel %vm148_vm2, %v140_v29, %v156_v42  ;;  %v2042_v29 = vld [vmem:[%s2835_s2 + $0x344] ss:$8 sps:$4 sm:$0xff]   ;;  %v39_v42 = vld [vmem:[%s2836_s0 + $0x18] sm:$0xff] }
  0x2b   :  { %1149 = vmatpush1.bf16.msra.mxu1 %v1981_v44  ;;  %v169_v44 = vsel %vm153_vm1, %v145_v28, %v161_v38  ;;  %v144_v57 = vadd.f32 %v127_v43, %v56_v33  ;;  %v2039_v28 = vld [vmem:[%s2835_s2 + $0x144] ss:$8 sps:$4 sm:$0xff]   ;;  %v2048_v33 = vld [vmem:[%s2835_s2 + $0x354] ss:$8 sps:$4 sm:$0xff]   ;;  %v2049_v38 = vld [vmem:[%s2835_s2 + $0x160] ss:$8 sps:$4 sm:$0xff]  }
  0x2c   :  { %1231 = vmatpush1.bf16.msra.mxu0 %v1982_v45  ;;  %1150 = vmatprep.subr.bf16.mxu1 %v1983_v47  ;;  %v295_v45 = vrot.slane %v255_v32, %v2356_v58  ;;  %v271_v47 = vrot.slane %v2379_v3, %v2356_v58  ;;  %v249_v55 = vmul.f32 %v235_v24, %v169_v44  ;;  %v2011_v3 = vld [vmem:[%s2835_s2 + $0xf0] ss:$8 sps:$4 sm:$0xff]   ;;  %v2033_v24 = vld [vmem:[%s2835_s2 + $0x134] ss:$8 sps:$4 sm:$0xff]   ;;  %v2564_v44 = vld [vmem:[%s2837_s1 + $0x8] sm:$0x77] }
  0x2d   :  { %1232 = vmatprep.subr.bf16.mxu0 %v1985_v50  ;;  %v2005_v50 = vld [vmem:[%s2835_s2 + $0xe0] ss:$8 sps:$4 sm:$0xff]   ;;  %vm152_vm3 = vcmp.gt.f32.partialorder %v144_v57, 0.0  ;;  %v160_v1 = vmul.f32 0.3, %v144_v57  ;;  %v47_v43 = vld [vmem:[%s2836_s0 + $0x58] sm:$0xff] }
  0x2e   :  { %v329_v0 = vadd.f32 %v315_v41, %v249_v55  ;;  %v311_v2 = vrot.slane %v271_v47, %v2356_v58  ;;  %v2045_v32 = vld [vmem:[%s2835_s2 + $0x154] ss:$8 sps:$4 sm:$0xff]   ;;  %v55_v47 = vadd.f32 %v47_v43, %v39_v42  ;;  %v2055_v55 = vld [vmem:[%s2835_s2 + $0x170] ss:$8 sps:$4 sm:$0xff]  }
  0x2f   :  { %1151 = vmatpush1.bf16.msra.mxu1 %v1987_v53  ;;  %v2006_v53 = vld [vmem:[%s2835_s2 + $0x2e0] ss:$8 sps:$4 sm:$0xff]   ;;  %v2060_v41 = vld [vmem:[%s2835_s2 + $0x374] ss:$8 sps:$4 sm:$0xff]   ;;  %v2079_v42 = vld [vmem:[%s2835_s2 + $0x1b0] ss:$8 sps:$4 sm:$0xff]  }
  0x30   :  { %1233 = vmatpush1.bf16.msra.mxu0 %v1988_v54  ;;  %1152 = vmatprep.subr.bf16.mxu1 %v1989_v59  ;;  %v325_v54 = vadd.f32 %v299_v12, %v245_v40  ;;  %v2007_v59 = vld [vmem:[%s2835_s2 + $0xf4] ss:$8 sps:$4 sm:$0xff]   ;;  %v337_v4 = vpack.c.bf16 %v329_v0, %v329_v0  ;;  %v2013_v12 = vld [vmem:[%s2835_s2 + $0x100] ss:$8 sps:$4 sm:$0xff]   ;;  %v2082_v43 = vld [vmem:[%s2835_s2 + $0x3b0] ss:$8 sps:$4 sm:$0xff]  }
  0x31   :  { %1234 = vmatprep.subr.bf16.mxu0 %v1991_v60  ;;  %v244_v60 = vmul.f32 %v215_v26, %v164_v56  ;;  %v2031_v26 = vld [vmem:[%s2835_s2 + $0x130] ss:$8 sps:$4 sm:$0xff]   ;;  %v2057_v40 = vld [vmem:[%s2835_s2 + $0x174] ss:$8 sps:$4 sm:$0xff]  }
  0x32   :  { %v333_v63 = vpack.c.bf16 %v325_v54, %v325_v54  ;;  %1242 = vmatprep.mubr.bf16.mxu0 %v337_v4  ;;  %v2577_v54 = vld [vmem:[%s2837_s1 + $0x18] sm:$0x77] }
  0x33   :  { %1153 = vmatpush1.bf16.msra.mxu1 %v1993_v6  ;;  %v324_v5 = vadd.f32 %v295_v45, %v244_v60  ;;  %v168_v6 = vsel %vm152_vm3, %v144_v57, %v160_v1  ;;  %v43_v45 = vld [vmem:[%s2836_s0 + $0x38] sm:$0xff]  ;;  %v2063_v57 = vld [vmem:[%s2835_s2 + $0x184] ss:$8 sps:$4 sm:$0xff]   ;;  %v203_v0 = vrot.slane %v2577_v54, %v2330_v49  ;;  %v2061_v1 = vld [vmem:[%s2835_s2 + $0x180] ss:$8 sps:$4 sm:$0xff]  }
  0x34   :  { %1235 = vmatpush1.bf16.msra.mxu0 %v1994_v10  ;;  %1154 = vmatprep.subr.bf16.mxu1 %v1995_v22  ;;  %v248_v8 = vmul.f32 %v231_v61, %v168_v6  ;;  %v2018_v10 = vld [vmem:[%s2835_s2 + $0x304] ss:$8 sps:$4 sm:$0xff]   ;;  %v2025_v22 = vld [vmem:[%s2835_s2 + $0x120] ss:$8 sps:$4 sm:$0xff]   ;;  %v2058_v56 = vld [vmem:[%s2835_s2 + $0x370] ss:$8 sps:$4 sm:$0xff]   ;;  %v99_v61 = vrot.slane %v2577_v54, %v2328_v48 }
  0x35   :  { %1236 = vmatprep.subr.bf16.mxu0 %v1997_v23  ;;  %1160 = vmatprep.mubr.bf16.mxu1 %v333_v63  ;;  %v332_v13 = vpack.c.bf16 %v324_v5, %v324_v5  ;;  %v2028_v23 = vld [vmem:[%s2835_s2 + $0x320] ss:$8 sps:$4 sm:$0xff]   ;;  %v2069_v5 = vld [vmem:[%s2835_s2 + $0x194] ss:$8 sps:$4 sm:$0xff]  }
  0x36   :  { %v328_v11 = vadd.f32 %v311_v2, %v248_v8  ;;  %v2064_v2 = vld [vmem:[%s2835_s2 + $0x380] ss:$8 sps:$4 sm:$0xff]   ;;  %v139_v4 = vrot.slane %v99_v61, %v2323_v46  ;;  %v2072_v8 = vld [vmem:[%s2835_s2 + $0x394] ss:$8 sps:$4 sm:$0xff]  }
  0x37   :  { %1155 = vmatpush1.bf16.msra.mxu1 %v1999_v30  ;;  %v2037_v30 = vld [vmem:[%s2835_s2 + $0x140] ss:$8 sps:$4 sm:$0xff]  }
  0x38   :  { %1237 = vmatpush1.bf16.msra.mxu0 %v2000_v31  ;;  %1156 = vmatprep.subr.bf16.mxu1 %v2001_v36  ;;  %v336_v15 = vpack.c.bf16 %v328_v11, %v328_v11  ;;  %v2040_v31 = vld [vmem:[%s2835_s2 + $0x340] ss:$8 sps:$4 sm:$0xff]   ;;  %v2051_v36 = vld [vmem:[%s2835_s2 + $0x164] ss:$8 sps:$4 sm:$0xff]  }
  0x39   :  { %1238 = vmatprep.subr.bf16.mxu0 %v2003_v39  ;;  %v2052_v39 = vld [vmem:[%s2835_s2 + $0x360] ss:$8 sps:$4 sm:$0xff]  }
  0x3b   :  { %1157 = vmatpush1.bf16.msra.mxu1 %v2005_v50  ;;  %v83_v50 = vrot.slane %v2564_v44, %v2328_v48 }
  0x3c   :  { %1239 = vmatpush1.bf16.msra.mxu0 %v2006_v53  ;;  %1158 = vmatprep.subr.bf16.mxu1 %v2007_v59  ;;  %v51_v53 = vld [vmem:[%s2836_s0 + $0x78] sm:$0xff]  ;;  %v187_v59 = vrot.slane %v2564_v44, %v2330_v49 }
  0x3d   :  { %1240 = vmatprep.subr.bf16.mxu0 %v2009_v62  ;;  %v59_v60 = vadd.f32 %v51_v53, %v43_v45  ;;  %v2066_v62 = vld [vmem:[%s2835_s2 + $0x384] ss:$8 sps:$4 sm:$0xff]   ;;  %v123_v63 = vrot.slane %v83_v50, %v2323_v46 }
  0x3e   :  { %v2087_v50 = vld [vmem:[%s2835_s2 + $0x1c4] ss:$8 sps:$4 sm:$0xff]  }
  0x3f   :  { %1159 = vmatpush1.bf16.msra.mxu1 %v2011_v3  ;;  %v267_v3 = vrot.slane %v2564_v44, %v2337_v52  ;;  %v143_v6 = vadd.f32 %v123_v63, %v55_v47  ;;  %v2090_v53 = vld [vmem:[%s2835_s2 + $0x3c4] ss:$8 sps:$4 sm:$0xff]   ;;  %v2096_v63 = vld [vmem:[%s2835_s2 + $0x3d4] ss:$8 sps:$4 sm:$0xff]  }
  0x40   :  { %1241 = vmatpush1.bf16.msra.mxu0 %v2012_v7  ;;  %1169 = vmatprep.subr.bf16.mxu1 %v2015_v9  ;;  %v283_v7 = vrot.slane %v2577_v54, %v2337_v52  ;;  %v227_v9 = vrot.slane %v187_v59, %v2335_v51  ;;  %v2088_v59 = vld [vmem:[%s2835_s2 + $0x3c0] ss:$8 sps:$4 sm:$0xff]  }
  0x41   :  { %1251 = vmatprep.subr.bf16.mxu0 %v2018_v10  ;;  %v147_v10 = vadd.f32 %v139_v4, %v59_v60  ;;  %vm151_vm4 = vcmp.gt.f32.partialorder %v143_v6, 0.0  ;;  %v159_v11 = vmul.f32 0.3, %v143_v6  ;;  %v2091_v4 = vld [vmem:[%s2835_s2 + $0x1d0] ss:$8 sps:$4 sm:$0xff]  }
  0x42   :  { %1161 = vmatmul.mubr.bf16.vlgmr.msra.gmra.mrb[0].mxu1 %v332_v13  ;;  %v2067_v13 = vld [vmem:[%s2835_s2 + $0x190] ss:$8 sps:$4 sm:$0xff]  }
  0x43   :  { %1243 = vmatmul.mubr.bf16.vlgmr.msra.gmra.mrb[0].mxu0 %v336_v15  ;;  %1170 = vmatpush1.bf16.msra.mxu1 %v2013_v12  ;;  %v243_v12 = vrot.slane %v203_v0, %v2335_v51  ;;  %v307_v15 = vrot.slane %v267_v3, %v2356_v58  ;;  %vm155_vm5 = vcmp.gt.f32.partialorder %v147_v10, 0.0  ;;  %v279_v3 = vrot.slane %v2577_v54, %v2356_v58 }
  0x44   :  { %1252 = vmatpush1.bf16.msra.mxu0 %v2016_v14  ;;  %1171 = vmatprep.subr.bf16.mxu1 %v2021_v16  ;;  %v2070_v14 = vld [vmem:[%s2835_s2 + $0x390] ss:$8 sps:$4 sm:$0xff]   ;;  %v163_v16 = vmul.f32 0.3, %v147_v10 }
  0x45   :  { %1253 = vmatprep.subr.bf16.mxu0 %v2024_v17  ;;  %v38_v17 = vld [vmem:[%s2836_s0 + $0x10] sm:$0xff] }
  0x47   :  { %1172 = vmatpush1.bf16.msra.mxu1 %v2019_v18  ;;  %v46_v18 = vld [vmem:[%s2836_s0 + $0x50] sm:$0xff] }
  0x48   :  { %1254 = vmatpush1.bf16.msra.mxu0 %v2022_v19  ;;  %1173 = vmatprep.subr.bf16.mxu1 %v2027_v20  ;;  %v42_v19 = vld [vmem:[%s2836_s0 + $0x30] sm:$0xff]  ;;  %v167_v20 = vsel %vm151_vm4, %v143_v6, %v159_v11  ;;  %v319_v11 = vrot.slane %v279_v3, %v2356_v58 }
  0x49   :  { %1255 = vmatprep.subr.bf16.mxu0 %v2030_v21  ;;  %v323_v21 = vrot.slane %v283_v7, %v2356_v58 }
  0x4b   :  { %1174 = vmatpush1.bf16.msra.mxu1 %v2025_v22  ;;  %v79_v22 = vrot.slane %v2564_v44, %v2323_v46 }
  0x4c   :  { %1256 = vmatpush1.bf16.msra.mxu0 %v2028_v23  ;;  %1175 = vmatprep.subr.bf16.mxu1 %v2033_v24  ;;  %v247_v23 = vmul.f32 %v227_v9, %v167_v20  ;;  %v171_v24 = vsel %vm155_vm5, %v147_v10, %v163_v16  ;;  %v2109_v20 = vld [vmem:[%s2838_s4 + $0x40] sm:$0xff]  }
  0x4d   :  { %1257 = vmatprep.subr.bf16.mxu0 %v2036_v25  ;;  %v50_v25 = vld [vmem:[%s2836_s0 + $0x70] sm:$0xff] }
  0x4f   :  { %1176 = vmatpush1.bf16.msra.mxu1 %v2031_v26  ;;  %v95_v26 = vrot.slane %v2577_v54, %v2323_v46 }
  0x50   :  { %1258 = vmatpush1.bf16.msra.mxu0 %v2034_v27  ;;  %1177 = vmatprep.subr.bf16.mxu1 %v2039_v28  ;;  %v2075_v27 = vld [vmem:[%s2835_s2 + $0x1a4] ss:$8 sps:$4 sm:$0xff]  }
  0x51   :  { %1259 = vmatprep.subr.bf16.mxu0 %v2042_v29  ;;  %v2078_v28 = vld [vmem:[%s2835_s2 + $0x3a4] ss:$8 sps:$4 sm:$0xff]   ;;  %v251_v29 = vmul.f32 %v243_v12, %v171_v24  ;;  %v2097_v12 = vld [vmem:[%s2835_s2 + $0x1e0] ss:$8 sps:$4 sm:$0xff]  }
  0x52   :  { %v2111_v24 = vld [vmem:[%s2838_s4 + $0x48] sm:$0xff]  }
  0x53   :  { %1178 = vmatpush1.bf16.msra.mxu1 %v2037_v30  ;;  %v2073_v30 = vld [vmem:[%s2835_s2 + $0x1a0] ss:$8 sps:$4 sm:$0xff]  }
  0x54   :  { %1260 = vmatpush1.bf16.msra.mxu0 %v2040_v31  ;;  %1179 = vmatprep.subr.bf16.mxu1 %v2045_v32  ;;  %v2076_v31 = vld [vmem:[%s2835_s2 + $0x3a0] ss:$8 sps:$4 sm:$0xff]   ;;  %v327_v32 = vadd.f32 %v307_v15, %v247_v23  ;;  %v2108_v15 = vld [vmem:[%s2835_s2 + $0x3f4] ss:$8 sps:$4 sm:$0xff]  }
  0x55   :  { %1261 = vmatprep.subr.bf16.mxu0 %v2048_v33  ;;  %v331_v33 = vadd.f32 %v323_v21, %v251_v29  ;;  %v2110_v23 = vld [vmem:[%s2838_s4] sm:$0xff]   ;;  %v2116_v29 = vld [vmem:[%s2838_s4 + $0x18] sm:$0xff]  }
  0x57   :  { %1180 = vmatpush1.bf16.msra.mxu1 %v2043_v34  ;;  %v54_v34 = vadd.f32 %v46_v18, %v38_v17  ;;  %v2103_v18 = vld [vmem:[%s2835_s2 + $0x1f0] ss:$8 sps:$4 sm:$0xff]  }
  0x58   :  { %1262 = vmatpush1.bf16.msra.mxu0 %v2046_v35  ;;  %1181 = vmatprep.subr.bf16.mxu1 %v2051_v36  ;;  %v58_v35 = vadd.f32 %v50_v25, %v42_v19  ;;  %v2081_v36 = vld [vmem:[%s2835_s2 + $0x1b4] ss:$8 sps:$4 sm:$0xff]   ;;  %v2106_v19 = vld [vmem:[%s2835_s2 + $0x3f0] ss:$8 sps:$4 sm:$0xff]   ;;  %v2112_v25 = vld [vmem:[%s2838_s4 + $0x8] sm:$0xff]  }
  0x59   :  { %1263 = vmatprep.subr.bf16.mxu0 %v2054_v37  ;;  %v2084_v37 = vld [vmem:[%s2835_s2 + $0x3b4] ss:$8 sps:$4 sm:$0xff]  }
  0x5b   :  { %1182 = vmatpush1.bf16.msra.mxu1 %v2049_v38  ;;  %v335_v38 = vpack.c.bf16 %v327_v32, %v327_v32  ;;  %v2119_v32 = vld [vmem:[%s2838_s4 + $0x68] sm:$0xff]  }
  0x5c   :  { %1264 = vmatpush1.bf16.msra.mxu0 %v2052_v39  ;;  %1183 = vmatprep.subr.bf16.mxu1 %v2057_v40  ;;  %v119_v39 = vrot.slane %v79_v22, %v2323_v46  ;;  %v135_v40 = vrot.slane %v95_v26, %v2323_v46  ;;  %v2113_v26 = vld [vmem:[%s2838_s4 + $0x50] sm:$0xff]  }
  0x5d   :  { %1265 = vmatprep.subr.bf16.mxu0 %v2060_v41  ;;  %v339_v41 = vpack.c.bf16 %v331_v33, %v331_v33  ;;  %1201 = vmatprep.mubr.bf16.mxu1 %v335_v38  ;;  %v2120_v33 = vld [vmem:[%s2838_s4 + $0x28] sm:$0xff]   ;;  %v2134_v38 = vmov 0.0  }
  0x5e   :  { %v142_v45 = vadd.f32 %v119_v39, %v54_v34  ;;  %v146_v47 = vadd.f32 %v135_v40, %v58_v35  ;;  %v2121_v34 = vld [vmem:[%s2838_s4 + $0x70] sm:$0xff]   ;;  %v468_v39 = vld [vmem:[%s2839_s3] sm:$0x77] }
  0x5f   :  { %1184 = vmatpush1.bf16.msra.mxu1 %v2055_v55  ;;  %1283 = vmatprep.mubr.bf16.mxu0 %v339_v41  ;;  %v2085_v55 = vld [vmem:[%s2835_s2 + $0x1c0] ss:$8 sps:$4 sm:$0xff]   ;;  %v2122_v35 = vld [vmem:[%s2838_s4 + $0x30] sm:$0xff]   ;;  %v473_v40 = vrot.slane %v468_v39, %v2323_v46  ;;  %v477_v41 = vrot.slane %v468_v39, %v2328_v48 }
  0x60   :  { %1266 = vmatpush1.bf16.msra.mxu0 %v2058_v56  ;;  %1185 = vmatprep.subr.bf16.mxu1 %v2063_v57  ;;  %v183_v56 = vrot.slane %v2564_v44, %v2335_v51  ;;  %v199_v57 = vrot.slane %v2577_v54, %v2335_v51  ;;  %v158_v60 = vmul.f32 0.3, %v142_v45  ;;  %v162_v61 = vmul.f32 0.3, %v146_v47  ;;  %v2102_v54 = vld [vmem:[%s2835_s2 + $0x3e4] ss:$8 sps:$4 sm:$0xff]  }
  0x61   :  { %1267 = vmatprep.subr.bf16.mxu0 %v2066_v62  ;;  %v2093_v62 = vld [vmem:[%s2835_s2 + $0x1d4] ss:$8 sps:$4 sm:$0xff]   ;;  %vm150_vm6 = vcmp.gt.f32.partialorder %v142_v45, 0.0  ;;  %vm154_vm7 = vcmp.gt.f32.partialorder %v146_v47, 0.0 }
  0x62   :  { %v223_v0 = vrot.slane %v183_v56, %v2335_v51  ;;  %v166_v6 = vsel %vm150_vm6, %v142_v45, %v158_v60  ;;  %v170_v7 = vsel %vm154_vm7, %v146_v47, %v162_v61 }
  0x63   :  { %1186 = vmatpush1.bf16.msra.mxu1 %v2061_v1  ;;  %v263_v1 = vrot.slane %v2564_v44, %v2356_v58  ;;  %v2099_v44 = vld [vmem:[%s2835_s2 + $0x1e4] ss:$8 sps:$4 sm:$0xff]  }
  0x64   :  { %1268 = vmatpush1.bf16.msra.mxu0 %v2064_v2  ;;  %1187 = vmatprep.subr.bf16.mxu1 %v2069_v5  ;;  %v239_v2 = vrot.slane %v199_v57, %v2335_v51  ;;  %v2094_v5 = vld [vmem:[%s2835_s2 + $0x3d0] ss:$8 sps:$4 sm:$0xff]   ;;  %v1305_v57 = vrot.slane %v468_v39, %v2330_v49 }
  0x65   :  { %1269 = vmatprep.subr.bf16.mxu0 %v2072_v8  ;;  %v246_v8 = vmul.f32 %v223_v0, %v166_v6  ;;  %v303_v9 = vrot.slane %v263_v1, %v2356_v58  ;;  %v1325_v1 = vrot.slane %v468_v39, %v2337_v52 }
  0x66   :  { %v250_v10 = vmul.f32 %v239_v2, %v170_v7 }
  0x67   :  { %1188 = vmatpush1.bf16.msra.mxu1 %v2067_v13  ;;  %v2100_v13 = vld [vmem:[%s2835_s2 + $0x3e0] ss:$8 sps:$4 sm:$0xff]   ;;  %v326_v16 = vadd.f32 %v303_v9, %v246_v8 }
  0x68   :  { %1270 = vmatpush1.bf16.msra.mxu0 %v2070_v14  ;;  %1189 = vmatprep.subr.bf16.mxu1 %v2075_v27  ;;  %v2105_v14 = vld [vmem:[%s2835_s2 + $0x1f4] ss:$8 sps:$4 sm:$0xff]   ;;  %v330_v17 = vadd.f32 %v319_v11, %v250_v10 }
  0x69   :  { %1271 = vmatprep.subr.bf16.mxu0 %v2078_v28  ;;  %v334_v21 = vpack.c.bf16 %v326_v16, %v326_v16  ;;  %v2114_v27 = vld [vmem:[%s2838_s4 + $0x10] sm:$0xff]   ;;  %v2115_v28 = vld [vmem:[%s2838_s4 + $0x58] sm:$0xff]  }
  0x6a   :  { %v338_v22 = vpack.c.bf16 %v330_v17, %v330_v17  ;;  %v2128_v16 = vld [vmem:[%s2840_s6 + $0x18] sm:$0xff]   ;;  %v1372_v17 = vld [vmem:[%s2841_s5] sm:$0x7] }
  0x6b   :  { %1190 = vmatpush1.bf16.msra.mxu1 %v2073_v30  ;;  %v2117_v30 = vld [vmem:[%s2838_s4 + $0x60] sm:$0xff]  }
  0x6c   :  { %1272 = vmatpush1.bf16.msra.mxu0 %v2076_v31  ;;  %1191 = vmatprep.subr.bf16.mxu1 %v2081_v36  ;;  %v2118_v31 = vld [vmem:[%s2838_s4 + $0x20] sm:$0xff]   ;;  %v2123_v36 = vld [vmem:[%s2838_s4 + $0x78] sm:$0xff]  }
  0x6d   :  { %1273 = vmatprep.subr.bf16.mxu0 %v2084_v37  ;;  %v2124_v37 = vld [vmem:[%s2838_s4 + $0x38] sm:$0xff]  }
  0x6f   :  { %1192 = vmatpush1.bf16.msra.mxu1 %v2079_v42  ;;  %v483_v42 = vrot.slane %v473_v40, %v2323_v46 }
  0x70   :  { %1274 = vmatpush1.bf16.msra.mxu0 %v2082_v43  ;;  %1193 = vmatprep.subr.bf16.mxu1 %v2087_v50  ;;  %v487_v43 = vrot.slane %v477_v41, %v2323_v46  ;;  %v1301_v50 = vrot.slane %v468_v39, %v2335_v51 }
  0x71   :  { %1275 = vmatprep.subr.bf16.mxu0 %v2090_v53 }
  0x72   :  { %v1311_v2 = vrot.slane %v1301_v50, %v2335_v51 }
  0x73   :  { %1194 = vmatpush1.bf16.msra.mxu1 %v2085_v55 }
  0x74   :  { %1276 = vmatpush1.bf16.msra.mxu0 %v2088_v59  ;;  %1195 = vmatprep.subr.bf16.mxu1 %v2093_v62  ;;  %v1321_v62 = vrot.slane %v468_v39, %v2356_v58 }
  0x75   :  { %1277 = vmatprep.subr.bf16.mxu0 %v2096_v63 }
  0x76   :  { %v1331_v49 = vrot.slane %v1321_v62, %v2356_v58 }
  0x77   :  { %1196 = vmatpush1.bf16.msra.mxu1 %v2091_v4 }
  0x78   :  { %1278 = vmatpush1.bf16.msra.mxu0 %v2094_v5  ;;  %1197 = vmatprep.subr.bf16.mxu1 %v2099_v44  ;;  %v1315_v5 = vrot.slane %v1305_v57, %v2335_v51  ;;  %v1335_v44 = vrot.slane %v1325_v1, %v2356_v58 }
  0x79   :  { %1279 = vmatprep.subr.bf16.mxu0 %v2102_v54 }
  0x7b   :  { %1198 = vmatpush1.bf16.msra.mxu1 %v2097_v12 }
  0x7c   :  { %1280 = vmatpush1.bf16.msra.mxu0 %v2100_v13  ;;  %1199 = vmatprep.subr.bf16.mxu1 %v2105_v14  ;;  %v2125_v13 = vld [vmem:[%s2840_s6] sm:$0xff]   ;;  %v2126_v14 = vld [vmem:[%s2840_s6 + $0x8] sm:$0xff]  }
  0x7d   :  { %1281 = vmatprep.subr.bf16.mxu0 %v2108_v15  ;;  %v2127_v15 = vld [vmem:[%s2840_s6 + $0x10] sm:$0xff]  }
  0x7f   :  { %1200 = vmatpush1.bf16.msra.mxu1 %v2103_v18 }
  0x80   :  { %1282 = vmatpush1.bf16.msra.mxu0 %v2106_v19  ;;  %1885 = vmatprep.subr.bf16.mxu1 %v2134_v38  ;;  %v1376_v19 = vrot.slane %v1372_v17, %v2323_v46 }
  0x81   :  { %1856 = vmatprep.subr.bf16.mxu0 %v2109_v20 }
  0x82   :  { %1202 = vmatmul.mubr.bf16.vlgmr.msra.gmra.mrb[0].mxu1 %v334_v21 }
  0x83   :  { %1284 = vmatmul.mubr.bf16.vlgmr.msra.gmra.mrb[0].mxu0 %v338_v22  ;;  %1886 = vmatpush3.bf16.msra.mxu1 %v2125_v13 }
  0x84   :  { %1857 = vmatpush3.bf16.msra.mxu0 %v2110_v23  ;;  %1887 = vmatprep.subr.bf16.mxu1 %v2134_v38 }
  0x85   :  { %1858 = vmatprep.subr.bf16.mxu0 %v2111_v24  ;;  %1893 = vmatprep.mubr.msk.bf16.mxu1 %vm2135_vm10, %v2134_v38 }
  0x87   :  { %1888 = vmatpush3.bf16.msra.mxu1 %v2126_v14 }
  0x88   :  { %1859 = vmatpush3.bf16.msra.mxu0 %v2112_v25  ;;  %1889 = vmatprep.subr.bf16.mxu1 %v2134_v38  ;;  %v1519_v25 = vrot.slane %v1372_v17, %v2335_v51 }
  0x89   :  { %1860 = vmatprep.subr.bf16.mxu0 %v2113_v26 }
  0x8b   :  { %1890 = vmatpush3.bf16.msra.mxu1 %v2127_v15 }
  0x8c   :  { %1861 = vmatpush3.bf16.msra.mxu0 %v2114_v27  ;;  %1891 = vmatprep.subr.bf16.mxu1 %v2134_v38  ;;  %v1524_v27 = vrot.slane %v1372_v17, %v2356_v58 }
  0x8d   :  { %1862 = vmatprep.subr.bf16.mxu0 %v2115_v28 }
  0x8f   :  { %1892 = vmatpush3.bf16.msra.mxu1 %v2128_v16 }
  0x90   :  { %1863 = vmatpush3.bf16.msra.mxu0 %v2116_v29  ;;  %1897 = vmatprep.subr.bf16.mxu1 %v2134_v38 }
  0x91   :  { %1864 = vmatprep.subr.bf16.mxu0 %v2117_v30 }
  0x94   :  { %1865 = vmatpush3.bf16.msra.mxu0 %v2118_v31 }
  0x95   :  { %1866 = vmatprep.subr.bf16.mxu0 %v2119_v32  ;;  %v2129_v32 = vld [vmem:[%s2842_s8] sm:$0xff]  }
  0x98   :  { %1867 = vmatpush3.bf16.msra.mxu0 %v2120_v33  ;;  %v1535_v33 = vld [vmem:[%s2843_s7] sm:$0x7] }
  0x99   :  { %1868 = vmatprep.subr.bf16.mxu0 %v2121_v34  ;;  %v1539_v34 = vrot.slane %v1535_v33, %v2323_v46  ;;  %v1614_v39 = vrot.slane %v1535_v33, %v2335_v51 }
  0x9c   :  { %1869 = vmatpush3.bf16.msra.mxu0 %v2122_v35 }
  0x9d   :  { %1870 = vmatprep.subr.bf16.mxu0 %v2123_v36 }
  0xa0   :  { %1871 = vmatpush3.bf16.msra.mxu0 %v2124_v37 }
 0x155   :  { %v1203_v45 = vpop.f32.mrb[0].mxu1 }
 0x156   :  { %v1285_v47 = vpop.f32.mrb[0].mxu0  ;;  %v1903_v53 = vadd.f32 %v1203_v45, %v483_v42  ;;  %v1205_v55 = vpop.f32.mrb[1].mxu1  ;;  %v1619_v42 = vrot.slane %v1535_v33, %v2356_v58 }
 0x157   :  { %v1287_v56 = vpop.f32.mrb[1].mxu0  ;;  %v1905_v59 = vadd.f32 %v1205_v55, %v487_v43  ;;  %v1207_v60 = vpop.f32.mrb[2].mxu1 }
 0x158   :  { %v1289_v61 = vpop.f32.mrb[2].mxu0  ;;  %v1904_v63 = vadd.f32 %v1903_v53, %v1285_v47  ;;  %v1208_v48 = vpop.f32.mrb[3].mxu1  ;;  %v1624_v53 = vld [vmem:[%s2844_s9] sm:$0x7] }
 0x159   :  { %v1290_v0 = vpop.f32.mrb[3].mxu0  ;;  %v1906_v3 = vadd.f32 %v1905_v59, %v1287_v56  ;;  %v1628_v55 = vrot.slane %v1624_v53, %v2323_v46  ;;  %v1685_v60 = vrot.slane %v1624_v53, %v2335_v51  ;;  %v1690_v48 = vrot.slane %v1624_v53, %v2356_v58 }
 0x15a   :  { %vm1292_vm8 = vcmp.gt.f32.partialorder %v1904_v63, 0.0  ;;  %v1294_v4 = vmul.f32 0.3, %v1904_v63 }
 0x15b   :  { %vm1293_vm9 = vcmp.gt.f32.partialorder %v1906_v3, 0.0  ;;  %v1295_v6 = vmul.f32 0.3, %v1906_v3 }
 0x15c   :  { %v1296_v7 = vsel %vm1292_vm8, %v1904_v63, %v1294_v4 }
 0x15d   :  { %v1316_v54 = vmul.f32 %v1311_v2, %v1296_v7  ;;  %v1297_v8 = vsel %vm1293_vm9, %v1906_v3, %v1295_v6 }
 0x15e   :  { %v1317_v9 = vmul.f32 %v1315_v5, %v1297_v8 }
 0x15f   :  { %v1336_v10 = vadd.f32 %v1331_v49, %v1316_v54 }
 0x160   :  { %v1337_v11 = vadd.f32 %v1335_v44, %v1317_v9 }
 0x161   :  { %v1338_v12 = vpack.c.bf16 %v1336_v10, %v1336_v10 }
 0x162   :  { %v1339_v52 = vpack.c.bf16 %v1337_v11, %v1337_v11 }
 0x164   :  { %1505 = vmatprep.mubr.bf16.mxu0 %v1339_v52 }
 0x165   :  { %1506 = vmatmul.mubr.bf16.vlgmr.msra.gmra.mrb[4].mxu0 %v1338_v12 }
 0x238   :  { %v1872_v18 = vpop.f32.mrb[4].mxu0 }
 0x239   :  { %v1873_v20 = vpop.f32.mrb[5].mxu0 }
 0x23a   :  { %v1874_v21 = vadd.f32 %v1873_v20, %v1872_v18  ;;  %v1875_v22 = vpop.f32.mrb[6].mxu0 }
 0x23b   :  { %v1876_v23 = vpop.f32.mrb[7].mxu0 }
 0x23c   :  { %v1508_v24 = vadd.f32 %v1874_v21, %v1376_v19 }
 0x23e   :  { %vm1513_vm11 = vcmp.gt.f32.partialorder %v1508_v24, 0.0  ;;  %v1514_v26 = vmul.f32 0.3, %v1508_v24 }
 0x240   :  { %v1515_v28 = vsel %vm1513_vm11, %v1508_v24, %v1514_v26 }
 0x241   :  { %v1520_v29 = vmul.f32 %v1519_v25, %v1515_v28 }
 0x243   :  { %v1525_v30 = vadd.f32 %v1524_v27, %v1520_v29 }
 0x245   :  { %v1526_v31 = vpack.c.bf16 %v1525_v30, %v1525_v30 }
 0x247   :  { %1894 = vmatmul.mubr.msk.bf16.vlgmr.msra.gmra.mrb[4].mxu1 %vm1564_vm12, %v1526_v31 }
 0x248   :  { %1899 = vmatprep.mubr.msk.bf16.mxu1 %vm2135_vm10, %v2134_v38  ;;  %1898 = vmatpush3.bf16.msra.mxu1 %v2129_v32 }
 0x31a   :  { %v1602_v35 = vpop.f32.mrb[4].mxu1 }
 0x31b   :  { %v1603_v36 = vadd.f32 %v1602_v35, %v1539_v34  ;;  %v1895_v37 = vpop.f32.mrb[5].mxu1 }
 0x31c   :  { %v1605_v40 = vpop.f32.mrb[6].mxu1 }
 0x31d   :  { %vm1608_vm13 = vcmp.gt.f32.partialorder %v1603_v36, 0.0  ;;  %v1609_v41 = vmul.f32 0.3, %v1603_v36  ;;  %v1896_v38 = vpop.f32.mrb[7].mxu1 }
 0x31f   :  { %v1610_v43 = vsel %vm1608_vm13, %v1603_v36, %v1609_v41 }
 0x320   :  { %v1615_v45 = vmul.f32 %v1614_v39, %v1610_v43 }
 0x322   :  { %v1620_v47 = vadd.f32 %v1619_v42, %v1615_v45 }
 0x324   :  { %v1621_v50 = vpack.c.bf16 %v1620_v47, %v1620_v47 }
 0x326   :  { %1900 = vmatmul.mubr.msk.bf16.vlgmr.msra.gmra.mrb[8].mxu1 %vm1635_vm14, %v1621_v50 }
 0x3f9   :  { %v1673_v56 = vpop.f32.mrb[8].mxu1 }
 0x3fa   :  { %v1674_v57 = vadd.f32 %v1673_v56, %v1628_v55  ;;  %v1901_v59 = vpop.f32.mrb[9].mxu1 }
 0x3fb   :  { %v1676_v61 = vpop.f32.mrb[10].mxu1 }
 0x3fc   :  { %vm1679_vm15 = vcmp.gt.f32.partialorder %v1674_v57, 0.0  ;;  %v1680_v62 = vmul.f32 0.3, %v1674_v57  ;;  %v1902_v63 = vpop.f32.mrb[11].mxu1 }
 0x3fe   :  { %v1681_v0 = vsel %vm1679_vm15, %v1674_v57, %v1680_v62 }
 0x3ff   :  { %v1686_v1 = vmul.f32 %v1685_v60, %v1681_v0 }
 0x401   :  { %v1691_v2 = vadd.f32 %v1690_v48, %v1686_v1 }
 0x403   :  { %v1855_v3 = vmul.f32 -1.442695, %v1691_v2 }
 0x405   :  { %2130 = vpow2.f32 %v1855_v3 }
 0x40f   :  { %v2131_v4 = vpop.eup %2130 }
 0x410   :  { %v1695_v5 = vadd.f32 1.0, %v2131_v4 }
 0x412   :  { %2132 = vrcp.f32 %v1695_v5 }
 0x41c   :  { %v2133_v46 = vpop.eup %2132 }
 0x41d   :  { %1699 = vst.msk [vmem:[%s2845_s10] sm:$0xff] %vm1698_vm0, %v2133_v46 }

// kernel: mlp2_forward.2
= control target key start
LH: loop header
LB: loop body
LE: loop exit
PB: predicated region body
PF: predicated region fallthrough
CT: control target
= control target key end

     0   :  { %9 = vsyncpa [#allocation4], 0  ;;  %s16410_s0 = inlined_call_operand.vmem [shape: bf16[8,512], index: 0, kind: input, shape index: {}]   ;;  %s16411_s1 = inlined_call_operand.hbm [shape: bf16[2,512,2048], index: 1, kind: input, shape index: {}]   ;;  %s16412_s2 = inlined_call_operand.hbm [shape: f32[3,4096], index: 2, kind: input, shape index: {}]   ;;  %s16413_s3 = inlined_call_operand.hbm [shape: bf16[4096,1024], index: 3, kind: input, shape index: {}]   ;;  %s16414_s4 = inlined_call_operand.vmem [shape: f32[2,8,1024], index: 4, kind: output, shape index: {}]  }
   0x1   :  { %11 = vsyncpa [#allocation4 + $0x1], 0 }
   0x2   :  { %12 = vsyncpa [#allocation6], 0 }
   0x3   :  { %14 = vsyncpa [#allocation6 + $0x1], 0  ;;  %s14226_s15 = smov 0   ;;  %s14228_s16 = smov 0  }
   0x4   :  { %s14230_s17 = smov 0   ;;  %s14232_s18 = smov 0  }
   0x5   :  { %s14234_s19 = smov 0   ;;  %s14236_s20 = smov 0  }
   0x6 LB: > { %s16416_s21 = sadd.s32 4294967295, %s14192_s20   ;;  %s32_s22 = sadd.s32 1, %s14188_s19  ;;  %s14192_s20 = sphi %s14236_s20, %s20_s20   ;;  %s14188_s19 = sphi %s14234_s19, %s16428_s19   ;;  %s14184_s18 = sphi %s14232_s18, %s16427_s18   ;;  %s14180_s17 = sphi %s14230_s17, %s16426_s17   ;;  %s14176_s16 = sphi %s14228_s16, %s16425_s16   ;;  %s14172_s15 = sphi %s14226_s15, %s16424_s15  }
   0x7   : > { %p34_p0 = scmp.ge.s32.totalorder %s32_s22, 2  ;;  %s62_s23 = sadd.s32 1, %s14180_s17 }
   0x8   : > { %p69_p1 = scmp.ne.s32.totalorder %s14180_s17, %s14176_s16  ;;  %p70_p2 = scmp.eq.s32.totalorder %s14192_s20, 0 }
   0x9   : > { %s16430_s22 = smov (%p34_p0, %s32_s22), 0  ;;  %p75_p4 = scmp.ne.s32.totalorder %s14176_s16, %s14172_s15 }
   0xa   : > { %p71_p3 = por %p70_p2, %p69_p1  ;;  %s59_s24 = ssub.s32 %s14188_s19, %s16430_s22 }
   0xb   : > { %p76_p5 = scmp.eq.s32.totalorder %s16416_s21, 0  ;;  %p60_p6 = scmp.eq.s32.totalorder %s59_s24, 0 }
   0xc   : > { %p13983_p8 = scmp.lt.s32.totalorder %s14192_s20, 2  ;;  %s14276_s27 = sand.u32 1, %s14180_s17  }
   0xd   : > { %p14267_p7 = por %p76_p5, %p75_p4  ;;  %s206_s29 = sand.u32 1, %s14192_s20  }
   0xe   : > { %s14273_s26 = scalar_select %p60_p6, %s14180_s17, %s62_s23  }
   0xf   : > { %s16417_s25 = scalar_select %p14267_p7, 1, 0 }
  0x10   : > { %p14278_p9 = pnand %p13983_p8, %p71_p3  ;;  %s12247_s30 = sshll.u32 %s14276_s27, 6 }
  0x11   : > { %s13803_s5 = sshll.u32 %s14188_s19, 10  ;;  %s210_s9 = scalar_lea.vmem [#allocation5], %s12247_s30 }
  0x12   : > { %s14288_s8 = scalar_lea.hbm %s16412_s2, %s13803_s5  ;;  %s219_s10 = sshll.u32 %s210_s9, 4  ;;  %s14290_s10 = int_to_ptr.vmem [resolvable:$true] %s219_s10 }
  0x13   : > { %s12250_s11 = sshll.u32 %s14276_s27, 13  ;;  %s14293_s12 = scalar_lea.sflag [#allocation6], %s206_s29 }
  0x14   : > { %s14048_s13 = scalar_lea.hbm %s14288_s8, 1024  ;;  %p14299_p11 = pneg %p14278_p9 }
  0x15   : > { %p14049_p10 = scmp.ne.s32.totalorder %s14288_s8, %s14048_s13  ;;  %s14053_s24 = scalar_lea.hbm %s16412_s2, 2048 }
  0x16   : > { %p14054_p0 = scmp.lt.u32.totalorder %s14288_s8, %s16412_s2  ;;  %p14055_p1 = scmp.lt.u32.totalorder %s14053_s24, %s14048_s13 }
  0x17   : > { %p14051_p12 = pnand %p14299_p11, %p14049_p10  ;;  %p14057_p3 = scmp.lt.u32.totalorder %s14048_s13, %s14288_s8 }
  0x18   : > { %p14056_p2 = por %p14055_p1, %p14054_p0 }
  0x19   : > { %p14052_p13 = pneg %p14051_p12 }
  0x1a   : > { %p14058_p4 = por %p14057_p3, %p14056_p2 }
  0x1c   : > { %p14059_p5 = pnand %p14058_p4, %p14052_p13 }
  0x1e   : > { %14062 = shalt.err (!%p14059_p5)
}
  0x1f   : > { %s14063_s29 = scalar_lea.vmem %s14290_s10, 1024  ;;  %s14194_s6 = smov [#allocation5]  }
  0x20   : > { %p14064_p6 = scmp.ne.s32.totalorder %s14290_s10, %s14063_s29  ;;  %s14068_s7 = sshll.u32 %s14194_s6, 4  ;;  %s14069_s7 = int_to_ptr.vmem [resolvable:$false] %s14068_s7 }
  0x21   : > { %s14070_s9 = scalar_lea.vmem %s14069_s7, 2048  ;;  %p14071_p12 = scmp.lt.s32.totalorder %s14290_s10, %s14069_s7 }
  0x22   : > { %p14066_p8 = pnand %p14064_p6, %p14299_p11  ;;  %p14072_p7 = scmp.lt.s32.totalorder %s14070_s9, %s14063_s29 }
  0x24   : > { %p14067_p10 = pneg %p14066_p8  ;;  %p14073_p0 = por %p14072_p7, %p14071_p12 }
  0x26   : > { %p14074_p1 = pnand %p14073_p0, %p14067_p10 }
  0x28   : > { %14077 = shalt.err (!%p14074_p1)
}
  0x29   : > { %13979 = dma.hbm_to_vmem [thread:$0]  (!%p14278_p9), %s14288_s8, 1024, %s14290_s10, %s14293_s12  }
  0x2a   : > { %p12254_p13 = scmp.ge.s32.totalorder %s14192_s20, 1  ;;  %p247_p2 = scmp.lt.s32.totalorder %s14192_s20, 3 }
  0x2b   : > { %s12244_s15 = sshll.u32 %s14276_s27, 12  ;;  %s13802_s23 = sshll.u32 %s14188_s19, 16 }
  0x2c   : > { %p14325_p3 = pnand %p12254_p13, %p247_p2  ;;  %s14334_s5 = scalar_lea.hbm %s16411_s1, %s13802_s23 }
  0x2d   : > { %s188_s29 = scalar_lea.vmem [#allocation3], %s12244_s15  ;;  %s185_s8 = scalar_lea.sflag [#allocation4], %s14276_s27 }
  0x2e   : > { %s16420_s13 = scalar_select %p14325_p3, 1, 0 }
  0x2f   : > { %s196_s6 = sshll.u32 %s188_s29, 4  ;;  %s14078_s10 = scalar_lea.hbm %s14334_s5, 65536  ;;  %s14336_s6 = int_to_ptr.vmem [resolvable:$true] %s196_s6 }
  0x30   : > { %p14079_p7 = scmp.ne.s32.totalorder %s14334_s5, %s14078_s10  ;;  %s14083_s24 = scalar_lea.hbm %s16411_s1, 131072 }
  0x31   : > { %p14084_p6 = scmp.lt.u32.totalorder %s14334_s5, %s16411_s1  ;;  %p14085_p8 = scmp.lt.u32.totalorder %s14083_s24, %s14078_s10 }
  0x32   : > { %p14081_p4 = pnand %p14079_p7, %p14299_p11  ;;  %p14087_p12 = scmp.lt.u32.totalorder %s14078_s10, %s14334_s5 }
  0x33   : > { %p14086_p10 = por %p14085_p8, %p14084_p6 }
  0x34   : > { %p14082_p5 = pneg %p14081_p4 }
  0x35   : > { %p14088_p0 = por %p14087_p12, %p14086_p10 }
  0x37   : > { %p14089_p1 = pnand %p14088_p0, %p14082_p5 }
  0x39   : > { %14092 = shalt.err (!%p14089_p1)
}
  0x3a   : > { %s14093_s15 = scalar_lea.vmem %s14336_s6, 65536  ;;  %s14195_s29 = smov [#allocation3]  }
  0x3b   : > { %p14094_p13 = scmp.ne.s32.totalorder %s14336_s6, %s14093_s15  ;;  %s14098_s7 = sshll.u32 %s14195_s29, 4  ;;  %s14099_s7 = int_to_ptr.vmem [resolvable:$false] %s14098_s7 }
  0x3c   : > { %s14100_s9 = scalar_lea.vmem %s14099_s7, 131072  ;;  %p14101_p4 = scmp.lt.s32.totalorder %s14336_s6, %s14099_s7 }
  0x3d   : > { %p14096_p2 = pnand %p14094_p13, %p14299_p11  ;;  %p14102_p3 = scmp.lt.s32.totalorder %s14100_s9, %s14093_s15 }
  0x3f   : > { %p14097_p7 = pneg %p14096_p2  ;;  %p14103_p6 = por %p14102_p3, %p14101_p4 }
  0x41   : > { %p14104_p8 = pnand %p14103_p6, %p14097_p7 }
  0x43   : > { %14107 = shalt.err (!%p14104_p8)
}
  0x44   : > { %s14196_s10 = smov 1024   ;;  %s14197_s24 = smov 64  }
  0x45   : > { %13976 = dma.hbm_to_vmem [thread:$0]  (!%p14278_p9), %s14334_s5, 65536, %s14336_s6, %s185_s8, %s14196_s10, %s14196_s10, %s14197_s24  }
  0x46   : > { %s13805_s23 = sshll.u32 %s14188_s19, 17  ;;  %s230_s7 = scalar_lea.vmem [#allocation7], %s12250_s11 }
  0x47   : > { %s14366_s15 = scalar_lea.hbm %s16413_s3, %s13805_s23  ;;  %s239_s9 = sshll.u32 %s230_s7, 4  ;;  %s14370_s9 = int_to_ptr.vmem [resolvable:$true] %s239_s9 }
  0x48   : > { %s14108_s21 = scalar_lea.hbm %s14366_s15, 131072  ;;  %s14113_s8 = scalar_lea.hbm %s16413_s3, 262144 }
  0x49   : > { %p14109_p3 = scmp.ne.s32.totalorder %s14366_s15, %s14108_s21  ;;  %p14114_p12 = scmp.lt.u32.totalorder %s14366_s15, %s16413_s3 }
  0x4a   : > { %p14115_p0 = scmp.lt.u32.totalorder %s14113_s8, %s14108_s21  ;;  %p14117_p13 = scmp.lt.u32.totalorder %s14108_s21, %s14366_s15 }
  0x4b   : > { %p14111_p5 = pnand %p14109_p3, %p14299_p11 }
  0x4c   : > { %p14116_p1 = por %p14115_p0, %p14114_p12 }
  0x4d   : > { %p14112_p10 = pneg %p14111_p5 }
  0x4e   : > { %p14118_p2 = por %p14117_p13, %p14116_p1 }
  0x50   : > { %p14119_p7 = pnand %p14118_p2, %p14112_p10 }
  0x52   : > { %14122 = shalt.err (!%p14119_p7)
}
  0x53   : > { %s14123_s27 = scalar_lea.vmem %s14370_s9, 131072  ;;  %s14198_s11 = smov [#allocation7]  }
  0x54   : > { %p14124_p4 = scmp.ne.s32.totalorder %s14370_s9, %s14123_s27  ;;  %s14128_s23 = sshll.u32 %s14198_s11, 4  ;;  %s14129_s23 = int_to_ptr.vmem [resolvable:$false] %s14128_s23 }
  0x55   : > { %s14130_s30 = scalar_lea.vmem %s14129_s23, 262144  ;;  %p14131_p3 = scmp.lt.s32.totalorder %s14370_s9, %s14129_s23 }
  0x56   : > { %p14126_p6 = pnand %p14124_p4, %p14299_p11  ;;  %p14132_p5 = scmp.lt.s32.totalorder %s14130_s30, %s14123_s27 }
  0x58   : > { %p14127_p8 = pneg %p14126_p6  ;;  %p14133_p12 = por %p14132_p5, %p14131_p3 }
  0x5a   : > { %p14134_p0 = pnand %p14133_p12, %p14127_p8 }
  0x5c   : > { %14137 = shalt.err (!%p14134_p0)
}
  0x5d   : > { %s14199_s21 = smov 512   ;;  %s14200_s29 = smov 32  }
  0x5e   : > { %13982 = dma.hbm_to_vmem [thread:$0]  (!%p14278_p9), %s14366_s15, 131072, %s14370_s9, %s14293_s12, %s14199_s21, %s14199_s21, %s14200_s29  }
  0x5f   : > { %p16421_p11 = scmp.ne.s32.totalorder %s16420_s13, 0 }
  0x60   : > { %s14397_s14 = sand.u32 (!%p16421_p11), 1, %s14176_s16   ;;  %p16422_p10 = scmp.ne.s32.totalorder (!%p16421_p11), %s16417_s25, 0 }
  0x61   : > { %251 = sbr.rel (%p16421_p11) target bundleno = 1865 (0x749), region = 36  ;;  %s12255_s7 = sshll.u32 (!%p16421_p11), %s14397_s14, 12 }
  0x62   : > { %s254_s5 = scalar_lea.sflag (!%p16421_p11), [#allocation4], %s14397_s14  ;;  %s14401_s6 = scalar_lea.vmem (!%p16421_p11), [#allocation3], %s12255_s7 }
  0x68   : > { %14163 = dma.done.wait (%p16422_p10), %s254_s5, 65536  }
  0x69   : > { %14165 = vsyncadd (%p16422_p10), %s254_s5, 4294901760  ;;  %s16423_s28 = sadd.s32 4294967295, %s14192_s20   ;;  %s12256_s13 = sshll.u32 %s14397_s14, 6 }
  0x6a   : > { %s262_s12 = sand.u32 1, %s16423_s28   ;;  %s14410_s9 = scalar_lea.vmem [#allocation5], %s12256_s13 }
  0x6b   : > { %s263_s15 = scalar_lea.sflag [#allocation6], %s262_s12 }
  0x6c   : > { %14167 = dma.done.wait (%p16422_p10), %s263_s15, 132096  }
  0x6d   : > { %14169 = vsyncadd (%p16422_p10), %s263_s15, 4294835200  ;;  %v334_v0 = vld [vmem:[%s14401_s6] sm:$0xff]  ;;  %v335_v2 = vld [vmem:[%s14401_s6 + $0x8] sm:$0xff]  ;;  %s12257_s27 = sshll.u32 %s14397_s14, 13  ;;  %p315_p9 = scmp.lt.s32.totalorder %s14184_s18, 1 }
  0x6e   : > { %v342_v1 = vld [vmem:[%s14401_s6 + $0x40] sm:$0xff]  ;;  %v343_v4 = vld [vmem:[%s14401_s6 + $0x48] sm:$0xff]  ;;  %s15081_s11 = scalar_lea.vmem [#allocation7], %s12257_s27 }
  0x6f   : > { %v12265_v3 = vcombine.high %v334_v0, %v342_v1  ;;  %v12264_v5 = vcombine.low %v334_v0, %v342_v1  ;;  %v350_v6 = vld [vmem:[%s14401_s6 + $0x80] sm:$0xff]  ;;  %v12267_v8 = vcombine.high %v335_v2, %v343_v4  ;;  %v12266_v9 = vcombine.low %v335_v2, %v343_v4  ;;  %v351_v11 = vld [vmem:[%s14401_s6 + $0x88] sm:$0xff]  ;;  %s16432_s18 = smov (!%p315_p9, %s14184_s18), 1 }
  0x70   : > { %v358_v7 = vld [vmem:[%s14401_s6 + $0xc0] sm:$0xff]  ;;  %v359_v12 = vld [vmem:[%s14401_s6 + $0xc8] sm:$0xff]  ;;  %s13806_s23 = sshll.u32 %s16432_s18, 6 }
  0x71   : > { %v12281_v10 = vcombine.high %v350_v6, %v358_v7  ;;  %v366_v13 = vld [vmem:[%s14401_s6 + $0x100] sm:$0xff]  ;;  %3580 = vmatprep.subr.bf16.mxu0 %v12265_v3  ;;  %v12283_v14 = vcombine.high %v351_v11, %v359_v12  ;;  %v367_v16 = vld [vmem:[%s14401_s6 + $0x108] sm:$0xff]  ;;  %3662 = vmatprep.subr.bf16.mxu1 %v12267_v8  ;;  %v12280_v18 = vcombine.low %v350_v6, %v358_v7  ;;  %s16072_s29 = scalar_lea.vmem %s16414_s4, %s13806_s23 }
  0x72   : > { %v374_v15 = vld [vmem:[%s14401_s6 + $0x140] sm:$0xff]  ;;  %v375_v17 = vld [vmem:[%s14401_s6 + $0x148] sm:$0xff]  ;;  %3581 = vmatpush1.bf16.msra.mxu0 %v12264_v5  ;;  %3663 = vmatpush1.bf16.msra.mxu1 %v12266_v9  ;;  %v12282_v19 = vcombine.low %v351_v11, %v359_v12 }
  0x73   : > { %3582 = vmatprep.subr.bf16.mxu0 %v12281_v10  ;;  %v12297_v20 = vcombine.high %v366_v13, %v374_v15  ;;  %3664 = vmatprep.subr.bf16.mxu1 %v12283_v14  ;;  %v12299_v21 = vcombine.high %v367_v16, %v375_v17  ;;  %v382_v22 = vld [vmem:[%s14401_s6 + $0x180] sm:$0xff]  ;;  %v383_v24 = vld [vmem:[%s14401_s6 + $0x188] sm:$0xff]  ;;  %v12296_v26 = vcombine.low %v366_v13, %v374_v15 }
  0x74   : > { %v390_v23 = vld [vmem:[%s14401_s6 + $0x1c0] sm:$0xff]  ;;  %v391_v25 = vld [vmem:[%s14401_s6 + $0x1c8] sm:$0xff]  ;;  %v12298_v27 = vcombine.low %v367_v16, %v375_v17 }
  0x75   : > { %v12313_v28 = vcombine.high %v382_v22, %v390_v23  ;;  %v12315_v29 = vcombine.high %v383_v24, %v391_v25  ;;  %v398_v30 = vld [vmem:[%s14401_s6 + $0x200] sm:$0xff]  ;;  %v399_v32 = vld [vmem:[%s14401_s6 + $0x208] sm:$0xff]  ;;  %v12312_v34 = vcombine.low %v382_v22, %v390_v23  ;;  %v12314_v35 = vcombine.low %v383_v24, %v391_v25 }
  0x76   : > { %3583 = vmatpush1.bf16.msra.mxu0 %v12280_v18  ;;  %3665 = vmatpush1.bf16.msra.mxu1 %v12282_v19  ;;  %v406_v31 = vld [vmem:[%s14401_s6 + $0x240] sm:$0xff]  ;;  %v407_v33 = vld [vmem:[%s14401_s6 + $0x248] sm:$0xff] }
  0x77   : > { %3584 = vmatprep.subr.bf16.mxu0 %v12297_v20  ;;  %3666 = vmatprep.subr.bf16.mxu1 %v12299_v21  ;;  %v12329_v36 = vcombine.high %v398_v30, %v406_v31  ;;  %v12331_v37 = vcombine.high %v399_v32, %v407_v33  ;;  %v414_v38 = vld [vmem:[%s14401_s6 + $0x280] sm:$0xff]  ;;  %v415_v40 = vld [vmem:[%s14401_s6 + $0x288] sm:$0xff]  ;;  %v12328_v42 = vcombine.low %v398_v30, %v406_v31 }
  0x78   : > { %v422_v39 = vld [vmem:[%s14401_s6 + $0x2c0] sm:$0xff]  ;;  %v423_v41 = vld [vmem:[%s14401_s6 + $0x2c8] sm:$0xff]  ;;  %v12330_v43 = vcombine.low %v399_v32, %v407_v33 }
  0x79   : > { %v12345_v44 = vcombine.high %v414_v38, %v422_v39  ;;  %v12347_v45 = vcombine.high %v415_v40, %v423_v41  ;;  %v430_v46 = vld [vmem:[%s14401_s6 + $0x300] sm:$0xff]  ;;  %v431_v48 = vld [vmem:[%s14401_s6 + $0x308] sm:$0xff]  ;;  %v12344_v50 = vcombine.low %v414_v38, %v422_v39  ;;  %v12346_v51 = vcombine.low %v415_v40, %v423_v41 }
  0x7a   : > { %3585 = vmatpush1.bf16.msra.mxu0 %v12296_v26  ;;  %3667 = vmatpush1.bf16.msra.mxu1 %v12298_v27  ;;  %v438_v47 = vld [vmem:[%s14401_s6 + $0x340] sm:$0xff]  ;;  %v439_v49 = vld [vmem:[%s14401_s6 + $0x348] sm:$0xff] }
  0x7b   : > { %3586 = vmatprep.subr.bf16.mxu0 %v12313_v28  ;;  %3668 = vmatprep.subr.bf16.mxu1 %v12315_v29  ;;  %v12361_v52 = vcombine.high %v430_v46, %v438_v47  ;;  %v14447_v53 = vld [vmem:[%s16410_s0] sm:$0xff]  ;;  %v12363_v54 = vcombine.high %v431_v48, %v439_v49  ;;  %v447_v58 = vld [vmem:[%s14401_s6 + $0x388] sm:$0xff]  ;;  %v12360_v60 = vcombine.low %v430_v46, %v438_v47 }
  0x7c   : > { %v446_v55 = vld [vmem:[%s14401_s6 + $0x380] sm:$0xff]  ;;  %v14453_v57 = vcombine.high %v14447_v53, %v14447_v53  ;;  %v455_v59 = vld [vmem:[%s14401_s6 + $0x3c8] sm:$0xff]  ;;  %v12362_v61 = vcombine.low %v431_v48, %v439_v49 }
  0x7d   : > { %v454_v56 = vld [vmem:[%s14401_s6 + $0x3c0] sm:$0xff]  ;;  %v12379_v63 = vcombine.high %v447_v58, %v455_v59  ;;  %v463_v2 = vld [vmem:[%s14401_s6 + $0x408] sm:$0xff]  ;;  %v12378_v5 = vcombine.low %v447_v58, %v455_v59 }
  0x7e   : > { %3587 = vmatpush1.bf16.msra.mxu0 %v12312_v34  ;;  %3669 = vmatpush1.bf16.msra.mxu1 %v12314_v35  ;;  %v12377_v62 = vcombine.high %v446_v55, %v454_v56  ;;  %v462_v0 = vld [vmem:[%s14401_s6 + $0x400] sm:$0xff]  ;;  %v471_v3 = vld [vmem:[%s14401_s6 + $0x448] sm:$0xff]  ;;  %v12376_v4 = vcombine.low %v446_v55, %v454_v56 }
  0x7f   : > { %3588 = vmatprep.subr.bf16.mxu0 %v12329_v36  ;;  %3670 = vmatprep.subr.bf16.mxu1 %v12331_v37  ;;  %v470_v1 = vld [vmem:[%s14401_s6 + $0x440] sm:$0xff]  ;;  %v12395_v7 = vcombine.high %v463_v2, %v471_v3  ;;  %v479_v10 = vld [vmem:[%s14401_s6 + $0x488] sm:$0xff]  ;;  %v12394_v13 = vcombine.low %v463_v2, %v471_v3 }
  0x80   : > { %3612 = vmatprep.mubr.bf16.mxu0 %v14453_v57  ;;  %3694 = vmatprep.mubr.bf16.mxu1 %v14453_v57  ;;  %v12393_v6 = vcombine.high %v462_v0, %v470_v1  ;;  %v478_v8 = vld [vmem:[%s14401_s6 + $0x480] sm:$0xff]  ;;  %v487_v11 = vld [vmem:[%s14401_s6 + $0x4c8] sm:$0xff]  ;;  %v12392_v12 = vcombine.low %v462_v0, %v470_v1 }
  0x81   : > { %v486_v9 = vld [vmem:[%s14401_s6 + $0x4c0] sm:$0xff]  ;;  %v12411_v15 = vcombine.high %v479_v10, %v487_v11  ;;  %v495_v18 = vld [vmem:[%s14401_s6 + $0x508] sm:$0xff]  ;;  %v12410_v21 = vcombine.low %v479_v10, %v487_v11 }
  0x82   : > { %3589 = vmatpush1.bf16.msra.mxu0 %v12328_v42  ;;  %3671 = vmatpush1.bf16.msra.mxu1 %v12330_v43  ;;  %v12409_v14 = vcombine.high %v478_v8, %v486_v9  ;;  %v494_v16 = vld [vmem:[%s14401_s6 + $0x500] sm:$0xff]  ;;  %v503_v19 = vld [vmem:[%s14401_s6 + $0x548] sm:$0xff]  ;;  %v12408_v20 = vcombine.low %v478_v8, %v486_v9 }
  0x83   : > { %3590 = vmatprep.subr.bf16.mxu0 %v12345_v44  ;;  %3672 = vmatprep.subr.bf16.mxu1 %v12347_v45  ;;  %v502_v17 = vld [vmem:[%s14401_s6 + $0x540] sm:$0xff]  ;;  %v12427_v23 = vcombine.high %v495_v18, %v503_v19  ;;  %v511_v26 = vld [vmem:[%s14401_s6 + $0x588] sm:$0xff]  ;;  %v12426_v29 = vcombine.low %v495_v18, %v503_v19 }
  0x84   : > { %v12425_v22 = vcombine.high %v494_v16, %v502_v17  ;;  %v510_v24 = vld [vmem:[%s14401_s6 + $0x580] sm:$0xff]  ;;  %v519_v27 = vld [vmem:[%s14401_s6 + $0x5c8] sm:$0xff]  ;;  %v12424_v28 = vcombine.low %v494_v16, %v502_v17 }
  0x85   : > { %v518_v25 = vld [vmem:[%s14401_s6 + $0x5c0] sm:$0xff]  ;;  %v12443_v31 = vcombine.high %v511_v26, %v519_v27  ;;  %v527_v34 = vld [vmem:[%s14401_s6 + $0x608] sm:$0xff]  ;;  %v12442_v37 = vcombine.low %v511_v26, %v519_v27 }
  0x86   : > { %3591 = vmatpush1.bf16.msra.mxu0 %v12344_v50  ;;  %3673 = vmatpush1.bf16.msra.mxu1 %v12346_v51  ;;  %v12441_v30 = vcombine.high %v510_v24, %v518_v25  ;;  %v526_v32 = vld [vmem:[%s14401_s6 + $0x600] sm:$0xff]  ;;  %v535_v35 = vld [vmem:[%s14401_s6 + $0x648] sm:$0xff]  ;;  %v12440_v36 = vcombine.low %v510_v24, %v518_v25 }
  0x87   : > { %3592 = vmatprep.subr.bf16.mxu0 %v12361_v52  ;;  %3674 = vmatprep.subr.bf16.mxu1 %v12363_v54  ;;  %v534_v33 = vld [vmem:[%s14401_s6 + $0x640] sm:$0xff]  ;;  %v12459_v39 = vcombine.high %v527_v34, %v535_v35  ;;  %v543_v42 = vld [vmem:[%s14401_s6 + $0x688] sm:$0xff]  ;;  %v12458_v45 = vcombine.low %v527_v34, %v535_v35 }
  0x88   : > { %v12457_v38 = vcombine.high %v526_v32, %v534_v33  ;;  %v542_v40 = vld [vmem:[%s14401_s6 + $0x680] sm:$0xff]  ;;  %v551_v43 = vld [vmem:[%s14401_s6 + $0x6c8] sm:$0xff]  ;;  %v12456_v44 = vcombine.low %v526_v32, %v534_v33 }
  0x89   : > { %v550_v41 = vld [vmem:[%s14401_s6 + $0x6c0] sm:$0xff]  ;;  %v12475_v47 = vcombine.high %v543_v42, %v551_v43  ;;  %v559_v50 = vld [vmem:[%s14401_s6 + $0x708] sm:$0xff]  ;;  %v12474_v54 = vcombine.low %v543_v42, %v551_v43 }
  0x8a   : > { %3593 = vmatpush1.bf16.msra.mxu0 %v12360_v60  ;;  %3675 = vmatpush1.bf16.msra.mxu1 %v12362_v61  ;;  %v12473_v46 = vcombine.high %v542_v40, %v550_v41  ;;  %v558_v48 = vld [vmem:[%s14401_s6 + $0x700] sm:$0xff]  ;;  %v567_v51 = vld [vmem:[%s14401_s6 + $0x748] sm:$0xff]  ;;  %v12472_v52 = vcombine.low %v542_v40, %v550_v41 }
  0x8b   : > { %3594 = vmatprep.subr.bf16.mxu0 %v12377_v62  ;;  %3676 = vmatprep.subr.bf16.mxu1 %v12379_v63  ;;  %v566_v49 = vld [vmem:[%s14401_s6 + $0x740] sm:$0xff]  ;;  %v12491_v56 = vcombine.high %v559_v50, %v567_v51  ;;  %v575_v60 = vld [vmem:[%s14401_s6 + $0x788] sm:$0xff]  ;;  %v12490_v63 = vcombine.low %v559_v50, %v567_v51 }
  0x8c   : > { %v12489_v55 = vcombine.high %v558_v48, %v566_v49  ;;  %v574_v58 = vld [vmem:[%s14401_s6 + $0x780] sm:$0xff]  ;;  %v583_v61 = vld [vmem:[%s14401_s6 + $0x7c8] sm:$0xff]  ;;  %v12488_v62 = vcombine.low %v558_v48, %v566_v49 }
  0x8d   : > { %v582_v59 = vld [vmem:[%s14401_s6 + $0x7c0] sm:$0xff]  ;;  %v12507_v1 = vcombine.high %v575_v60, %v583_v61 }
  0x8e   : > { %3595 = vmatpush1.bf16.msra.mxu0 %v12376_v4  ;;  %3677 = vmatpush1.bf16.msra.mxu1 %v12378_v5  ;;  %v12505_v0 = vcombine.high %v574_v58, %v582_v59  ;;  %v590_v2 = vld [vmem:[%s14401_s6 + $0x800] sm:$0xff]  ;;  %v591_v4 = vld [vmem:[%s14401_s6 + $0x808] sm:$0xff] }
  0x8f   : > { %3596 = vmatprep.subr.bf16.mxu0 %v12393_v6  ;;  %3678 = vmatprep.subr.bf16.mxu1 %v12395_v7  ;;  %v598_v3 = vld [vmem:[%s14401_s6 + $0x840] sm:$0xff]  ;;  %v599_v5 = vld [vmem:[%s14401_s6 + $0x848] sm:$0xff]  ;;  %v12504_v6 = vcombine.low %v574_v58, %v582_v59  ;;  %v12506_v7 = vcombine.low %v575_v60, %v583_v61 }
  0x90   : > { %v12521_v8 = vcombine.high %v590_v2, %v598_v3  ;;  %v12523_v9 = vcombine.high %v591_v4, %v599_v5  ;;  %v606_v10 = vld [vmem:[%s14401_s6 + $0x880] sm:$0xff]  ;;  %v12520_v16 = vcombine.low %v590_v2, %v598_v3  ;;  %v12522_v17 = vcombine.low %v591_v4, %v599_v5 }
  0x91   : > { %v614_v11 = vld [vmem:[%s14401_s6 + $0x8c0] sm:$0xff] }
  0x92   : > { %3597 = vmatpush1.bf16.msra.mxu0 %v12392_v12  ;;  %3679 = vmatpush1.bf16.msra.mxu1 %v12394_v13  ;;  %v14499_v12 = vcombine.low %v14447_v53, %v14447_v53  ;;  %v607_v13 = vld [vmem:[%s14401_s6 + $0x888] sm:$0xff]  ;;  %v12537_v18 = vcombine.high %v606_v10, %v614_v11  ;;  %v622_v53 = vld [vmem:[%s14401_s6 + $0x900] sm:$0xff]  ;;  %v12536_v24 = vcombine.low %v606_v10, %v614_v11 }
  0x93   : > { %3598 = vmatprep.subr.bf16.mxu0 %v12409_v14  ;;  %3680 = vmatprep.subr.bf16.mxu1 %v12411_v15  ;;  %v615_v14 = vld [vmem:[%s14401_s6 + $0x8c8] sm:$0xff] }
  0x94   : > { %v14506_v15 = vld [vmem:[%s16410_s0 + $0x8] sm:$0xff]  ;;  %v12539_v19 = vcombine.high %v607_v13, %v615_v14  ;;  %v12538_v25 = vcombine.low %v607_v13, %v615_v14 }
  0x96   : > { %3599 = vmatpush1.bf16.msra.mxu0 %v12408_v20  ;;  %3681 = vmatpush1.bf16.msra.mxu1 %v12410_v21  ;;  %v630_v20 = vld [vmem:[%s14401_s6 + $0x940] sm:$0xff]  ;;  %v14512_v21 = vcombine.high %v14506_v15, %v14506_v15 }
  0x97   : > { %3600 = vmatprep.subr.bf16.mxu0 %v12425_v22  ;;  %3682 = vmatprep.subr.bf16.mxu1 %v12427_v23  ;;  %v623_v22 = vld [vmem:[%s14401_s6 + $0x908] sm:$0xff]  ;;  %v12553_v26 = vcombine.high %v622_v53, %v630_v20  ;;  %v12552_v32 = vcombine.low %v622_v53, %v630_v20 }
  0x98   : > { %v631_v23 = vld [vmem:[%s14401_s6 + $0x948] sm:$0xff] }
  0x99   : > { %v12555_v27 = vcombine.high %v623_v22, %v631_v23  ;;  %v12554_v33 = vcombine.low %v623_v22, %v631_v23 }
  0x9a   : > { %3601 = vmatpush1.bf16.msra.mxu0 %v12424_v28  ;;  %3683 = vmatpush1.bf16.msra.mxu1 %v12426_v29  ;;  %v638_v28 = vld [vmem:[%s14401_s6 + $0x980] sm:$0xff] }
  0x9b   : > { %3602 = vmatprep.subr.bf16.mxu0 %v12441_v30  ;;  %3684 = vmatprep.subr.bf16.mxu1 %v12443_v31  ;;  %v646_v29 = vld [vmem:[%s14401_s6 + $0x9c0] sm:$0xff]  ;;  %v639_v30 = vld [vmem:[%s14401_s6 + $0x988] sm:$0xff] }
  0x9c   : > { %v647_v31 = vld [vmem:[%s14401_s6 + $0x9c8] sm:$0xff]  ;;  %v12569_v34 = vcombine.high %v638_v28, %v646_v29  ;;  %v12568_v40 = vcombine.low %v638_v28, %v646_v29 }
  0x9d   : > { %v12571_v35 = vcombine.high %v639_v30, %v647_v31  ;;  %v12570_v41 = vcombine.low %v639_v30, %v647_v31 }
  0x9e   : > { %3603 = vmatpush1.bf16.msra.mxu0 %v12440_v36  ;;  %3685 = vmatpush1.bf16.msra.mxu1 %v12442_v37  ;;  %v654_v36 = vld [vmem:[%s14401_s6 + $0xa00] sm:$0xff] }
  0x9f   : > { %3604 = vmatprep.subr.bf16.mxu0 %v12457_v38  ;;  %3686 = vmatprep.subr.bf16.mxu1 %v12459_v39  ;;  %v662_v37 = vld [vmem:[%s14401_s6 + $0xa40] sm:$0xff]  ;;  %v655_v38 = vld [vmem:[%s14401_s6 + $0xa08] sm:$0xff] }
  0xa0   : > { %v663_v39 = vld [vmem:[%s14401_s6 + $0xa48] sm:$0xff]  ;;  %v12585_v42 = vcombine.high %v654_v36, %v662_v37  ;;  %v12584_v48 = vcombine.low %v654_v36, %v662_v37 }
  0xa1   : > { %v12587_v43 = vcombine.high %v655_v38, %v663_v39  ;;  %v12586_v49 = vcombine.low %v655_v38, %v663_v39 }
  0xa2   : > { %3605 = vmatpush1.bf16.msra.mxu0 %v12456_v44  ;;  %3687 = vmatpush1.bf16.msra.mxu1 %v12458_v45  ;;  %v670_v44 = vld [vmem:[%s14401_s6 + $0xa80] sm:$0xff] }
  0xa3   : > { %3606 = vmatprep.subr.bf16.mxu0 %v12473_v46  ;;  %3688 = vmatprep.subr.bf16.mxu1 %v12475_v47  ;;  %v678_v45 = vld [vmem:[%s14401_s6 + $0xac0] sm:$0xff]  ;;  %v671_v46 = vld [vmem:[%s14401_s6 + $0xa88] sm:$0xff] }
  0xa4   : > { %v679_v47 = vld [vmem:[%s14401_s6 + $0xac8] sm:$0xff]  ;;  %v12601_v50 = vcombine.high %v670_v44, %v678_v45  ;;  %v12600_v58 = vcombine.low %v670_v44, %v678_v45 }
  0xa5   : > { %v12603_v51 = vcombine.high %v671_v46, %v679_v47  ;;  %v12602_v59 = vcombine.low %v671_v46, %v679_v47 }
  0xa6   : > { %3607 = vmatpush1.bf16.msra.mxu0 %v12472_v52  ;;  %3689 = vmatpush1.bf16.msra.mxu1 %v12474_v54  ;;  %v686_v52 = vld [vmem:[%s14401_s6 + $0xb00] sm:$0xff] }
  0xa7   : > { %3608 = vmatprep.subr.bf16.mxu0 %v12489_v55  ;;  %3690 = vmatprep.subr.bf16.mxu1 %v12491_v56  ;;  %v694_v54 = vld [vmem:[%s14401_s6 + $0xb40] sm:$0xff]  ;;  %v687_v55 = vld [vmem:[%s14401_s6 + $0xb08] sm:$0xff] }
  0xa8   : > { %v695_v56 = vld [vmem:[%s14401_s6 + $0xb48] sm:$0xff]  ;;  %v12617_v60 = vcombine.high %v686_v52, %v694_v54  ;;  %v12616_v2 = vcombine.low %v686_v52, %v694_v54 }
  0xa9   : > { %v12619_v61 = vcombine.high %v687_v55, %v695_v56  ;;  %v12618_v3 = vcombine.low %v687_v55, %v695_v56 }
  0xaa   : > { %3609 = vmatpush1.bf16.msra.mxu0 %v12488_v62  ;;  %3691 = vmatpush1.bf16.msra.mxu1 %v12490_v63  ;;  %v702_v62 = vld [vmem:[%s14401_s6 + $0xb80] sm:$0xff] }
  0xab   : > { %3610 = vmatprep.subr.bf16.mxu0 %v12505_v0  ;;  %3692 = vmatprep.subr.bf16.mxu1 %v12507_v1  ;;  %v710_v63 = vld [vmem:[%s14401_s6 + $0xbc0] sm:$0xff]  ;;  %v703_v0 = vld [vmem:[%s14401_s6 + $0xb88] sm:$0xff] }
  0xac   : > { %v711_v1 = vld [vmem:[%s14401_s6 + $0xbc8] sm:$0xff]  ;;  %v12633_v4 = vcombine.high %v702_v62, %v710_v63  ;;  %v12632_v10 = vcombine.low %v702_v62, %v710_v63 }
  0xad   : > { %v12635_v5 = vcombine.high %v703_v0, %v711_v1  ;;  %v12634_v11 = vcombine.low %v703_v0, %v711_v1 }
  0xae   : > { %3611 = vmatpush1.bf16.msra.mxu0 %v12504_v6  ;;  %3693 = vmatpush1.bf16.msra.mxu1 %v12506_v7  ;;  %v718_v6 = vld [vmem:[%s14401_s6 + $0xc00] sm:$0xff] }
  0xaf   : > { %3621 = vmatprep.subr.bf16.mxu0 %v12521_v8  ;;  %3703 = vmatprep.subr.bf16.mxu1 %v12523_v9  ;;  %v726_v7 = vld [vmem:[%s14401_s6 + $0xc40] sm:$0xff]  ;;  %v719_v8 = vld [vmem:[%s14401_s6 + $0xc08] sm:$0xff] }
  0xb0   : > { %v727_v9 = vld [vmem:[%s14401_s6 + $0xc48] sm:$0xff]  ;;  %v12649_v13 = vcombine.high %v718_v6, %v726_v7  ;;  %v12648_v53 = vcombine.low %v718_v6, %v726_v7 }
  0xb1   : > { %3613 = vmatmul.mubr.bf16.vlgmr.msra.gmra.mrb[0].mxu0 %v14499_v12  ;;  %3695 = vmatmul.mubr.bf16.vlgmr.msra.gmra.mrb[0].mxu1 %v14499_v12  ;;  %v12651_v14 = vcombine.high %v719_v8, %v727_v9  ;;  %v12650_v20 = vcombine.low %v719_v8, %v727_v9 }
  0xb2   : > { %3622 = vmatpush1.bf16.msra.mxu0 %v12520_v16  ;;  %3704 = vmatpush1.bf16.msra.mxu1 %v12522_v17  ;;  %v734_v16 = vld [vmem:[%s14401_s6 + $0xc80] sm:$0xff] }
  0xb3   : > { %3623 = vmatprep.subr.bf16.mxu0 %v12537_v18  ;;  %3705 = vmatprep.subr.bf16.mxu1 %v12539_v19  ;;  %v742_v17 = vld [vmem:[%s14401_s6 + $0xcc0] sm:$0xff]  ;;  %v735_v18 = vld [vmem:[%s14401_s6 + $0xc88] sm:$0xff] }
  0xb4   : > { %3653 = vmatprep.mubr.bf16.mxu0 %v14512_v21  ;;  %3735 = vmatprep.mubr.bf16.mxu1 %v14512_v21  ;;  %v743_v19 = vld [vmem:[%s14401_s6 + $0xcc8] sm:$0xff]  ;;  %v12665_v22 = vcombine.high %v734_v16, %v742_v17  ;;  %v12664_v28 = vcombine.low %v734_v16, %v742_v17 }
  0xb5   : > { %v12667_v23 = vcombine.high %v735_v18, %v743_v19  ;;  %v12666_v29 = vcombine.low %v735_v18, %v743_v19 }
  0xb6   : > { %3624 = vmatpush1.bf16.msra.mxu0 %v12536_v24  ;;  %3706 = vmatpush1.bf16.msra.mxu1 %v12538_v25  ;;  %v750_v24 = vld [vmem:[%s14401_s6 + $0xd00] sm:$0xff] }
  0xb7   : > { %3625 = vmatprep.subr.bf16.mxu0 %v12553_v26  ;;  %3707 = vmatprep.subr.bf16.mxu1 %v12555_v27  ;;  %v758_v25 = vld [vmem:[%s14401_s6 + $0xd40] sm:$0xff]  ;;  %v751_v26 = vld [vmem:[%s14401_s6 + $0xd08] sm:$0xff] }
  0xb8   : > { %v759_v27 = vld [vmem:[%s14401_s6 + $0xd48] sm:$0xff]  ;;  %v12681_v30 = vcombine.high %v750_v24, %v758_v25  ;;  %v12680_v36 = vcombine.low %v750_v24, %v758_v25  ;;  %v361_v24 = vld [vmem:[%s14401_s6 + $0xd8] sm:$0xff] }
  0xb9   : > { %v12683_v31 = vcombine.high %v751_v26, %v759_v27  ;;  %v12682_v37 = vcombine.low %v751_v26, %v759_v27 }
  0xba   : > { %3626 = vmatpush1.bf16.msra.mxu0 %v12552_v32  ;;  %3708 = vmatpush1.bf16.msra.mxu1 %v12554_v33  ;;  %v766_v32 = vld [vmem:[%s14401_s6 + $0xd80] sm:$0xff] }
  0xbb   : > { %3627 = vmatprep.subr.bf16.mxu0 %v12569_v34  ;;  %3709 = vmatprep.subr.bf16.mxu1 %v12571_v35  ;;  %v774_v33 = vld [vmem:[%s14401_s6 + $0xdc0] sm:$0xff]  ;;  %v767_v34 = vld [vmem:[%s14401_s6 + $0xd88] sm:$0xff] }
  0xbc   : > { %v775_v35 = vld [vmem:[%s14401_s6 + $0xdc8] sm:$0xff]  ;;  %v12697_v38 = vcombine.high %v766_v32, %v774_v33  ;;  %v12696_v44 = vcombine.low %v766_v32, %v774_v33 }
  0xbd   : > { %v12699_v39 = vcombine.high %v767_v34, %v775_v35  ;;  %v12698_v45 = vcombine.low %v767_v34, %v775_v35 }
  0xbe   : > { %3628 = vmatpush1.bf16.msra.mxu0 %v12568_v40  ;;  %3710 = vmatpush1.bf16.msra.mxu1 %v12570_v41  ;;  %v782_v40 = vld [vmem:[%s14401_s6 + $0xe00] sm:$0xff] }
  0xbf   : > { %3629 = vmatprep.subr.bf16.mxu0 %v12585_v42  ;;  %3711 = vmatprep.subr.bf16.mxu1 %v12587_v43  ;;  %v790_v41 = vld [vmem:[%s14401_s6 + $0xe40] sm:$0xff]  ;;  %v783_v42 = vld [vmem:[%s14401_s6 + $0xe08] sm:$0xff] }
  0xc0   : > { %v791_v43 = vld [vmem:[%s14401_s6 + $0xe48] sm:$0xff]  ;;  %v12713_v46 = vcombine.high %v782_v40, %v790_v41  ;;  %v12712_v52 = vcombine.low %v782_v40, %v790_v41 }
  0xc1   : > { %v12715_v47 = vcombine.high %v783_v42, %v791_v43  ;;  %v12714_v54 = vcombine.low %v783_v42, %v791_v43 }
  0xc2   : > { %3630 = vmatpush1.bf16.msra.mxu0 %v12584_v48  ;;  %3712 = vmatpush1.bf16.msra.mxu1 %v12586_v49  ;;  %v798_v48 = vld [vmem:[%s14401_s6 + $0xe80] sm:$0xff] }
  0xc3   : > { %3631 = vmatprep.subr.bf16.mxu0 %v12601_v50  ;;  %3713 = vmatprep.subr.bf16.mxu1 %v12603_v51  ;;  %v806_v49 = vld [vmem:[%s14401_s6 + $0xec0] sm:$0xff]  ;;  %v799_v50 = vld [vmem:[%s14401_s6 + $0xe88] sm:$0xff] }
  0xc4   : > { %v807_v51 = vld [vmem:[%s14401_s6 + $0xec8] sm:$0xff]  ;;  %v12729_v55 = vcombine.high %v798_v48, %v806_v49  ;;  %v12728_v62 = vcombine.low %v798_v48, %v806_v49 }
  0xc5   : > { %v12731_v56 = vcombine.high %v799_v50, %v807_v51  ;;  %v12730_v63 = vcombine.low %v799_v50, %v807_v51 }
  0xc6   : > { %3632 = vmatpush1.bf16.msra.mxu0 %v12600_v58  ;;  %3714 = vmatpush1.bf16.msra.mxu1 %v12602_v59  ;;  %v814_v58 = vld [vmem:[%s14401_s6 + $0xf00] sm:$0xff] }
  0xc7   : > { %3633 = vmatprep.subr.bf16.mxu0 %v12617_v60  ;;  %3715 = vmatprep.subr.bf16.mxu1 %v12619_v61  ;;  %v822_v59 = vld [vmem:[%s14401_s6 + $0xf40] sm:$0xff]  ;;  %v815_v60 = vld [vmem:[%s14401_s6 + $0xf08] sm:$0xff] }
  0xc8   : > { %v823_v61 = vld [vmem:[%s14401_s6 + $0xf48] sm:$0xff]  ;;  %v12745_v0 = vcombine.high %v814_v58, %v822_v59  ;;  %v12744_v6 = vcombine.low %v814_v58, %v822_v59 }
  0xc9   : > { %v12747_v1 = vcombine.high %v815_v60, %v823_v61  ;;  %v12746_v7 = vcombine.low %v815_v60, %v823_v61 }
  0xca   : > { %3634 = vmatpush1.bf16.msra.mxu0 %v12616_v2  ;;  %3716 = vmatpush1.bf16.msra.mxu1 %v12618_v3  ;;  %v830_v2 = vld [vmem:[%s14401_s6 + $0xf80] sm:$0xff] }
  0xcb   : > { %3635 = vmatprep.subr.bf16.mxu0 %v12633_v4  ;;  %3717 = vmatprep.subr.bf16.mxu1 %v12635_v5  ;;  %v838_v3 = vld [vmem:[%s14401_s6 + $0xfc0] sm:$0xff]  ;;  %v831_v4 = vld [vmem:[%s14401_s6 + $0xf88] sm:$0xff] }
  0xcc   : > { %v839_v5 = vld [vmem:[%s14401_s6 + $0xfc8] sm:$0xff]  ;;  %v12761_v8 = vcombine.high %v830_v2, %v838_v3  ;;  %v12760_v16 = vcombine.low %v830_v2, %v838_v3 }
  0xcd   : > { %v12763_v9 = vcombine.high %v831_v4, %v839_v5  ;;  %v12762_v17 = vcombine.low %v831_v4, %v839_v5 }
  0xce   : > { %3636 = vmatpush1.bf16.msra.mxu0 %v12632_v10  ;;  %3718 = vmatpush1.bf16.msra.mxu1 %v12634_v11  ;;  %v336_v10 = vld [vmem:[%s14401_s6 + $0x10] sm:$0xff] }
  0xcf   : > { %3637 = vmatprep.subr.bf16.mxu0 %v12649_v13  ;;  %3719 = vmatprep.subr.bf16.mxu1 %v12651_v14  ;;  %v344_v11 = vld [vmem:[%s14401_s6 + $0x50] sm:$0xff]  ;;  %v337_v13 = vld [vmem:[%s14401_s6 + $0x18] sm:$0xff] }
  0xd0   : > { %v345_v14 = vld [vmem:[%s14401_s6 + $0x58] sm:$0xff]  ;;  %v12269_v18 = vcombine.high %v336_v10, %v344_v11  ;;  %v12268_v25 = vcombine.low %v336_v10, %v344_v11 }
  0xd1   : > { %v12271_v19 = vcombine.high %v337_v13, %v345_v14  ;;  %v12270_v26 = vcombine.low %v337_v13, %v345_v14 }
  0xd2   : > { %3638 = vmatpush1.bf16.msra.mxu0 %v12648_v53  ;;  %3720 = vmatpush1.bf16.msra.mxu1 %v12650_v20  ;;  %v352_v53 = vld [vmem:[%s14401_s6 + $0x90] sm:$0xff] }
  0xd3   : > { %3639 = vmatprep.subr.bf16.mxu0 %v12665_v22  ;;  %3721 = vmatprep.subr.bf16.mxu1 %v12667_v23  ;;  %v360_v20 = vld [vmem:[%s14401_s6 + $0xd0] sm:$0xff]  ;;  %v14580_v22 = vcombine.low %v14506_v15, %v14506_v15  ;;  %v353_v23 = vld [vmem:[%s14401_s6 + $0x98] sm:$0xff] }
  0xd4   : > { %v12285_v27 = vcombine.high %v352_v53, %v360_v20  ;;  %v369_v15 = vld [vmem:[%s14401_s6 + $0x118] sm:$0xff]  ;;  %v12284_v32 = vcombine.low %v352_v53, %v360_v20  ;;  %v12286_v33 = vcombine.low %v353_v23, %v361_v24 }
  0xd6   : > { %3640 = vmatpush1.bf16.msra.mxu0 %v12664_v28  ;;  %3722 = vmatpush1.bf16.msra.mxu1 %v12666_v29  ;;  %v12287_v28 = vcombine.high %v353_v23, %v361_v24  ;;  %v368_v29 = vld [vmem:[%s14401_s6 + $0x110] sm:$0xff] }
  0xd7   : > { %3641 = vmatprep.subr.bf16.mxu0 %v12681_v30  ;;  %3723 = vmatprep.subr.bf16.mxu1 %v12683_v31  ;;  %v376_v30 = vld [vmem:[%s14401_s6 + $0x150] sm:$0xff]  ;;  %v377_v31 = vld [vmem:[%s14401_s6 + $0x158] sm:$0xff] }
  0xd8   : > { %v12301_v34 = vcombine.high %v368_v29, %v376_v30  ;;  %v12303_v35 = vcombine.high %v369_v15, %v377_v31  ;;  %v12300_v40 = vcombine.low %v368_v29, %v376_v30  ;;  %v12302_v41 = vcombine.low %v369_v15, %v377_v31 }
  0xda   : > { %3642 = vmatpush1.bf16.msra.mxu0 %v12680_v36  ;;  %3724 = vmatpush1.bf16.msra.mxu1 %v12682_v37  ;;  %v384_v36 = vld [vmem:[%s14401_s6 + $0x190] sm:$0xff] }
  0xdb   : > { %3643 = vmatprep.subr.bf16.mxu0 %v12697_v38  ;;  %3725 = vmatprep.subr.bf16.mxu1 %v12699_v39  ;;  %v392_v37 = vld [vmem:[%s14401_s6 + $0x1d0] sm:$0xff]  ;;  %v385_v38 = vld [vmem:[%s14401_s6 + $0x198] sm:$0xff] }
  0xdc   : > { %v393_v39 = vld [vmem:[%s14401_s6 + $0x1d8] sm:$0xff]  ;;  %v12317_v42 = vcombine.high %v384_v36, %v392_v37  ;;  %v12316_v48 = vcombine.low %v384_v36, %v392_v37 }
  0xdd   : > { %v12319_v43 = vcombine.high %v385_v38, %v393_v39  ;;  %v12318_v49 = vcombine.low %v385_v38, %v393_v39 }
  0xde   : > { %3644 = vmatpush1.bf16.msra.mxu0 %v12696_v44  ;;  %3726 = vmatpush1.bf16.msra.mxu1 %v12698_v45  ;;  %v400_v44 = vld [vmem:[%s14401_s6 + $0x210] sm:$0xff] }
  0xdf   : > { %3645 = vmatprep.subr.bf16.mxu0 %v12713_v46  ;;  %3727 = vmatprep.subr.bf16.mxu1 %v12715_v47  ;;  %v408_v45 = vld [vmem:[%s14401_s6 + $0x250] sm:$0xff]  ;;  %v401_v46 = vld [vmem:[%s14401_s6 + $0x218] sm:$0xff] }
  0xe0   : > { %v409_v47 = vld [vmem:[%s14401_s6 + $0x258] sm:$0xff]  ;;  %v12333_v50 = vcombine.high %v400_v44, %v408_v45  ;;  %v12332_v58 = vcombine.low %v400_v44, %v408_v45 }
  0xe1   : > { %v12335_v51 = vcombine.high %v401_v46, %v409_v47  ;;  %v12334_v59 = vcombine.low %v401_v46, %v409_v47 }
  0xe2   : > { %3646 = vmatpush1.bf16.msra.mxu0 %v12712_v52  ;;  %3728 = vmatpush1.bf16.msra.mxu1 %v12714_v54  ;;  %v416_v52 = vld [vmem:[%s14401_s6 + $0x290] sm:$0xff] }
  0xe3   : > { %3647 = vmatprep.subr.bf16.mxu0 %v12729_v55  ;;  %3729 = vmatprep.subr.bf16.mxu1 %v12731_v56  ;;  %v424_v54 = vld [vmem:[%s14401_s6 + $0x2d0] sm:$0xff]  ;;  %v417_v55 = vld [vmem:[%s14401_s6 + $0x298] sm:$0xff] }
  0xe4   : > { %v425_v56 = vld [vmem:[%s14401_s6 + $0x2d8] sm:$0xff]  ;;  %v12349_v60 = vcombine.high %v416_v52, %v424_v54  ;;  %v12348_v2 = vcombine.low %v416_v52, %v424_v54 }
  0xe5   : > { %v12351_v61 = vcombine.high %v417_v55, %v425_v56  ;;  %v12350_v3 = vcombine.low %v417_v55, %v425_v56 }
  0xe6   : > { %3648 = vmatpush1.bf16.msra.mxu0 %v12728_v62  ;;  %3730 = vmatpush1.bf16.msra.mxu1 %v12730_v63  ;;  %v432_v62 = vld [vmem:[%s14401_s6 + $0x310] sm:$0xff] }
  0xe7   : > { %3649 = vmatprep.subr.bf16.mxu0 %v12745_v0  ;;  %3731 = vmatprep.subr.bf16.mxu1 %v12747_v1  ;;  %v440_v63 = vld [vmem:[%s14401_s6 + $0x350] sm:$0xff]  ;;  %v433_v0 = vld [vmem:[%s14401_s6 + $0x318] sm:$0xff] }
  0xe8   : > { %v441_v1 = vld [vmem:[%s14401_s6 + $0x358] sm:$0xff]  ;;  %v12365_v4 = vcombine.high %v432_v62, %v440_v63  ;;  %v12364_v10 = vcombine.low %v432_v62, %v440_v63 }
  0xe9   : > { %v12367_v5 = vcombine.high %v433_v0, %v441_v1  ;;  %v12366_v11 = vcombine.low %v433_v0, %v441_v1 }
  0xea   : > { %3650 = vmatpush1.bf16.msra.mxu0 %v12744_v6  ;;  %3732 = vmatpush1.bf16.msra.mxu1 %v12746_v7  ;;  %v448_v6 = vld [vmem:[%s14401_s6 + $0x390] sm:$0xff] }
  0xeb   : > { %3651 = vmatprep.subr.bf16.mxu0 %v12761_v8  ;;  %3733 = vmatprep.subr.bf16.mxu1 %v12763_v9  ;;  %v456_v7 = vld [vmem:[%s14401_s6 + $0x3d0] sm:$0xff]  ;;  %v449_v8 = vld [vmem:[%s14401_s6 + $0x398] sm:$0xff] }
  0xec   : > { %v457_v9 = vld [vmem:[%s14401_s6 + $0x3d8] sm:$0xff]  ;;  %v12381_v13 = vcombine.high %v448_v6, %v456_v7  ;;  %v12380_v53 = vcombine.low %v448_v6, %v456_v7 }
  0xed   : > { %v12383_v14 = vcombine.high %v449_v8, %v457_v9  ;;  %v12382_v20 = vcombine.low %v449_v8, %v457_v9 }
  0xee   : > { %3652 = vmatpush1.bf16.msra.mxu0 %v12760_v16  ;;  %3734 = vmatpush1.bf16.msra.mxu1 %v12762_v17  ;;  %v464_v16 = vld [vmem:[%s14401_s6 + $0x410] sm:$0xff] }
  0xef   : > { %3744 = vmatprep.subr.bf16.mxu0 %v12269_v18  ;;  %3826 = vmatprep.subr.bf16.mxu1 %v12271_v19  ;;  %v472_v17 = vld [vmem:[%s14401_s6 + $0x450] sm:$0xff]  ;;  %v465_v18 = vld [vmem:[%s14401_s6 + $0x418] sm:$0xff] }
  0xf0   : > { %v473_v19 = vld [vmem:[%s14401_s6 + $0x458] sm:$0xff]  ;;  %v12397_v23 = vcombine.high %v464_v16, %v472_v17  ;;  %v12396_v29 = vcombine.low %v464_v16, %v472_v17 }
  0xf1   : > { %3654 = vmatmul.mubr.bf16.vlgmr.msra.gmra.mrb[0].mxu0 %v14580_v22  ;;  %3736 = vmatmul.mubr.bf16.vlgmr.msra.gmra.mrb[0].mxu1 %v14580_v22  ;;  %v12399_v24 = vcombine.high %v465_v18, %v473_v19  ;;  %v12398_v30 = vcombine.low %v465_v18, %v473_v19 }
  0xf2   : > { %3745 = vmatpush1.bf16.msra.mxu0 %v12268_v25  ;;  %3827 = vmatpush1.bf16.msra.mxu1 %v12270_v26  ;;  %v480_v25 = vld [vmem:[%s14401_s6 + $0x490] sm:$0xff] }
  0xf3   : > { %3746 = vmatprep.subr.bf16.mxu0 %v12285_v27  ;;  %3828 = vmatprep.subr.bf16.mxu1 %v12287_v28  ;;  %v488_v26 = vld [vmem:[%s14401_s6 + $0x4d0] sm:$0xff]  ;;  %v481_v27 = vld [vmem:[%s14401_s6 + $0x498] sm:$0xff] }
  0xf4   : > { %3776 = vmatprep.mubr.bf16.mxu0 %v14453_v57  ;;  %3858 = vmatprep.mubr.bf16.mxu1 %v14453_v57  ;;  %v489_v28 = vld [vmem:[%s14401_s6 + $0x4d8] sm:$0xff]  ;;  %v12413_v15 = vcombine.high %v480_v25, %v488_v26  ;;  %v12412_v36 = vcombine.low %v480_v25, %v488_v26 }
  0xf5   : > { %v12415_v31 = vcombine.high %v481_v27, %v489_v28  ;;  %v12414_v37 = vcombine.low %v481_v27, %v489_v28 }
  0xf6   : > { %3747 = vmatpush1.bf16.msra.mxu0 %v12284_v32  ;;  %3829 = vmatpush1.bf16.msra.mxu1 %v12286_v33  ;;  %v496_v32 = vld [vmem:[%s14401_s6 + $0x510] sm:$0xff] }
  0xf7   : > { %3748 = vmatprep.subr.bf16.mxu0 %v12301_v34  ;;  %3830 = vmatprep.subr.bf16.mxu1 %v12303_v35  ;;  %v504_v33 = vld [vmem:[%s14401_s6 + $0x550] sm:$0xff]  ;;  %v497_v34 = vld [vmem:[%s14401_s6 + $0x518] sm:$0xff] }
  0xf8   : > { %v505_v35 = vld [vmem:[%s14401_s6 + $0x558] sm:$0xff]  ;;  %v12429_v38 = vcombine.high %v496_v32, %v504_v33  ;;  %v12428_v44 = vcombine.low %v496_v32, %v504_v33 }
  0xf9   : > { %v12431_v39 = vcombine.high %v497_v34, %v505_v35  ;;  %v12430_v45 = vcombine.low %v497_v34, %v505_v35 }
  0xfa   : > { %3749 = vmatpush1.bf16.msra.mxu0 %v12300_v40  ;;  %3831 = vmatpush1.bf16.msra.mxu1 %v12302_v41  ;;  %v512_v40 = vld [vmem:[%s14401_s6 + $0x590] sm:$0xff] }
  0xfb   : > { %3750 = vmatprep.subr.bf16.mxu0 %v12317_v42  ;;  %3832 = vmatprep.subr.bf16.mxu1 %v12319_v43  ;;  %v520_v41 = vld [vmem:[%s14401_s6 + $0x5d0] sm:$0xff]  ;;  %v513_v42 = vld [vmem:[%s14401_s6 + $0x598] sm:$0xff] }
  0xfc   : > { %v521_v43 = vld [vmem:[%s14401_s6 + $0x5d8] sm:$0xff]  ;;  %v12445_v46 = vcombine.high %v512_v40, %v520_v41  ;;  %v12444_v52 = vcombine.low %v512_v40, %v520_v41 }
  0xfd   : > { %v12447_v47 = vcombine.high %v513_v42, %v521_v43  ;;  %v12446_v54 = vcombine.low %v513_v42, %v521_v43 }
  0xfe   : > { %3751 = vmatpush1.bf16.msra.mxu0 %v12316_v48  ;;  %3833 = vmatpush1.bf16.msra.mxu1 %v12318_v49  ;;  %v528_v48 = vld [vmem:[%s14401_s6 + $0x610] sm:$0xff] }
  0xff   : > { %3752 = vmatprep.subr.bf16.mxu0 %v12333_v50  ;;  %3834 = vmatprep.subr.bf16.mxu1 %v12335_v51  ;;  %v536_v49 = vld [vmem:[%s14401_s6 + $0x650] sm:$0xff]  ;;  %v529_v50 = vld [vmem:[%s14401_s6 + $0x618] sm:$0xff] }
 0x100   : > { %v537_v51 = vld [vmem:[%s14401_s6 + $0x658] sm:$0xff]  ;;  %v12461_v55 = vcombine.high %v528_v48, %v536_v49  ;;  %v12460_v62 = vcombine.low %v528_v48, %v536_v49 }
 0x101   : > { %v12463_v56 = vcombine.high %v529_v50, %v537_v51  ;;  %v12462_v63 = vcombine.low %v529_v50, %v537_v51 }
 0x102   : > { %3753 = vmatpush1.bf16.msra.mxu0 %v12332_v58  ;;  %3835 = vmatpush1.bf16.msra.mxu1 %v12334_v59  ;;  %v544_v58 = vld [vmem:[%s14401_s6 + $0x690] sm:$0xff] }
 0x103   : > { %3754 = vmatprep.subr.bf16.mxu0 %v12349_v60  ;;  %3836 = vmatprep.subr.bf16.mxu1 %v12351_v61  ;;  %v552_v59 = vld [vmem:[%s14401_s6 + $0x6d0] sm:$0xff]  ;;  %v545_v60 = vld [vmem:[%s14401_s6 + $0x698] sm:$0xff] }
 0x104   : > { %v553_v61 = vld [vmem:[%s14401_s6 + $0x6d8] sm:$0xff]  ;;  %v12477_v0 = vcombine.high %v544_v58, %v552_v59  ;;  %v12476_v6 = vcombine.low %v544_v58, %v552_v59 }
 0x105   : > { %v12479_v1 = vcombine.high %v545_v60, %v553_v61  ;;  %v12478_v7 = vcombine.low %v545_v60, %v553_v61 }
 0x106   : > { %3755 = vmatpush1.bf16.msra.mxu0 %v12348_v2  ;;  %3837 = vmatpush1.bf16.msra.mxu1 %v12350_v3  ;;  %v560_v2 = vld [vmem:[%s14401_s6 + $0x710] sm:$0xff] }
 0x107   : > { %3756 = vmatprep.subr.bf16.mxu0 %v12365_v4  ;;  %3838 = vmatprep.subr.bf16.mxu1 %v12367_v5  ;;  %v568_v3 = vld [vmem:[%s14401_s6 + $0x750] sm:$0xff]  ;;  %v561_v4 = vld [vmem:[%s14401_s6 + $0x718] sm:$0xff] }
 0x108   : > { %v569_v5 = vld [vmem:[%s14401_s6 + $0x758] sm:$0xff]  ;;  %v12493_v8 = vcombine.high %v560_v2, %v568_v3  ;;  %v12492_v16 = vcombine.low %v560_v2, %v568_v3 }
 0x109   : > { %v12495_v9 = vcombine.high %v561_v4, %v569_v5  ;;  %v12494_v17 = vcombine.low %v561_v4, %v569_v5 }
 0x10a   : > { %3757 = vmatpush1.bf16.msra.mxu0 %v12364_v10  ;;  %3839 = vmatpush1.bf16.msra.mxu1 %v12366_v11  ;;  %v576_v10 = vld [vmem:[%s14401_s6 + $0x790] sm:$0xff] }
 0x10b   : > { %3758 = vmatprep.subr.bf16.mxu0 %v12381_v13  ;;  %3840 = vmatprep.subr.bf16.mxu1 %v12383_v14  ;;  %v584_v11 = vld [vmem:[%s14401_s6 + $0x7d0] sm:$0xff]  ;;  %v577_v13 = vld [vmem:[%s14401_s6 + $0x798] sm:$0xff] }
 0x10c   : > { %v585_v14 = vld [vmem:[%s14401_s6 + $0x7d8] sm:$0xff]  ;;  %v12509_v18 = vcombine.high %v576_v10, %v584_v11  ;;  %v12508_v25 = vcombine.low %v576_v10, %v584_v11 }
 0x10d   : > { %v12511_v19 = vcombine.high %v577_v13, %v585_v14  ;;  %v12510_v26 = vcombine.low %v577_v13, %v585_v14 }
 0x10e   : > { %3759 = vmatpush1.bf16.msra.mxu0 %v12380_v53  ;;  %3841 = vmatpush1.bf16.msra.mxu1 %v12382_v20  ;;  %v592_v53 = vld [vmem:[%s14401_s6 + $0x810] sm:$0xff] }
 0x10f   : > { %3760 = vmatprep.subr.bf16.mxu0 %v12397_v23  ;;  %3842 = vmatprep.subr.bf16.mxu1 %v12399_v24  ;;  %v600_v20 = vld [vmem:[%s14401_s6 + $0x850] sm:$0xff]  ;;  %v593_v23 = vld [vmem:[%s14401_s6 + $0x818] sm:$0xff] }
 0x110   : > { %v601_v24 = vld [vmem:[%s14401_s6 + $0x858] sm:$0xff]  ;;  %v12525_v27 = vcombine.high %v592_v53, %v600_v20  ;;  %v12524_v32 = vcombine.low %v592_v53, %v600_v20 }
 0x111   : > { %v12527_v28 = vcombine.high %v593_v23, %v601_v24  ;;  %v12526_v33 = vcombine.low %v593_v23, %v601_v24 }
 0x112   : > { %3761 = vmatpush1.bf16.msra.mxu0 %v12396_v29  ;;  %3843 = vmatpush1.bf16.msra.mxu1 %v12398_v30  ;;  %v608_v29 = vld [vmem:[%s14401_s6 + $0x890] sm:$0xff] }
 0x113   : > { %3762 = vmatprep.subr.bf16.mxu0 %v12413_v15  ;;  %3844 = vmatprep.subr.bf16.mxu1 %v12415_v31  ;;  %v616_v30 = vld [vmem:[%s14401_s6 + $0x8d0] sm:$0xff]  ;;  %v609_v15 = vld [vmem:[%s14401_s6 + $0x898] sm:$0xff] }
 0x114   : > { %v617_v31 = vld [vmem:[%s14401_s6 + $0x8d8] sm:$0xff]  ;;  %v12541_v34 = vcombine.high %v608_v29, %v616_v30  ;;  %v12540_v40 = vcombine.low %v608_v29, %v616_v30 }
 0x115   : > { %v12543_v35 = vcombine.high %v609_v15, %v617_v31  ;;  %v12542_v41 = vcombine.low %v609_v15, %v617_v31 }
 0x116   : > { %3763 = vmatpush1.bf16.msra.mxu0 %v12412_v36  ;;  %3845 = vmatpush1.bf16.msra.mxu1 %v12414_v37  ;;  %v624_v36 = vld [vmem:[%s14401_s6 + $0x910] sm:$0xff] }
 0x117   : > { %3764 = vmatprep.subr.bf16.mxu0 %v12429_v38  ;;  %3846 = vmatprep.subr.bf16.mxu1 %v12431_v39  ;;  %v632_v37 = vld [vmem:[%s14401_s6 + $0x950] sm:$0xff]  ;;  %v625_v38 = vld [vmem:[%s14401_s6 + $0x918] sm:$0xff] }
 0x118   : > { %v633_v39 = vld [vmem:[%s14401_s6 + $0x958] sm:$0xff]  ;;  %v12557_v42 = vcombine.high %v624_v36, %v632_v37  ;;  %v12556_v48 = vcombine.low %v624_v36, %v632_v37 }
 0x119   : > { %v12559_v43 = vcombine.high %v625_v38, %v633_v39  ;;  %v12558_v49 = vcombine.low %v625_v38, %v633_v39 }
 0x11a   : > { %3765 = vmatpush1.bf16.msra.mxu0 %v12428_v44  ;;  %3847 = vmatpush1.bf16.msra.mxu1 %v12430_v45  ;;  %v640_v44 = vld [vmem:[%s14401_s6 + $0x990] sm:$0xff] }
 0x11b   : > { %3766 = vmatprep.subr.bf16.mxu0 %v12445_v46  ;;  %3848 = vmatprep.subr.bf16.mxu1 %v12447_v47  ;;  %v648_v45 = vld [vmem:[%s14401_s6 + $0x9d0] sm:$0xff]  ;;  %v641_v46 = vld [vmem:[%s14401_s6 + $0x998] sm:$0xff] }
 0x11c   : > { %v649_v47 = vld [vmem:[%s14401_s6 + $0x9d8] sm:$0xff]  ;;  %v12573_v50 = vcombine.high %v640_v44, %v648_v45  ;;  %v12572_v58 = vcombine.low %v640_v44, %v648_v45 }
 0x11d   : > { %v12575_v51 = vcombine.high %v641_v46, %v649_v47  ;;  %v12574_v59 = vcombine.low %v641_v46, %v649_v47 }
 0x11e   : > { %3767 = vmatpush1.bf16.msra.mxu0 %v12444_v52  ;;  %3849 = vmatpush1.bf16.msra.mxu1 %v12446_v54  ;;  %v656_v52 = vld [vmem:[%s14401_s6 + $0xa10] sm:$0xff] }
 0x11f   : > { %3768 = vmatprep.subr.bf16.mxu0 %v12461_v55  ;;  %3850 = vmatprep.subr.bf16.mxu1 %v12463_v56  ;;  %v664_v54 = vld [vmem:[%s14401_s6 + $0xa50] sm:$0xff]  ;;  %v657_v55 = vld [vmem:[%s14401_s6 + $0xa18] sm:$0xff] }
 0x120   : > { %v665_v56 = vld [vmem:[%s14401_s6 + $0xa58] sm:$0xff]  ;;  %v12589_v60 = vcombine.high %v656_v52, %v664_v54  ;;  %v12588_v2 = vcombine.low %v656_v52, %v664_v54 }
 0x121   : > { %v12591_v61 = vcombine.high %v657_v55, %v665_v56  ;;  %v12590_v3 = vcombine.low %v657_v55, %v665_v56 }
 0x122   : > { %3769 = vmatpush1.bf16.msra.mxu0 %v12460_v62  ;;  %3851 = vmatpush1.bf16.msra.mxu1 %v12462_v63  ;;  %v672_v62 = vld [vmem:[%s14401_s6 + $0xa90] sm:$0xff] }
 0x123   : > { %3770 = vmatprep.subr.bf16.mxu0 %v12477_v0  ;;  %3852 = vmatprep.subr.bf16.mxu1 %v12479_v1  ;;  %v680_v63 = vld [vmem:[%s14401_s6 + $0xad0] sm:$0xff]  ;;  %v673_v0 = vld [vmem:[%s14401_s6 + $0xa98] sm:$0xff] }
 0x124   : > { %v681_v1 = vld [vmem:[%s14401_s6 + $0xad8] sm:$0xff]  ;;  %v12605_v4 = vcombine.high %v672_v62, %v680_v63  ;;  %v12604_v10 = vcombine.low %v672_v62, %v680_v63 }
 0x125   : > { %v12607_v5 = vcombine.high %v673_v0, %v681_v1  ;;  %v12606_v11 = vcombine.low %v673_v0, %v681_v1 }
 0x126   : > { %3771 = vmatpush1.bf16.msra.mxu0 %v12476_v6  ;;  %3853 = vmatpush1.bf16.msra.mxu1 %v12478_v7  ;;  %v688_v6 = vld [vmem:[%s14401_s6 + $0xb10] sm:$0xff] }
 0x127   : > { %3772 = vmatprep.subr.bf16.mxu0 %v12493_v8  ;;  %3854 = vmatprep.subr.bf16.mxu1 %v12495_v9  ;;  %v696_v7 = vld [vmem:[%s14401_s6 + $0xb50] sm:$0xff]  ;;  %v689_v8 = vld [vmem:[%s14401_s6 + $0xb18] sm:$0xff] }
 0x128   : > { %v697_v9 = vld [vmem:[%s14401_s6 + $0xb58] sm:$0xff]  ;;  %v12621_v13 = vcombine.high %v688_v6, %v696_v7  ;;  %v12620_v53 = vcombine.low %v688_v6, %v696_v7 }
 0x129   : > { %v12623_v14 = vcombine.high %v689_v8, %v697_v9  ;;  %v12622_v20 = vcombine.low %v689_v8, %v697_v9 }
 0x12a   : > { %3773 = vmatpush1.bf16.msra.mxu0 %v12492_v16  ;;  %3855 = vmatpush1.bf16.msra.mxu1 %v12494_v17  ;;  %v704_v16 = vld [vmem:[%s14401_s6 + $0xb90] sm:$0xff] }
 0x12b   : > { %3774 = vmatprep.subr.bf16.mxu0 %v12509_v18  ;;  %3856 = vmatprep.subr.bf16.mxu1 %v12511_v19  ;;  %v712_v17 = vld [vmem:[%s14401_s6 + $0xbd0] sm:$0xff]  ;;  %v705_v18 = vld [vmem:[%s14401_s6 + $0xb98] sm:$0xff] }
 0x12c   : > { %v713_v19 = vld [vmem:[%s14401_s6 + $0xbd8] sm:$0xff]  ;;  %v12637_v23 = vcombine.high %v704_v16, %v712_v17  ;;  %v12636_v29 = vcombine.low %v704_v16, %v712_v17 }
 0x12d   : > { %v12639_v24 = vcombine.high %v705_v18, %v713_v19  ;;  %v12638_v30 = vcombine.low %v705_v18, %v713_v19 }
 0x12e   : > { %3775 = vmatpush1.bf16.msra.mxu0 %v12508_v25  ;;  %3857 = vmatpush1.bf16.msra.mxu1 %v12510_v26  ;;  %v720_v25 = vld [vmem:[%s14401_s6 + $0xc10] sm:$0xff] }
 0x12f   : > { %3785 = vmatprep.subr.bf16.mxu0 %v12525_v27  ;;  %3867 = vmatprep.subr.bf16.mxu1 %v12527_v28  ;;  %v728_v26 = vld [vmem:[%s14401_s6 + $0xc50] sm:$0xff]  ;;  %v721_v27 = vld [vmem:[%s14401_s6 + $0xc18] sm:$0xff] }
 0x130   : > { %v729_v28 = vld [vmem:[%s14401_s6 + $0xc58] sm:$0xff]  ;;  %v12653_v15 = vcombine.high %v720_v25, %v728_v26  ;;  %v12652_v36 = vcombine.low %v720_v25, %v728_v26 }
 0x131   : > { %3777 = vmatmul.mubr.bf16.vlgmr.msra.gmra.mrb[4].mxu0 %v14499_v12  ;;  %3859 = vmatmul.mubr.bf16.vlgmr.msra.gmra.mrb[4].mxu1 %v14499_v12  ;;  %v12655_v31 = vcombine.high %v721_v27, %v729_v28  ;;  %v12654_v37 = vcombine.low %v721_v27, %v729_v28 }
 0x132   : > { %3786 = vmatpush1.bf16.msra.mxu0 %v12524_v32  ;;  %3868 = vmatpush1.bf16.msra.mxu1 %v12526_v33  ;;  %v736_v32 = vld [vmem:[%s14401_s6 + $0xc90] sm:$0xff] }
 0x133   : > { %3787 = vmatprep.subr.bf16.mxu0 %v12541_v34  ;;  %3869 = vmatprep.subr.bf16.mxu1 %v12543_v35  ;;  %v744_v33 = vld [vmem:[%s14401_s6 + $0xcd0] sm:$0xff]  ;;  %v737_v34 = vld [vmem:[%s14401_s6 + $0xc98] sm:$0xff] }
 0x134   : > { %3817 = vmatprep.mubr.bf16.mxu0 %v14512_v21  ;;  %3899 = vmatprep.mubr.bf16.mxu1 %v14512_v21  ;;  %v745_v35 = vld [vmem:[%s14401_s6 + $0xcd8] sm:$0xff]  ;;  %v12669_v38 = vcombine.high %v736_v32, %v744_v33  ;;  %v12668_v44 = vcombine.low %v736_v32, %v744_v33 }
 0x135   : > { %v12671_v39 = vcombine.high %v737_v34, %v745_v35  ;;  %v12670_v45 = vcombine.low %v737_v34, %v745_v35 }
 0x136   : > { %3788 = vmatpush1.bf16.msra.mxu0 %v12540_v40  ;;  %3870 = vmatpush1.bf16.msra.mxu1 %v12542_v41  ;;  %v752_v40 = vld [vmem:[%s14401_s6 + $0xd10] sm:$0xff] }
 0x137   : > { %3789 = vmatprep.subr.bf16.mxu0 %v12557_v42  ;;  %3871 = vmatprep.subr.bf16.mxu1 %v12559_v43  ;;  %v760_v41 = vld [vmem:[%s14401_s6 + $0xd50] sm:$0xff]  ;;  %v753_v42 = vld [vmem:[%s14401_s6 + $0xd18] sm:$0xff] }
 0x138   : > { %v761_v43 = vld [vmem:[%s14401_s6 + $0xd58] sm:$0xff]  ;;  %v12685_v46 = vcombine.high %v752_v40, %v760_v41  ;;  %v12684_v52 = vcombine.low %v752_v40, %v760_v41 }
 0x139   : > { %v12687_v47 = vcombine.high %v753_v42, %v761_v43  ;;  %v12686_v54 = vcombine.low %v753_v42, %v761_v43 }
 0x13a   : > { %3790 = vmatpush1.bf16.msra.mxu0 %v12556_v48  ;;  %3872 = vmatpush1.bf16.msra.mxu1 %v12558_v49  ;;  %v768_v48 = vld [vmem:[%s14401_s6 + $0xd90] sm:$0xff] }
 0x13b   : > { %3791 = vmatprep.subr.bf16.mxu0 %v12573_v50  ;;  %3873 = vmatprep.subr.bf16.mxu1 %v12575_v51  ;;  %v776_v49 = vld [vmem:[%s14401_s6 + $0xdd0] sm:$0xff]  ;;  %v769_v50 = vld [vmem:[%s14401_s6 + $0xd98] sm:$0xff] }
 0x13c   : > { %v777_v51 = vld [vmem:[%s14401_s6 + $0xdd8] sm:$0xff]  ;;  %v12701_v55 = vcombine.high %v768_v48, %v776_v49  ;;  %v12700_v62 = vcombine.low %v768_v48, %v776_v49 }
 0x13d   : > { %v12703_v56 = vcombine.high %v769_v50, %v777_v51  ;;  %v12702_v63 = vcombine.low %v769_v50, %v777_v51 }
 0x13e   : > { %3792 = vmatpush1.bf16.msra.mxu0 %v12572_v58  ;;  %3874 = vmatpush1.bf16.msra.mxu1 %v12574_v59  ;;  %v784_v58 = vld [vmem:[%s14401_s6 + $0xe10] sm:$0xff] }
 0x13f   : > { %3793 = vmatprep.subr.bf16.mxu0 %v12589_v60  ;;  %3875 = vmatprep.subr.bf16.mxu1 %v12591_v61  ;;  %v792_v59 = vld [vmem:[%s14401_s6 + $0xe50] sm:$0xff]  ;;  %v785_v60 = vld [vmem:[%s14401_s6 + $0xe18] sm:$0xff] }
 0x140   : > { %v793_v61 = vld [vmem:[%s14401_s6 + $0xe58] sm:$0xff]  ;;  %v12717_v0 = vcombine.high %v784_v58, %v792_v59  ;;  %v12716_v6 = vcombine.low %v784_v58, %v792_v59 }
 0x141   : > { %v12719_v1 = vcombine.high %v785_v60, %v793_v61  ;;  %v12718_v7 = vcombine.low %v785_v60, %v793_v61 }
 0x142   : > { %3794 = vmatpush1.bf16.msra.mxu0 %v12588_v2  ;;  %3876 = vmatpush1.bf16.msra.mxu1 %v12590_v3  ;;  %v800_v2 = vld [vmem:[%s14401_s6 + $0xe90] sm:$0xff] }
 0x143   : > { %3795 = vmatprep.subr.bf16.mxu0 %v12605_v4  ;;  %3877 = vmatprep.subr.bf16.mxu1 %v12607_v5  ;;  %v808_v3 = vld [vmem:[%s14401_s6 + $0xed0] sm:$0xff]  ;;  %v801_v4 = vld [vmem:[%s14401_s6 + $0xe98] sm:$0xff] }
 0x144   : > { %v809_v5 = vld [vmem:[%s14401_s6 + $0xed8] sm:$0xff]  ;;  %v12733_v8 = vcombine.high %v800_v2, %v808_v3  ;;  %v12732_v16 = vcombine.low %v800_v2, %v808_v3 }
 0x145   : > { %v12735_v9 = vcombine.high %v801_v4, %v809_v5  ;;  %v12734_v17 = vcombine.low %v801_v4, %v809_v5 }
 0x146   : > { %3796 = vmatpush1.bf16.msra.mxu0 %v12604_v10  ;;  %3878 = vmatpush1.bf16.msra.mxu1 %v12606_v11  ;;  %v816_v10 = vld [vmem:[%s14401_s6 + $0xf10] sm:$0xff] }
 0x147   : > { %3797 = vmatprep.subr.bf16.mxu0 %v12621_v13  ;;  %3879 = vmatprep.subr.bf16.mxu1 %v12623_v14  ;;  %v824_v11 = vld [vmem:[%s14401_s6 + $0xf50] sm:$0xff]  ;;  %v817_v13 = vld [vmem:[%s14401_s6 + $0xf18] sm:$0xff] }
 0x148   : > { %v825_v14 = vld [vmem:[%s14401_s6 + $0xf58] sm:$0xff]  ;;  %v12749_v18 = vcombine.high %v816_v10, %v824_v11  ;;  %v12748_v25 = vcombine.low %v816_v10, %v824_v11 }
 0x149   : > { %v12751_v19 = vcombine.high %v817_v13, %v825_v14  ;;  %v12750_v26 = vcombine.low %v817_v13, %v825_v14 }
 0x14a   : > { %3798 = vmatpush1.bf16.msra.mxu0 %v12620_v53  ;;  %3880 = vmatpush1.bf16.msra.mxu1 %v12622_v20  ;;  %v832_v53 = vld [vmem:[%s14401_s6 + $0xf90] sm:$0xff] }
 0x14b   : > { %3799 = vmatprep.subr.bf16.mxu0 %v12637_v23  ;;  %3881 = vmatprep.subr.bf16.mxu1 %v12639_v24  ;;  %v840_v20 = vld [vmem:[%s14401_s6 + $0xfd0] sm:$0xff]  ;;  %v833_v23 = vld [vmem:[%s14401_s6 + $0xf98] sm:$0xff] }
 0x14c   : > { %v841_v24 = vld [vmem:[%s14401_s6 + $0xfd8] sm:$0xff]  ;;  %v12765_v27 = vcombine.high %v832_v53, %v840_v20  ;;  %v12764_v32 = vcombine.low %v832_v53, %v840_v20 }
 0x14d   : > { %v12767_v28 = vcombine.high %v833_v23, %v841_v24  ;;  %v12766_v33 = vcombine.low %v833_v23, %v841_v24 }
 0x14e   : > { %3800 = vmatpush1.bf16.msra.mxu0 %v12636_v29  ;;  %3882 = vmatpush1.bf16.msra.mxu1 %v12638_v30  ;;  %v338_v29 = vld [vmem:[%s14401_s6 + $0x20] sm:$0xff] }
 0x14f   : > { %3801 = vmatprep.subr.bf16.mxu0 %v12653_v15  ;;  %3883 = vmatprep.subr.bf16.mxu1 %v12655_v31  ;;  %v346_v30 = vld [vmem:[%s14401_s6 + $0x60] sm:$0xff]  ;;  %v339_v15 = vld [vmem:[%s14401_s6 + $0x28] sm:$0xff] }
 0x150   : > { %v347_v31 = vld [vmem:[%s14401_s6 + $0x68] sm:$0xff]  ;;  %v12273_v34 = vcombine.high %v338_v29, %v346_v30  ;;  %v12272_v40 = vcombine.low %v338_v29, %v346_v30 }
 0x151   : > { %v12275_v35 = vcombine.high %v339_v15, %v347_v31  ;;  %v12274_v41 = vcombine.low %v339_v15, %v347_v31 }
 0x152   : > { %3802 = vmatpush1.bf16.msra.mxu0 %v12652_v36  ;;  %3884 = vmatpush1.bf16.msra.mxu1 %v12654_v37  ;;  %v354_v36 = vld [vmem:[%s14401_s6 + $0xa0] sm:$0xff] }
 0x153   : > { %3803 = vmatprep.subr.bf16.mxu0 %v12669_v38  ;;  %3885 = vmatprep.subr.bf16.mxu1 %v12671_v39  ;;  %v362_v37 = vld [vmem:[%s14401_s6 + $0xe0] sm:$0xff]  ;;  %v355_v38 = vld [vmem:[%s14401_s6 + $0xa8] sm:$0xff] }
 0x154   : > { %v363_v39 = vld [vmem:[%s14401_s6 + $0xe8] sm:$0xff]  ;;  %v12289_v42 = vcombine.high %v354_v36, %v362_v37  ;;  %v12288_v48 = vcombine.low %v354_v36, %v362_v37 }
 0x155   : > { %v12291_v43 = vcombine.high %v355_v38, %v363_v39  ;;  %v12290_v49 = vcombine.low %v355_v38, %v363_v39 }
 0x156   : > { %3804 = vmatpush1.bf16.msra.mxu0 %v12668_v44  ;;  %3886 = vmatpush1.bf16.msra.mxu1 %v12670_v45  ;;  %v370_v44 = vld [vmem:[%s14401_s6 + $0x120] sm:$0xff] }
 0x157   : > { %3805 = vmatprep.subr.bf16.mxu0 %v12685_v46  ;;  %3887 = vmatprep.subr.bf16.mxu1 %v12687_v47  ;;  %v378_v45 = vld [vmem:[%s14401_s6 + $0x160] sm:$0xff]  ;;  %v371_v46 = vld [vmem:[%s14401_s6 + $0x128] sm:$0xff] }
 0x158   : > { %v379_v47 = vld [vmem:[%s14401_s6 + $0x168] sm:$0xff]  ;;  %v12305_v50 = vcombine.high %v370_v44, %v378_v45  ;;  %v12304_v58 = vcombine.low %v370_v44, %v378_v45 }
 0x159   : > { %v12307_v51 = vcombine.high %v371_v46, %v379_v47  ;;  %v12306_v59 = vcombine.low %v371_v46, %v379_v47 }
 0x15a   : > { %3806 = vmatpush1.bf16.msra.mxu0 %v12684_v52  ;;  %3888 = vmatpush1.bf16.msra.mxu1 %v12686_v54  ;;  %v386_v52 = vld [vmem:[%s14401_s6 + $0x1a0] sm:$0xff] }
 0x15b   : > { %3807 = vmatprep.subr.bf16.mxu0 %v12701_v55  ;;  %3889 = vmatprep.subr.bf16.mxu1 %v12703_v56  ;;  %v394_v54 = vld [vmem:[%s14401_s6 + $0x1e0] sm:$0xff]  ;;  %v387_v55 = vld [vmem:[%s14401_s6 + $0x1a8] sm:$0xff] }
 0x15c   : > { %v395_v56 = vld [vmem:[%s14401_s6 + $0x1e8] sm:$0xff]  ;;  %v12321_v60 = vcombine.high %v386_v52, %v394_v54  ;;  %v12320_v2 = vcombine.low %v386_v52, %v394_v54 }
 0x15d   : > { %v12323_v61 = vcombine.high %v387_v55, %v395_v56  ;;  %v12322_v3 = vcombine.low %v387_v55, %v395_v56 }
 0x15e   : > { %3808 = vmatpush1.bf16.msra.mxu0 %v12700_v62  ;;  %3890 = vmatpush1.bf16.msra.mxu1 %v12702_v63  ;;  %v402_v62 = vld [vmem:[%s14401_s6 + $0x220] sm:$0xff] }
 0x15f   : > { %3809 = vmatprep.subr.bf16.mxu0 %v12717_v0  ;;  %3891 = vmatprep.subr.bf16.mxu1 %v12719_v1  ;;  %v410_v63 = vld [vmem:[%s14401_s6 + $0x260] sm:$0xff]  ;;  %v403_v0 = vld [vmem:[%s14401_s6 + $0x228] sm:$0xff] }
 0x160   : > { %v411_v1 = vld [vmem:[%s14401_s6 + $0x268] sm:$0xff]  ;;  %v12337_v4 = vcombine.high %v402_v62, %v410_v63  ;;  %v12336_v10 = vcombine.low %v402_v62, %v410_v63 }
 0x161   : > { %v12339_v5 = vcombine.high %v403_v0, %v411_v1  ;;  %v12338_v11 = vcombine.low %v403_v0, %v411_v1 }
 0x162   : > { %3810 = vmatpush1.bf16.msra.mxu0 %v12716_v6  ;;  %3892 = vmatpush1.bf16.msra.mxu1 %v12718_v7  ;;  %v418_v6 = vld [vmem:[%s14401_s6 + $0x2a0] sm:$0xff] }
 0x163   : > { %3811 = vmatprep.subr.bf16.mxu0 %v12733_v8  ;;  %3893 = vmatprep.subr.bf16.mxu1 %v12735_v9  ;;  %v426_v7 = vld [vmem:[%s14401_s6 + $0x2e0] sm:$0xff]  ;;  %v419_v8 = vld [vmem:[%s14401_s6 + $0x2a8] sm:$0xff] }
 0x164   : > { %v427_v9 = vld [vmem:[%s14401_s6 + $0x2e8] sm:$0xff]  ;;  %v12353_v13 = vcombine.high %v418_v6, %v426_v7  ;;  %v12352_v53 = vcombine.low %v418_v6, %v426_v7 }
 0x165   : > { %v12355_v14 = vcombine.high %v419_v8, %v427_v9  ;;  %v12354_v20 = vcombine.low %v419_v8, %v427_v9 }
 0x166   : > { %3812 = vmatpush1.bf16.msra.mxu0 %v12732_v16  ;;  %3894 = vmatpush1.bf16.msra.mxu1 %v12734_v17  ;;  %v434_v16 = vld [vmem:[%s14401_s6 + $0x320] sm:$0xff] }
 0x167   : > { %3813 = vmatprep.subr.bf16.mxu0 %v12749_v18  ;;  %3895 = vmatprep.subr.bf16.mxu1 %v12751_v19  ;;  %v442_v17 = vld [vmem:[%s14401_s6 + $0x360] sm:$0xff]  ;;  %v435_v18 = vld [vmem:[%s14401_s6 + $0x328] sm:$0xff] }
 0x168   : > { %v443_v19 = vld [vmem:[%s14401_s6 + $0x368] sm:$0xff]  ;;  %v12369_v23 = vcombine.high %v434_v16, %v442_v17  ;;  %v12368_v29 = vcombine.low %v434_v16, %v442_v17 }
 0x169   : > { %v12371_v24 = vcombine.high %v435_v18, %v443_v19  ;;  %v12370_v30 = vcombine.low %v435_v18, %v443_v19 }
 0x16a   : > { %3814 = vmatpush1.bf16.msra.mxu0 %v12748_v25  ;;  %3896 = vmatpush1.bf16.msra.mxu1 %v12750_v26  ;;  %v450_v25 = vld [vmem:[%s14401_s6 + $0x3a0] sm:$0xff] }
 0x16b   : > { %3815 = vmatprep.subr.bf16.mxu0 %v12765_v27  ;;  %3897 = vmatprep.subr.bf16.mxu1 %v12767_v28  ;;  %v458_v26 = vld [vmem:[%s14401_s6 + $0x3e0] sm:$0xff]  ;;  %v451_v27 = vld [vmem:[%s14401_s6 + $0x3a8] sm:$0xff] }
 0x16c   : > { %v459_v28 = vld [vmem:[%s14401_s6 + $0x3e8] sm:$0xff]  ;;  %v12385_v15 = vcombine.high %v450_v25, %v458_v26  ;;  %v12384_v36 = vcombine.low %v450_v25, %v458_v26 }
 0x16d   : > { %v12387_v31 = vcombine.high %v451_v27, %v459_v28  ;;  %v12386_v37 = vcombine.low %v451_v27, %v459_v28 }
 0x16e   : > { %3816 = vmatpush1.bf16.msra.mxu0 %v12764_v32  ;;  %3898 = vmatpush1.bf16.msra.mxu1 %v12766_v33  ;;  %v466_v32 = vld [vmem:[%s14401_s6 + $0x420] sm:$0xff] }
 0x16f   : > { %3908 = vmatprep.subr.bf16.mxu0 %v12273_v34  ;;  %3990 = vmatprep.subr.bf16.mxu1 %v12275_v35  ;;  %v474_v33 = vld [vmem:[%s14401_s6 + $0x460] sm:$0xff]  ;;  %v467_v34 = vld [vmem:[%s14401_s6 + $0x428] sm:$0xff] }
 0x170   : > { %v475_v35 = vld [vmem:[%s14401_s6 + $0x468] sm:$0xff]  ;;  %v12401_v38 = vcombine.high %v466_v32, %v474_v33  ;;  %v12400_v44 = vcombine.low %v466_v32, %v474_v33 }
 0x171   : > { %3818 = vmatmul.mubr.bf16.vlgmr.msra.gmra.mrb[4].mxu0 %v14580_v22  ;;  %3900 = vmatmul.mubr.bf16.vlgmr.msra.gmra.mrb[4].mxu1 %v14580_v22  ;;  %v12403_v39 = vcombine.high %v467_v34, %v475_v35  ;;  %v12402_v45 = vcombine.low %v467_v34, %v475_v35 }
 0x172   : > { %3909 = vmatpush1.bf16.msra.mxu0 %v12272_v40  ;;  %3991 = vmatpush1.bf16.msra.mxu1 %v12274_v41  ;;  %v482_v40 = vld [vmem:[%s14401_s6 + $0x4a0] sm:$0xff] }
 0x173   : > { %3910 = vmatprep.subr.bf16.mxu0 %v12289_v42  ;;  %3992 = vmatprep.subr.bf16.mxu1 %v12291_v43  ;;  %v490_v41 = vld [vmem:[%s14401_s6 + $0x4e0] sm:$0xff]  ;;  %v483_v42 = vld [vmem:[%s14401_s6 + $0x4a8] sm:$0xff] }
 0x174   : > { %3940 = vmatprep.mubr.bf16.mxu0 %v14453_v57  ;;  %4022 = vmatprep.mubr.bf16.mxu1 %v14453_v57  ;;  %v491_v43 = vld [vmem:[%s14401_s6 + $0x4e8] sm:$0xff]  ;;  %v12417_v46 = vcombine.high %v482_v40, %v490_v41  ;;  %v12416_v52 = vcombine.low %v482_v40, %v490_v41 }
 0x175   : > { %v12419_v47 = vcombine.high %v483_v42, %v491_v43  ;;  %v12418_v54 = vcombine.low %v483_v42, %v491_v43 }
 0x176   : > { %3911 = vmatpush1.bf16.msra.mxu0 %v12288_v48  ;;  %3993 = vmatpush1.bf16.msra.mxu1 %v12290_v49  ;;  %v498_v48 = vld [vmem:[%s14401_s6 + $0x520] sm:$0xff] }
 0x177   : > { %3912 = vmatprep.subr.bf16.mxu0 %v12305_v50  ;;  %3994 = vmatprep.subr.bf16.mxu1 %v12307_v51  ;;  %v506_v49 = vld [vmem:[%s14401_s6 + $0x560] sm:$0xff]  ;;  %v499_v50 = vld [vmem:[%s14401_s6 + $0x528] sm:$0xff] }
 0x178   : > { %v507_v51 = vld [vmem:[%s14401_s6 + $0x568] sm:$0xff]  ;;  %v12433_v55 = vcombine.high %v498_v48, %v506_v49  ;;  %v12432_v62 = vcombine.low %v498_v48, %v506_v49 }
 0x179   : > { %v12435_v56 = vcombine.high %v499_v50, %v507_v51  ;;  %v12434_v63 = vcombine.low %v499_v50, %v507_v51 }
 0x17a   : > { %3913 = vmatpush1.bf16.msra.mxu0 %v12304_v58  ;;  %3995 = vmatpush1.bf16.msra.mxu1 %v12306_v59  ;;  %v514_v58 = vld [vmem:[%s14401_s6 + $0x5a0] sm:$0xff] }
 0x17b   : > { %3914 = vmatprep.subr.bf16.mxu0 %v12321_v60  ;;  %3996 = vmatprep.subr.bf16.mxu1 %v12323_v61  ;;  %v522_v59 = vld [vmem:[%s14401_s6 + $0x5e0] sm:$0xff]  ;;  %v515_v60 = vld [vmem:[%s14401_s6 + $0x5a8] sm:$0xff] }
 0x17c   : > { %v523_v61 = vld [vmem:[%s14401_s6 + $0x5e8] sm:$0xff]  ;;  %v12449_v0 = vcombine.high %v514_v58, %v522_v59  ;;  %v12448_v6 = vcombine.low %v514_v58, %v522_v59  ;;  %v862_v58 = vlaneseq }
 0x17d   : > { %v12451_v1 = vcombine.high %v515_v60, %v523_v61  ;;  %v12450_v7 = vcombine.low %v515_v60, %v523_v61 }
 0x17e   : > { %3915 = vmatpush1.bf16.msra.mxu0 %v12320_v2  ;;  %3997 = vmatpush1.bf16.msra.mxu1 %v12322_v3  ;;  %v530_v2 = vld [vmem:[%s14401_s6 + $0x620] sm:$0xff] }
 0x17f   : > { %3916 = vmatprep.subr.bf16.mxu0 %v12337_v4  ;;  %3998 = vmatprep.subr.bf16.mxu1 %v12339_v5  ;;  %v538_v3 = vld [vmem:[%s14401_s6 + $0x660] sm:$0xff]  ;;  %v531_v4 = vld [vmem:[%s14401_s6 + $0x628] sm:$0xff] }
 0x180   : > { %v539_v5 = vld [vmem:[%s14401_s6 + $0x668] sm:$0xff]  ;;  %v12465_v8 = vcombine.high %v530_v2, %v538_v3  ;;  %v12464_v16 = vcombine.low %v530_v2, %v538_v3  ;;  %v14799_v3 = vshrl.u32 %v862_v58, 7 }
 0x181   : > { %v12467_v9 = vcombine.high %v531_v4, %v539_v5  ;;  %v12466_v17 = vcombine.low %v531_v4, %v539_v5  ;;  %v651_v2 = vld [vmem:[%s14401_s6 + $0x9e8] sm:$0xff] }
 0x182   : > { %3917 = vmatpush1.bf16.msra.mxu0 %v12336_v10  ;;  %3999 = vmatpush1.bf16.msra.mxu1 %v12338_v11  ;;  %v546_v10 = vld [vmem:[%s14401_s6 + $0x6a0] sm:$0xff] }
 0x183   : > { %3918 = vmatprep.subr.bf16.mxu0 %v12353_v13  ;;  %4000 = vmatprep.subr.bf16.mxu1 %v12355_v14  ;;  %v554_v11 = vld [vmem:[%s14401_s6 + $0x6e0] sm:$0xff]  ;;  %v547_v13 = vld [vmem:[%s14401_s6 + $0x6a8] sm:$0xff] }
 0x184   : > { %v555_v14 = vld [vmem:[%s14401_s6 + $0x6e8] sm:$0xff]  ;;  %v12481_v18 = vcombine.high %v546_v10, %v554_v11  ;;  %v12480_v25 = vcombine.low %v546_v10, %v554_v11 }
 0x185   : > { %v12483_v19 = vcombine.high %v547_v13, %v555_v14  ;;  %v12482_v26 = vcombine.low %v547_v13, %v555_v14  ;;  %v659_v10 = vld [vmem:[%s14401_s6 + $0xa28] sm:$0xff]  ;;  %v14807_v13 = vsub.s32 0, %v14799_v3 }
 0x186   : > { %3919 = vmatpush1.bf16.msra.mxu0 %v12352_v53  ;;  %4001 = vmatpush1.bf16.msra.mxu1 %v12354_v20  ;;  %v562_v53 = vld [vmem:[%s14401_s6 + $0x720] sm:$0xff]  ;;  %v667_v11 = vld [vmem:[%s14401_s6 + $0xa68] sm:$0xff] }
 0x187   : > { %3920 = vmatprep.subr.bf16.mxu0 %v12369_v23  ;;  %4002 = vmatprep.subr.bf16.mxu1 %v12371_v24  ;;  %v570_v20 = vld [vmem:[%s14401_s6 + $0x760] sm:$0xff]  ;;  %v563_v23 = vld [vmem:[%s14401_s6 + $0x728] sm:$0xff] }
 0x188   : > { %v571_v24 = vld [vmem:[%s14401_s6 + $0x768] sm:$0xff]  ;;  %v12497_v27 = vcombine.high %v562_v53, %v570_v20  ;;  %v12496_v32 = vcombine.low %v562_v53, %v570_v20  ;;  %v12595_v53 = vcombine.high %v659_v10, %v667_v11  ;;  %v674_v20 = vld [vmem:[%s14401_s6 + $0xaa0] sm:$0xff] }
 0x189   : > { %v12499_v28 = vcombine.high %v563_v23, %v571_v24  ;;  %v12498_v33 = vcombine.low %v563_v23, %v571_v24  ;;  %v682_v23 = vld [vmem:[%s14401_s6 + $0xae0] sm:$0xff] }
 0x18a   : > { %3921 = vmatpush1.bf16.msra.mxu0 %v12368_v29  ;;  %4003 = vmatpush1.bf16.msra.mxu1 %v12370_v30  ;;  %v578_v29 = vld [vmem:[%s14401_s6 + $0x7a0] sm:$0xff] }
 0x18b   : > { %3922 = vmatprep.subr.bf16.mxu0 %v12385_v15  ;;  %4004 = vmatprep.subr.bf16.mxu1 %v12387_v31  ;;  %v586_v30 = vld [vmem:[%s14401_s6 + $0x7e0] sm:$0xff]  ;;  %v579_v15 = vld [vmem:[%s14401_s6 + $0x7a8] sm:$0xff] }
 0x18c   : > { %v587_v31 = vld [vmem:[%s14401_s6 + $0x7e8] sm:$0xff]  ;;  %v12513_v34 = vcombine.high %v578_v29, %v586_v30  ;;  %v12512_v40 = vcombine.low %v578_v29, %v586_v30  ;;  %v12594_v30 = vcombine.low %v659_v10, %v667_v11 }
 0x18d   : > { %v12515_v35 = vcombine.high %v579_v15, %v587_v31  ;;  %v12514_v41 = vcombine.low %v579_v15, %v587_v31  ;;  %v12609_v15 = vcombine.high %v674_v20, %v682_v23  ;;  %v731_v10 = vld [vmem:[%s14401_s6 + $0xc68] sm:$0xff] }
 0x18e   : > { %3923 = vmatpush1.bf16.msra.mxu0 %v12384_v36  ;;  %4005 = vmatpush1.bf16.msra.mxu1 %v12386_v37  ;;  %v594_v36 = vld [vmem:[%s14401_s6 + $0x820] sm:$0xff] }
 0x18f   : > { %3924 = vmatprep.subr.bf16.mxu0 %v12401_v38  ;;  %4006 = vmatprep.subr.bf16.mxu1 %v12403_v39  ;;  %v602_v37 = vld [vmem:[%s14401_s6 + $0x860] sm:$0xff]  ;;  %v595_v38 = vld [vmem:[%s14401_s6 + $0x828] sm:$0xff] }
 0x190   : > { %v603_v39 = vld [vmem:[%s14401_s6 + $0x868] sm:$0xff]  ;;  %v12529_v42 = vcombine.high %v594_v36, %v602_v37  ;;  %v12528_v48 = vcombine.low %v594_v36, %v602_v37 }
 0x191   : > { %v12531_v43 = vcombine.high %v595_v38, %v603_v39  ;;  %v12530_v49 = vcombine.low %v595_v38, %v603_v39  ;;  %v699_v36 = vld [vmem:[%s14401_s6 + $0xb68] sm:$0xff] }
 0x192   : > { %3925 = vmatpush1.bf16.msra.mxu0 %v12400_v44  ;;  %4007 = vmatpush1.bf16.msra.mxu1 %v12402_v45  ;;  %v610_v44 = vld [vmem:[%s14401_s6 + $0x8a0] sm:$0xff] }
 0x193   : > { %3926 = vmatprep.subr.bf16.mxu0 %v12417_v46  ;;  %4008 = vmatprep.subr.bf16.mxu1 %v12419_v47  ;;  %v618_v45 = vld [vmem:[%s14401_s6 + $0x8e0] sm:$0xff]  ;;  %v611_v46 = vld [vmem:[%s14401_s6 + $0x8a8] sm:$0xff] }
 0x194   : > { %v619_v47 = vld [vmem:[%s14401_s6 + $0x8e8] sm:$0xff]  ;;  %v12545_v50 = vcombine.high %v610_v44, %v618_v45  ;;  %v12544_v59 = vcombine.low %v610_v44, %v618_v45  ;;  %v706_v45 = vld [vmem:[%s14401_s6 + $0xba0] sm:$0xff] }
 0x195   : > { %v12547_v51 = vcombine.high %v611_v46, %v619_v47  ;;  %v12546_v60 = vcombine.low %v611_v46, %v619_v47  ;;  %v714_v46 = vld [vmem:[%s14401_s6 + $0xbe0] sm:$0xff] }
 0x196   : > { %3927 = vmatpush1.bf16.msra.mxu0 %v12416_v52  ;;  %4009 = vmatpush1.bf16.msra.mxu1 %v12418_v54  ;;  %v626_v52 = vld [vmem:[%s14401_s6 + $0x920] sm:$0xff] }
 0x197   : > { %3928 = vmatprep.subr.bf16.mxu0 %v12433_v55  ;;  %4010 = vmatprep.subr.bf16.mxu1 %v12435_v56  ;;  %v634_v54 = vld [vmem:[%s14401_s6 + $0x960] sm:$0xff]  ;;  %v627_v55 = vld [vmem:[%s14401_s6 + $0x928] sm:$0xff] }
 0x198   : > { %v635_v56 = vld [vmem:[%s14401_s6 + $0x968] sm:$0xff]  ;;  %v12561_v61 = vcombine.high %v626_v52, %v634_v54  ;;  %v12560_v4 = vcombine.low %v626_v52, %v634_v54 }
 0x199   : > { %v12562_v5 = vcombine.low %v627_v55, %v635_v56  ;;  %v715_v52 = vld [vmem:[%s14401_s6 + $0xbe8] sm:$0xff] }
 0x19a   : > { %3929 = vmatpush1.bf16.msra.mxu0 %v12432_v62  ;;  %4011 = vmatpush1.bf16.msra.mxu1 %v12434_v63  ;;  %v12563_v62 = vcombine.high %v627_v55, %v635_v56  ;;  %v642_v63 = vld [vmem:[%s14401_s6 + $0x9a0] sm:$0xff] }
 0x19b   : > { %3930 = vmatprep.subr.bf16.mxu0 %v12449_v0  ;;  %4012 = vmatprep.subr.bf16.mxu1 %v12451_v1  ;;  %v650_v0 = vld [vmem:[%s14401_s6 + $0x9e0] sm:$0xff]  ;;  %v643_v1 = vld [vmem:[%s14401_s6 + $0x9a8] sm:$0xff] }
 0x19c   : > { %v12576_v14 = vcombine.low %v642_v63, %v650_v0 }
 0x19e   : > { %3931 = vmatpush1.bf16.msra.mxu0 %v12448_v6  ;;  %4013 = vmatpush1.bf16.msra.mxu1 %v12450_v7  ;;  %v12577_v6 = vcombine.high %v642_v63, %v650_v0  ;;  %v12579_v7 = vcombine.high %v643_v1, %v651_v2 }
 0x19f   : > { %3932 = vmatprep.subr.bf16.mxu0 %v12465_v8  ;;  %4014 = vmatprep.subr.bf16.mxu1 %v12467_v9  ;;  %v658_v8 = vld [vmem:[%s14401_s6 + $0xa20] sm:$0xff] }
 0x1a0   : > { %v666_v9 = vld [vmem:[%s14401_s6 + $0xa60] sm:$0xff] }
 0x1a2   : > { %3933 = vmatpush1.bf16.msra.mxu0 %v12464_v16  ;;  %4015 = vmatpush1.bf16.msra.mxu1 %v12466_v17  ;;  %v14810_v16 = vld [vmem:[%s14410_s9] sm:$0x77]  ;;  %v12578_v17 = vcombine.low %v643_v1, %v651_v2  ;;  %v12641_v1 = vcombine.high %v706_v45, %v714_v46 }
 0x1a3   : > { %3934 = vmatprep.subr.bf16.mxu0 %v12481_v18  ;;  %4016 = vmatprep.subr.bf16.mxu1 %v12483_v19  ;;  %v12593_v18 = vcombine.high %v658_v8, %v666_v9  ;;  %v14813_v19 = vld [vmem:[%s14410_s9 + $0x8] sm:$0x77]  ;;  %v865_v24 = vrot.slane %v14810_v16, %v14807_v13 }
 0x1a4   : > { %v873_v29 = vrot.slane %v14813_v19, %v14807_v13 }
 0x1a6   : > { %3935 = vmatpush1.bf16.msra.mxu0 %v12480_v25  ;;  %4017 = vmatpush1.bf16.msra.mxu1 %v12482_v26  ;;  %v675_v25 = vld [vmem:[%s14401_s6 + $0xaa8] sm:$0xff]  ;;  %v953_v38 = vrot.slane %v873_v29, %v14807_v13 }
 0x1a7   : > { %3936 = vmatprep.subr.bf16.mxu0 %v12497_v27  ;;  %4018 = vmatprep.subr.bf16.mxu1 %v12499_v28  ;;  %v683_v26 = vld [vmem:[%s14401_s6 + $0xae8] sm:$0xff]  ;;  %v12592_v27 = vcombine.low %v658_v8, %v666_v9  ;;  %v14822_v28 = vsub.s32 1, %v14799_v3 }
 0x1a8   : > { %v12611_v31 = vcombine.high %v675_v25, %v683_v26  ;;  %v723_v9 = vld [vmem:[%s14401_s6 + $0xc28] sm:$0xff] }
 0x1a9   : > { %v4287_v37 = vrot.slane %v14810_v16, %v14822_v28  ;;  %v4295_v39 = vrot.slane %v14813_v19, %v14822_v28  ;;  %v747_v29 = vld [vmem:[%s14401_s6 + $0xce8] sm:$0xff] }
 0x1aa   : > { %3937 = vmatpush1.bf16.msra.mxu0 %v12496_v32  ;;  %4019 = vmatpush1.bf16.msra.mxu1 %v12498_v33  ;;  %v690_v32 = vld [vmem:[%s14401_s6 + $0xb20] sm:$0xff] }
 0x1ab   : > { %3938 = vmatprep.subr.bf16.mxu0 %v12513_v34  ;;  %4020 = vmatprep.subr.bf16.mxu1 %v12515_v35  ;;  %v698_v33 = vld [vmem:[%s14401_s6 + $0xb60] sm:$0xff]  ;;  %v945_v34 = vrot.slane %v865_v24, %v14807_v13  ;;  %v691_v35 = vld [vmem:[%s14401_s6 + $0xb28] sm:$0xff]  ;;  %v4367_v54 = vrot.slane %v4287_v37, %v14822_v28  ;;  %v4375_v56 = vrot.slane %v4295_v39, %v14822_v28 }
 0x1ac   : > { %v12627_v44 = vcombine.high %v691_v35, %v699_v36  ;;  %v12626_v0 = vcombine.low %v691_v35, %v699_v36  ;;  %v762_v35 = vld [vmem:[%s14401_s6 + $0xd60] sm:$0xff]  ;;  %v755_v36 = vld [vmem:[%s14401_s6 + $0xd28] sm:$0xff] }
 0x1ad   : > { %v763_v37 = vld [vmem:[%s14401_s6 + $0xd68] sm:$0xff] }
 0x1ae   : > { %3939 = vmatpush1.bf16.msra.mxu0 %v12512_v40  ;;  %4021 = vmatpush1.bf16.msra.mxu1 %v12514_v41  ;;  %v12608_v40 = vcombine.low %v674_v20, %v682_v23  ;;  %v12610_v41 = vcombine.low %v675_v25, %v683_v26  ;;  %v12659_v25 = vcombine.high %v723_v9, %v731_v10  ;;  %v738_v26 = vld [vmem:[%s14401_s6 + $0xca0] sm:$0xff] }
 0x1af   : > { %3949 = vmatprep.subr.bf16.mxu0 %v12529_v42  ;;  %4031 = vmatprep.subr.bf16.mxu1 %v12531_v43  ;;  %v12625_v42 = vcombine.high %v690_v32, %v698_v33 }
 0x1b1   : > { %3941 = vmatmul.mubr.bf16.vlgmr.msra.gmra.mrb[8].mxu0 %v14499_v12  ;;  %4023 = vmatmul.mubr.bf16.vlgmr.msra.gmra.mrb[8].mxu1 %v14499_v12 }
 0x1b2   : > { %3950 = vmatpush1.bf16.msra.mxu0 %v12528_v48  ;;  %4032 = vmatpush1.bf16.msra.mxu1 %v12530_v49 }
 0x1b3   : > { %3951 = vmatprep.subr.bf16.mxu0 %v12545_v50  ;;  %4033 = vmatprep.subr.bf16.mxu1 %v12547_v51  ;;  %v14841_v50 = vsub.s32 2, %v14799_v3  ;;  %v707_v51 = vld [vmem:[%s14401_s6 + $0xba8] sm:$0xff] }
 0x1b4   : > { %3981 = vmatprep.mubr.bf16.mxu0 %v14512_v21  ;;  %4063 = vmatprep.mubr.bf16.mxu1 %v14512_v21  ;;  %v12642_v23 = vcombine.low %v707_v51, %v715_v52 }
 0x1b5   : > { %v4447_v11 = vrot.slane %v14810_v16, %v14841_v50  ;;  %v746_v16 = vld [vmem:[%s14401_s6 + $0xce0] sm:$0xff] }
 0x1b6   : > { %3952 = vmatpush1.bf16.msra.mxu0 %v12544_v59  ;;  %4034 = vmatpush1.bf16.msra.mxu1 %v12546_v60  ;;  %v12624_v60 = vcombine.low %v690_v32, %v698_v33  ;;  %v12673_v32 = vcombine.high %v738_v26, %v746_v16  ;;  %v12672_v39 = vcombine.low %v738_v26, %v746_v16  ;;  %v835_v26 = vld [vmem:[%s14401_s6 + $0xfa8] sm:$0xff] }
 0x1b7   : > { %3953 = vmatprep.subr.bf16.mxu0 %v12561_v61  ;;  %4035 = vmatprep.subr.bf16.mxu1 %v12563_v62  ;;  %v843_v16 = vld [vmem:[%s14401_s6 + $0xfe8] sm:$0xff] }
 0x1ba   : > { %3954 = vmatpush1.bf16.msra.mxu0 %v12560_v4  ;;  %4036 = vmatpush1.bf16.msra.mxu1 %v12562_v5  ;;  %v12643_v4 = vcombine.high %v707_v51, %v715_v52  ;;  %v722_v5 = vld [vmem:[%s14401_s6 + $0xc20] sm:$0xff]  ;;  %v12690_v51 = vcombine.low %v755_v36, %v763_v37 }
 0x1bb   : > { %3955 = vmatprep.subr.bf16.mxu0 %v12577_v6  ;;  %4037 = vmatprep.subr.bf16.mxu1 %v12579_v7  ;;  %v730_v6 = vld [vmem:[%s14401_s6 + $0xc60] sm:$0xff] }
 0x1bc   : > { %v12657_v24 = vcombine.high %v722_v5, %v730_v6 }
 0x1be   : > { %3956 = vmatpush1.bf16.msra.mxu0 %v12576_v14  ;;  %4038 = vmatpush1.bf16.msra.mxu1 %v12578_v17 }
 0x1bf   : > { %3957 = vmatprep.subr.bf16.mxu0 %v12593_v18  ;;  %4039 = vmatprep.subr.bf16.mxu1 %v12595_v53  ;;  %v12640_v18 = vcombine.low %v706_v45, %v714_v46  ;;  %v4455_v53 = vrot.slane %v14813_v19, %v14841_v50  ;;  %v778_v45 = vld [vmem:[%s14401_s6 + $0xde0] sm:$0xff]  ;;  %v771_v46 = vld [vmem:[%s14401_s6 + $0xda8] sm:$0xff] }
 0x1c1   : > { %v4535_v19 = vrot.slane %v4455_v53, %v14841_v50 }
 0x1c2   : > { %3958 = vmatpush1.bf16.msra.mxu0 %v12592_v27  ;;  %4040 = vmatpush1.bf16.msra.mxu1 %v12594_v30  ;;  %v739_v27 = vld [vmem:[%s14401_s6 + $0xca8] sm:$0xff]  ;;  %v4527_v30 = vrot.slane %v4447_v11, %v14841_v50  ;;  %v826_v11 = vld [vmem:[%s14401_s6 + $0xf60] sm:$0xff] }
 0x1c3   : > { %3959 = vmatprep.subr.bf16.mxu0 %v12609_v15  ;;  %4041 = vmatprep.subr.bf16.mxu1 %v12611_v31  ;;  %v12656_v15 = vcombine.low %v722_v5, %v730_v6  ;;  %v12658_v31 = vcombine.low %v723_v9, %v731_v10  ;;  %v12675_v33 = vcombine.high %v739_v27, %v747_v29  ;;  %v811_v5 = vld [vmem:[%s14401_s6 + $0xee8] sm:$0xff]  ;;  %v818_v10 = vld [vmem:[%s14401_s6 + $0xf20] sm:$0xff] }
 0x1c4   : > { %v3655_v43 = vpop.f32.mrb[0].mxu0  ;;  %v3737_v48 = vpop.f32.mrb[0].mxu1 }
 0x1c5   : > { %v13807_v47 = vadd.f32 %v3655_v43, %v945_v34  ;;  %v14838_v49 = vpop.f32.mrb[1].mxu0  ;;  %v13809_v55 = vadd.f32 %v3737_v48, %v953_v38  ;;  %v14847_v58 = vpop.f32.mrb[1].mxu1  ;;  %v754_v34 = vld [vmem:[%s14401_s6 + $0xd20] sm:$0xff]  ;;  %v12691_v43 = vcombine.high %v755_v36, %v763_v37 }
 0x1c6   : > { %v3659_v59 = vpop.f32.mrb[2].mxu0  ;;  %3960 = vmatpush1.bf16.msra.mxu0 %v12608_v40  ;;  %v3741_v62 = vpop.f32.mrb[2].mxu1  ;;  %4042 = vmatpush1.bf16.msra.mxu1 %v12610_v41  ;;  %v12674_v41 = vcombine.low %v739_v27, %v747_v29  ;;  %v12688_v48 = vcombine.low %v754_v34, %v762_v35  ;;  %v12752_v27 = vcombine.low %v818_v10, %v826_v11 }
 0x1c7   : > { %vm4236_vm0 = vcmp.gt.f32.partialorder %v13807_v47, 0.0  ;;  %v4252_v61 = vmul.f32 0.3, %v13807_v47  ;;  %v3660_v63 = vpop.f32.mrb[3].mxu0  ;;  %3961 = vmatprep.subr.bf16.mxu0 %v12625_v42  ;;  %vm4238_vm1 = vcmp.gt.f32.partialorder %v13809_v55, 0.0  ;;  %4043 = vmatprep.subr.bf16.mxu1 %v12627_v44  ;;  %v3742_v8 = vpop.f32.mrb[3].mxu1  ;;  %v12689_v42 = vcombine.high %v754_v34, %v762_v35 }
 0x1c8   : > { %v4254_v2 = vmul.f32 0.3, %v13809_v55  ;;  %v770_v44 = vld [vmem:[%s14401_s6 + $0xda0] sm:$0xff]  ;;  %v787_v59 = vld [vmem:[%s14401_s6 + $0xe28] sm:$0xff]  ;;  %v12770_v35 = vcombine.low %v835_v26, %v843_v16 }
 0x1c9   : > { %v4268_v7 = vsel %vm4236_vm0, %v13807_v47, %v4252_v61  ;;  %v779_v47 = vld [vmem:[%s14401_s6 + $0xde8] sm:$0xff]  ;;  %v12705_v52 = vcombine.high %v770_v44, %v778_v45  ;;  %v12704_v61 = vcombine.low %v770_v44, %v778_v45 }
 0x1ca   : > { %v4428_v14 = vmul.f32 %v4367_v54, %v4268_v7  ;;  %v4270_v17 = vsel %vm4238_vm1, %v13809_v55, %v4254_v2  ;;  %3962 = vmatpush1.bf16.msra.mxu0 %v12624_v60  ;;  %4044 = vmatpush1.bf16.msra.mxu1 %v12626_v0  ;;  %v12707_v54 = vcombine.high %v771_v46, %v779_v47  ;;  %v786_v55 = vld [vmem:[%s14401_s6 + $0xe20] sm:$0xff]  ;;  %v795_v60 = vld [vmem:[%s14401_s6 + $0xe68] sm:$0xff] }
 0x1cb   : > { %v4430_v20 = vmul.f32 %v4375_v56, %v4270_v17  ;;  %3963 = vmatprep.subr.bf16.mxu0 %v12641_v1  ;;  %4045 = vmatprep.subr.bf16.mxu1 %v12643_v4  ;;  %v794_v56 = vld [vmem:[%s14401_s6 + $0xe60] sm:$0xff]  ;;  %v12706_v62 = vcombine.low %v771_v46, %v779_v47  ;;  %v12723_v0 = vcombine.high %v787_v59, %v795_v60  ;;  %v803_v4 = vld [vmem:[%s14401_s6 + $0xea8] sm:$0xff] }
 0x1cc   : > { %v14867_v38 = vadd.f32 %v4527_v30, %v4428_v14  ;;  %v12721_v63 = vcombine.high %v786_v55, %v794_v56  ;;  %v802_v1 = vld [vmem:[%s14401_s6 + $0xea0] sm:$0xff]  ;;  %v12720_v6 = vcombine.low %v786_v55, %v794_v56  ;;  %v12722_v7 = vcombine.low %v787_v59, %v795_v60  ;;  %v819_v14 = vld [vmem:[%s14401_s6 + $0xf28] sm:$0xff] }
 0x1cd   : > { %v14869_v40 = vadd.f32 %v4535_v19, %v4430_v20  ;;  %v810_v2 = vld [vmem:[%s14401_s6 + $0xee0] sm:$0xff]  ;;  %v12739_v9 = vcombine.high %v803_v4, %v811_v5  ;;  %v827_v17 = vld [vmem:[%s14401_s6 + $0xf68] sm:$0xff]  ;;  %v12738_v53 = vcombine.low %v803_v4, %v811_v5  ;;  %v12753_v20 = vcombine.high %v818_v10, %v826_v11  ;;  %v340_v19 = vld [vmem:[%s14401_s6 + $0x30] sm:$0xff] }
 0x1ce   : > { %3964 = vmatpush1.bf16.msra.mxu0 %v12640_v18  ;;  %4046 = vmatpush1.bf16.msra.mxu1 %v12642_v23  ;;  %v12737_v8 = vcombine.high %v802_v1, %v810_v2  ;;  %v12736_v18 = vcombine.low %v802_v1, %v810_v2  ;;  %v12755_v23 = vcombine.high %v819_v14, %v827_v17 }
 0x1cf   : > { %3965 = vmatprep.subr.bf16.mxu0 %v12657_v24  ;;  %4047 = vmatprep.subr.bf16.mxu1 %v12659_v25  ;;  %v834_v24 = vld [vmem:[%s14401_s6 + $0xfa0] sm:$0xff]  ;;  %v12754_v29 = vcombine.low %v819_v14, %v827_v17  ;;  %v420_v17 = vld [vmem:[%s14401_s6 + $0x2b0] sm:$0xff] }
 0x1d0   : > { %v842_v25 = vld [vmem:[%s14401_s6 + $0xfe0] sm:$0xff] }
 0x1d1   : > { %v12769_v30 = vcombine.high %v834_v24, %v842_v25  ;;  %v12768_v34 = vcombine.low %v834_v24, %v842_v25 }
 0x1d2   : > { %3966 = vmatpush1.bf16.msra.mxu0 %v12656_v15  ;;  %4048 = vmatpush1.bf16.msra.mxu1 %v12658_v31  ;;  %v12771_v15 = vcombine.high %v835_v26, %v843_v16  ;;  %v348_v31 = vld [vmem:[%s14401_s6 + $0x70] sm:$0xff] }
 0x1d3   : > { %3967 = vmatprep.subr.bf16.mxu0 %v12673_v32  ;;  %4049 = vmatprep.subr.bf16.mxu1 %v12675_v33  ;;  %v341_v32 = vld [vmem:[%s14401_s6 + $0x38] sm:$0xff]  ;;  %v12277_v36 = vcombine.high %v340_v19, %v348_v31  ;;  %v12276_v44 = vcombine.low %v340_v19, %v348_v31  ;;  %v436_v16 = vld [vmem:[%s14401_s6 + $0x330] sm:$0xff] }
 0x1d4   : > { %v349_v33 = vld [vmem:[%s14401_s6 + $0x78] sm:$0xff] }
 0x1d5   : > { %v12279_v37 = vcombine.high %v341_v32, %v349_v33  ;;  %v12278_v45 = vcombine.low %v341_v32, %v349_v33  ;;  %v452_v33 = vld [vmem:[%s14401_s6 + $0x3b0] sm:$0xff] }
 0x1d6   : > { %3968 = vmatpush1.bf16.msra.mxu0 %v12672_v39  ;;  %4050 = vmatpush1.bf16.msra.mxu1 %v12674_v41  ;;  %v356_v39 = vld [vmem:[%s14401_s6 + $0xb0] sm:$0xff] }
 0x1d7   : > { %3969 = vmatprep.subr.bf16.mxu0 %v12689_v42  ;;  %4051 = vmatprep.subr.bf16.mxu1 %v12691_v43  ;;  %v364_v41 = vld [vmem:[%s14401_s6 + $0xf0] sm:$0xff]  ;;  %v357_v42 = vld [vmem:[%s14401_s6 + $0xb8] sm:$0xff] }
 0x1d8   : > { %v365_v43 = vld [vmem:[%s14401_s6 + $0xf8] sm:$0xff]  ;;  %v12293_v46 = vcombine.high %v356_v39, %v364_v41  ;;  %v12292_v55 = vcombine.low %v356_v39, %v364_v41 }
 0x1d9   : > { %v12295_v47 = vcombine.high %v357_v42, %v365_v43  ;;  %v12294_v56 = vcombine.low %v357_v42, %v365_v43  ;;  %v468_v43 = vld [vmem:[%s14401_s6 + $0x430] sm:$0xff] }
 0x1da   : > { %3970 = vmatpush1.bf16.msra.mxu0 %v12688_v48  ;;  %4052 = vmatpush1.bf16.msra.mxu1 %v12690_v51  ;;  %v372_v48 = vld [vmem:[%s14401_s6 + $0x130] sm:$0xff] }
 0x1db   : > { %3971 = vmatprep.subr.bf16.mxu0 %v12705_v52  ;;  %4053 = vmatprep.subr.bf16.mxu1 %v12707_v54  ;;  %v380_v51 = vld [vmem:[%s14401_s6 + $0x170] sm:$0xff]  ;;  %v373_v52 = vld [vmem:[%s14401_s6 + $0x138] sm:$0xff] }
 0x1dc   : > { %v381_v54 = vld [vmem:[%s14401_s6 + $0x178] sm:$0xff]  ;;  %v12309_v59 = vcombine.high %v372_v48, %v380_v51  ;;  %v12308_v1 = vcombine.low %v372_v48, %v380_v51 }
 0x1dd   : > { %v12311_v60 = vcombine.high %v373_v52, %v381_v54  ;;  %v12310_v2 = vcombine.low %v373_v52, %v381_v54  ;;  %v484_v54 = vld [vmem:[%s14401_s6 + $0x4b0] sm:$0xff] }
 0x1de   : > { %3972 = vmatpush1.bf16.msra.mxu0 %v12704_v61  ;;  %4054 = vmatpush1.bf16.msra.mxu1 %v12706_v62  ;;  %v388_v61 = vld [vmem:[%s14401_s6 + $0x1b0] sm:$0xff] }
 0x1df   : > { %3973 = vmatprep.subr.bf16.mxu0 %v12721_v63  ;;  %4055 = vmatprep.subr.bf16.mxu1 %v12723_v0  ;;  %v396_v62 = vld [vmem:[%s14401_s6 + $0x1f0] sm:$0xff]  ;;  %v389_v63 = vld [vmem:[%s14401_s6 + $0x1b8] sm:$0xff] }
 0x1e0   : > { %v397_v0 = vld [vmem:[%s14401_s6 + $0x1f8] sm:$0xff]  ;;  %v12325_v4 = vcombine.high %v388_v61, %v396_v62  ;;  %v12324_v10 = vcombine.low %v388_v61, %v396_v62 }
 0x1e1   : > { %v12327_v5 = vcombine.high %v389_v63, %v397_v0 }
 0x1e2   : > { %3974 = vmatpush1.bf16.msra.mxu0 %v12720_v6  ;;  %4056 = vmatpush1.bf16.msra.mxu1 %v12722_v7  ;;  %v404_v6 = vld [vmem:[%s14401_s6 + $0x230] sm:$0xff] }
 0x1e3   : > { %3975 = vmatprep.subr.bf16.mxu0 %v12737_v8  ;;  %4057 = vmatprep.subr.bf16.mxu1 %v12739_v9  ;;  %v412_v7 = vld [vmem:[%s14401_s6 + $0x270] sm:$0xff]  ;;  %v405_v8 = vld [vmem:[%s14401_s6 + $0x238] sm:$0xff] }
 0x1e4   : > { %v413_v9 = vld [vmem:[%s14401_s6 + $0x278] sm:$0xff]  ;;  %v12341_v11 = vcombine.high %v404_v6, %v412_v7 }
 0x1e5   : > { %v12343_v14 = vcombine.high %v405_v8, %v413_v9  ;;  %v12342_v24 = vcombine.low %v405_v8, %v413_v9  ;;  %v516_v9 = vld [vmem:[%s14401_s6 + $0x5b0] sm:$0xff] }
 0x1e6   : > { %3976 = vmatpush1.bf16.msra.mxu0 %v12736_v18  ;;  %4058 = vmatpush1.bf16.msra.mxu1 %v12738_v53  ;;  %v428_v18 = vld [vmem:[%s14401_s6 + $0x2f0] sm:$0xff]  ;;  %v421_v53 = vld [vmem:[%s14401_s6 + $0x2b8] sm:$0xff] }
 0x1e7   : > { %3977 = vmatprep.subr.bf16.mxu0 %v12753_v20  ;;  %4059 = vmatprep.subr.bf16.mxu1 %v12755_v23  ;;  %v429_v20 = vld [vmem:[%s14401_s6 + $0x2f8] sm:$0xff]  ;;  %v12340_v23 = vcombine.low %v404_v6, %v412_v7  ;;  %v12357_v25 = vcombine.high %v420_v17, %v428_v18 }
 0x1e8   : > { %v12359_v26 = vcombine.high %v421_v53, %v429_v20  ;;  %v12358_v19 = vcombine.low %v421_v53, %v429_v20  ;;  %v532_v20 = vld [vmem:[%s14401_s6 + $0x630] sm:$0xff] }
 0x1ea   : > { %3978 = vmatpush1.bf16.msra.mxu0 %v12752_v27  ;;  %4060 = vmatpush1.bf16.msra.mxu1 %v12754_v29  ;;  %v444_v27 = vld [vmem:[%s14401_s6 + $0x370] sm:$0xff]  ;;  %v437_v29 = vld [vmem:[%s14401_s6 + $0x338] sm:$0xff] }
 0x1eb   : > { %3979 = vmatprep.subr.bf16.mxu0 %v12769_v30  ;;  %4061 = vmatprep.subr.bf16.mxu1 %v12771_v15  ;;  %v445_v30 = vld [vmem:[%s14401_s6 + $0x378] sm:$0xff]  ;;  %v12356_v15 = vcombine.low %v420_v17, %v428_v18  ;;  %v12373_v31 = vcombine.high %v436_v16, %v444_v27 }
 0x1ec   : > { %v12375_v32 = vcombine.high %v437_v29, %v445_v30  ;;  %v12374_v39 = vcombine.low %v437_v29, %v445_v30  ;;  %v548_v30 = vld [vmem:[%s14401_s6 + $0x6b0] sm:$0xff] }
 0x1ee   : > { %3980 = vmatpush1.bf16.msra.mxu0 %v12768_v34  ;;  %4062 = vmatpush1.bf16.msra.mxu1 %v12770_v35  ;;  %v460_v34 = vld [vmem:[%s14401_s6 + $0x3f0] sm:$0xff]  ;;  %v453_v35 = vld [vmem:[%s14401_s6 + $0x3b8] sm:$0xff] }
 0x1ef   : > { %4072 = vmatprep.subr.bf16.mxu0 %v12277_v36  ;;  %4154 = vmatprep.subr.bf16.mxu1 %v12279_v37  ;;  %v461_v36 = vld [vmem:[%s14401_s6 + $0x3f8] sm:$0xff]  ;;  %v12372_v37 = vcombine.low %v436_v16, %v444_v27  ;;  %v12389_v41 = vcombine.high %v452_v33, %v460_v34 }
 0x1f0   : > { %v12391_v42 = vcombine.high %v453_v35, %v461_v36  ;;  %v12390_v48 = vcombine.low %v453_v35, %v461_v36  ;;  %v564_v36 = vld [vmem:[%s14401_s6 + $0x730] sm:$0xff] }
 0x1f1   : > { %3982 = vmatmul.mubr.bf16.vlgmr.msra.gmra.mrb[8].mxu0 %v14580_v22  ;;  %4064 = vmatmul.mubr.bf16.vlgmr.msra.gmra.mrb[8].mxu1 %v14580_v22 }
 0x1f2   : > { %4073 = vmatpush1.bf16.msra.mxu0 %v12276_v44  ;;  %4155 = vmatpush1.bf16.msra.mxu1 %v12278_v45  ;;  %v476_v44 = vld [vmem:[%s14401_s6 + $0x470] sm:$0xff]  ;;  %v469_v45 = vld [vmem:[%s14401_s6 + $0x438] sm:$0xff] }
 0x1f3   : > { %4074 = vmatprep.subr.bf16.mxu0 %v12293_v46  ;;  %4156 = vmatprep.subr.bf16.mxu1 %v12295_v47  ;;  %v477_v46 = vld [vmem:[%s14401_s6 + $0x478] sm:$0xff]  ;;  %v12388_v47 = vcombine.low %v452_v33, %v460_v34  ;;  %v12405_v51 = vcombine.high %v468_v43, %v476_v44 }
 0x1f4   : > { %4104 = vmatprep.mubr.bf16.mxu0 %v14453_v57  ;;  %4186 = vmatprep.mubr.bf16.mxu1 %v14453_v57  ;;  %v12326_v57 = vcombine.low %v389_v63, %v397_v0  ;;  %v12407_v52 = vcombine.high %v469_v45, %v477_v46  ;;  %v12406_v61 = vcombine.low %v469_v45, %v477_v46  ;;  %v500_v0 = vld [vmem:[%s14401_s6 + $0x530] sm:$0xff] }
 0x1f5   : > { %v580_v46 = vld [vmem:[%s14401_s6 + $0x7b0] sm:$0xff] }
 0x1f6   : > { %4075 = vmatpush1.bf16.msra.mxu0 %v12292_v55  ;;  %4157 = vmatpush1.bf16.msra.mxu1 %v12294_v56  ;;  %v492_v55 = vld [vmem:[%s14401_s6 + $0x4f0] sm:$0xff]  ;;  %v485_v56 = vld [vmem:[%s14401_s6 + $0x4b8] sm:$0xff] }
 0x1f7   : > { %4076 = vmatprep.subr.bf16.mxu0 %v12309_v59  ;;  %4158 = vmatprep.subr.bf16.mxu1 %v12311_v60  ;;  %v493_v59 = vld [vmem:[%s14401_s6 + $0x4f8] sm:$0xff]  ;;  %v12404_v60 = vcombine.low %v468_v43, %v476_v44  ;;  %v12421_v62 = vcombine.high %v484_v54, %v492_v55 }
 0x1f8   : > { %v12423_v63 = vcombine.high %v485_v56, %v493_v59  ;;  %v12422_v6 = vcombine.low %v485_v56, %v493_v59  ;;  %v596_v59 = vld [vmem:[%s14401_s6 + $0x830] sm:$0xff] }
 0x1fa   : > { %4077 = vmatpush1.bf16.msra.mxu0 %v12308_v1  ;;  %4159 = vmatpush1.bf16.msra.mxu1 %v12310_v2  ;;  %v508_v1 = vld [vmem:[%s14401_s6 + $0x570] sm:$0xff]  ;;  %v501_v2 = vld [vmem:[%s14401_s6 + $0x538] sm:$0xff] }
 0x1fb   : > { %4078 = vmatprep.subr.bf16.mxu0 %v12325_v4  ;;  %4160 = vmatprep.subr.bf16.mxu1 %v12327_v5  ;;  %v509_v4 = vld [vmem:[%s14401_s6 + $0x578] sm:$0xff]  ;;  %v12420_v5 = vcombine.low %v484_v54, %v492_v55  ;;  %v12437_v7 = vcombine.high %v500_v0, %v508_v1 }
 0x1fc   : > { %v12439_v8 = vcombine.high %v501_v2, %v509_v4  ;;  %v12438_v17 = vcombine.low %v501_v2, %v509_v4  ;;  %v612_v4 = vld [vmem:[%s14401_s6 + $0x8b0] sm:$0xff] }
 0x1fe   : > { %4079 = vmatpush1.bf16.msra.mxu0 %v12324_v10  ;;  %4161 = vmatpush1.bf16.msra.mxu1 %v12326_v57  ;;  %v524_v10 = vld [vmem:[%s14401_s6 + $0x5f0] sm:$0xff]  ;;  %v517_v57 = vld [vmem:[%s14401_s6 + $0x5b8] sm:$0xff] }
 0x1ff   : > { %4080 = vmatprep.subr.bf16.mxu0 %v12341_v11  ;;  %4162 = vmatprep.subr.bf16.mxu1 %v12343_v14  ;;  %v525_v11 = vld [vmem:[%s14401_s6 + $0x5f8] sm:$0xff]  ;;  %v12436_v14 = vcombine.low %v500_v0, %v508_v1  ;;  %v12453_v18 = vcombine.high %v516_v9, %v524_v10 }
 0x200   : > { %v12455_v53 = vcombine.high %v517_v57, %v525_v11  ;;  %v12454_v16 = vcombine.low %v517_v57, %v525_v11  ;;  %v628_v11 = vld [vmem:[%s14401_s6 + $0x930] sm:$0xff] }
 0x202   : > { %4081 = vmatpush1.bf16.msra.mxu0 %v12340_v23  ;;  %4163 = vmatpush1.bf16.msra.mxu1 %v12342_v24  ;;  %v540_v23 = vld [vmem:[%s14401_s6 + $0x670] sm:$0xff]  ;;  %v533_v24 = vld [vmem:[%s14401_s6 + $0x638] sm:$0xff] }
 0x203   : > { %4082 = vmatprep.subr.bf16.mxu0 %v12357_v25  ;;  %4164 = vmatprep.subr.bf16.mxu1 %v12359_v26  ;;  %v541_v25 = vld [vmem:[%s14401_s6 + $0x678] sm:$0xff]  ;;  %v12452_v26 = vcombine.low %v516_v9, %v524_v10  ;;  %v12469_v27 = vcombine.high %v532_v20, %v540_v23 }
 0x204   : > { %v12471_v29 = vcombine.high %v533_v24, %v541_v25  ;;  %v12470_v33 = vcombine.low %v533_v24, %v541_v25  ;;  %v644_v25 = vld [vmem:[%s14401_s6 + $0x9b0] sm:$0xff] }
 0x206   : > { %4083 = vmatpush1.bf16.msra.mxu0 %v12356_v15  ;;  %4165 = vmatpush1.bf16.msra.mxu1 %v12358_v19  ;;  %v556_v15 = vld [vmem:[%s14401_s6 + $0x6f0] sm:$0xff]  ;;  %v549_v19 = vld [vmem:[%s14401_s6 + $0x6b8] sm:$0xff] }
 0x207   : > { %4084 = vmatprep.subr.bf16.mxu0 %v12373_v31  ;;  %4166 = vmatprep.subr.bf16.mxu1 %v12375_v32  ;;  %v557_v31 = vld [vmem:[%s14401_s6 + $0x6f8] sm:$0xff]  ;;  %v12468_v32 = vcombine.low %v532_v20, %v540_v23  ;;  %v12485_v34 = vcombine.high %v548_v30, %v556_v15 }
 0x208   : > { %v12487_v35 = vcombine.high %v549_v19, %v557_v31  ;;  %v12486_v43 = vcombine.low %v549_v19, %v557_v31  ;;  %v660_v19 = vld [vmem:[%s14401_s6 + $0xa30] sm:$0xff] }
 0x209   : > { %v668_v31 = vld [vmem:[%s14401_s6 + $0xa70] sm:$0xff] }
 0x20a   : > { %4085 = vmatpush1.bf16.msra.mxu0 %v12372_v37  ;;  %4167 = vmatpush1.bf16.msra.mxu1 %v12374_v39  ;;  %v572_v37 = vld [vmem:[%s14401_s6 + $0x770] sm:$0xff]  ;;  %v565_v39 = vld [vmem:[%s14401_s6 + $0x738] sm:$0xff] }
 0x20b   : > { %4086 = vmatprep.subr.bf16.mxu0 %v12389_v41  ;;  %4168 = vmatprep.subr.bf16.mxu1 %v12391_v42  ;;  %v573_v41 = vld [vmem:[%s14401_s6 + $0x778] sm:$0xff]  ;;  %v12484_v42 = vcombine.low %v548_v30, %v556_v15  ;;  %v12501_v44 = vcombine.high %v564_v36, %v572_v37 }
 0x20c   : > { %v12503_v45 = vcombine.high %v565_v39, %v573_v41  ;;  %v12502_v54 = vcombine.low %v565_v39, %v573_v41  ;;  %v676_v41 = vld [vmem:[%s14401_s6 + $0xab0] sm:$0xff] }
 0x20e   : > { %4087 = vmatpush1.bf16.msra.mxu0 %v12388_v47  ;;  %4169 = vmatpush1.bf16.msra.mxu1 %v12390_v48  ;;  %v588_v47 = vld [vmem:[%s14401_s6 + $0x7f0] sm:$0xff]  ;;  %v581_v48 = vld [vmem:[%s14401_s6 + $0x7b8] sm:$0xff] }
 0x20f   : > { %4088 = vmatprep.subr.bf16.mxu0 %v12405_v51  ;;  %4170 = vmatprep.subr.bf16.mxu1 %v12407_v52  ;;  %v589_v51 = vld [vmem:[%s14401_s6 + $0x7f8] sm:$0xff]  ;;  %v12500_v52 = vcombine.low %v564_v36, %v572_v37  ;;  %v12517_v55 = vcombine.high %v580_v46, %v588_v47  ;;  %v12597_v36 = vcombine.high %v660_v19, %v668_v31 }
 0x210   : > { %v12519_v56 = vcombine.high %v581_v48, %v589_v51  ;;  %v12518_v0 = vcombine.low %v581_v48, %v589_v51  ;;  %v14987_v37 = vld [vmem:[%s14410_s9 + $0x18] sm:$0x77] }
 0x212   : > { %4089 = vmatpush1.bf16.msra.mxu0 %v12404_v60  ;;  %4171 = vmatpush1.bf16.msra.mxu1 %v12406_v61  ;;  %v604_v60 = vld [vmem:[%s14401_s6 + $0x870] sm:$0xff]  ;;  %v597_v61 = vld [vmem:[%s14401_s6 + $0x838] sm:$0xff] }
 0x213   : > { %4090 = vmatprep.subr.bf16.mxu0 %v12421_v62  ;;  %4172 = vmatprep.subr.bf16.mxu1 %v12423_v63  ;;  %v605_v62 = vld [vmem:[%s14401_s6 + $0x878] sm:$0xff]  ;;  %v12516_v63 = vcombine.low %v580_v46, %v588_v47  ;;  %v12533_v1 = vcombine.high %v596_v59, %v604_v60  ;;  %v12596_v46 = vcombine.low %v660_v19, %v668_v31 }
 0x214   : > { %v12535_v2 = vcombine.high %v597_v61, %v605_v62  ;;  %v12534_v9 = vcombine.low %v597_v61, %v605_v62  ;;  %v889_v47 = vrot.slane %v14987_v37, %v14807_v13 }
 0x216   : > { %4091 = vmatpush1.bf16.msra.mxu0 %v12420_v5  ;;  %4173 = vmatpush1.bf16.msra.mxu1 %v12422_v6  ;;  %v620_v5 = vld [vmem:[%s14401_s6 + $0x8f0] sm:$0xff]  ;;  %v613_v6 = vld [vmem:[%s14401_s6 + $0x8b8] sm:$0xff]  ;;  %v969_v62 = vrot.slane %v889_v47, %v14807_v13  ;;  %v4471_v47 = vrot.slane %v14987_v37, %v14841_v50 }
 0x217   : > { %4092 = vmatprep.subr.bf16.mxu0 %v12437_v7  ;;  %4174 = vmatprep.subr.bf16.mxu1 %v12439_v8  ;;  %v621_v7 = vld [vmem:[%s14401_s6 + $0x8f8] sm:$0xff]  ;;  %v12532_v8 = vcombine.low %v596_v59, %v604_v60  ;;  %v12549_v10 = vcombine.high %v612_v4, %v620_v5 }
 0x218   : > { %v12551_v57 = vcombine.high %v613_v6, %v621_v7  ;;  %v12550_v20 = vcombine.low %v613_v6, %v621_v7  ;;  %v693_v59 = vld [vmem:[%s14401_s6 + $0xb38] sm:$0xff]  ;;  %v708_v6 = vld [vmem:[%s14401_s6 + $0xbb0] sm:$0xff] }
 0x219   : > { %v701_v60 = vld [vmem:[%s14401_s6 + $0xb78] sm:$0xff]  ;;  %v716_v7 = vld [vmem:[%s14401_s6 + $0xbf0] sm:$0xff] }
 0x21a   : > { %4093 = vmatpush1.bf16.msra.mxu0 %v12436_v14  ;;  %4175 = vmatpush1.bf16.msra.mxu1 %v12438_v17  ;;  %v636_v14 = vld [vmem:[%s14401_s6 + $0x970] sm:$0xff]  ;;  %v629_v17 = vld [vmem:[%s14401_s6 + $0x938] sm:$0xff] }
 0x21b   : > { %4094 = vmatprep.subr.bf16.mxu0 %v12453_v18  ;;  %4176 = vmatprep.subr.bf16.mxu1 %v12455_v53  ;;  %v637_v18 = vld [vmem:[%s14401_s6 + $0x978] sm:$0xff]  ;;  %v12548_v53 = vcombine.low %v612_v4, %v620_v5  ;;  %v12565_v23 = vcombine.high %v628_v11, %v636_v14  ;;  %v12631_v5 = vcombine.high %v693_v59, %v701_v60 }
 0x21c   : > { %v12567_v24 = vcombine.high %v629_v17, %v637_v18 }
 0x21e   : > { %4095 = vmatpush1.bf16.msra.mxu0 %v12452_v26  ;;  %4177 = vmatpush1.bf16.msra.mxu1 %v12454_v16  ;;  %v652_v26 = vld [vmem:[%s14401_s6 + $0x9f0] sm:$0xff]  ;;  %v645_v16 = vld [vmem:[%s14401_s6 + $0x9b8] sm:$0xff] }
 0x21f   : > { %4096 = vmatprep.subr.bf16.mxu0 %v12469_v27  ;;  %4178 = vmatprep.subr.bf16.mxu1 %v12471_v29  ;;  %v653_v27 = vld [vmem:[%s14401_s6 + $0x9f8] sm:$0xff]  ;;  %v12566_v29 = vcombine.low %v629_v17, %v637_v18  ;;  %v12581_v30 = vcombine.high %v644_v25, %v652_v26 }
 0x220   : > { %v12583_v15 = vcombine.high %v645_v16, %v653_v27 }
 0x222   : > { %4097 = vmatpush1.bf16.msra.mxu0 %v12468_v32  ;;  %4179 = vmatpush1.bf16.msra.mxu1 %v12470_v33  ;;  %v661_v32 = vld [vmem:[%s14401_s6 + $0xa38] sm:$0xff] }
 0x223   : > { %4098 = vmatprep.subr.bf16.mxu0 %v12485_v34  ;;  %4180 = vmatprep.subr.bf16.mxu1 %v12487_v35  ;;  %v669_v33 = vld [vmem:[%s14401_s6 + $0xa78] sm:$0xff]  ;;  %v12580_v34 = vcombine.low %v644_v25, %v652_v26  ;;  %v12582_v35 = vcombine.low %v645_v16, %v653_v27  ;;  %v12630_v16 = vcombine.low %v693_v59, %v701_v60  ;;  %v756_v59 = vld [vmem:[%s14401_s6 + $0xd30] sm:$0xff] }
 0x224   : > { %v12599_v39 = vcombine.high %v661_v32, %v669_v33  ;;  %v12598_v48 = vcombine.low %v661_v32, %v669_v33  ;;  %v12645_v27 = vcombine.high %v708_v6, %v716_v7  ;;  %v725_v32 = vld [vmem:[%s14401_s6 + $0xc38] sm:$0xff]  ;;  %v764_v60 = vld [vmem:[%s14401_s6 + $0xd70] sm:$0xff] }
 0x225   : > { %v733_v33 = vld [vmem:[%s14401_s6 + $0xc78] sm:$0xff] }
 0x226   : > { %4099 = vmatpush1.bf16.msra.mxu0 %v12484_v42  ;;  %4181 = vmatpush1.bf16.msra.mxu1 %v12486_v43  ;;  %v684_v42 = vld [vmem:[%s14401_s6 + $0xaf0] sm:$0xff] }
 0x227   : > { %4100 = vmatprep.subr.bf16.mxu0 %v12501_v44  ;;  %4182 = vmatprep.subr.bf16.mxu1 %v12503_v45  ;;  %v677_v44 = vld [vmem:[%s14401_s6 + $0xab8] sm:$0xff]  ;;  %v12613_v51 = vcombine.high %v676_v41, %v684_v42 }
 0x228   : > { %v685_v45 = vld [vmem:[%s14401_s6 + $0xaf8] sm:$0xff] }
 0x22a   : > { %4101 = vmatpush1.bf16.msra.mxu0 %v12500_v52  ;;  %4183 = vmatpush1.bf16.msra.mxu1 %v12502_v54  ;;  %v12615_v52 = vcombine.high %v677_v44, %v685_v45  ;;  %v692_v54 = vld [vmem:[%s14401_s6 + $0xb30] sm:$0xff] }
 0x22b   : > { %4102 = vmatprep.subr.bf16.mxu0 %v12517_v55  ;;  %4184 = vmatprep.subr.bf16.mxu1 %v12519_v56  ;;  %v700_v55 = vld [vmem:[%s14401_s6 + $0xb70] sm:$0xff] }
 0x22e   : > { %4103 = vmatpush1.bf16.msra.mxu0 %v12516_v63  ;;  %4185 = vmatpush1.bf16.msra.mxu1 %v12518_v0  ;;  %v4311_v63 = vrot.slane %v14987_v37, %v14822_v28  ;;  %v12612_v0 = vcombine.low %v676_v41, %v684_v42  ;;  %v757_v37 = vld [vmem:[%s14401_s6 + $0xd38] sm:$0xff] }
 0x22f   : > { %4113 = vmatprep.subr.bf16.mxu0 %v12533_v1  ;;  %4195 = vmatprep.subr.bf16.mxu1 %v12535_v2  ;;  %v12614_v1 = vcombine.low %v677_v44, %v685_v45  ;;  %v12629_v2 = vcombine.high %v692_v54, %v700_v55  ;;  %v12663_v44 = vcombine.high %v725_v32, %v733_v33  ;;  %v740_v45 = vld [vmem:[%s14401_s6 + $0xcb0] sm:$0xff] }
 0x230   : > { %v4391_v18 = vrot.slane %v4311_v63, %v14822_v28  ;;  %v15036_v63 = vsub.s32 4, %v14799_v3 }
 0x231   : > { %4105 = vmatmul.mubr.bf16.vlgmr.msra.gmra.mrb[12].mxu0 %v14499_v12  ;;  %4187 = vmatmul.mubr.bf16.vlgmr.msra.gmra.mrb[12].mxu1 %v14499_v12  ;;  %v12564_v12 = vcombine.low %v628_v11, %v636_v14  ;;  %v717_v11 = vld [vmem:[%s14401_s6 + $0xbf8] sm:$0xff] }
 0x232   : > { %4114 = vmatpush1.bf16.msra.mxu0 %v12532_v8  ;;  %4196 = vmatpush1.bf16.msra.mxu1 %v12534_v9 }
 0x233   : > { %4115 = vmatprep.subr.bf16.mxu0 %v12549_v10  ;;  %4197 = vmatprep.subr.bf16.mxu1 %v12551_v57  ;;  %v709_v57 = vld [vmem:[%s14401_s6 + $0xbb8] sm:$0xff] }
 0x234   : > { %4145 = vmatprep.mubr.bf16.mxu0 %v14512_v21  ;;  %4227 = vmatprep.mubr.bf16.mxu1 %v14512_v21  ;;  %v14984_v21 = vld [vmem:[%s14410_s9 + $0x10] sm:$0x77] }
 0x235   : > { %v881_v43 = vrot.slane %v14984_v21, %v14807_v13  ;;  %v4303_v61 = vrot.slane %v14984_v21, %v14822_v28 }
 0x236   : > { %4116 = vmatpush1.bf16.msra.mxu0 %v12548_v53  ;;  %4198 = vmatpush1.bf16.msra.mxu1 %v12550_v20 }
 0x237   : > { %4117 = vmatprep.subr.bf16.mxu0 %v12565_v23  ;;  %4199 = vmatprep.subr.bf16.mxu1 %v12567_v24  ;;  %v961_v56 = vrot.slane %v881_v43, %v14807_v13  ;;  %v4383_v14 = vrot.slane %v4303_v61, %v14822_v28  ;;  %v12628_v23 = vcombine.low %v692_v54, %v700_v55 }
 0x238   : > { %v4463_v43 = vrot.slane %v14984_v21, %v14841_v50  ;;  %v12662_v54 = vcombine.low %v725_v32, %v733_v33  ;;  %v4551_v61 = vrot.slane %v4471_v47, %v14841_v50  ;;  %v15059_v32 = vsub.s32 5, %v14799_v3  ;;  %v805_v33 = vld [vmem:[%s14401_s6 + $0xeb8] sm:$0xff] }
 0x239   : > { %v829_v47 = vld [vmem:[%s14401_s6 + $0xf78] sm:$0xff] }
 0x23a   : > { %4118 = vmatpush1.bf16.msra.mxu0 %v12564_v12  ;;  %4200 = vmatpush1.bf16.msra.mxu1 %v12566_v29  ;;  %v12647_v29 = vcombine.high %v709_v57, %v717_v11  ;;  %v4543_v21 = vrot.slane %v4463_v43, %v14841_v50  ;;  %v820_v43 = vld [vmem:[%s14401_s6 + $0xf30] sm:$0xff] }
 0x23b   : > { %4119 = vmatprep.subr.bf16.mxu0 %v12581_v30  ;;  %4201 = vmatprep.subr.bf16.mxu1 %v12583_v15  ;;  %v724_v30 = vld [vmem:[%s14401_s6 + $0xc30] sm:$0xff] }
 0x23c   : > { %v732_v15 = vld [vmem:[%s14401_s6 + $0xc70] sm:$0xff] }
 0x23d   : > { %v12661_v42 = vcombine.high %v724_v30, %v732_v15 }
 0x23e   : > { %4120 = vmatpush1.bf16.msra.mxu0 %v12580_v34  ;;  %4202 = vmatpush1.bf16.msra.mxu1 %v12582_v35 }
 0x23f   : > { %4121 = vmatprep.subr.bf16.mxu0 %v12597_v36  ;;  %4203 = vmatprep.subr.bf16.mxu1 %v12599_v39  ;;  %v12644_v36 = vcombine.low %v708_v6, %v716_v7  ;;  %v12646_v39 = vcombine.low %v709_v57, %v717_v11  ;;  %v772_v6 = vld [vmem:[%s14401_s6 + $0xdb0] sm:$0xff]  ;;  %v781_v57 = vld [vmem:[%s14401_s6 + $0xdf8] sm:$0xff]  ;;  %v15047_v11 = vld [vmem:[%s14410_s9] sm:$0x77] }
 0x240   : > { %v780_v7 = vld [vmem:[%s14401_s6 + $0xdf0] sm:$0xff] }
 0x242   : > { %4122 = vmatpush1.bf16.msra.mxu0 %v12596_v46  ;;  %4204 = vmatpush1.bf16.msra.mxu1 %v12598_v48  ;;  %v748_v46 = vld [vmem:[%s14401_s6 + $0xcf0] sm:$0xff]  ;;  %v741_v48 = vld [vmem:[%s14401_s6 + $0xcb8] sm:$0xff] }
 0x243   : > { %4123 = vmatprep.subr.bf16.mxu0 %v12613_v51  ;;  %4205 = vmatprep.subr.bf16.mxu1 %v12615_v52  ;;  %v749_v51 = vld [vmem:[%s14401_s6 + $0xcf8] sm:$0xff]  ;;  %v12660_v52 = vcombine.low %v724_v30, %v732_v15  ;;  %v12677_v55 = vcombine.high %v740_v45, %v748_v46 }
 0x244   : > { %v3819_v4 = vpop.f32.mrb[4].mxu0  ;;  %v3901_v9 = vpop.f32.mrb[4].mxu1 }
 0x245   : > { %v13811_v8 = vadd.f32 %v3819_v4, %v961_v56  ;;  %v15009_v10 = vpop.f32.mrb[5].mxu0  ;;  %v13813_v17 = vadd.f32 %v3901_v9, %v969_v62  ;;  %v15015_v53 = vpop.f32.mrb[5].mxu1  ;;  %v12679_v56 = vcombine.high %v741_v48, %v749_v51  ;;  %v765_v62 = vld [vmem:[%s14401_s6 + $0xd78] sm:$0xff] }
 0x246   : > { %v3823_v20 = vpop.f32.mrb[6].mxu0  ;;  %4124 = vmatpush1.bf16.msra.mxu0 %v12612_v0  ;;  %v3905_v25 = vpop.f32.mrb[6].mxu1  ;;  %4206 = vmatpush1.bf16.msra.mxu1 %v12614_v1  ;;  %v12676_v0 = vcombine.low %v740_v45, %v748_v46  ;;  %v12678_v1 = vcombine.low %v741_v48, %v749_v51  ;;  %v773_v9 = vld [vmem:[%s14401_s6 + $0xdb8] sm:$0xff]  ;;  %v4291_v45 = vrot.slane %v15047_v11, %v15059_v32 }
 0x247   : > { %vm4240_vm2 = vcmp.gt.f32.partialorder %v13811_v8, 0.0  ;;  %v4256_v24 = vmul.f32 0.3, %v13811_v8  ;;  %v3824_v26 = vpop.f32.mrb[7].mxu0  ;;  %4125 = vmatprep.subr.bf16.mxu0 %v12629_v2  ;;  %vm4242_vm3 = vcmp.gt.f32.partialorder %v13813_v17, 0.0  ;;  %4207 = vmatprep.subr.bf16.mxu1 %v12631_v5  ;;  %v3906_v31 = vpop.f32.mrb[7].mxu1  ;;  %v12693_v2 = vcombine.high %v756_v59, %v764_v60 }
 0x248   : > { %v4258_v12 = vmul.f32 0.3, %v13813_v17  ;;  %v12695_v5 = vcombine.high %v757_v37, %v765_v62  ;;  %v12709_v20 = vcombine.high %v772_v6, %v780_v7  ;;  %v796_v25 = vld [vmem:[%s14401_s6 + $0xe70] sm:$0xff]  ;;  %v789_v26 = vld [vmem:[%s14401_s6 + $0xe38] sm:$0xff] }
 0x249   : > { %v4272_v19 = vsel %vm4240_vm2, %v13811_v8, %v4256_v24  ;;  %v788_v24 = vld [vmem:[%s14401_s6 + $0xe30] sm:$0xff]  ;;  %v821_v46 = vld [vmem:[%s14401_s6 + $0xf38] sm:$0xff] }
 0x24a   : > { %v4432_v34 = vmul.f32 %v4383_v14, %v4272_v19  ;;  %v4274_v35 = vsel %vm4242_vm3, %v13813_v17, %v4258_v12  ;;  %4126 = vmatpush1.bf16.msra.mxu0 %v12628_v23  ;;  %4208 = vmatpush1.bf16.msra.mxu1 %v12630_v16  ;;  %v869_v14 = vrot.slane %v15047_v11, %v15036_v63  ;;  %v797_v16 = vld [vmem:[%s14401_s6 + $0xe78] sm:$0xff]  ;;  %v804_v19 = vld [vmem:[%s14401_s6 + $0xeb0] sm:$0xff] }
 0x24b   : > { %v4434_v41 = vmul.f32 %v4391_v18, %v4274_v35  ;;  %4127 = vmatprep.subr.bf16.mxu0 %v12645_v27  ;;  %4209 = vmatprep.subr.bf16.mxu1 %v12647_v29  ;;  %v12692_v17 = vcombine.low %v756_v59, %v764_v60  ;;  %v12694_v18 = vcombine.low %v757_v37, %v765_v62  ;;  %v812_v31 = vld [vmem:[%s14401_s6 + $0xef0] sm:$0xff]  ;;  %v837_v60 = vld [vmem:[%s14401_s6 + $0xfb8] sm:$0xff] }
 0x24c   : > { %v15038_v4 = vadd.f32 %v4543_v21, %v4432_v34  ;;  %v12711_v23 = vcombine.high %v773_v9, %v781_v57  ;;  %v949_v27 = vrot.slane %v869_v14, %v14807_v13  ;;  %v12708_v12 = vcombine.low %v772_v6, %v780_v7  ;;  %v813_v34 = vld [vmem:[%s14401_s6 + $0xef8] sm:$0xff]  ;;  %v836_v21 = vld [vmem:[%s14401_s6 + $0xfb0] sm:$0xff]  ;;  %v4632_v6 = vld [vmem:[%s15081_s11 + $0x20] sm:$0xff] }
 0x24d   : > { %v15042_v8 = vadd.f32 %v4551_v61, %v4434_v41  ;;  %v12710_v29 = vcombine.low %v773_v9, %v781_v57  ;;  %v12725_v30 = vcombine.high %v788_v24, %v796_v25  ;;  %v12727_v15 = vcombine.high %v789_v26, %v797_v16  ;;  %v845_v61 = vld [vmem:[%s14401_s6 + $0xff8] sm:$0xff]  ;;  %v4629_v9 = vld [vmem:[%s15081_s11 + $0x8] sm:$0xff] }
 0x24e   : > { %4128 = vmatpush1.bf16.msra.mxu0 %v12644_v36  ;;  %4210 = vmatpush1.bf16.msra.mxu1 %v12646_v39  ;;  %v13808_v35 = vadd.f32 %v14838_v49, %v949_v27  ;;  %v12724_v36 = vcombine.low %v788_v24, %v796_v25  ;;  %v12726_v39 = vcombine.low %v789_v26, %v797_v16  ;;  %v15071_v49 = vsub.s32 6, %v14799_v3  ;;  %v4633_v57 = vld [vmem:[%s15081_s11 + $0x28] sm:$0xff]  ;;  %v4636_v24 = vld [vmem:[%s15081_s11 + $0x40] sm:$0xff] }
 0x24f   : > { %4129 = vmatprep.subr.bf16.mxu0 %v12661_v42  ;;  %4211 = vmatprep.subr.bf16.mxu1 %v12663_v44  ;;  %v12741_v41 = vcombine.high %v804_v19, %v812_v31  ;;  %v12743_v42 = vcombine.high %v805_v33, %v813_v34  ;;  %v828_v44 = vld [vmem:[%s14401_s6 + $0xf70] sm:$0xff]  ;;  %v12740_v51 = vcombine.low %v804_v19, %v812_v31  ;;  %v4640_v25 = vld [vmem:[%s15081_s11 + $0x60] sm:$0xff]  ;;  %v4637_v16 = vld [vmem:[%s15081_s11 + $0x48] sm:$0xff] }
 0x250   : > { %v4253_v48 = vmul.f32 0.3, %v13808_v35  ;;  %vm4237_vm4 = vcmp.gt.f32.partialorder %v13808_v35, 0.0  ;;  %v4371_v59 = vrot.slane %v4291_v45, %v14822_v28  ;;  %v4451_v3 = vrot.slane %v15047_v11, %v15071_v49  ;;  %v4641_v27 = vld [vmem:[%s15081_s11 + $0x68] sm:$0xff] }
 0x251   : > { %v12756_v62 = vcombine.low %v820_v43, %v828_v44  ;;  %v12787_v31 = vcombine.high %v4637_v16, %v4641_v27 }
 0x252   : > { %4130 = vmatpush1.bf16.msra.mxu0 %v12660_v52  ;;  %4212 = vmatpush1.bf16.msra.mxu1 %v12662_v54  ;;  %v12742_v52 = vcombine.low %v805_v33, %v813_v34  ;;  %v12757_v54 = vcombine.high %v820_v43, %v828_v44  ;;  %v4269_v37 = vsel %vm4237_vm4, %v13808_v35, %v4253_v48  ;;  %v4645_v33 = vld [vmem:[%s15081_s11 + $0x88] sm:$0xff]  ;;  %v4656_v43 = vld [vmem:[%s15081_s11 + $0xe0] sm:$0xff] }
 0x253   : > { %4131 = vmatprep.subr.bf16.mxu0 %v12677_v55  ;;  %4213 = vmatprep.subr.bf16.mxu1 %v12679_v56  ;;  %v12759_v55 = vcombine.high %v821_v46, %v829_v47  ;;  %v844_v56 = vld [vmem:[%s14401_s6 + $0xff0] sm:$0xff]  ;;  %v4429_v7 = vmul.f32 %v4371_v59, %v4269_v37  ;;  %v4531_v11 = vrot.slane %v4451_v3, %v14841_v50  ;;  %v4649_v34 = vld [vmem:[%s15081_s11 + $0xa8] sm:$0xff]  ;;  %v4672_v3 = vld [vmem:[%s15081_s11 + $0x160] sm:$0xff] }
 0x254   : > { %v12772_v14 = vcombine.low %v836_v21, %v844_v56  ;;  %v12784_v35 = vcombine.low %v4636_v24, %v4640_v25  ;;  %v4653_v44 = vld [vmem:[%s15081_s11 + $0xc8] sm:$0xff] }
 0x255   : > { %v4669_v37 = vld [vmem:[%s15081_s11 + $0x148] sm:$0xff] }
 0x256   : > { %4132 = vmatpush1.bf16.msra.mxu0 %v12676_v0  ;;  %4214 = vmatpush1.bf16.msra.mxu1 %v12678_v1  ;;  %v12758_v0 = vcombine.low %v821_v46, %v829_v47  ;;  %v12773_v1 = vcombine.high %v836_v21, %v844_v56  ;;  %v12794_v46 = vcombine.low %v4645_v33, %v4649_v34 }
 0x257   : > { %4133 = vmatprep.subr.bf16.mxu0 %v12693_v2  ;;  %4215 = vmatprep.subr.bf16.mxu1 %v12695_v5  ;;  %v12775_v2 = vcombine.high %v837_v60, %v845_v61  ;;  %v4628_v5 = vld [vmem:[%s15081_s11] sm:$0xff] }
 0x258   : > { %v12776_v26 = vcombine.low %v4628_v5, %v4632_v6 }
 0x25a   : > { %4134 = vmatpush1.bf16.msra.mxu0 %v12692_v17  ;;  %4216 = vmatpush1.bf16.msra.mxu1 %v12694_v18  ;;  %v12774_v17 = vcombine.low %v837_v60, %v845_v61  ;;  %v12777_v18 = vcombine.high %v4628_v5, %v4632_v6  ;;  %v4668_v61 = vld [vmem:[%s15081_s11 + $0x140] sm:$0xff] }
 0x25b   : > { %4135 = vmatprep.subr.bf16.mxu0 %v12709_v20  ;;  %4217 = vmatprep.subr.bf16.mxu1 %v12711_v23  ;;  %v12779_v20 = vcombine.high %v4629_v9, %v4633_v57  ;;  %v4589_v23 = vadd.f32 %v4531_v11, %v4429_v7  ;;  %v4676_v6 = vld [vmem:[%s15081_s11 + $0x180] sm:$0xff]  ;;  %v12816_v11 = vcombine.low %v4668_v61, %v4672_v3 }
 0x25c   : > { %v4680_v7 = vld [vmem:[%s15081_s11 + $0x1a0] sm:$0xff] }
 0x25d   : > { %v15095_v19 = vpack.c.bf16 %v4589_v23, %v4589_v23  ;;  %v4688_v23 = vld [vmem:[%s15081_s11 + $0x1e0] sm:$0xff] }
 0x25e   : > { %4136 = vmatpush1.bf16.msra.mxu0 %v12708_v12  ;;  %4218 = vmatpush1.bf16.msra.mxu1 %v12710_v29  ;;  %v12778_v12 = vcombine.low %v4629_v9, %v4633_v57  ;;  %v12785_v29 = vcombine.high %v4636_v24, %v4640_v25  ;;  %v4677_v9 = vld [vmem:[%s15081_s11 + $0x188] sm:$0xff] }
 0x25f   : > { %4137 = vmatprep.subr.bf16.mxu0 %v12725_v30  ;;  %4219 = vmatprep.subr.bf16.mxu1 %v12727_v15  ;;  %v4644_v30 = vld [vmem:[%s15081_s11 + $0x80] sm:$0xff]  ;;  %v4681_v57 = vld [vmem:[%s15081_s11 + $0x1a8] sm:$0xff] }
 0x260   : > { %v4648_v15 = vld [vmem:[%s15081_s11 + $0xa0] sm:$0xff]  ;;  %v4685_v24 = vld [vmem:[%s15081_s11 + $0x1c8] sm:$0xff] }
 0x261   : > { %v12792_v45 = vcombine.low %v4644_v30, %v4648_v15  ;;  %v4689_v25 = vld [vmem:[%s15081_s11 + $0x1e8] sm:$0xff] }
 0x262   : > { %4138 = vmatpush1.bf16.msra.mxu0 %v12724_v36  ;;  %4220 = vmatpush1.bf16.msra.mxu1 %v12726_v39  ;;  %v12786_v36 = vcombine.low %v4637_v16, %v4641_v27  ;;  %v12793_v39 = vcombine.high %v4644_v30, %v4648_v15  ;;  %v12826_v16 = vcombine.low %v4677_v9, %v4681_v57  ;;  %v4696_v30 = vld [vmem:[%s15081_s11 + $0x220] sm:$0xff]  ;;  %v4693_v15 = vld [vmem:[%s15081_s11 + $0x208] sm:$0xff] }
 0x263   : > { %4139 = vmatprep.subr.bf16.mxu0 %v12741_v41  ;;  %4221 = vmatprep.subr.bf16.mxu1 %v12743_v42  ;;  %v12795_v41 = vcombine.high %v4645_v33, %v4649_v34  ;;  %v4652_v42 = vld [vmem:[%s15081_s11 + $0xc0] sm:$0xff]  ;;  %v12834_v34 = vcombine.low %v4685_v24, %v4689_v25 }
 0x264   : > { %v12801_v47 = vcombine.high %v4652_v42, %v4656_v43  ;;  %v12800_v21 = vcombine.low %v4652_v42, %v4656_v43  ;;  %v4701_v42 = vld [vmem:[%s15081_s11 + $0x248] sm:$0xff] }
 0x265   : > { %v4705_v43 = vld [vmem:[%s15081_s11 + $0x268] sm:$0xff] }
 0x266   : > { %4140 = vmatpush1.bf16.msra.mxu0 %v12740_v51  ;;  %4222 = vmatpush1.bf16.msra.mxu1 %v12742_v52  ;;  %v4660_v51 = vld [vmem:[%s15081_s11 + $0x100] sm:$0xff] }
 0x267   : > { %4141 = vmatprep.subr.bf16.mxu0 %v12757_v54  ;;  %4223 = vmatprep.subr.bf16.mxu1 %v12759_v55  ;;  %v4664_v52 = vld [vmem:[%s15081_s11 + $0x120] sm:$0xff]  ;;  %v4661_v54 = vld [vmem:[%s15081_s11 + $0x108] sm:$0xff] }
 0x268   : > { %v4665_v55 = vld [vmem:[%s15081_s11 + $0x128] sm:$0xff]  ;;  %v12809_v59 = vcombine.high %v4660_v51, %v4664_v52 }
 0x269   : > { %v12811_v60 = vcombine.high %v4661_v54, %v4665_v55 }
 0x26a   : > { %4142 = vmatpush1.bf16.msra.mxu0 %v12756_v62  ;;  %4224 = vmatpush1.bf16.msra.mxu1 %v12758_v0  ;;  %v4673_v62 = vld [vmem:[%s15081_s11 + $0x168] sm:$0xff]  ;;  %v12808_v0 = vcombine.low %v4660_v51, %v4664_v52 }
 0x26b   : > { %4143 = vmatprep.subr.bf16.mxu0 %v12773_v1  ;;  %4225 = vmatprep.subr.bf16.mxu1 %v12775_v2  ;;  %v12810_v1 = vcombine.low %v4661_v54, %v4665_v55  ;;  %v12817_v2 = vcombine.high %v4668_v61, %v4672_v3  ;;  %v12819_v5 = vcombine.high %v4669_v37, %v4673_v62  ;;  %v4709_v51 = vld [vmem:[%s15081_s11 + $0x288] sm:$0xff] }
 0x26c   : > { %v4713_v52 = vld [vmem:[%s15081_s11 + $0x2a8] sm:$0xff]  ;;  %v12850_v55 = vcombine.low %v4701_v42, %v4705_v43 }
 0x26d   : > { %v4717_v61 = vld [vmem:[%s15081_s11 + $0x2c8] sm:$0xff] }
 0x26e   : > { %4144 = vmatpush1.bf16.msra.mxu0 %v12772_v14  ;;  %4226 = vmatpush1.bf16.msra.mxu1 %v12774_v17  ;;  %v12818_v14 = vcombine.low %v4669_v37, %v4673_v62  ;;  %v12825_v17 = vcombine.high %v4676_v6, %v4680_v7  ;;  %v4721_v3 = vld [vmem:[%s15081_s11 + $0x2e8] sm:$0xff] }
 0x26f   : > { %10772 = vmatprep.subr.bf16.mxu0 %v12777_v18  ;;  %11100 = vmatprep.subr.bf16.mxu1 %v12779_v20  ;;  %v12827_v18 = vcombine.high %v4677_v9, %v4681_v57  ;;  %v4684_v20 = vld [vmem:[%s15081_s11 + $0x1c0] sm:$0xff]  ;;  %v15139_v37 = vld [vmem:[%s14410_s9 + $0x8] sm:$0x77] }
 0x270   : > { %v12833_v27 = vcombine.high %v4684_v20, %v4688_v23  ;;  %v12832_v33 = vcombine.low %v4684_v20, %v4688_v23  ;;  %v877_v62 = vrot.slane %v15139_v37, %v15036_v63  ;;  %v4725_v9 = vld [vmem:[%s15081_s11 + $0x308] sm:$0xff]  ;;  %v4732_v23 = vld [vmem:[%s15081_s11 + $0x340] sm:$0xff] }
 0x271   : > { %4146 = vmatmul.mubr.bf16.vlgmr.msra.gmra.mrb[12].mxu0 %v14580_v22  ;;  %4228 = vmatmul.mubr.bf16.vlgmr.msra.gmra.mrb[12].mxu1 %v14580_v22  ;;  %v4657_v22 = vld [vmem:[%s15081_s11 + $0xe8] sm:$0xff] }
 0x272   : > { %10773 = vmatpush1.bf16.msra.mxu0 %v12776_v26  ;;  %10804 = vmatprep.mubr.bf16.mxu0 %v15095_v19  ;;  %v12803_v48 = vcombine.high %v4653_v44, %v4657_v22  ;;  %v12802_v56 = vcombine.low %v4653_v44, %v4657_v22  ;;  %v12824_v26 = vcombine.low %v4676_v6, %v4680_v7  ;;  %v4724_v6 = vld [vmem:[%s15081_s11 + $0x300] sm:$0xff]  ;;  %v4729_v57 = vld [vmem:[%s15081_s11 + $0x328] sm:$0xff] }
 0x273   : > { %11101 = vmatpush1.bf16.msra.mxu1 %v12778_v12  ;;  %11132 = vmatprep.mubr.bf16.mxu1 %v15095_v19  ;;  %v12835_v12 = vcombine.high %v4685_v24, %v4689_v25  ;;  %v4728_v7 = vld [vmem:[%s15081_s11 + $0x320] sm:$0xff]  ;;  %v12875_v20 = vcombine.high %v4725_v9, %v4729_v57  ;;  %v4733_v25 = vld [vmem:[%s15081_s11 + $0x348] sm:$0xff] }
 0x274   : > { %10774 = vmatprep.subr.bf16.mxu0 %v12785_v29  ;;  %11102 = vmatprep.subr.bf16.mxu1 %v12787_v31  ;;  %v4692_v29 = vld [vmem:[%s15081_s11 + $0x200] sm:$0xff]  ;;  %v4697_v31 = vld [vmem:[%s15081_s11 + $0x228] sm:$0xff] }
 0x275   : > { %v12840_v44 = vcombine.low %v4692_v29, %v4696_v30  ;;  %v12842_v22 = vcombine.low %v4693_v15, %v4697_v31  ;;  %v4736_v24 = vld [vmem:[%s15081_s11 + $0x360] sm:$0xff] }
 0x276   : > { %10775 = vmatpush1.bf16.msra.mxu0 %v12784_v35  ;;  %v12841_v35 = vcombine.high %v4692_v29, %v4696_v30  ;;  %v12881_v29 = vcombine.high %v4732_v23, %v4736_v24 }
 0x277   : > { %11103 = vmatpush1.bf16.msra.mxu1 %v12786_v36  ;;  %10776 = vmatprep.subr.bf16.mxu0 %v12793_v39  ;;  %v12843_v36 = vcombine.high %v4693_v15, %v4697_v31  ;;  %v4700_v39 = vld [vmem:[%s15081_s11 + $0x240] sm:$0xff] }
 0x278   : > { %11104 = vmatprep.subr.bf16.mxu1 %v12795_v41  ;;  %v4704_v41 = vld [vmem:[%s15081_s11 + $0x260] sm:$0xff] }
 0x279   : > { %v12848_v54 = vcombine.low %v4700_v39, %v4704_v41  ;;  %v4740_v15 = vld [vmem:[%s15081_s11 + $0x380] sm:$0xff] }
 0x27a   : > { %10777 = vmatpush1.bf16.msra.mxu0 %v12792_v45  ;;  %v12849_v45 = vcombine.high %v4700_v39, %v4704_v41  ;;  %v4744_v31 = vld [vmem:[%s15081_s11 + $0x3a0] sm:$0xff] }
 0x27b   : > { %11105 = vmatpush1.bf16.msra.mxu1 %v12794_v46  ;;  %10778 = vmatprep.subr.bf16.mxu0 %v12801_v47  ;;  %v12851_v46 = vcombine.high %v4701_v42, %v4705_v43  ;;  %v4708_v47 = vld [vmem:[%s15081_s11 + $0x280] sm:$0xff]  ;;  %v12889_v41 = vcombine.high %v4740_v15, %v4744_v31 }
 0x27c   : > { %11106 = vmatprep.subr.bf16.mxu1 %v12803_v48  ;;  %v4712_v48 = vld [vmem:[%s15081_s11 + $0x2a0] sm:$0xff] }
 0x27d   : > { %v4748_v43 = vld [vmem:[%s15081_s11 + $0x3c0] sm:$0xff] }
 0x27e   : > { %10779 = vmatpush1.bf16.msra.mxu0 %v12800_v21  ;;  %v12857_v21 = vcombine.high %v4708_v47, %v4712_v48 }
 0x27f   : > { %11107 = vmatpush1.bf16.msra.mxu1 %v12802_v56  ;;  %10780 = vmatprep.subr.bf16.mxu0 %v12809_v59  ;;  %v12859_v56 = vcombine.high %v4709_v51, %v4713_v52  ;;  %v4716_v59 = vld [vmem:[%s15081_s11 + $0x2c0] sm:$0xff] }
 0x280   : > { %11108 = vmatprep.subr.bf16.mxu1 %v12811_v60  ;;  %v4720_v60 = vld [vmem:[%s15081_s11 + $0x2e0] sm:$0xff] }
 0x282   : > { %10781 = vmatpush1.bf16.msra.mxu0 %v12808_v0  ;;  %v12856_v0 = vcombine.low %v4708_v47, %v4712_v48  ;;  %v4459_v47 = vrot.slane %v15139_v37, %v15071_v49 }
 0x283   : > { %11109 = vmatpush1.bf16.msra.mxu1 %v12810_v1  ;;  %10782 = vmatprep.subr.bf16.mxu0 %v12817_v2  ;;  %v12858_v1 = vcombine.low %v4709_v51, %v4713_v52  ;;  %v12865_v2 = vcombine.high %v4716_v59, %v4720_v60  ;;  %v12888_v51 = vcombine.low %v4740_v15, %v4744_v31  ;;  %v4781_v15 = vld [vmem:[%s15081_s11 + $0x4c8] sm:$0xff] }
 0x284   : > { %11110 = vmatprep.subr.bf16.mxu1 %v12819_v5  ;;  %v12867_v5 = vcombine.high %v4717_v61, %v4721_v3  ;;  %v4785_v31 = vld [vmem:[%s15081_s11 + $0x4e8] sm:$0xff] }
 0x286   : > { %10783 = vmatpush1.bf16.msra.mxu0 %v12816_v11  ;;  %v957_v11 = vrot.slane %v877_v62, %v14807_v13 }
 0x287   : > { %11111 = vmatpush1.bf16.msra.mxu1 %v12818_v14  ;;  %10784 = vmatprep.subr.bf16.mxu0 %v12825_v17  ;;  %v12864_v14 = vcombine.low %v4716_v59, %v4720_v60  ;;  %v12866_v17 = vcombine.low %v4717_v61, %v4721_v3  ;;  %v4757_v60 = vld [vmem:[%s15081_s11 + $0x408] sm:$0xff]  ;;  %v4539_v3 = vrot.slane %v4459_v47, %v14841_v50 }
 0x288   : > { %11112 = vmatprep.subr.bf16.mxu1 %v12827_v18  ;;  %v12873_v18 = vcombine.high %v4724_v6, %v4728_v7  ;;  %v4761_v61 = vld [vmem:[%s15081_s11 + $0x428] sm:$0xff] }
 0x28a   : > { %10785 = vmatpush1.bf16.msra.mxu0 %v12824_v26  ;;  %v4737_v26 = vld [vmem:[%s15081_s11 + $0x368] sm:$0xff] }
 0x28b   : > { %11113 = vmatpush1.bf16.msra.mxu1 %v12826_v16  ;;  %10786 = vmatprep.subr.bf16.mxu0 %v12833_v27  ;;  %v13810_v16 = vadd.f32 %v14847_v58, %v957_v11  ;;  %v12872_v27 = vcombine.low %v4724_v6, %v4728_v7  ;;  %v12883_v30 = vcombine.high %v4733_v25, %v4737_v26  ;;  %v4768_v6 = vld [vmem:[%s15081_s11 + $0x460] sm:$0xff] }
 0x28c   : > { %11114 = vmatprep.subr.bf16.mxu1 %v12835_v12  ;;  %v12874_v12 = vcombine.low %v4725_v9, %v4729_v57  ;;  %v12882_v39 = vcombine.low %v4733_v25, %v4737_v26  ;;  %v4765_v9 = vld [vmem:[%s15081_s11 + $0x448] sm:$0xff]  ;;  %v15177_v11 = vpack.c.bf16 %v14867_v38, %v14867_v38 }
 0x28d   : > { %v4255_v58 = vmul.f32 0.3, %v13810_v16  ;;  %vm4239_vm5 = vcmp.gt.f32.partialorder %v13810_v16, 0.0  ;;  %v4769_v57 = vld [vmem:[%s15081_s11 + $0x468] sm:$0xff] }
 0x28e   : > { %10787 = vmatpush1.bf16.msra.mxu0 %v12832_v33  ;;  %v4299_v33 = vrot.slane %v15139_v37, %v15059_v32  ;;  %v4773_v25 = vld [vmem:[%s15081_s11 + $0x488] sm:$0xff] }
 0x28f   : > { %11115 = vmatpush1.bf16.msra.mxu1 %v12834_v34  ;;  %10788 = vmatprep.subr.bf16.mxu0 %v12841_v35  ;;  %v4741_v34 = vld [vmem:[%s15081_s11 + $0x388] sm:$0xff]  ;;  %v4271_v48 = vsel %vm4239_vm5, %v13810_v16, %v4255_v58  ;;  %v12914_v16 = vcombine.low %v4765_v9, %v4769_v57  ;;  %v12931_v58 = vcombine.high %v4781_v15, %v4785_v31 }
 0x290   : > { %11116 = vmatprep.subr.bf16.mxu1 %v12843_v36  ;;  %v4745_v35 = vld [vmem:[%s15081_s11 + $0x3a8] sm:$0xff]  ;;  %v12880_v36 = vcombine.low %v4732_v23, %v4736_v24  ;;  %v12915_v24 = vcombine.high %v4765_v9, %v4769_v57 }
 0x291   : > { %v12891_v42 = vcombine.high %v4741_v34, %v4745_v35  ;;  %v12890_v52 = vcombine.low %v4741_v34, %v4745_v35  ;;  %v4777_v26 = vld [vmem:[%s15081_s11 + $0x4a8] sm:$0xff] }
 0x292   : > { %10789 = vmatpush1.bf16.msra.mxu0 %v12840_v44  ;;  %v4752_v44 = vld [vmem:[%s15081_s11 + $0x3e0] sm:$0xff]  ;;  %v12922_v34 = vcombine.low %v4773_v25, %v4777_v26 }
 0x293   : > { %11117 = vmatpush1.bf16.msra.mxu1 %v12842_v22  ;;  %10790 = vmatprep.subr.bf16.mxu0 %v12849_v45  ;;  %v4379_v22 = vrot.slane %v4299_v33, %v14822_v28  ;;  %v4749_v45 = vld [vmem:[%s15081_s11 + $0x3c8] sm:$0xff]  ;;  %v12896_v37 = vcombine.low %v4748_v43, %v4752_v44 }
 0x294   : > { %11118 = vmatprep.subr.bf16.mxu1 %v12851_v46  ;;  %v4753_v46 = vld [vmem:[%s15081_s11 + $0x3e8] sm:$0xff] }
 0x295   : > { %v4431_v59 = vmul.f32 %v4379_v22, %v4271_v48  ;;  %v12898_v62 = vcombine.low %v4749_v45, %v4753_v46  ;;  %v12930_v22 = vcombine.low %v4781_v15, %v4785_v31  ;;  %v4796_v48 = vld [vmem:[%s15081_s11 + $0x540] sm:$0xff] }
 0x296   : > { %10791 = vmatpush1.bf16.msra.mxu0 %v12848_v54  ;;  %v12897_v54 = vcombine.high %v4748_v43, %v4752_v44  ;;  %v15198_v44 = vld [vmem:[%s14410_s9 + $0x20] sm:$0x77] }
 0x297   : > { %11119 = vmatpush1.bf16.msra.mxu1 %v12850_v55  ;;  %10792 = vmatprep.subr.bf16.mxu0 %v12857_v21  ;;  %v12899_v55 = vcombine.high %v4749_v45, %v4753_v46  ;;  %v4756_v21 = vld [vmem:[%s15081_s11 + $0x400] sm:$0xff]  ;;  %v15201_v46 = vld [vmem:[%s14410_s9 + $0x28] sm:$0x77] }
 0x298   : > { %11120 = vmatprep.subr.bf16.mxu1 %v12859_v56  ;;  %v4760_v56 = vld [vmem:[%s15081_s11 + $0x420] sm:$0xff] }
 0x299   : > { %v12904_v7 = vcombine.low %v4756_v21, %v4760_v56 }
 0x29a   : > { %10793 = vmatpush1.bf16.msra.mxu0 %v12856_v0  ;;  %v12905_v0 = vcombine.high %v4756_v21, %v4760_v56  ;;  %v905_v56 = vrot.slane %v15201_v46, %v14807_v13 }
 0x29b   : > { %11121 = vmatpush1.bf16.msra.mxu1 %v12858_v1  ;;  %10794 = vmatprep.subr.bf16.mxu0 %v12865_v2  ;;  %v12907_v1 = vcombine.high %v4757_v60, %v4761_v61  ;;  %v4591_v2 = vadd.f32 %v4539_v3, %v4431_v59  ;;  %v4804_v3 = vld [vmem:[%s15081_s11 + $0x580] sm:$0xff] }
 0x29c   : > { %11122 = vmatprep.subr.bf16.mxu1 %v12867_v5  ;;  %v4764_v5 = vld [vmem:[%s15081_s11 + $0x440] sm:$0xff] }
 0x29d   : > { %v15182_v23 = vpack.c.bf16 %v4591_v2, %v4591_v2  ;;  %v12912_v38 = vcombine.low %v4764_v5, %v4768_v6  ;;  %v4319_v2 = vrot.slane %v15198_v44, %v14822_v28 }
 0x29e   : > { %10795 = vmatpush1.bf16.msra.mxu0 %v12864_v14  ;;  %v12906_v14 = vcombine.low %v4757_v60, %v4761_v61 }
 0x29f   : > { %11123 = vmatpush1.bf16.msra.mxu1 %v12866_v17  ;;  %10796 = vmatprep.subr.bf16.mxu0 %v12873_v18  ;;  %v12913_v17 = vcombine.high %v4764_v5, %v4768_v6  ;;  %v4772_v18 = vld [vmem:[%s15081_s11 + $0x480] sm:$0xff]  ;;  %v985_v5 = vrot.slane %v905_v56, %v14807_v13  ;;  %v4327_v6 = vrot.slane %v15201_v46, %v14822_v28 }
 0x2a0   : > { %11124 = vmatprep.subr.bf16.mxu1 %v12875_v20  ;;  %v4776_v20 = vld [vmem:[%s15081_s11 + $0x4a0] sm:$0xff] }
 0x2a1   : > { %v12920_v33 = vcombine.low %v4772_v18, %v4776_v20 }
 0x2a2   : > { %10797 = vmatpush1.bf16.msra.mxu0 %v12872_v27  ;;  %v12921_v27 = vcombine.high %v4772_v18, %v4776_v20  ;;  %v4812_v18 = vld [vmem:[%s15081_s11 + $0x5c0] sm:$0xff] }
 0x2a3   : > { %11125 = vmatpush1.bf16.msra.mxu1 %v12874_v12  ;;  %10798 = vmatprep.subr.bf16.mxu0 %v12881_v29  ;;  %v12923_v12 = vcombine.high %v4773_v25, %v4777_v26  ;;  %v4780_v29 = vld [vmem:[%s15081_s11 + $0x4c0] sm:$0xff] }
 0x2a4   : > { %11126 = vmatprep.subr.bf16.mxu1 %v12883_v30  ;;  %v4784_v30 = vld [vmem:[%s15081_s11 + $0x4e0] sm:$0xff] }
 0x2a5   : > { %v12929_v35 = vcombine.high %v4780_v29, %v4784_v30  ;;  %v12928_v43 = vcombine.low %v4780_v29, %v4784_v30  ;;  %v4816_v20 = vld [vmem:[%s15081_s11 + $0x5e0] sm:$0xff]  ;;  %v4407_v29 = vrot.slane %v4327_v6, %v14822_v28 }
 0x2a6   : > { %10799 = vmatpush1.bf16.msra.mxu0 %v12880_v36  ;;  %v4788_v36 = vld [vmem:[%s15081_s11 + $0x500] sm:$0xff] }
 0x2a7   : > { %11127 = vmatpush1.bf16.msra.mxu1 %v12882_v39  ;;  %10800 = vmatprep.subr.bf16.mxu0 %v12889_v41  ;;  %v4792_v39 = vld [vmem:[%s15081_s11 + $0x520] sm:$0xff]  ;;  %v4789_v41 = vld [vmem:[%s15081_s11 + $0x508] sm:$0xff] }
 0x2a8   : > { %11128 = vmatprep.subr.bf16.mxu1 %v12891_v42  ;;  %v4793_v42 = vld [vmem:[%s15081_s11 + $0x528] sm:$0xff]  ;;  %v12937_v45 = vcombine.high %v4788_v36, %v4792_v39  ;;  %v12936_v21 = vcombine.low %v4788_v36, %v4792_v39  ;;  %v12961_v36 = vcombine.high %v4812_v18, %v4816_v20 }
 0x2a9   : > { %v12939_v47 = vcombine.high %v4789_v41, %v4793_v42  ;;  %v12938_v59 = vcombine.low %v4789_v41, %v4793_v42  ;;  %v4820_v42 = vld [vmem:[%s15081_s11 + $0x600] sm:$0xff] }
 0x2aa   : > { %10801 = vmatpush1.bf16.msra.mxu0 %v12888_v51  ;;  %v4800_v51 = vld [vmem:[%s15081_s11 + $0x560] sm:$0xff] }
 0x2ab   : > { %11129 = vmatpush1.bf16.msra.mxu1 %v12890_v52  ;;  %10802 = vmatprep.subr.bf16.mxu0 %v12897_v54  ;;  %v897_v52 = vrot.slane %v15198_v44, %v14807_v13  ;;  %v4797_v54 = vld [vmem:[%s15081_s11 + $0x548] sm:$0xff]  ;;  %v12945_v60 = vcombine.high %v4796_v48, %v4800_v51 }
 0x2ac   : > { %11130 = vmatprep.subr.bf16.mxu1 %v12899_v55  ;;  %v4801_v55 = vld [vmem:[%s15081_s11 + $0x568] sm:$0xff] }
 0x2ad   : > { %v12947_v61 = vcombine.high %v4797_v54, %v4801_v55  ;;  %v12946_v9 = vcombine.low %v4797_v54, %v4801_v55  ;;  %v12960_v54 = vcombine.low %v4812_v18, %v4816_v20 }
 0x2ae   : > { %10803 = vmatpush1.bf16.msra.mxu0 %v12896_v37  ;;  %v4808_v37 = vld [vmem:[%s15081_s11 + $0x5a0] sm:$0xff] }
 0x2af   : > { %11131 = vmatpush1.bf16.msra.mxu1 %v12898_v62  ;;  %10813 = vmatprep.subr.bf16.mxu0 %v12905_v0  ;;  %v977_v62 = vrot.slane %v897_v52, %v14807_v13  ;;  %v4805_v0 = vld [vmem:[%s15081_s11 + $0x588] sm:$0xff]  ;;  %v12953_v57 = vcombine.high %v4804_v3, %v4808_v37  ;;  %v12952_v31 = vcombine.low %v4804_v3, %v4808_v37 }
 0x2b0   : > { %11141 = vmatprep.subr.bf16.mxu1 %v12907_v1  ;;  %v4809_v1 = vld [vmem:[%s15081_s11 + $0x5a8] sm:$0xff]  ;;  %v4479_v3 = vrot.slane %v15198_v44, %v14841_v50 }
 0x2b1   : > { %10805 = vmatmul.mubr.bf16.vlgmr.msra.gmra.mrb[16].mxu0 %v15177_v11  ;;  %v4829_v37 = vld [vmem:[%s15081_s11 + $0x648] sm:$0xff] }
 0x2b2   : > { %11133 = vmatmul.mubr.bf16.vlgmr.msra.gmra.mrb[16].mxu1 %v15177_v11  ;;  %10814 = vmatpush1.bf16.msra.mxu0 %v12904_v7  ;;  %v12944_v7 = vcombine.low %v4796_v48, %v4800_v51  ;;  %v4825_v48 = vld [vmem:[%s15081_s11 + $0x628] sm:$0xff]  ;;  %v4559_v44 = vrot.slane %v4479_v3, %v14841_v50  ;;  %v4868_v3 = vld [vmem:[%s15081_s11 + $0x780] sm:$0xff] }
 0x2b3   : > { %10845 = vmatprep.mubr.bf16.mxu0 %v15182_v23  ;;  %11142 = vmatpush1.bf16.msra.mxu1 %v12906_v14 }
 0x2b4   : > { %11173 = vmatprep.mubr.bf16.mxu1 %v15182_v23  ;;  %10815 = vmatprep.subr.bf16.mxu0 %v12913_v17  ;;  %v12955_v17 = vcombine.high %v4805_v0, %v4809_v1 }
 0x2b5   : > { %11143 = vmatprep.subr.bf16.mxu1 %v12915_v24 }
 0x2b6   : > { %10816 = vmatpush1.bf16.msra.mxu0 %v12912_v38  ;;  %v4813_v38 = vld [vmem:[%s15081_s11 + $0x5c8] sm:$0xff] }
 0x2b7   : > { %11144 = vmatpush1.bf16.msra.mxu1 %v12914_v16  ;;  %10817 = vmatprep.subr.bf16.mxu0 %v12921_v27  ;;  %v4817_v16 = vld [vmem:[%s15081_s11 + $0x5e8] sm:$0xff]  ;;  %v4399_v27 = vrot.slane %v4319_v2, %v14822_v28 }
 0x2b8   : > { %11145 = vmatprep.subr.bf16.mxu1 %v12923_v12  ;;  %v12963_v41 = vcombine.high %v4813_v38, %v4817_v16 }
 0x2ba   : > { %10818 = vmatpush1.bf16.msra.mxu0 %v12920_v33 }
 0x2bb   : > { %11146 = vmatpush1.bf16.msra.mxu1 %v12922_v34  ;;  %10819 = vmatprep.subr.bf16.mxu0 %v12929_v35 }
 0x2bc   : > { %11147 = vmatprep.subr.bf16.mxu1 %v12931_v58  ;;  %v12954_v58 = vcombine.low %v4805_v0, %v4809_v1  ;;  %v4487_v0 = vrot.slane %v15201_v46, %v14841_v50 }
 0x2be   : > { %10820 = vmatpush1.bf16.msra.mxu0 %v12928_v43  ;;  %v4824_v43 = vld [vmem:[%s15081_s11 + $0x620] sm:$0xff]  ;;  %v4567_v46 = vrot.slane %v4487_v0, %v14841_v50  ;;  %v4869_v0 = vld [vmem:[%s15081_s11 + $0x788] sm:$0xff] }
 0x2bf   : > { %11148 = vmatpush1.bf16.msra.mxu1 %v12930_v22  ;;  %10821 = vmatprep.subr.bf16.mxu0 %v12937_v45  ;;  %v12969_v56 = vcombine.high %v4820_v42, %v4824_v43  ;;  %v12968_v1 = vcombine.low %v4820_v42, %v4824_v43  ;;  %v4857_v42 = vld [vmem:[%s15081_s11 + $0x728] sm:$0xff] }
 0x2c0   : > { %11149 = vmatprep.subr.bf16.mxu1 %v12939_v47  ;;  %v4821_v47 = vld [vmem:[%s15081_s11 + $0x608] sm:$0xff] }
 0x2c1   : > { %v12970_v2 = vcombine.low %v4821_v47, %v4825_v48 }
 0x2c2   : > { %10822 = vmatpush1.bf16.msra.mxu0 %v12936_v21  ;;  %v12962_v21 = vcombine.low %v4813_v38, %v4817_v16  ;;  %v4848_v38 = vld [vmem:[%s15081_s11 + $0x6e0] sm:$0xff] }
 0x2c3   : > { %11150 = vmatpush1.bf16.msra.mxu1 %v12938_v59  ;;  %10823 = vmatprep.subr.bf16.mxu0 %v12945_v60  ;;  %v12971_v59 = vcombine.high %v4821_v47, %v4825_v48  ;;  %v4828_v60 = vld [vmem:[%s15081_s11 + $0x640] sm:$0xff] }
 0x2c4   : > { %v3983_v14 = vpop.f32.mrb[8].mxu0  ;;  %11151 = vmatprep.subr.bf16.mxu1 %v12947_v61  ;;  %v4065_v25 = vpop.f32.mrb[8].mxu1  ;;  %v4832_v61 = vld [vmem:[%s15081_s11 + $0x660] sm:$0xff] }
 0x2c5   : > { %v13815_v24 = vadd.f32 %v3983_v14, %v977_v62  ;;  %v15223_v26 = vpop.f32.mrb[9].mxu0  ;;  %v13817_v12 = vadd.f32 %v4065_v25, %v985_v5  ;;  %v15229_v30 = vpop.f32.mrb[9].mxu1  ;;  %v4833_v62 = vld [vmem:[%s15081_s11 + $0x668] sm:$0xff]  ;;  %v12977_v5 = vcombine.high %v4828_v60, %v4832_v61  ;;  %v4844_v25 = vld [vmem:[%s15081_s11 + $0x6c0] sm:$0xff] }
 0x2c6   : > { %v3987_v15 = vpop.f32.mrb[10].mxu0  ;;  %10824 = vmatpush1.bf16.msra.mxu0 %v12944_v7  ;;  %v4069_v34 = vpop.f32.mrb[10].mxu1  ;;  %v12979_v6 = vcombine.high %v4829_v37, %v4833_v62  ;;  %v4836_v7 = vld [vmem:[%s15081_s11 + $0x680] sm:$0xff]  ;;  %v4841_v14 = vld [vmem:[%s15081_s11 + $0x6a8] sm:$0xff]  ;;  %v12978_v18 = vcombine.low %v4829_v37, %v4833_v62 }
 0x2c7   : > { %vm4244_vm6 = vcmp.gt.f32.partialorder %v13815_v24, 0.0  ;;  %v4260_v33 = vmul.f32 0.3, %v13815_v24  ;;  %11152 = vmatpush1.bf16.msra.mxu1 %v12946_v9  ;;  %v3988_v35 = vpop.f32.mrb[11].mxu0  ;;  %10825 = vmatprep.subr.bf16.mxu0 %v12953_v57  ;;  %vm4246_vm7 = vcmp.gt.f32.partialorder %v13817_v12, 0.0  ;;  %v4070_v45 = vpop.f32.mrb[11].mxu1 }
 0x2c8   : > { %v4262_v39 = vmul.f32 0.3, %v13817_v12  ;;  %11153 = vmatprep.subr.bf16.mxu1 %v12955_v17  ;;  %v4840_v9 = vld [vmem:[%s15081_s11 + $0x6a0] sm:$0xff]  ;;  %v4837_v57 = vld [vmem:[%s15081_s11 + $0x688] sm:$0xff]  ;;  %v12976_v17 = vcombine.low %v4828_v60, %v4832_v61  ;;  %v15258_v15 = vld [vmem:[%s14410_s9 + $0x10] sm:$0x77]  ;;  %v12993_v35 = vcombine.high %v4844_v25, %v4848_v38 }
 0x2c9   : > { %v4276_v22 = vsel %vm4244_vm6, %v13815_v24, %v4260_v33  ;;  %v12985_v20 = vcombine.high %v4836_v7, %v4840_v9  ;;  %v12987_v24 = vcombine.high %v4837_v57, %v4841_v14  ;;  %v12984_v33 = vcombine.low %v4836_v7, %v4840_v9  ;;  %v4872_v37 = vld [vmem:[%s15081_s11 + $0x7a0] sm:$0xff] }
 0x2ca   : > { %v4436_v51 = vmul.f32 %v4399_v27, %v4276_v22  ;;  %v4278_v52 = vsel %vm4246_vm7, %v13817_v12, %v4262_v39  ;;  %10826 = vmatpush1.bf16.msra.mxu0 %v12952_v31  ;;  %v4845_v27 = vld [vmem:[%s15081_s11 + $0x6c8] sm:$0xff]  ;;  %v885_v31 = vrot.slane %v15258_v15, %v15036_v63  ;;  %v12986_v34 = vcombine.low %v4837_v57, %v4841_v14  ;;  %v4856_v39 = vld [vmem:[%s15081_s11 + $0x720] sm:$0xff] }
 0x2cb   : > { %v4438_v55 = vmul.f32 %v4407_v29, %v4278_v52  ;;  %11154 = vmatpush1.bf16.msra.mxu1 %v12954_v58  ;;  %10827 = vmatprep.subr.bf16.mxu0 %v12961_v36  ;;  %v4849_v12 = vld [vmem:[%s15081_s11 + $0x6e8] sm:$0xff]  ;;  %v4852_v36 = vld [vmem:[%s15081_s11 + $0x700] sm:$0xff]  ;;  %v12992_v22 = vcombine.low %v4844_v25, %v4848_v38  ;;  %v4307_v62 = vrot.slane %v15258_v15, %v15059_v32 }
 0x2cc   : > { %11155 = vmatprep.subr.bf16.mxu1 %v12963_v41  ;;  %v15251_v16 = vadd.f32 %v4559_v44, %v4436_v51  ;;  %v12995_v58 = vcombine.high %v4845_v27, %v4849_v12  ;;  %v4853_v41 = vld [vmem:[%s15081_s11 + $0x708] sm:$0xff]  ;;  %v965_v43 = vrot.slane %v885_v31, %v14807_v13  ;;  %v12994_v45 = vcombine.low %v4845_v27, %v4849_v12  ;;  %v4860_v51 = vld [vmem:[%s15081_s11 + $0x740] sm:$0xff] }
 0x2cd   : > { %v15255_v29 = vadd.f32 %v4567_v46, %v4438_v55  ;;  %v13001_v47 = vcombine.high %v4852_v36, %v4856_v39  ;;  %v13003_v48 = vcombine.high %v4853_v41, %v4857_v42  ;;  %v4864_v52 = vld [vmem:[%s15081_s11 + $0x760] sm:$0xff]  ;;  %v4865_v55 = vld [vmem:[%s15081_s11 + $0x768] sm:$0xff]  ;;  %v4387_v57 = vrot.slane %v4307_v62, %v14822_v28 }
 0x2ce   : > { %10828 = vmatpush1.bf16.msra.mxu0 %v12960_v54  ;;  %v4861_v54 = vld [vmem:[%s15081_s11 + $0x748] sm:$0xff]  ;;  %v13009_v60 = vcombine.high %v4860_v51, %v4864_v52  ;;  %v4876_v9 = vld [vmem:[%s15081_s11 + $0x7c0] sm:$0xff] }
 0x2cf   : > { %11156 = vmatpush1.bf16.msra.mxu1 %v12962_v21  ;;  %10829 = vmatprep.subr.bf16.mxu0 %v12969_v56  ;;  %v13812_v21 = vadd.f32 %v15009_v10, %v965_v43  ;;  %v13000_v56 = vcombine.low %v4852_v36, %v4856_v39  ;;  %v13011_v61 = vcombine.high %v4861_v54, %v4865_v55  ;;  %v4880_v44 = vld [vmem:[%s15081_s11 + $0x7e0] sm:$0xff]  ;;  %v4877_v14 = vld [vmem:[%s15081_s11 + $0x7c8] sm:$0xff] }
 0x2d0   : > { %11157 = vmatprep.subr.bf16.mxu1 %v12971_v59  ;;  %v13002_v59 = vcombine.low %v4853_v41, %v4857_v42  ;;  %v4881_v46 = vld [vmem:[%s15081_s11 + $0x7e8] sm:$0xff]  ;;  %v13025_v25 = vcombine.high %v4876_v9, %v4880_v44  ;;  %v4884_v27 = vld [vmem:[%s15081_s11 + $0x800] sm:$0xff] }
 0x2d1   : > { %v4257_v10 = vmul.f32 0.3, %v13812_v21  ;;  %vm4241_vm8 = vcmp.gt.f32.partialorder %v13812_v21, 0.0  ;;  %v13027_v38 = vcombine.high %v4877_v14, %v4881_v46  ;;  %v4888_v12 = vld [vmem:[%s15081_s11 + $0x820] sm:$0xff] }
 0x2d2   : > { %10830 = vmatpush1.bf16.msra.mxu0 %v12968_v1  ;;  %v4873_v1 = vld [vmem:[%s15081_s11 + $0x7a8] sm:$0xff]  ;;  %v13033_v36 = vcombine.high %v4884_v27, %v4888_v12  ;;  %v4892_v42 = vld [vmem:[%s15081_s11 + $0x840] sm:$0xff] }
 0x2d3   : > { %11158 = vmatpush1.bf16.msra.mxu1 %v12970_v2  ;;  %10831 = vmatprep.subr.bf16.mxu0 %v12977_v5  ;;  %v13008_v2 = vcombine.low %v4860_v51, %v4864_v52  ;;  %v13010_v5 = vcombine.low %v4861_v54, %v4865_v55  ;;  %v13019_v7 = vcombine.high %v4869_v0, %v4873_v1  ;;  %v4896_v43 = vld [vmem:[%s15081_s11 + $0x860] sm:$0xff] }
 0x2d4   : > { %11159 = vmatprep.subr.bf16.mxu1 %v12979_v6  ;;  %v13017_v6 = vcombine.high %v4868_v3, %v4872_v37  ;;  %v13041_v52 = vcombine.high %v4892_v42, %v4896_v43  ;;  %v4900_v54 = vld [vmem:[%s15081_s11 + $0x880] sm:$0xff] }
 0x2d5   : > { %v4904_v55 = vld [vmem:[%s15081_s11 + $0x8a0] sm:$0xff] }
 0x2d6   : > { %10832 = vmatpush1.bf16.msra.mxu0 %v12976_v17  ;;  %v4467_v17 = vrot.slane %v15258_v15, %v15071_v49  ;;  %v4908_v62 = vld [vmem:[%s15081_s11 + $0x8c0] sm:$0xff] }
 0x2d7   : > { %11160 = vmatpush1.bf16.msra.mxu1 %v12978_v18  ;;  %10833 = vmatprep.subr.bf16.mxu0 %v12985_v20  ;;  %v4273_v18 = vsel %vm4241_vm8, %v13812_v21, %v4257_v10  ;;  %v13016_v20 = vcombine.low %v4868_v3, %v4872_v37  ;;  %v13049_v3 = vcombine.high %v4900_v54, %v4904_v55  ;;  %v4913_v10 = vld [vmem:[%s15081_s11 + $0x8e8] sm:$0xff] }
 0x2d8   : > { %11161 = vmatprep.subr.bf16.mxu1 %v12987_v24  ;;  %v13018_v24 = vcombine.low %v4869_v0, %v4873_v1  ;;  %v4433_v31 = vmul.f32 %v4387_v57, %v4273_v18  ;;  %v4547_v15 = vrot.slane %v4467_v17, %v14841_v50  ;;  %v4912_v0 = vld [vmem:[%s15081_s11 + $0x8e0] sm:$0xff]  ;;  %v4909_v1 = vld [vmem:[%s15081_s11 + $0x8c8] sm:$0xff] }
 0x2d9   : > { %v4917_v57 = vld [vmem:[%s15081_s11 + $0x908] sm:$0xff]  ;;  %v13058_v17 = vcombine.low %v4909_v1, %v4913_v10 }
 0x2da   : > { %10834 = vmatpush1.bf16.msra.mxu0 %v12984_v33  ;;  %v4885_v33 = vld [vmem:[%s15081_s11 + $0x808] sm:$0xff]  ;;  %v4593_v41 = vadd.f32 %v4547_v15, %v4433_v31  ;;  %v4932_v15 = vld [vmem:[%s15081_s11 + $0x980] sm:$0xff] }
 0x2db   : > { %11162 = vmatpush1.bf16.msra.mxu1 %v12986_v34  ;;  %10835 = vmatprep.subr.bf16.mxu0 %v12993_v35  ;;  %v4889_v34 = vld [vmem:[%s15081_s11 + $0x828] sm:$0xff]  ;;  %v13024_v35 = vcombine.low %v4876_v9, %v4880_v44  ;;  %v4916_v9 = vld [vmem:[%s15081_s11 + $0x900] sm:$0xff] }
 0x2dc   : > { %11163 = vmatprep.subr.bf16.mxu1 %v12995_v58  ;;  %v13026_v58 = vcombine.low %v4877_v14, %v4881_v46  ;;  %v13035_v39 = vcombine.high %v4885_v33, %v4889_v34  ;;  %v13034_v51 = vcombine.low %v4885_v33, %v4889_v34  ;;  %v15301_v21 = vpack.c.bf16 %v4593_v41, %v4593_v41  ;;  %v4920_v44 = vld [vmem:[%s15081_s11 + $0x920] sm:$0xff]  ;;  %v4921_v14 = vld [vmem:[%s15081_s11 + $0x928] sm:$0xff] }
 0x2dd   : > { %v13056_v46 = vcombine.low %v4908_v62, %v4912_v0  ;;  %v13065_v18 = vcombine.high %v4916_v9, %v4920_v44  ;;  %v13066_v31 = vcombine.low %v4917_v57, %v4921_v14 }
 0x2de   : > { %10836 = vmatpush1.bf16.msra.mxu0 %v12992_v22  ;;  %v13032_v22 = vcombine.low %v4884_v27, %v4888_v12  ;;  %v4929_v27 = vld [vmem:[%s15081_s11 + $0x968] sm:$0xff]  ;;  %v13064_v12 = vcombine.low %v4916_v9, %v4920_v44 }
 0x2df   : > { %11164 = vmatpush1.bf16.msra.mxu1 %v12994_v45  ;;  %10837 = vmatprep.subr.bf16.mxu0 %v13001_v47  ;;  %v4893_v45 = vld [vmem:[%s15081_s11 + $0x848] sm:$0xff] }
 0x2e0   : > { %11165 = vmatprep.subr.bf16.mxu1 %v13003_v48  ;;  %v4897_v47 = vld [vmem:[%s15081_s11 + $0x868] sm:$0xff]  ;;  %v15296_v48 = vpack.c.bf16 %v14869_v40, %v14869_v40  ;;  %v13040_v40 = vcombine.low %v4892_v42, %v4896_v43 }
 0x2e2   : > { %10838 = vmatpush1.bf16.msra.mxu0 %v13000_v56  ;;  %v13043_v56 = vcombine.high %v4893_v45, %v4897_v47 }
 0x2e3   : > { %11166 = vmatpush1.bf16.msra.mxu1 %v13002_v59  ;;  %10839 = vmatprep.subr.bf16.mxu0 %v13009_v60  ;;  %v4901_v59 = vld [vmem:[%s15081_s11 + $0x888] sm:$0xff] }
 0x2e4   : > { %11167 = vmatprep.subr.bf16.mxu1 %v13011_v61  ;;  %v4905_v60 = vld [vmem:[%s15081_s11 + $0x8a8] sm:$0xff]  ;;  %v13042_v61 = vcombine.low %v4893_v45, %v4897_v47  ;;  %v4944_v45 = vld [vmem:[%s15081_s11 + $0x9e0] sm:$0xff] }
 0x2e5   : > { %v13051_v37 = vcombine.high %v4901_v59, %v4905_v60  ;;  %v4941_v47 = vld [vmem:[%s15081_s11 + $0x9c8] sm:$0xff] }
 0x2e6   : > { %10840 = vmatpush1.bf16.msra.mxu0 %v13008_v2  ;;  %v13048_v2 = vcombine.low %v4900_v54, %v4904_v55 }
 0x2e7   : > { %11168 = vmatpush1.bf16.msra.mxu1 %v13010_v5  ;;  %10841 = vmatprep.subr.bf16.mxu0 %v13017_v6  ;;  %v13050_v5 = vcombine.low %v4901_v59, %v4905_v60  ;;  %v13057_v6 = vcombine.high %v4908_v62, %v4912_v0  ;;  %v4948_v59 = vld [vmem:[%s15081_s11 + $0xa00] sm:$0xff] }
 0x2e8   : > { %11169 = vmatprep.subr.bf16.mxu1 %v13019_v7  ;;  %v13059_v7 = vcombine.high %v4909_v1, %v4913_v10  ;;  %v4952_v60 = vld [vmem:[%s15081_s11 + $0xa20] sm:$0xff] }
 0x2e9   : > { %v13097_v62 = vcombine.high %v4948_v59, %v4952_v60  ;;  %v4956_v1 = vld [vmem:[%s15081_s11 + $0xa40] sm:$0xff] }
 0x2ea   : > { %10842 = vmatpush1.bf16.msra.mxu0 %v13016_v20  ;;  %v13067_v20 = vcombine.high %v4917_v57, %v4921_v14  ;;  %v4960_v10 = vld [vmem:[%s15081_s11 + $0xa60] sm:$0xff] }
 0x2eb   : > { %11170 = vmatpush1.bf16.msra.mxu1 %v13018_v24  ;;  %10843 = vmatprep.subr.bf16.mxu0 %v13025_v25  ;;  %v4924_v24 = vld [vmem:[%s15081_s11 + $0x940] sm:$0xff]  ;;  %v13105_v9 = vcombine.high %v4956_v1, %v4960_v10 }
 0x2ec   : > { %11171 = vmatprep.subr.bf16.mxu1 %v13027_v38  ;;  %v4928_v25 = vld [vmem:[%s15081_s11 + $0x960] sm:$0xff]  ;;  %v4925_v38 = vld [vmem:[%s15081_s11 + $0x948] sm:$0xff] }
 0x2ed   : > { %v13073_v33 = vcombine.high %v4924_v24, %v4928_v25  ;;  %v13075_v34 = vcombine.high %v4925_v38, %v4929_v27  ;;  %v13074_v41 = vcombine.low %v4925_v38, %v4929_v27  ;;  %v4964_v57 = vld [vmem:[%s15081_s11 + $0xa80] sm:$0xff] }
 0x2ee   : > { %10844 = vmatpush1.bf16.msra.mxu0 %v13024_v35  ;;  %v4936_v35 = vld [vmem:[%s15081_s11 + $0x9a0] sm:$0xff] }
 0x2ef   : > { %11172 = vmatpush1.bf16.msra.mxu1 %v13026_v58  ;;  %10854 = vmatprep.subr.bf16.mxu0 %v13033_v36  ;;  %v4933_v58 = vld [vmem:[%s15081_s11 + $0x988] sm:$0xff]  ;;  %v13081_v42 = vcombine.high %v4932_v15, %v4936_v35  ;;  %v4968_v14 = vld [vmem:[%s15081_s11 + $0xaa0] sm:$0xff] }
 0x2f0   : > { %11182 = vmatprep.subr.bf16.mxu1 %v13035_v39  ;;  %v4937_v36 = vld [vmem:[%s15081_s11 + $0x9a8] sm:$0xff]  ;;  %v13072_v39 = vcombine.low %v4924_v24, %v4928_v25  ;;  %v13113_v24 = vcombine.high %v4964_v57, %v4968_v14  ;;  %v4972_v38 = vld [vmem:[%s15081_s11 + $0xac0] sm:$0xff] }
 0x2f1   : > { %10846 = vmatmul.mubr.bf16.vlgmr.msra.gmra.mrb[16].mxu0 %v15296_v48  ;;  %v13083_v43 = vcombine.high %v4933_v58, %v4937_v36  ;;  %v13082_v54 = vcombine.low %v4933_v58, %v4937_v36  ;;  %v4976_v27 = vld [vmem:[%s15081_s11 + $0xae0] sm:$0xff] }
 0x2f2   : > { %11174 = vmatmul.mubr.bf16.vlgmr.msra.gmra.mrb[16].mxu1 %v15296_v48  ;;  %10855 = vmatpush1.bf16.msra.mxu0 %v13032_v22  ;;  %v4940_v22 = vld [vmem:[%s15081_s11 + $0x9c0] sm:$0xff]  ;;  %v13121_v58 = vcombine.high %v4972_v38, %v4976_v27 }
 0x2f3   : > { %10886 = vmatprep.mubr.bf16.mxu0 %v15301_v21  ;;  %11183 = vmatpush1.bf16.msra.mxu1 %v13034_v51  ;;  %v4945_v51 = vld [vmem:[%s15081_s11 + $0x9e8] sm:$0xff]  ;;  %v13089_v55 = vcombine.high %v4940_v22, %v4944_v45 }
 0x2f4   : > { %11214 = vmatprep.mubr.bf16.mxu1 %v15301_v21  ;;  %10856 = vmatprep.subr.bf16.mxu0 %v13041_v52  ;;  %v13080_v52 = vcombine.low %v4932_v15, %v4936_v35  ;;  %v13112_v15 = vcombine.low %v4964_v57, %v4968_v14  ;;  %v5008_v57 = vld [vmem:[%s15081_s11 + $0xbe0] sm:$0xff] }
 0x2f5   : > { %11184 = vmatprep.subr.bf16.mxu1 %v13043_v56  ;;  %v13091_v56 = vcombine.high %v4941_v47, %v4945_v51 }
 0x2f6   : > { %10857 = vmatpush1.bf16.msra.mxu0 %v13040_v40  ;;  %v4949_v40 = vld [vmem:[%s15081_s11 + $0xa08] sm:$0xff] }
 0x2f7   : > { %11185 = vmatpush1.bf16.msra.mxu1 %v13042_v61  ;;  %10858 = vmatprep.subr.bf16.mxu0 %v13049_v3  ;;  %v4953_v61 = vld [vmem:[%s15081_s11 + $0xa28] sm:$0xff]  ;;  %v13088_v3 = vcombine.low %v4940_v22, %v4944_v45  ;;  %v13120_v45 = vcombine.low %v4972_v38, %v4976_v27 }
 0x2f8   : > { %11186 = vmatprep.subr.bf16.mxu1 %v13051_v37  ;;  %v13090_v37 = vcombine.low %v4941_v47, %v4945_v51  ;;  %v13099_v0 = vcombine.high %v4949_v40, %v4953_v61 }
 0x2fa   : > { %10859 = vmatpush1.bf16.msra.mxu0 %v13048_v2  ;;  %v4957_v2 = vld [vmem:[%s15081_s11 + $0xa48] sm:$0xff] }
 0x2fb   : > { %11187 = vmatpush1.bf16.msra.mxu1 %v13050_v5  ;;  %10860 = vmatprep.subr.bf16.mxu0 %v13057_v6  ;;  %v4961_v5 = vld [vmem:[%s15081_s11 + $0xa68] sm:$0xff]  ;;  %v13096_v6 = vcombine.low %v4948_v59, %v4952_v60 }
 0x2fc   : > { %11188 = vmatprep.subr.bf16.mxu1 %v13059_v7  ;;  %v13098_v7 = vcombine.low %v4949_v40, %v4953_v61  ;;  %v13107_v44 = vcombine.high %v4957_v2, %v4961_v5  ;;  %v4993_v59 = vld [vmem:[%s15081_s11 + $0xb68] sm:$0xff] }
 0x2fe   : > { %10861 = vmatpush1.bf16.msra.mxu0 %v13056_v46  ;;  %v4965_v46 = vld [vmem:[%s15081_s11 + $0xa88] sm:$0xff] }
 0x2ff   : > { %11189 = vmatpush1.bf16.msra.mxu1 %v13058_v17  ;;  %10862 = vmatprep.subr.bf16.mxu0 %v13065_v18  ;;  %v4969_v17 = vld [vmem:[%s15081_s11 + $0xaa8] sm:$0xff]  ;;  %v13104_v18 = vcombine.low %v4956_v1, %v4960_v10 }
 0x300   : > { %11190 = vmatprep.subr.bf16.mxu1 %v13067_v20  ;;  %v13106_v20 = vcombine.low %v4957_v2, %v4961_v5  ;;  %v13115_v25 = vcombine.high %v4965_v46, %v4969_v17  ;;  %v13114_v35 = vcombine.low %v4965_v46, %v4969_v17  ;;  %v4997_v10 = vld [vmem:[%s15081_s11 + $0xb88] sm:$0xff] }
 0x301   : > { %v5001_v2 = vld [vmem:[%s15081_s11 + $0xba8] sm:$0xff] }
 0x302   : > { %10863 = vmatpush1.bf16.msra.mxu0 %v13064_v12  ;;  %v4973_v12 = vld [vmem:[%s15081_s11 + $0xac8] sm:$0xff] }
 0x303   : > { %11191 = vmatpush1.bf16.msra.mxu1 %v13066_v31  ;;  %10864 = vmatprep.subr.bf16.mxu0 %v13073_v33  ;;  %v4977_v31 = vld [vmem:[%s15081_s11 + $0xae8] sm:$0xff]  ;;  %v15345_v33 = vld [vmem:[%s14410_s9 + $0x18] sm:$0x77] }
 0x304   : > { %11192 = vmatprep.subr.bf16.mxu1 %v13075_v34  ;;  %v893_v34 = vrot.slane %v15345_v33, %v15036_v63  ;;  %v13123_v36 = vcombine.high %v4973_v12, %v4977_v31  ;;  %v13122_v47 = vcombine.low %v4973_v12, %v4977_v31  ;;  %v4315_v1 = vrot.slane %v15345_v33, %v15059_v32  ;;  %v5005_v46 = vld [vmem:[%s15081_s11 + $0xbc8] sm:$0xff]  ;;  %v5012_v12 = vld [vmem:[%s15081_s11 + $0xc00] sm:$0xff] }
 0x305   : > { %v5009_v17 = vld [vmem:[%s15081_s11 + $0xbe8] sm:$0xff]  ;;  %v5016_v31 = vld [vmem:[%s15081_s11 + $0xc20] sm:$0xff] }
 0x306   : > { %10865 = vmatpush1.bf16.msra.mxu0 %v13072_v39  ;;  %v4980_v39 = vld [vmem:[%s15081_s11 + $0xb00] sm:$0xff]  ;;  %v973_v22 = vrot.slane %v893_v34, %v14807_v13  ;;  %v4395_v14 = vrot.slane %v4315_v1, %v14822_v28  ;;  %v13155_v27 = vcombine.high %v5005_v46, %v5009_v17 }
 0x307   : > { %11193 = vmatpush1.bf16.msra.mxu1 %v13074_v41  ;;  %10866 = vmatprep.subr.bf16.mxu0 %v13081_v42  ;;  %v4984_v41 = vld [vmem:[%s15081_s11 + $0xb20] sm:$0xff]  ;;  %v4981_v42 = vld [vmem:[%s15081_s11 + $0xb08] sm:$0xff] }
 0x308   : > { %11194 = vmatprep.subr.bf16.mxu1 %v13083_v43  ;;  %v4985_v43 = vld [vmem:[%s15081_s11 + $0xb28] sm:$0xff]  ;;  %v13129_v51 = vcombine.high %v4980_v39, %v4984_v41  ;;  %v13814_v60 = vadd.f32 %v15015_v53, %v973_v22  ;;  %v13128_v40 = vcombine.low %v4980_v39, %v4984_v41  ;;  %v13161_v39 = vcombine.high %v5012_v12, %v5016_v31  ;;  %v5024_v22 = vld [vmem:[%s15081_s11 + $0xc60] sm:$0xff] }
 0x309   : > { %v13130_v61 = vcombine.low %v4981_v42, %v4985_v43  ;;  %v5036_v1 = vld [vmem:[%s15081_s11 + $0xcc0] sm:$0xff] }
 0x30a   : > { %10867 = vmatpush1.bf16.msra.mxu0 %v13080_v52  ;;  %v13131_v52 = vcombine.high %v4981_v42, %v4985_v43  ;;  %v4259_v53 = vmul.f32 0.3, %v13814_v60  ;;  %vm4243_vm9 = vcmp.gt.f32.partialorder %v13814_v60, 0.0  ;;  %v5020_v43 = vld [vmem:[%s15081_s11 + $0xc40] sm:$0xff] }
 0x30b   : > { %11195 = vmatpush1.bf16.msra.mxu1 %v13082_v54  ;;  %10868 = vmatprep.subr.bf16.mxu0 %v13089_v55  ;;  %v4988_v54 = vld [vmem:[%s15081_s11 + $0xb40] sm:$0xff] }
 0x30c   : > { %11196 = vmatprep.subr.bf16.mxu1 %v13091_v56  ;;  %v4992_v55 = vld [vmem:[%s15081_s11 + $0xb60] sm:$0xff]  ;;  %v4989_v56 = vld [vmem:[%s15081_s11 + $0xb48] sm:$0xff] }
 0x30d   : > { %v13136_v5 = vcombine.low %v4988_v54, %v4992_v55 }
 0x30e   : > { %10869 = vmatpush1.bf16.msra.mxu0 %v13088_v3  ;;  %v13137_v3 = vcombine.high %v4988_v54, %v4992_v55  ;;  %v13169_v55 = vcombine.high %v5020_v43, %v5024_v22 }
 0x30f   : > { %11197 = vmatpush1.bf16.msra.mxu1 %v13090_v37  ;;  %10870 = vmatprep.subr.bf16.mxu0 %v13097_v62  ;;  %v13139_v37 = vcombine.high %v4989_v56, %v4993_v59  ;;  %v4996_v62 = vld [vmem:[%s15081_s11 + $0xb80] sm:$0xff] }
 0x310   : > { %11198 = vmatprep.subr.bf16.mxu1 %v13099_v0  ;;  %v5000_v0 = vld [vmem:[%s15081_s11 + $0xba0] sm:$0xff] }
 0x312   : > { %10871 = vmatpush1.bf16.msra.mxu0 %v13096_v6  ;;  %v13138_v6 = vcombine.low %v4989_v56, %v4993_v59  ;;  %v5028_v56 = vld [vmem:[%s15081_s11 + $0xc80] sm:$0xff] }
 0x313   : > { %11199 = vmatpush1.bf16.msra.mxu1 %v13098_v7  ;;  %10872 = vmatprep.subr.bf16.mxu0 %v13105_v9  ;;  %v13145_v7 = vcombine.high %v4996_v62, %v5000_v0  ;;  %v13147_v9 = vcombine.high %v4997_v10, %v5001_v2  ;;  %v5032_v59 = vld [vmem:[%s15081_s11 + $0xca0] sm:$0xff] }
 0x314   : > { %11200 = vmatprep.subr.bf16.mxu1 %v13107_v44  ;;  %v5004_v44 = vld [vmem:[%s15081_s11 + $0xbc0] sm:$0xff] }
 0x315   : > { %v13153_v38 = vcombine.high %v5004_v44, %v5008_v57 }
 0x316   : > { %10873 = vmatpush1.bf16.msra.mxu0 %v13104_v18  ;;  %v4475_v18 = vrot.slane %v15345_v33, %v15071_v49 }
 0x317   : > { %11201 = vmatpush1.bf16.msra.mxu1 %v13106_v20  ;;  %10874 = vmatprep.subr.bf16.mxu0 %v13113_v24  ;;  %v4275_v20 = vsel %vm4243_vm9, %v13814_v60, %v4259_v53  ;;  %v13144_v24 = vcombine.low %v4996_v62, %v5000_v0  ;;  %v13177_v62 = vcombine.high %v5028_v56, %v5032_v59  ;;  %v5041_v53 = vld [vmem:[%s15081_s11 + $0xce8] sm:$0xff] }
 0x318   : > { %11202 = vmatprep.subr.bf16.mxu1 %v13115_v25  ;;  %v13146_v25 = vcombine.low %v4997_v10, %v5001_v2  ;;  %v4435_v34 = vmul.f32 %v4395_v14, %v4275_v20  ;;  %v4555_v33 = vrot.slane %v4475_v18, %v14841_v50  ;;  %v5040_v10 = vld [vmem:[%s15081_s11 + $0xce0] sm:$0xff]  ;;  %v5037_v2 = vld [vmem:[%s15081_s11 + $0xcc8] sm:$0xff]  ;;  %v15404_v18 = vld [vmem:[%s14410_s9 + $0x30] sm:$0x77] }
 0x319   : > { %v5045_v14 = vld [vmem:[%s15081_s11 + $0xd08] sm:$0xff]  ;;  %v13186_v20 = vcombine.low %v5037_v2, %v5041_v53 }
 0x31a   : > { %10875 = vmatpush1.bf16.msra.mxu0 %v13112_v15  ;;  %v5013_v15 = vld [vmem:[%s15081_s11 + $0xc08] sm:$0xff]  ;;  %v4595_v42 = vadd.f32 %v4555_v33, %v4435_v34 }
 0x31b   : > { %11203 = vmatpush1.bf16.msra.mxu1 %v13114_v35  ;;  %10876 = vmatprep.subr.bf16.mxu0 %v13121_v58  ;;  %v5017_v35 = vld [vmem:[%s15081_s11 + $0xc28] sm:$0xff]  ;;  %v13152_v58 = vcombine.low %v5004_v44, %v5008_v57  ;;  %v5044_v44 = vld [vmem:[%s15081_s11 + $0xd00] sm:$0xff] }
 0x31c   : > { %11204 = vmatprep.subr.bf16.mxu1 %v13123_v36  ;;  %v13154_v36 = vcombine.low %v5005_v46, %v5009_v17  ;;  %v13163_v41 = vcombine.high %v5013_v15, %v5017_v35  ;;  %v13162_v54 = vcombine.low %v5013_v15, %v5017_v35  ;;  %v15388_v60 = vpack.c.bf16 %v4595_v42, %v4595_v42  ;;  %v5048_v57 = vld [vmem:[%s15081_s11 + $0xd20] sm:$0xff]  ;;  %v5049_v46 = vld [vmem:[%s15081_s11 + $0xd28] sm:$0xff] }
 0x31d   : > { %v13184_v17 = vcombine.low %v5036_v1, %v5040_v10  ;;  %v5053_v34 = vld [vmem:[%s15081_s11 + $0xd48] sm:$0xff]  ;;  %v13192_v35 = vcombine.low %v5044_v44, %v5048_v57  ;;  %v5064_v42 = vld [vmem:[%s15081_s11 + $0xda0] sm:$0xff] }
 0x31e   : > { %10877 = vmatpush1.bf16.msra.mxu0 %v13120_v45  ;;  %v13160_v45 = vcombine.low %v5012_v12, %v5016_v31  ;;  %v5056_v12 = vld [vmem:[%s15081_s11 + $0xd60] sm:$0xff]  ;;  %v913_v31 = vrot.slane %v15404_v18, %v14807_v13  ;;  %v5057_v15 = vld [vmem:[%s15081_s11 + $0xd68] sm:$0xff] }
 0x31f   : > { %11205 = vmatpush1.bf16.msra.mxu1 %v13122_v47  ;;  %10878 = vmatprep.subr.bf16.mxu0 %v13129_v51  ;;  %v5021_v47 = vld [vmem:[%s15081_s11 + $0xc48] sm:$0xff] }
 0x320   : > { %11206 = vmatprep.subr.bf16.mxu1 %v13131_v52  ;;  %v5025_v51 = vld [vmem:[%s15081_s11 + $0xc68] sm:$0xff]  ;;  %v15383_v52 = vpack.c.bf16 %v15038_v4, %v15038_v4  ;;  %v13168_v4 = vcombine.low %v5020_v43, %v5024_v22  ;;  %v993_v43 = vrot.slane %v913_v31, %v14807_v13  ;;  %v4335_v22 = vrot.slane %v15404_v18, %v14822_v28  ;;  %v5080_v31 = vld [vmem:[%s15081_s11 + $0xe20] sm:$0xff] }
 0x322   : > { %10879 = vmatpush1.bf16.msra.mxu0 %v13128_v40  ;;  %v13171_v40 = vcombine.high %v5021_v47, %v5025_v51 }
 0x323   : > { %11207 = vmatpush1.bf16.msra.mxu1 %v13130_v61  ;;  %10880 = vmatprep.subr.bf16.mxu0 %v13137_v3  ;;  %v5029_v61 = vld [vmem:[%s15081_s11 + $0xc88] sm:$0xff] }
 0x324   : > { %11208 = vmatprep.subr.bf16.mxu1 %v13139_v37  ;;  %v5033_v3 = vld [vmem:[%s15081_s11 + $0xca8] sm:$0xff]  ;;  %v13170_v37 = vcombine.low %v5021_v47, %v5025_v51 }
 0x325   : > { %v13179_v0 = vcombine.high %v5029_v61, %v5033_v3  ;;  %v5061_v47 = vld [vmem:[%s15081_s11 + $0xd88] sm:$0xff] }
 0x326   : > { %10881 = vmatpush1.bf16.msra.mxu0 %v13136_v5  ;;  %v13176_v5 = vcombine.low %v5028_v56, %v5032_v59  ;;  %v5065_v51 = vld [vmem:[%s15081_s11 + $0xda8] sm:$0xff]  ;;  %v13202_v56 = vcombine.low %v5053_v34, %v5057_v15 }
 0x327   : > { %11209 = vmatpush1.bf16.msra.mxu1 %v13138_v6  ;;  %10882 = vmatprep.subr.bf16.mxu0 %v13145_v7  ;;  %v13178_v6 = vcombine.low %v5029_v61, %v5033_v3  ;;  %v13185_v7 = vcombine.high %v5036_v1, %v5040_v10  ;;  %v13211_v61 = vcombine.high %v5061_v47, %v5065_v51  ;;  %v5068_v3 = vld [vmem:[%s15081_s11 + $0xdc0] sm:$0xff] }
 0x328   : > { %11210 = vmatprep.subr.bf16.mxu1 %v13147_v9  ;;  %v13187_v9 = vcombine.high %v5037_v2, %v5041_v53  ;;  %v5069_v2 = vld [vmem:[%s15081_s11 + $0xdc8] sm:$0xff] }
 0x329   : > { %v5073_v53 = vld [vmem:[%s15081_s11 + $0xde8] sm:$0xff] }
 0x32a   : > { %10883 = vmatpush1.bf16.msra.mxu0 %v13144_v24  ;;  %v13193_v24 = vcombine.high %v5044_v44, %v5048_v57  ;;  %v4495_v44 = vrot.slane %v15404_v18, %v14841_v50 }
 0x32b   : > { %11211 = vmatpush1.bf16.msra.mxu1 %v13146_v25  ;;  %10884 = vmatprep.subr.bf16.mxu0 %v13153_v38  ;;  %v15407_v25 = vld [vmem:[%s14410_s9 + $0x38] sm:$0x77]  ;;  %v13195_v38 = vcombine.high %v5045_v14, %v5049_v46 }
 0x32c   : > { %11212 = vmatprep.subr.bf16.mxu1 %v13155_v27  ;;  %v5052_v27 = vld [vmem:[%s15081_s11 + $0xd40] sm:$0xff]  ;;  %v921_v33 = vrot.slane %v15407_v25, %v14807_v13  ;;  %v4503_v57 = vrot.slane %v15407_v25, %v14841_v50 }
 0x32e   : > { %10885 = vmatpush1.bf16.msra.mxu0 %v13152_v58  ;;  %v13194_v58 = vcombine.low %v5045_v14, %v5049_v46 }
 0x32f   : > { %11213 = vmatpush1.bf16.msra.mxu1 %v13154_v36  ;;  %10895 = vmatprep.subr.bf16.mxu0 %v13161_v39  ;;  %v13201_v36 = vcombine.high %v5052_v27, %v5056_v12  ;;  %v13203_v39 = vcombine.high %v5053_v34, %v5057_v15  ;;  %v5077_v15 = vld [vmem:[%s15081_s11 + $0xe08] sm:$0xff] }
 0x330   : > { %11223 = vmatprep.subr.bf16.mxu1 %v13163_v41  ;;  %v5060_v41 = vld [vmem:[%s15081_s11 + $0xd80] sm:$0xff] }
 0x331   : > { %10887 = vmatmul.mubr.bf16.vlgmr.msra.gmra.mrb[16].mxu0 %v15383_v52  ;;  %v13209_v59 = vcombine.high %v5060_v41, %v5064_v42 }
 0x332   : > { %11215 = vmatmul.mubr.bf16.vlgmr.msra.gmra.mrb[16].mxu1 %v15383_v52  ;;  %10896 = vmatpush1.bf16.msra.mxu0 %v13160_v45  ;;  %v4343_v45 = vrot.slane %v15407_v25, %v14822_v28 }
 0x333   : > { %10927 = vmatprep.mubr.bf16.mxu0 %v15388_v60  ;;  %11224 = vmatpush1.bf16.msra.mxu1 %v13162_v54  ;;  %v1001_v54 = vrot.slane %v921_v33, %v14807_v13 }
 0x334   : > { %11255 = vmatprep.mubr.bf16.mxu1 %v15388_v60  ;;  %10897 = vmatprep.subr.bf16.mxu0 %v13169_v55  ;;  %v13200_v55 = vcombine.low %v5052_v27, %v5056_v12  ;;  %v4423_v1 = vrot.slane %v4343_v45, %v14822_v28  ;;  %v13219_v27 = vcombine.high %v5069_v2, %v5073_v53  ;;  %v5076_v12 = vld [vmem:[%s15081_s11 + $0xe00] sm:$0xff] }
 0x335   : > { %11225 = vmatprep.subr.bf16.mxu1 %v13171_v40  ;;  %v5084_v45 = vld [vmem:[%s15081_s11 + $0xe40] sm:$0xff] }
 0x336   : > { %10898 = vmatpush1.bf16.msra.mxu0 %v13168_v4  ;;  %v5072_v4 = vld [vmem:[%s15081_s11 + $0xde0] sm:$0xff] }
 0x337   : > { %11226 = vmatpush1.bf16.msra.mxu1 %v13170_v37  ;;  %10899 = vmatprep.subr.bf16.mxu0 %v13177_v62  ;;  %v4415_v62 = vrot.slane %v4335_v22, %v14822_v28  ;;  %v13216_v25 = vcombine.low %v5068_v3, %v5072_v4 }
 0x338   : > { %11227 = vmatprep.subr.bf16.mxu1 %v13179_v0 }
 0x33a   : > { %10900 = vmatpush1.bf16.msra.mxu0 %v13176_v5 }
 0x33b   : > { %11228 = vmatpush1.bf16.msra.mxu1 %v13178_v6  ;;  %10901 = vmatprep.subr.bf16.mxu0 %v13185_v7 }
 0x33c   : > { %11229 = vmatprep.subr.bf16.mxu1 %v13187_v9  ;;  %v13208_v9 = vcombine.low %v5060_v41, %v5064_v42  ;;  %v13218_v42 = vcombine.low %v5069_v2, %v5073_v53 }
 0x33e   : > { %10902 = vmatpush1.bf16.msra.mxu0 %v13184_v17 }
 0x33f   : > { %11230 = vmatpush1.bf16.msra.mxu1 %v13186_v20  ;;  %10903 = vmatprep.subr.bf16.mxu0 %v13193_v24  ;;  %v13210_v20 = vcombine.low %v5061_v47, %v5065_v51  ;;  %v13217_v24 = vcombine.high %v5068_v3, %v5072_v4  ;;  %v5088_v47 = vld [vmem:[%s15081_s11 + $0xe60] sm:$0xff]  ;;  %v5085_v51 = vld [vmem:[%s15081_s11 + $0xe48] sm:$0xff] }
 0x340   : > { %11231 = vmatprep.subr.bf16.mxu1 %v13195_v38  ;;  %v5092_v4 = vld [vmem:[%s15081_s11 + $0xe80] sm:$0xff] }
 0x342   : > { %10904 = vmatpush1.bf16.msra.mxu0 %v13192_v35  ;;  %v5081_v35 = vld [vmem:[%s15081_s11 + $0xe28] sm:$0xff] }
 0x343   : > { %11232 = vmatpush1.bf16.msra.mxu1 %v13194_v58  ;;  %10905 = vmatprep.subr.bf16.mxu0 %v13201_v36  ;;  %v4575_v36 = vrot.slane %v4495_v44, %v14841_v50  ;;  %v13227_v22 = vcombine.high %v5077_v15, %v5081_v35  ;;  %v5101_v44 = vld [vmem:[%s15081_s11 + $0xec8] sm:$0xff] }
 0x344   : > { %v4147_v40 = vpop.f32.mrb[12].mxu0  ;;  %11233 = vmatprep.subr.bf16.mxu1 %v13203_v39  ;;  %v4229_v0 = vpop.f32.mrb[12].mxu1  ;;  %v4583_v39 = vrot.slane %v4503_v57, %v14841_v50  ;;  %v5105_v57 = vld [vmem:[%s15081_s11 + $0xee8] sm:$0xff] }
 0x345   : > { %v13819_v37 = vadd.f32 %v4147_v40, %v993_v43  ;;  %v15431_v10 = vpop.f32.mrb[13].mxu0  ;;  %v13821_v5 = vadd.f32 %v4229_v0, %v1001_v54  ;;  %v15435_v6 = vpop.f32.mrb[13].mxu1  ;;  %v13225_v43 = vcombine.high %v5076_v12, %v5080_v31  ;;  %v5089_v54 = vld [vmem:[%s15081_s11 + $0xe68] sm:$0xff]  ;;  %v13226_v40 = vcombine.low %v5077_v15, %v5081_v35 }
 0x346   : > { %v4151_v7 = vpop.f32.mrb[14].mxu0  ;;  %10906 = vmatpush1.bf16.msra.mxu0 %v13200_v55  ;;  %v4233_v46 = vpop.f32.mrb[14].mxu1  ;;  %v13224_v55 = vcombine.low %v5076_v12, %v5080_v31  ;;  %v13235_v3 = vcombine.high %v5085_v51, %v5089_v54  ;;  %v5097_v0 = vld [vmem:[%s15081_s11 + $0xea8] sm:$0xff]  ;;  %v13234_v2 = vcombine.low %v5085_v51, %v5089_v54  ;;  %v5112_v12 = vld [vmem:[%s15081_s11 + $0xf20] sm:$0xff]  ;;  %v13250_v15 = vcombine.low %v5101_v44, %v5105_v57 }
 0x347   : > { %vm4248_vm10 = vcmp.gt.f32.partialorder %v13819_v37, 0.0  ;;  %v4264_v14 = vmul.f32 0.3, %v13819_v37  ;;  %11234 = vmatpush1.bf16.msra.mxu1 %v13202_v56  ;;  %v4152_v17 = vpop.f32.mrb[15].mxu0  ;;  %10907 = vmatprep.subr.bf16.mxu0 %v13209_v59  ;;  %vm4250_vm11 = vcmp.gt.f32.partialorder %v13821_v5, 0.0  ;;  %v4234_v34 = vpop.f32.mrb[15].mxu1 }
 0x348   : > { %v4266_v38 = vmul.f32 0.3, %v13821_v5  ;;  %11235 = vmatprep.subr.bf16.mxu1 %v13211_v61  ;;  %v13233_v61 = vcombine.high %v5084_v45, %v5088_v47  ;;  %v5100_v7 = vld [vmem:[%s15081_s11 + $0xec0] sm:$0xff]  ;;  %v5109_v31 = vld [vmem:[%s15081_s11 + $0xf08] sm:$0xff] }
 0x349   : > { %v4280_v18 = vsel %vm4248_vm10, %v13819_v37, %v4264_v14  ;;  %v5096_v37 = vld [vmem:[%s15081_s11 + $0xea0] sm:$0xff] }
 0x34a   : > { %v4440_v33 = vmul.f32 %v4415_v62, %v4280_v18  ;;  %v4282_v58 = vsel %vm4250_vm11, %v13821_v5, %v4266_v38  ;;  %10908 = vmatpush1.bf16.msra.mxu0 %v13208_v9  ;;  %v5093_v62 = vld [vmem:[%s15081_s11 + $0xe88] sm:$0xff]  ;;  %v13241_v53 = vcombine.high %v5092_v4, %v5096_v37  ;;  %v5104_v9 = vld [vmem:[%s15081_s11 + $0xee0] sm:$0xff]  ;;  %v13240_v17 = vcombine.low %v5092_v4, %v5096_v37 }
 0x34b   : > { %v4442_v41 = vmul.f32 %v4423_v1, %v4282_v58  ;;  %11236 = vmatpush1.bf16.msra.mxu1 %v13210_v20  ;;  %10909 = vmatprep.subr.bf16.mxu0 %v13217_v24  ;;  %v13232_v1 = vcombine.low %v5084_v45, %v5088_v47  ;;  %v13243_v5 = vcombine.high %v5093_v62, %v5097_v0  ;;  %v15464_v14 = vld [vmem:[%s14410_s9 + $0x20] sm:$0x77]  ;;  %v5113_v18 = vld [vmem:[%s15081_s11 + $0xf28] sm:$0xff] }
 0x34c   : > { %11237 = vmatprep.subr.bf16.mxu1 %v13219_v27  ;;  %v15451_v56 = vadd.f32 %v4575_v36, %v4440_v33  ;;  %v901_v46 = vrot.slane %v15464_v14, %v15036_v63  ;;  %v13242_v20 = vcombine.low %v5093_v62, %v5097_v0  ;;  %v13249_v24 = vcombine.high %v5100_v7, %v5104_v9  ;;  %v5108_v27 = vld [vmem:[%s15081_s11 + $0xf00] sm:$0xff] }
 0x34d   : > { %v15453_v59 = vadd.f32 %v4583_v39, %v4442_v41  ;;  %v13251_v38 = vcombine.high %v5101_v44, %v5105_v57  ;;  %v13257_v35 = vcombine.high %v5108_v27, %v5112_v12  ;;  %v13259_v33 = vcombine.high %v5109_v31, %v5113_v18  ;;  %v5116_v58 = vld [vmem:[%s15081_s11 + $0xf40] sm:$0xff]  ;;  %v5117_v39 = vld [vmem:[%s15081_s11 + $0xf48] sm:$0xff] }
 0x34e   : > { %10910 = vmatpush1.bf16.msra.mxu0 %v13216_v25  ;;  %v981_v34 = vrot.slane %v901_v46, %v14807_v13  ;;  %v13248_v25 = vcombine.low %v5100_v7, %v5104_v9  ;;  %v5120_v36 = vld [vmem:[%s15081_s11 + $0xf60] sm:$0xff]  ;;  %v5121_v41 = vld [vmem:[%s15081_s11 + $0xf68] sm:$0xff]  ;;  %v4483_v7 = vrot.slane %v15464_v14, %v15071_v49 }
 0x34f   : > { %11238 = vmatpush1.bf16.msra.mxu1 %v13218_v42  ;;  %10911 = vmatprep.subr.bf16.mxu0 %v13225_v43  ;;  %v13256_v43 = vcombine.low %v5108_v27, %v5112_v12  ;;  %v13265_v45 = vcombine.high %v5116_v58, %v5120_v36  ;;  %v13267_v47 = vcombine.high %v5117_v39, %v5121_v41  ;;  %v5124_v51 = vld [vmem:[%s15081_s11 + $0xf80] sm:$0xff]  ;;  %v5141_v27 = vld [vmem:[%s15081_s11 + $0x1008] sm:$0xff] }
 0x350   : > { %11239 = vmatprep.subr.bf16.mxu1 %v13227_v22  ;;  %v13816_v42 = vadd.f32 %v15223_v26, %v981_v34  ;;  %v13258_v22 = vcombine.low %v5109_v31, %v5113_v18  ;;  %v5128_v54 = vld [vmem:[%s15081_s11 + $0xfa0] sm:$0xff]  ;;  %v13266_v4 = vcombine.low %v5117_v39, %v5121_v41  ;;  %v5145_v12 = vld [vmem:[%s15081_s11 + $0x1028] sm:$0xff]  ;;  %v15502_v41 = vpack.c.bf16 %v15042_v8, %v15042_v8 }
 0x351   : > { %v13273_v37 = vcombine.high %v5124_v51, %v5128_v54  ;;  %v5132_v0 = vld [vmem:[%s15081_s11 + $0xfc0] sm:$0xff]  ;;  %v13272_v44 = vcombine.low %v5124_v51, %v5128_v54  ;;  %v5153_v39 = vld [vmem:[%s15081_s11 + $0x1068] sm:$0xff] }
 0x352   : > { %10912 = vmatpush1.bf16.msra.mxu0 %v13224_v55  ;;  %v4323_v55 = vrot.slane %v15464_v14, %v15059_v32  ;;  %v4261_v26 = vmul.f32 0.3, %v13816_v42  ;;  %vm4245_vm12 = vcmp.gt.f32.partialorder %v13816_v42, 0.0  ;;  %v4563_v14 = vrot.slane %v4483_v7, %v14841_v50  ;;  %v5157_v54 = vld [vmem:[%s15081_s11 + $0x1088] sm:$0xff]  ;;  %v5176_v7 = vld [vmem:[%s15081_s11 + $0x1120] sm:$0xff] }
 0x353   : > { %11240 = vmatpush1.bf16.msra.mxu1 %v13226_v40  ;;  %10913 = vmatprep.subr.bf16.mxu0 %v13233_v61  ;;  %v5125_v40 = vld [vmem:[%s15081_s11 + $0xf88] sm:$0xff] }
 0x354   : > { %11241 = vmatprep.subr.bf16.mxu1 %v13235_v3  ;;  %v5129_v61 = vld [vmem:[%s15081_s11 + $0xfa8] sm:$0xff]  ;;  %v13264_v3 = vcombine.low %v5116_v58, %v5120_v36  ;;  %v4277_v9 = vsel %vm4245_vm12, %v13816_v42, %v4261_v26  ;;  %v13290_v42 = vcombine.low %v5141_v27, %v5145_v12 }
 0x355   : > { %v13275_v62 = vcombine.high %v5125_v40, %v5129_v61  ;;  %v13274_v57 = vcombine.low %v5125_v40, %v5129_v61  ;;  %v5149_v36 = vld [vmem:[%s15081_s11 + $0x1048] sm:$0xff] }
 0x356   : > { %10914 = vmatpush1.bf16.msra.mxu0 %v13232_v1  ;;  %v5136_v1 = vld [vmem:[%s15081_s11 + $0xfe0] sm:$0xff]  ;;  %v13299_v51 = vcombine.high %v5149_v36, %v5153_v39  ;;  %v13298_v40 = vcombine.low %v5149_v36, %v5153_v39 }
 0x357   : > { %11242 = vmatpush1.bf16.msra.mxu1 %v13234_v2  ;;  %10915 = vmatprep.subr.bf16.mxu0 %v13241_v53  ;;  %v4403_v2 = vrot.slane %v4323_v55, %v14822_v28  ;;  %v5133_v53 = vld [vmem:[%s15081_s11 + $0xfc8] sm:$0xff]  ;;  %v13281_v46 = vcombine.high %v5132_v0, %v5136_v1  ;;  %v13280_v31 = vcombine.low %v5132_v0, %v5136_v1 }
 0x358   : > { %11243 = vmatprep.subr.bf16.mxu1 %v13243_v5  ;;  %v5137_v5 = vld [vmem:[%s15081_s11 + $0xfe8] sm:$0xff] }
 0x359   : > { %v13282_v18 = vcombine.low %v5133_v53, %v5137_v5  ;;  %v5161_v55 = vld [vmem:[%s15081_s11 + $0x10a8] sm:$0xff] }
 0x35a   : > { %10916 = vmatpush1.bf16.msra.mxu0 %v13240_v17  ;;  %v13283_v17 = vcombine.high %v5133_v53, %v5137_v5  ;;  %v13307_v26 = vcombine.high %v5157_v54, %v5161_v55  ;;  %v13306_v1 = vcombine.low %v5157_v54, %v5161_v55  ;;  %v5172_v5 = vld [vmem:[%s15081_s11 + $0x1100] sm:$0xff] }
 0x35b   : > { %11244 = vmatpush1.bf16.msra.mxu1 %v13242_v20  ;;  %10917 = vmatprep.subr.bf16.mxu0 %v13249_v24  ;;  %v5140_v20 = vld [vmem:[%s15081_s11 + $0x1000] sm:$0xff] }
 0x35c   : > { %11245 = vmatprep.subr.bf16.mxu1 %v13251_v38  ;;  %v5144_v24 = vld [vmem:[%s15081_s11 + $0x1020] sm:$0xff]  ;;  %v4437_v38 = vmul.f32 %v4403_v2, %v4277_v9  ;;  %v5173_v9 = vld [vmem:[%s15081_s11 + $0x1108] sm:$0xff] }
 0x35d   : > { %v13289_v34 = vcombine.high %v5140_v20, %v5144_v24  ;;  %v13288_v58 = vcombine.low %v5140_v20, %v5144_v24  ;;  %v5180_v24 = vld [vmem:[%s15081_s11 + $0x1140] sm:$0xff] }
 0x35e   : > { %10918 = vmatpush1.bf16.msra.mxu0 %v13248_v25  ;;  %v13291_v25 = vcombine.high %v5141_v27, %v5145_v12  ;;  %v5181_v27 = vld [vmem:[%s15081_s11 + $0x1148] sm:$0xff] }
 0x35f   : > { %11246 = vmatpush1.bf16.msra.mxu1 %v13250_v15  ;;  %10919 = vmatprep.subr.bf16.mxu0 %v13257_v35  ;;  %v4597_v15 = vadd.f32 %v4563_v14, %v4437_v38  ;;  %v5148_v35 = vld [vmem:[%s15081_s11 + $0x1040] sm:$0xff]  ;;  %v5185_v12 = vld [vmem:[%s15081_s11 + $0x1168] sm:$0xff]  ;;  %v13320_v14 = vcombine.low %v5172_v5, %v5176_v7 }
 0x360   : > { %11247 = vmatprep.subr.bf16.mxu1 %v13259_v33  ;;  %v5152_v33 = vld [vmem:[%s15081_s11 + $0x1060] sm:$0xff]  ;;  %v13330_v36 = vcombine.low %v5181_v27, %v5185_v12 }
 0x361   : > { %v13296_v8 = vcombine.low %v5148_v35, %v5152_v33  ;;  %v5184_v38 = vld [vmem:[%s15081_s11 + $0x1160] sm:$0xff] }
 0x362   : > { %10920 = vmatpush1.bf16.msra.mxu0 %v13256_v43  ;;  %v13297_v43 = vcombine.high %v5148_v35, %v5152_v33  ;;  %v5189_v35 = vld [vmem:[%s15081_s11 + $0x1188] sm:$0xff] }
 0x363   : > { %11248 = vmatpush1.bf16.msra.mxu1 %v13258_v22  ;;  %10921 = vmatprep.subr.bf16.mxu0 %v13265_v45  ;;  %v5156_v22 = vld [vmem:[%s15081_s11 + $0x1080] sm:$0xff]  ;;  %v5193_v33 = vld [vmem:[%s15081_s11 + $0x11a8] sm:$0xff] }
 0x364   : > { %11249 = vmatprep.subr.bf16.mxu1 %v13267_v47  ;;  %v5160_v45 = vld [vmem:[%s15081_s11 + $0x10a0] sm:$0xff]  ;;  %v15507_v47 = vpack.c.bf16 %v4597_v15, %v4597_v15  ;;  %v13338_v55 = vcombine.low %v5189_v35, %v5193_v33 }
 0x365   : > { %v13305_v61 = vcombine.high %v5156_v22, %v5160_v45  ;;  %v13304_v0 = vcombine.low %v5156_v22, %v5160_v45  ;;  %v5192_v15 = vld [vmem:[%s15081_s11 + $0x11a0] sm:$0xff]  ;;  %v5197_v45 = vld [vmem:[%s15081_s11 + $0x11c8] sm:$0xff] }
 0x366   : > { %10922 = vmatpush1.bf16.msra.mxu0 %v13264_v3  ;;  %v5164_v3 = vld [vmem:[%s15081_s11 + $0x10c0] sm:$0xff] }
 0x367   : > { %11250 = vmatpush1.bf16.msra.mxu1 %v13266_v4  ;;  %10923 = vmatprep.subr.bf16.mxu0 %v13273_v37  ;;  %v5168_v4 = vld [vmem:[%s15081_s11 + $0x10e0] sm:$0xff]  ;;  %v5165_v37 = vld [vmem:[%s15081_s11 + $0x10c8] sm:$0xff] }
 0x368   : > { %11251 = vmatprep.subr.bf16.mxu1 %v13275_v62  ;;  %v5169_v62 = vld [vmem:[%s15081_s11 + $0x10e8] sm:$0xff]  ;;  %v13313_v2 = vcombine.high %v5164_v3, %v5168_v4  ;;  %v5200_v22 = vld [vmem:[%s15081_s11 + $0x11e0] sm:$0xff] }
 0x369   : > { %v13315_v53 = vcombine.high %v5165_v37, %v5169_v62 }
 0x36a   : > { %10924 = vmatpush1.bf16.msra.mxu0 %v13272_v44  ;;  %v5177_v44 = vld [vmem:[%s15081_s11 + $0x1128] sm:$0xff] }
 0x36b   : > { %11252 = vmatpush1.bf16.msra.mxu1 %v13274_v57  ;;  %10925 = vmatprep.subr.bf16.mxu0 %v13281_v46  ;;  %v13312_v57 = vcombine.low %v5164_v3, %v5168_v4  ;;  %v13314_v46 = vcombine.low %v5165_v37, %v5169_v62  ;;  %v13323_v20 = vcombine.high %v5173_v9, %v5177_v44  ;;  %v5205_v3 = vld [vmem:[%s15081_s11 + $0x1208] sm:$0xff] }
 0x36c   : > { %11253 = vmatprep.subr.bf16.mxu1 %v13283_v17  ;;  %v13321_v17 = vcombine.high %v5172_v5, %v5176_v7  ;;  %v5209_v4 = vld [vmem:[%s15081_s11 + $0x1228] sm:$0xff] }
 0x36d   : > { %v5213_v5 = vld [vmem:[%s15081_s11 + $0x1248] sm:$0xff] }
 0x36e   : > { %10926 = vmatpush1.bf16.msra.mxu0 %v13280_v31  ;;  %v13322_v31 = vcombine.low %v5173_v9, %v5177_v44  ;;  %v5217_v7 = vld [vmem:[%s15081_s11 + $0x1268] sm:$0xff]  ;;  %v13354_v44 = vcombine.low %v5205_v3, %v5209_v4 }
 0x36f   : > { %11254 = vmatpush1.bf16.msra.mxu1 %v13282_v18  ;;  %10936 = vmatprep.subr.bf16.mxu0 %v13289_v34  ;;  %v13329_v18 = vcombine.high %v5180_v24, %v5184_v38  ;;  %v13331_v34 = vcombine.high %v5181_v27, %v5185_v12  ;;  %v13362_v12 = vcombine.low %v5213_v5, %v5217_v7 }
 0x370   : > { %11264 = vmatprep.subr.bf16.mxu1 %v13291_v25  ;;  %v5188_v25 = vld [vmem:[%s15081_s11 + $0x1180] sm:$0xff] }
 0x371   : > { %10928 = vmatmul.mubr.bf16.vlgmr.msra.gmra.mrb[16].mxu0 %v15502_v41  ;;  %v13337_v39 = vcombine.high %v5188_v25, %v5192_v15  ;;  %v13336_v54 = vcombine.low %v5188_v25, %v5192_v15  ;;  %v5229_v25 = vld [vmem:[%s15081_s11 + $0x12c8] sm:$0xff] }
 0x372   : > { %11256 = vmatmul.mubr.bf16.vlgmr.msra.gmra.mrb[16].mxu1 %v15502_v41  ;;  %10937 = vmatpush1.bf16.msra.mxu0 %v13288_v58  ;;  %v13328_v58 = vcombine.low %v5180_v24, %v5184_v38  ;;  %v5221_v24 = vld [vmem:[%s15081_s11 + $0x1288] sm:$0xff] }
 0x373   : > { %10968 = vmatprep.mubr.bf16.mxu0 %v15507_v47  ;;  %11265 = vmatpush1.bf16.msra.mxu1 %v13290_v42  ;;  %v13339_v42 = vcombine.high %v5189_v35, %v5193_v33  ;;  %v5225_v38 = vld [vmem:[%s15081_s11 + $0x12a8] sm:$0xff] }
 0x374   : > { %11296 = vmatprep.mubr.bf16.mxu1 %v15507_v47  ;;  %10938 = vmatprep.subr.bf16.mxu0 %v13297_v43  ;;  %v5196_v43 = vld [vmem:[%s15081_s11 + $0x11c0] sm:$0xff]  ;;  %v5233_v15 = vld [vmem:[%s15081_s11 + $0x12e8] sm:$0xff] }
 0x375   : > { %11266 = vmatprep.subr.bf16.mxu1 %v13299_v51  ;;  %v5201_v51 = vld [vmem:[%s15081_s11 + $0x11e8] sm:$0xff]  ;;  %v13344_v37 = vcombine.low %v5196_v43, %v5200_v22 }
 0x376   : > { %10939 = vmatpush1.bf16.msra.mxu0 %v13296_v8  ;;  %v13345_v8 = vcombine.high %v5196_v43, %v5200_v22  ;;  %v13346_v62 = vcombine.low %v5197_v45, %v5201_v51  ;;  %v15551_v35 = vld [vmem:[%s14410_s9 + $0x28] sm:$0x77]  ;;  %v5236_v43 = vld [vmem:[%s15081_s11 + $0x1300] sm:$0xff] }
 0x377   : > { %11267 = vmatpush1.bf16.msra.mxu1 %v13298_v40  ;;  %10940 = vmatprep.subr.bf16.mxu0 %v13305_v61  ;;  %v13347_v40 = vcombine.high %v5197_v45, %v5201_v51  ;;  %v5204_v61 = vld [vmem:[%s15081_s11 + $0x1200] sm:$0xff]  ;;  %v909_v33 = vrot.slane %v15551_v35, %v15036_v63  ;;  %v5237_v45 = vld [vmem:[%s15081_s11 + $0x1308] sm:$0xff] }
 0x378   : > { %11268 = vmatprep.subr.bf16.mxu1 %v13307_v26  ;;  %v5208_v26 = vld [vmem:[%s15081_s11 + $0x1220] sm:$0xff]  ;;  %v5241_v51 = vld [vmem:[%s15081_s11 + $0x1328] sm:$0xff] }
 0x379   : > { %v13352_v9 = vcombine.low %v5204_v61, %v5208_v26  ;;  %v5240_v22 = vld [vmem:[%s15081_s11 + $0x1320] sm:$0xff] }
 0x37a   : > { %10941 = vmatpush1.bf16.msra.mxu0 %v13304_v0  ;;  %v13353_v0 = vcombine.high %v5204_v61, %v5208_v26  ;;  %v13387_v61 = vcombine.high %v5237_v45, %v5241_v51  ;;  %v5244_v26 = vld [vmem:[%s15081_s11 + $0x1340] sm:$0xff] }
 0x37b   : > { %11269 = vmatpush1.bf16.msra.mxu1 %v13306_v1  ;;  %10942 = vmatprep.subr.bf16.mxu0 %v13313_v2  ;;  %v13355_v1 = vcombine.high %v5205_v3, %v5209_v4  ;;  %v5212_v2 = vld [vmem:[%s15081_s11 + $0x1240] sm:$0xff]  ;;  %v5245_v4 = vld [vmem:[%s15081_s11 + $0x1348] sm:$0xff] }
 0x37c   : > { %11270 = vmatprep.subr.bf16.mxu1 %v13315_v53  ;;  %v5216_v53 = vld [vmem:[%s15081_s11 + $0x1260] sm:$0xff] }
 0x37d   : > { %v13360_v27 = vcombine.low %v5212_v2, %v5216_v53  ;;  %v5248_v3 = vld [vmem:[%s15081_s11 + $0x1360] sm:$0xff] }
 0x37e   : > { %10943 = vmatpush1.bf16.msra.mxu0 %v13312_v57  ;;  %v13361_v57 = vcombine.high %v5212_v2, %v5216_v53  ;;  %v13393_v2 = vcombine.high %v5244_v26, %v5248_v3 }
 0x37f   : > { %11271 = vmatpush1.bf16.msra.mxu1 %v13314_v46  ;;  %10944 = vmatprep.subr.bf16.mxu0 %v13321_v17  ;;  %v13363_v46 = vcombine.high %v5213_v5, %v5217_v7  ;;  %v5220_v17 = vld [vmem:[%s15081_s11 + $0x1280] sm:$0xff] }
 0x380   : > { %11272 = vmatprep.subr.bf16.mxu1 %v13323_v20  ;;  %v5224_v20 = vld [vmem:[%s15081_s11 + $0x12a0] sm:$0xff] }
 0x381   : > { %v5252_v5 = vld [vmem:[%s15081_s11 + $0x1380] sm:$0xff] }
 0x382   : > { %10945 = vmatpush1.bf16.msra.mxu0 %v13320_v14  ;;  %v13369_v14 = vcombine.high %v5220_v17, %v5224_v20  ;;  %v5256_v7 = vld [vmem:[%s15081_s11 + $0x13a0] sm:$0xff] }
 0x383   : > { %11273 = vmatpush1.bf16.msra.mxu1 %v13322_v31  ;;  %10946 = vmatprep.subr.bf16.mxu0 %v13329_v18  ;;  %v13371_v31 = vcombine.high %v5221_v24, %v5225_v38  ;;  %v5228_v18 = vld [vmem:[%s15081_s11 + $0x12c0] sm:$0xff] }
 0x384   : > { %11274 = vmatprep.subr.bf16.mxu1 %v13331_v34  ;;  %v5232_v34 = vld [vmem:[%s15081_s11 + $0x12e0] sm:$0xff] }
 0x386   : > { %10947 = vmatpush1.bf16.msra.mxu0 %v13328_v58  ;;  %v13368_v58 = vcombine.low %v5220_v17, %v5224_v20  ;;  %v13401_v20 = vcombine.high %v5252_v5, %v5256_v7 }
 0x387   : > { %11275 = vmatpush1.bf16.msra.mxu1 %v13330_v36  ;;  %10948 = vmatprep.subr.bf16.mxu0 %v13337_v39  ;;  %v13370_v36 = vcombine.low %v5221_v24, %v5225_v38  ;;  %v13377_v39 = vcombine.high %v5228_v18, %v5232_v34  ;;  %v5260_v38 = vld [vmem:[%s15081_s11 + $0x13c0] sm:$0xff] }
 0x388   : > { %11276 = vmatprep.subr.bf16.mxu1 %v13339_v42  ;;  %v13379_v42 = vcombine.high %v5229_v25, %v5233_v15 }
 0x38a   : > { %10949 = vmatpush1.bf16.msra.mxu0 %v13336_v54  ;;  %v989_v54 = vrot.slane %v909_v33, %v14807_v13 }
 0x38b   : > { %11277 = vmatpush1.bf16.msra.mxu1 %v13338_v55  ;;  %10950 = vmatprep.subr.bf16.mxu0 %v13345_v8  ;;  %v13376_v55 = vcombine.low %v5228_v18, %v5232_v34  ;;  %v13378_v8 = vcombine.low %v5229_v25, %v5233_v15  ;;  %v4491_v18 = vrot.slane %v15551_v35, %v15071_v49 }
 0x38c   : > { %11278 = vmatprep.subr.bf16.mxu1 %v13347_v40  ;;  %v13385_v40 = vcombine.high %v5236_v43, %v5240_v22  ;;  %v13400_v25 = vcombine.low %v5252_v5, %v5256_v7  ;;  %v5285_v7 = vld [vmem:[%s15081_s11 + $0x1488] sm:$0xff] }
 0x38e   : > { %10951 = vmatpush1.bf16.msra.mxu0 %v13344_v37  ;;  %v5249_v37 = vld [vmem:[%s15081_s11 + $0x1368] sm:$0xff] }
 0x38f   : > { %11279 = vmatpush1.bf16.msra.mxu1 %v13346_v62  ;;  %10952 = vmatprep.subr.bf16.mxu0 %v13353_v0  ;;  %v13818_v62 = vadd.f32 %v15229_v30, %v989_v54  ;;  %v13384_v0 = vcombine.low %v5236_v43, %v5240_v22  ;;  %v13395_v53 = vcombine.high %v5245_v4, %v5249_v37  ;;  %v5269_v43 = vld [vmem:[%s15081_s11 + $0x1408] sm:$0xff] }
 0x390   : > { %11280 = vmatprep.subr.bf16.mxu1 %v13355_v1  ;;  %v13386_v1 = vcombine.low %v5237_v45, %v5241_v51  ;;  %v13394_v17 = vcombine.low %v5245_v4, %v5249_v37  ;;  %v5273_v22 = vld [vmem:[%s15081_s11 + $0x1428] sm:$0xff]  ;;  %v15589_v37 = vpack.c.bf16 %v15251_v16, %v15251_v16 }
 0x391   : > { %v4263_v30 = vmul.f32 0.3, %v13818_v62  ;;  %vm4247_vm13 = vcmp.gt.f32.partialorder %v13818_v62, 0.0  ;;  %v5281_v4 = vld [vmem:[%s15081_s11 + $0x1468] sm:$0xff] }
 0x392   : > { %10953 = vmatpush1.bf16.msra.mxu0 %v13352_v9  ;;  %v4331_v9 = vrot.slane %v15551_v35, %v15059_v32  ;;  %v4571_v35 = vrot.slane %v4491_v18, %v14841_v50  ;;  %v5304_v18 = vld [vmem:[%s15081_s11 + $0x1520] sm:$0xff] }
 0x393   : > { %11281 = vmatpush1.bf16.msra.mxu1 %v13354_v44  ;;  %10954 = vmatprep.subr.bf16.mxu0 %v13361_v57  ;;  %v5253_v44 = vld [vmem:[%s15081_s11 + $0x1388] sm:$0xff]  ;;  %v4279_v34 = vsel %vm4247_vm13, %v13818_v62, %v4263_v30  ;;  %v13418_v62 = vcombine.low %v5269_v43, %v5273_v22 }
 0x394   : > { %11282 = vmatprep.subr.bf16.mxu1 %v13363_v46  ;;  %v5257_v57 = vld [vmem:[%s15081_s11 + $0x13a8] sm:$0xff]  ;;  %v13392_v46 = vcombine.low %v5244_v26, %v5248_v3 }
 0x395   : > { %v13403_v24 = vcombine.high %v5253_v44, %v5257_v57  ;;  %v13402_v15 = vcombine.low %v5253_v44, %v5257_v57  ;;  %v5277_v3 = vld [vmem:[%s15081_s11 + $0x1448] sm:$0xff] }
 0x396   : > { %10955 = vmatpush1.bf16.msra.mxu0 %v13360_v27  ;;  %v5264_v27 = vld [vmem:[%s15081_s11 + $0x13e0] sm:$0xff]  ;;  %v13427_v5 = vcombine.high %v5277_v3, %v5281_v4  ;;  %v13426_v44 = vcombine.low %v5277_v3, %v5281_v4 }
 0x397   : > { %11283 = vmatpush1.bf16.msra.mxu1 %v13362_v12  ;;  %10956 = vmatprep.subr.bf16.mxu0 %v13369_v14  ;;  %v4411_v12 = vrot.slane %v4331_v9, %v14822_v28  ;;  %v5261_v14 = vld [vmem:[%s15081_s11 + $0x13c8] sm:$0xff]  ;;  %v13409_v33 = vcombine.high %v5260_v38, %v5264_v27  ;;  %v13408_v45 = vcombine.low %v5260_v38, %v5264_v27 }
 0x398   : > { %11284 = vmatprep.subr.bf16.mxu1 %v13371_v31  ;;  %v5265_v31 = vld [vmem:[%s15081_s11 + $0x13e8] sm:$0xff] }
 0x399   : > { %v13410_v51 = vcombine.low %v5261_v14, %v5265_v31  ;;  %v5289_v9 = vld [vmem:[%s15081_s11 + $0x14a8] sm:$0xff] }
 0x39a   : > { %10957 = vmatpush1.bf16.msra.mxu0 %v13368_v58  ;;  %v13411_v58 = vcombine.high %v5261_v14, %v5265_v31  ;;  %v13435_v30 = vcombine.high %v5285_v7, %v5289_v9  ;;  %v13434_v27 = vcombine.low %v5285_v7, %v5289_v9  ;;  %v5300_v31 = vld [vmem:[%s15081_s11 + $0x1500] sm:$0xff] }
 0x39b   : > { %11285 = vmatpush1.bf16.msra.mxu1 %v13370_v36  ;;  %10958 = vmatprep.subr.bf16.mxu0 %v13377_v39  ;;  %v5268_v36 = vld [vmem:[%s15081_s11 + $0x1400] sm:$0xff] }
 0x39c   : > { %11286 = vmatprep.subr.bf16.mxu1 %v13379_v42  ;;  %v5272_v39 = vld [vmem:[%s15081_s11 + $0x1420] sm:$0xff]  ;;  %v4439_v42 = vmul.f32 %v4411_v12, %v4279_v34  ;;  %v5301_v34 = vld [vmem:[%s15081_s11 + $0x1508] sm:$0xff] }
 0x39d   : > { %v13417_v54 = vcombine.high %v5268_v36, %v5272_v39  ;;  %v13416_v26 = vcombine.low %v5268_v36, %v5272_v39  ;;  %v5308_v39 = vld [vmem:[%s15081_s11 + $0x1540] sm:$0xff] }
 0x39e   : > { %10959 = vmatpush1.bf16.msra.mxu0 %v13376_v55  ;;  %v13419_v55 = vcombine.high %v5269_v43, %v5273_v22  ;;  %v5309_v43 = vld [vmem:[%s15081_s11 + $0x1548] sm:$0xff] }
 0x39f   : > { %11287 = vmatpush1.bf16.msra.mxu1 %v13378_v8  ;;  %10960 = vmatprep.subr.bf16.mxu0 %v13385_v40  ;;  %v4599_v8 = vadd.f32 %v4571_v35, %v4439_v42  ;;  %v5276_v40 = vld [vmem:[%s15081_s11 + $0x1440] sm:$0xff]  ;;  %v5313_v22 = vld [vmem:[%s15081_s11 + $0x1568] sm:$0xff]  ;;  %v13448_v35 = vcombine.low %v5300_v31, %v5304_v18 }
 0x3a0   : > { %11288 = vmatprep.subr.bf16.mxu1 %v13387_v61  ;;  %v5280_v61 = vld [vmem:[%s15081_s11 + $0x1460] sm:$0xff]  ;;  %v13458_v3 = vcombine.low %v5309_v43, %v5313_v22 }
 0x3a1   : > { %v13424_v16 = vcombine.low %v5276_v40, %v5280_v61  ;;  %v5312_v42 = vld [vmem:[%s15081_s11 + $0x1560] sm:$0xff] }
 0x3a2   : > { %10961 = vmatpush1.bf16.msra.mxu0 %v13384_v0  ;;  %v13425_v0 = vcombine.high %v5276_v40, %v5280_v61  ;;  %v5317_v40 = vld [vmem:[%s15081_s11 + $0x1588] sm:$0xff] }
 0x3a3   : > { %11289 = vmatpush1.bf16.msra.mxu1 %v13386_v1  ;;  %10962 = vmatprep.subr.bf16.mxu0 %v13393_v2  ;;  %v5284_v1 = vld [vmem:[%s15081_s11 + $0x1480] sm:$0xff]  ;;  %v5321_v61 = vld [vmem:[%s15081_s11 + $0x15a8] sm:$0xff] }
 0x3a4   : > { %11290 = vmatprep.subr.bf16.mxu1 %v13395_v53  ;;  %v5288_v2 = vld [vmem:[%s15081_s11 + $0x14a0] sm:$0xff]  ;;  %v15594_v53 = vpack.c.bf16 %v4599_v8, %v4599_v8  ;;  %v13466_v9 = vcombine.low %v5317_v40, %v5321_v61 }
 0x3a5   : > { %v13433_v57 = vcombine.high %v5284_v1, %v5288_v2  ;;  %v13432_v38 = vcombine.low %v5284_v1, %v5288_v2  ;;  %v5320_v8 = vld [vmem:[%s15081_s11 + $0x15a0] sm:$0xff]  ;;  %v5325_v2 = vld [vmem:[%s15081_s11 + $0x15c8] sm:$0xff] }
 0x3a6   : > { %10963 = vmatpush1.bf16.msra.mxu0 %v13392_v46  ;;  %v5292_v46 = vld [vmem:[%s15081_s11 + $0x14c0] sm:$0xff] }
 0x3a7   : > { %11291 = vmatpush1.bf16.msra.mxu1 %v13394_v17  ;;  %10964 = vmatprep.subr.bf16.mxu0 %v13401_v20  ;;  %v5296_v17 = vld [vmem:[%s15081_s11 + $0x14e0] sm:$0xff]  ;;  %v5293_v20 = vld [vmem:[%s15081_s11 + $0x14c8] sm:$0xff] }
 0x3a8   : > { %11292 = vmatprep.subr.bf16.mxu1 %v13403_v24  ;;  %v5297_v24 = vld [vmem:[%s15081_s11 + $0x14e8] sm:$0xff]  ;;  %v13441_v12 = vcombine.high %v5292_v46, %v5296_v17  ;;  %v5328_v1 = vld [vmem:[%s15081_s11 + $0x15e0] sm:$0xff] }
 0x3a9   : > { %v13443_v14 = vcombine.high %v5293_v20, %v5297_v24 }
 0x3aa   : > { %10965 = vmatpush1.bf16.msra.mxu0 %v13400_v25  ;;  %v5305_v25 = vld [vmem:[%s15081_s11 + $0x1528] sm:$0xff] }
 0x3ab   : > { %11293 = vmatpush1.bf16.msra.mxu1 %v13402_v15  ;;  %10966 = vmatprep.subr.bf16.mxu0 %v13409_v33  ;;  %v13440_v15 = vcombine.low %v5292_v46, %v5296_v17  ;;  %v13442_v33 = vcombine.low %v5293_v20, %v5297_v24  ;;  %v13451_v36 = vcombine.high %v5301_v34, %v5305_v25  ;;  %v5333_v46 = vld [vmem:[%s15081_s11 + $0x1608] sm:$0xff] }
 0x3ac   : > { %11294 = vmatprep.subr.bf16.mxu1 %v13411_v58  ;;  %v13449_v58 = vcombine.high %v5300_v31, %v5304_v18  ;;  %v5337_v17 = vld [vmem:[%s15081_s11 + $0x1628] sm:$0xff] }
 0x3ad   : > { %v5341_v31 = vld [vmem:[%s15081_s11 + $0x1648] sm:$0xff] }
 0x3ae   : > { %10967 = vmatpush1.bf16.msra.mxu0 %v13408_v45  ;;  %v13450_v45 = vcombine.low %v5301_v34, %v5305_v25  ;;  %v5345_v18 = vld [vmem:[%s15081_s11 + $0x1668] sm:$0xff]  ;;  %v13482_v25 = vcombine.low %v5333_v46, %v5337_v17 }
 0x3af   : > { %11295 = vmatpush1.bf16.msra.mxu1 %v13410_v51  ;;  %10977 = vmatprep.subr.bf16.mxu0 %v13417_v54  ;;  %v13457_v51 = vcombine.high %v5308_v39, %v5312_v42  ;;  %v13459_v54 = vcombine.high %v5309_v43, %v5313_v22  ;;  %v13490_v22 = vcombine.low %v5341_v31, %v5345_v18 }
 0x3b0   : > { %11305 = vmatprep.subr.bf16.mxu1 %v13419_v55  ;;  %v5316_v55 = vld [vmem:[%s15081_s11 + $0x1580] sm:$0xff] }
 0x3b1   : > { %10969 = vmatmul.mubr.bf16.vlgmr.msra.gmra.mrb[16].mxu0 %v15589_v37  ;;  %v13465_v4 = vcombine.high %v5316_v55, %v5320_v8  ;;  %v13464_v7 = vcombine.low %v5316_v55, %v5320_v8  ;;  %v5357_v55 = vld [vmem:[%s15081_s11 + $0x16c8] sm:$0xff] }
 0x3b2   : > { %11297 = vmatmul.mubr.bf16.vlgmr.msra.gmra.mrb[16].mxu1 %v15589_v37  ;;  %10978 = vmatpush1.bf16.msra.mxu0 %v13416_v26  ;;  %v13456_v26 = vcombine.low %v5308_v39, %v5312_v42  ;;  %v5349_v39 = vld [vmem:[%s15081_s11 + $0x1688] sm:$0xff] }
 0x3b3   : > { %11009 = vmatprep.mubr.bf16.mxu0 %v15594_v53  ;;  %11306 = vmatpush1.bf16.msra.mxu1 %v13418_v62  ;;  %v13467_v62 = vcombine.high %v5317_v40, %v5321_v61  ;;  %v5353_v42 = vld [vmem:[%s15081_s11 + $0x16a8] sm:$0xff]  ;;  %v15638_v40 = vld [vmem:[%s14410_s9 + $0x30] sm:$0x77] }
 0x3b4   : > { %11337 = vmatprep.mubr.bf16.mxu1 %v15594_v53  ;;  %10979 = vmatprep.subr.bf16.mxu0 %v13425_v0  ;;  %v5324_v0 = vld [vmem:[%s15081_s11 + $0x15c0] sm:$0xff]  ;;  %v5361_v8 = vld [vmem:[%s15081_s11 + $0x16e8] sm:$0xff]  ;;  %v917_v61 = vrot.slane %v15638_v40, %v15036_v63 }
 0x3b5   : > { %11307 = vmatprep.subr.bf16.mxu1 %v13427_v5  ;;  %v5329_v5 = vld [vmem:[%s15081_s11 + $0x15e8] sm:$0xff]  ;;  %v13472_v20 = vcombine.low %v5324_v0, %v5328_v1 }
 0x3b6   : > { %10980 = vmatpush1.bf16.msra.mxu0 %v13424_v16  ;;  %v13473_v16 = vcombine.high %v5324_v0, %v5328_v1  ;;  %v13474_v24 = vcombine.low %v5325_v2, %v5329_v5  ;;  %v5364_v0 = vld [vmem:[%s15081_s11 + $0x1700] sm:$0xff] }
 0x3b7   : > { %11308 = vmatpush1.bf16.msra.mxu1 %v13426_v44  ;;  %10981 = vmatprep.subr.bf16.mxu0 %v13433_v57  ;;  %v13475_v44 = vcombine.high %v5325_v2, %v5329_v5  ;;  %v5332_v57 = vld [vmem:[%s15081_s11 + $0x1600] sm:$0xff]  ;;  %v5365_v2 = vld [vmem:[%s15081_s11 + $0x1708] sm:$0xff] }
 0x3b8   : > { %11309 = vmatprep.subr.bf16.mxu1 %v13435_v30  ;;  %v5336_v30 = vld [vmem:[%s15081_s11 + $0x1620] sm:$0xff]  ;;  %v5369_v5 = vld [vmem:[%s15081_s11 + $0x1728] sm:$0xff] }
 0x3b9   : > { %v13480_v34 = vcombine.low %v5332_v57, %v5336_v30  ;;  %v5368_v1 = vld [vmem:[%s15081_s11 + $0x1720] sm:$0xff] }
 0x3ba   : > { %10982 = vmatpush1.bf16.msra.mxu0 %v13432_v38  ;;  %v13481_v38 = vcombine.high %v5332_v57, %v5336_v30  ;;  %v13515_v57 = vcombine.high %v5365_v2, %v5369_v5  ;;  %v5372_v30 = vld [vmem:[%s15081_s11 + $0x1740] sm:$0xff] }
 0x3bb   : > { %11310 = vmatpush1.bf16.msra.mxu1 %v13434_v27  ;;  %10983 = vmatprep.subr.bf16.mxu0 %v13441_v12  ;;  %v13483_v27 = vcombine.high %v5333_v46, %v5337_v17  ;;  %v5340_v12 = vld [vmem:[%s15081_s11 + $0x1640] sm:$0xff]  ;;  %v5373_v17 = vld [vmem:[%s15081_s11 + $0x1748] sm:$0xff] }
 0x3bc   : > { %11311 = vmatprep.subr.bf16.mxu1 %v13443_v14  ;;  %v5344_v14 = vld [vmem:[%s15081_s11 + $0x1660] sm:$0xff] }
 0x3bd   : > { %v13488_v43 = vcombine.low %v5340_v12, %v5344_v14  ;;  %v5376_v46 = vld [vmem:[%s15081_s11 + $0x1760] sm:$0xff] }
 0x3be   : > { %10984 = vmatpush1.bf16.msra.mxu0 %v13440_v15  ;;  %v13489_v15 = vcombine.high %v5340_v12, %v5344_v14  ;;  %v13521_v12 = vcombine.high %v5372_v30, %v5376_v46 }
 0x3bf   : > { %11312 = vmatpush1.bf16.msra.mxu1 %v13442_v33  ;;  %10985 = vmatprep.subr.bf16.mxu0 %v13449_v58  ;;  %v13491_v33 = vcombine.high %v5341_v31, %v5345_v18  ;;  %v5348_v58 = vld [vmem:[%s15081_s11 + $0x1680] sm:$0xff] }
 0x3c0   : > { %11313 = vmatprep.subr.bf16.mxu1 %v13451_v36  ;;  %v5352_v36 = vld [vmem:[%s15081_s11 + $0x16a0] sm:$0xff] }
 0x3c1   : > { %v5380_v31 = vld [vmem:[%s15081_s11 + $0x1780] sm:$0xff] }
 0x3c2   : > { %10986 = vmatpush1.bf16.msra.mxu0 %v13448_v35  ;;  %v13497_v35 = vcombine.high %v5348_v58, %v5352_v36  ;;  %v5384_v18 = vld [vmem:[%s15081_s11 + $0x17a0] sm:$0xff] }
 0x3c3   : > { %11314 = vmatpush1.bf16.msra.mxu1 %v13450_v45  ;;  %10987 = vmatprep.subr.bf16.mxu0 %v13457_v51  ;;  %v13499_v45 = vcombine.high %v5349_v39, %v5353_v42  ;;  %v5356_v51 = vld [vmem:[%s15081_s11 + $0x16c0] sm:$0xff] }
 0x3c4   : > { %11315 = vmatprep.subr.bf16.mxu1 %v13459_v54  ;;  %v5360_v54 = vld [vmem:[%s15081_s11 + $0x16e0] sm:$0xff] }
 0x3c6   : > { %10988 = vmatpush1.bf16.msra.mxu0 %v13456_v26  ;;  %v13496_v26 = vcombine.low %v5348_v58, %v5352_v36  ;;  %v13529_v36 = vcombine.high %v5380_v31, %v5384_v18 }
 0x3c7   : > { %11316 = vmatpush1.bf16.msra.mxu1 %v13458_v3  ;;  %10989 = vmatprep.subr.bf16.mxu0 %v13465_v4  ;;  %v13498_v3 = vcombine.low %v5349_v39, %v5353_v42  ;;  %v13505_v4 = vcombine.high %v5356_v51, %v5360_v54  ;;  %v5388_v42 = vld [vmem:[%s15081_s11 + $0x17c0] sm:$0xff] }
 0x3c8   : > { %11317 = vmatprep.subr.bf16.mxu1 %v13467_v62  ;;  %v13507_v62 = vcombine.high %v5357_v55, %v5361_v8 }
 0x3ca   : > { %10990 = vmatpush1.bf16.msra.mxu0 %v13464_v7  ;;  %v997_v7 = vrot.slane %v917_v61, %v14807_v13 }
 0x3cb   : > { %11318 = vmatpush1.bf16.msra.mxu1 %v13466_v9  ;;  %10991 = vmatprep.subr.bf16.mxu0 %v13473_v16  ;;  %v13504_v9 = vcombine.low %v5356_v51, %v5360_v54  ;;  %v13506_v16 = vcombine.low %v5357_v55, %v5361_v8  ;;  %v4499_v51 = vrot.slane %v15638_v40, %v15071_v49 }
 0x3cc   : > { %11319 = vmatprep.subr.bf16.mxu1 %v13475_v44  ;;  %v13513_v44 = vcombine.high %v5364_v0, %v5368_v1  ;;  %v13528_v55 = vcombine.low %v5380_v31, %v5384_v18  ;;  %v5413_v18 = vld [vmem:[%s15081_s11 + $0x1888] sm:$0xff] }
 0x3ce   : > { %10992 = vmatpush1.bf16.msra.mxu0 %v13472_v20  ;;  %v5377_v20 = vld [vmem:[%s15081_s11 + $0x1768] sm:$0xff] }
 0x3cf   : > { %11320 = vmatpush1.bf16.msra.mxu1 %v13474_v24  ;;  %10993 = vmatprep.subr.bf16.mxu0 %v13481_v38  ;;  %v13820_v24 = vadd.f32 %v15431_v10, %v997_v7  ;;  %v13512_v38 = vcombine.low %v5364_v0, %v5368_v1  ;;  %v13523_v14 = vcombine.high %v5373_v17, %v5377_v20  ;;  %v5397_v0 = vld [vmem:[%s15081_s11 + $0x1808] sm:$0xff] }
 0x3d0   : > { %11321 = vmatprep.subr.bf16.mxu1 %v13483_v27  ;;  %v13514_v27 = vcombine.low %v5365_v2, %v5369_v5  ;;  %v13522_v58 = vcombine.low %v5373_v17, %v5377_v20  ;;  %v5401_v1 = vld [vmem:[%s15081_s11 + $0x1828] sm:$0xff]  ;;  %v15676_v20 = vpack.c.bf16 %v15255_v29, %v15255_v29 }
 0x3d1   : > { %v4265_v10 = vmul.f32 0.3, %v13820_v24  ;;  %vm4249_vm14 = vcmp.gt.f32.partialorder %v13820_v24, 0.0  ;;  %v5409_v17 = vld [vmem:[%s15081_s11 + $0x1868] sm:$0xff] }
 0x3d2   : > { %10994 = vmatpush1.bf16.msra.mxu0 %v13480_v34  ;;  %v4339_v34 = vrot.slane %v15638_v40, %v15059_v32  ;;  %v4579_v40 = vrot.slane %v4499_v51, %v14841_v50  ;;  %v5432_v51 = vld [vmem:[%s15081_s11 + $0x1920] sm:$0xff] }
 0x3d3   : > { %11322 = vmatpush1.bf16.msra.mxu1 %v13482_v25  ;;  %10995 = vmatprep.subr.bf16.mxu0 %v13489_v15  ;;  %v5381_v25 = vld [vmem:[%s15081_s11 + $0x1788] sm:$0xff]  ;;  %v4281_v54 = vsel %vm4249_vm14, %v13820_v24, %v4265_v10  ;;  %v13546_v24 = vcombine.low %v5397_v0, %v5401_v1 }
 0x3d4   : > { %11323 = vmatprep.subr.bf16.mxu1 %v13491_v33  ;;  %v5385_v15 = vld [vmem:[%s15081_s11 + $0x17a8] sm:$0xff]  ;;  %v13520_v33 = vcombine.low %v5372_v30, %v5376_v46 }
 0x3d5   : > { %v13531_v39 = vcombine.high %v5381_v25, %v5385_v15  ;;  %v13530_v8 = vcombine.low %v5381_v25, %v5385_v15  ;;  %v5405_v46 = vld [vmem:[%s15081_s11 + $0x1848] sm:$0xff] }
 0x3d6   : > { %10996 = vmatpush1.bf16.msra.mxu0 %v13488_v43  ;;  %v5392_v43 = vld [vmem:[%s15081_s11 + $0x17e0] sm:$0xff]  ;;  %v13555_v31 = vcombine.high %v5405_v46, %v5409_v17  ;;  %v13554_v25 = vcombine.low %v5405_v46, %v5409_v17 }
 0x3d7   : > { %11324 = vmatpush1.bf16.msra.mxu1 %v13490_v22  ;;  %10997 = vmatprep.subr.bf16.mxu0 %v13497_v35  ;;  %v4419_v22 = vrot.slane %v4339_v34, %v14822_v28  ;;  %v5389_v35 = vld [vmem:[%s15081_s11 + $0x17c8] sm:$0xff]  ;;  %v13537_v61 = vcombine.high %v5388_v42, %v5392_v43  ;;  %v13536_v2 = vcombine.low %v5388_v42, %v5392_v43 }
 0x3d8   : > { %11325 = vmatprep.subr.bf16.mxu1 %v13499_v45  ;;  %v5393_v45 = vld [vmem:[%s15081_s11 + $0x17e8] sm:$0xff] }
 0x3d9   : > { %v13538_v5 = vcombine.low %v5389_v35, %v5393_v45  ;;  %v5417_v34 = vld [vmem:[%s15081_s11 + $0x18a8] sm:$0xff] }
 0x3da   : > { %10998 = vmatpush1.bf16.msra.mxu0 %v13496_v26  ;;  %v13539_v26 = vcombine.high %v5389_v35, %v5393_v45  ;;  %v13563_v10 = vcombine.high %v5413_v18, %v5417_v34  ;;  %v13562_v43 = vcombine.low %v5413_v18, %v5417_v34  ;;  %v5428_v45 = vld [vmem:[%s15081_s11 + $0x1900] sm:$0xff] }
 0x3db   : > { %11326 = vmatpush1.bf16.msra.mxu1 %v13498_v3  ;;  %10999 = vmatprep.subr.bf16.mxu0 %v13505_v4  ;;  %v5396_v3 = vld [vmem:[%s15081_s11 + $0x1800] sm:$0xff] }
 0x3dc   : > { %11327 = vmatprep.subr.bf16.mxu1 %v13507_v62  ;;  %v5400_v4 = vld [vmem:[%s15081_s11 + $0x1820] sm:$0xff]  ;;  %v4441_v62 = vmul.f32 %v4419_v22, %v4281_v54  ;;  %v5429_v54 = vld [vmem:[%s15081_s11 + $0x1908] sm:$0xff] }
 0x3dd   : > { %v13545_v7 = vcombine.high %v5396_v3, %v5400_v4  ;;  %v13544_v30 = vcombine.low %v5396_v3, %v5400_v4  ;;  %v5436_v4 = vld [vmem:[%s15081_s11 + $0x1940] sm:$0xff] }
 0x3de   : > { %11000 = vmatpush1.bf16.msra.mxu0 %v13504_v9  ;;  %v13547_v9 = vcombine.high %v5397_v0, %v5401_v1  ;;  %v5437_v0 = vld [vmem:[%s15081_s11 + $0x1948] sm:$0xff] }
 0x3df   : > { %11328 = vmatpush1.bf16.msra.mxu1 %v13506_v16  ;;  %11001 = vmatprep.subr.bf16.mxu0 %v13513_v44  ;;  %v4601_v16 = vadd.f32 %v4579_v40, %v4441_v62  ;;  %v5404_v44 = vld [vmem:[%s15081_s11 + $0x1840] sm:$0xff]  ;;  %v5441_v1 = vld [vmem:[%s15081_s11 + $0x1968] sm:$0xff]  ;;  %v13576_v40 = vcombine.low %v5428_v45, %v5432_v51 }
 0x3e0   : > { %11329 = vmatprep.subr.bf16.mxu1 %v13515_v57  ;;  %v5408_v57 = vld [vmem:[%s15081_s11 + $0x1860] sm:$0xff]  ;;  %v13586_v46 = vcombine.low %v5437_v0, %v5441_v1 }
 0x3e1   : > { %v13552_v29 = vcombine.low %v5404_v44, %v5408_v57  ;;  %v5440_v62 = vld [vmem:[%s15081_s11 + $0x1960] sm:$0xff] }
 0x3e2   : > { %11002 = vmatpush1.bf16.msra.mxu0 %v13512_v38  ;;  %v13553_v38 = vcombine.high %v5404_v44, %v5408_v57  ;;  %v5445_v44 = vld [vmem:[%s15081_s11 + $0x1988] sm:$0xff] }
 0x3e3   : > { %11330 = vmatpush1.bf16.msra.mxu1 %v13514_v27  ;;  %11003 = vmatprep.subr.bf16.mxu0 %v13521_v12  ;;  %v5412_v27 = vld [vmem:[%s15081_s11 + $0x1880] sm:$0xff]  ;;  %v5449_v57 = vld [vmem:[%s15081_s11 + $0x19a8] sm:$0xff] }
 0x3e4   : > { %11331 = vmatprep.subr.bf16.mxu1 %v13523_v14  ;;  %v5416_v12 = vld [vmem:[%s15081_s11 + $0x18a0] sm:$0xff]  ;;  %v15681_v14 = vpack.c.bf16 %v4601_v16, %v4601_v16  ;;  %v13594_v34 = vcombine.low %v5445_v44, %v5449_v57 }
 0x3e5   : > { %v13561_v15 = vcombine.high %v5412_v27, %v5416_v12  ;;  %v13560_v42 = vcombine.low %v5412_v27, %v5416_v12  ;;  %v5448_v16 = vld [vmem:[%s15081_s11 + $0x19a0] sm:$0xff]  ;;  %v5453_v12 = vld [vmem:[%s15081_s11 + $0x19c8] sm:$0xff] }
 0x3e6   : > { %11004 = vmatpush1.bf16.msra.mxu0 %v13520_v33  ;;  %v5420_v33 = vld [vmem:[%s15081_s11 + $0x18c0] sm:$0xff] }
 0x3e7   : > { %11332 = vmatpush1.bf16.msra.mxu1 %v13522_v58  ;;  %11005 = vmatprep.subr.bf16.mxu0 %v13529_v36  ;;  %v5424_v58 = vld [vmem:[%s15081_s11 + $0x18e0] sm:$0xff]  ;;  %v5421_v36 = vld [vmem:[%s15081_s11 + $0x18c8] sm:$0xff] }
 0x3e8   : > { %11333 = vmatprep.subr.bf16.mxu1 %v13531_v39  ;;  %v5425_v39 = vld [vmem:[%s15081_s11 + $0x18e8] sm:$0xff]  ;;  %v13569_v22 = vcombine.high %v5420_v33, %v5424_v58  ;;  %v5456_v27 = vld [vmem:[%s15081_s11 + $0x19e0] sm:$0xff] }
 0x3e9   : > { %v13571_v35 = vcombine.high %v5421_v36, %v5425_v39 }
 0x3ea   : > { %11006 = vmatpush1.bf16.msra.mxu0 %v13528_v55  ;;  %v5433_v55 = vld [vmem:[%s15081_s11 + $0x1928] sm:$0xff] }
 0x3eb   : > { %11334 = vmatpush1.bf16.msra.mxu1 %v13530_v8  ;;  %11007 = vmatprep.subr.bf16.mxu0 %v13537_v61  ;;  %v13568_v8 = vcombine.low %v5420_v33, %v5424_v58  ;;  %v13570_v61 = vcombine.low %v5421_v36, %v5425_v39  ;;  %v13579_v3 = vcombine.high %v5429_v54, %v5433_v55  ;;  %v5461_v33 = vld [vmem:[%s15081_s11 + $0x1a08] sm:$0xff] }
 0x3ec   : > { %11335 = vmatprep.subr.bf16.mxu1 %v13539_v26  ;;  %v13577_v26 = vcombine.high %v5428_v45, %v5432_v51  ;;  %v5465_v58 = vld [vmem:[%s15081_s11 + $0x1a28] sm:$0xff] }
 0x3ed   : > { %v5469_v45 = vld [vmem:[%s15081_s11 + $0x1a48] sm:$0xff] }
 0x3ee   : > { %11008 = vmatpush1.bf16.msra.mxu0 %v13536_v2  ;;  %v13578_v2 = vcombine.low %v5429_v54, %v5433_v55  ;;  %v5473_v51 = vld [vmem:[%s15081_s11 + $0x1a68] sm:$0xff]  ;;  %v13610_v55 = vcombine.low %v5461_v33, %v5465_v58 }
 0x3ef   : > { %11336 = vmatpush1.bf16.msra.mxu1 %v13538_v5  ;;  %11018 = vmatprep.subr.bf16.mxu0 %v13545_v7  ;;  %v13585_v5 = vcombine.high %v5436_v4, %v5440_v62  ;;  %v13587_v7 = vcombine.high %v5437_v0, %v5441_v1  ;;  %v13618_v1 = vcombine.low %v5469_v45, %v5473_v51 }
 0x3f0   : > { %11346 = vmatprep.subr.bf16.mxu1 %v13547_v9  ;;  %v5444_v9 = vld [vmem:[%s15081_s11 + $0x1980] sm:$0xff] }
 0x3f1   : > { %11010 = vmatmul.mubr.bf16.vlgmr.msra.gmra.mrb[16].mxu0 %v15676_v20  ;;  %v13593_v17 = vcombine.high %v5444_v9, %v5448_v16  ;;  %v13592_v18 = vcombine.low %v5444_v9, %v5448_v16  ;;  %v5485_v9 = vld [vmem:[%s15081_s11 + $0x1ac8] sm:$0xff] }
 0x3f2   : > { %11338 = vmatmul.mubr.bf16.vlgmr.msra.gmra.mrb[16].mxu1 %v15676_v20  ;;  %11019 = vmatpush1.bf16.msra.mxu0 %v13544_v30  ;;  %v13584_v30 = vcombine.low %v5436_v4, %v5440_v62  ;;  %v5477_v4 = vld [vmem:[%s15081_s11 + $0x1a88] sm:$0xff] }
 0x3f3   : > { %11050 = vmatprep.mubr.bf16.mxu0 %v15681_v14  ;;  %11347 = vmatpush1.bf16.msra.mxu1 %v13546_v24  ;;  %v13595_v24 = vcombine.high %v5445_v44, %v5449_v57  ;;  %v5481_v62 = vld [vmem:[%s15081_s11 + $0x1aa8] sm:$0xff]  ;;  %v15725_v44 = vld [vmem:[%s14410_s9 + $0x38] sm:$0x77] }
 0x3f4   : > { %11378 = vmatprep.mubr.bf16.mxu1 %v15681_v14  ;;  %11020 = vmatprep.subr.bf16.mxu0 %v13553_v38  ;;  %v5452_v38 = vld [vmem:[%s15081_s11 + $0x19c0] sm:$0xff]  ;;  %v5489_v16 = vld [vmem:[%s15081_s11 + $0x1ae8] sm:$0xff]  ;;  %v925_v57 = vrot.slane %v15725_v44, %v15036_v63 }
 0x3f5   : > { %11348 = vmatprep.subr.bf16.mxu1 %v13555_v31  ;;  %v5457_v31 = vld [vmem:[%s15081_s11 + $0x19e8] sm:$0xff]  ;;  %v13600_v36 = vcombine.low %v5452_v38, %v5456_v27 }
 0x3f6   : > { %11021 = vmatpush1.bf16.msra.mxu0 %v13552_v29  ;;  %v13601_v29 = vcombine.high %v5452_v38, %v5456_v27  ;;  %v13602_v39 = vcombine.low %v5453_v12, %v5457_v31  ;;  %v5492_v38 = vld [vmem:[%s15081_s11 + $0x1b00] sm:$0xff] }
 0x3f7   : > { %11349 = vmatpush1.bf16.msra.mxu1 %v13554_v25  ;;  %11022 = vmatprep.subr.bf16.mxu0 %v13561_v15  ;;  %v13603_v25 = vcombine.high %v5453_v12, %v5457_v31  ;;  %v5460_v15 = vld [vmem:[%s15081_s11 + $0x1a00] sm:$0xff]  ;;  %v5493_v12 = vld [vmem:[%s15081_s11 + $0x1b08] sm:$0xff] }
 0x3f8   : > { %11350 = vmatprep.subr.bf16.mxu1 %v13563_v10  ;;  %v5464_v10 = vld [vmem:[%s15081_s11 + $0x1a20] sm:$0xff]  ;;  %v5497_v31 = vld [vmem:[%s15081_s11 + $0x1b28] sm:$0xff] }
 0x3f9   : > { %v13608_v54 = vcombine.low %v5460_v15, %v5464_v10  ;;  %v5496_v27 = vld [vmem:[%s15081_s11 + $0x1b20] sm:$0xff] }
 0x3fa   : > { %11023 = vmatpush1.bf16.msra.mxu0 %v13560_v42  ;;  %v13609_v42 = vcombine.high %v5460_v15, %v5464_v10  ;;  %v5500_v15 = vld [vmem:[%s15081_s11 + $0x1b40] sm:$0xff] }
 0x3fb   : > { %11351 = vmatpush1.bf16.msra.mxu1 %v13562_v43  ;;  %11024 = vmatprep.subr.bf16.mxu0 %v13569_v22  ;;  %v13611_v43 = vcombine.high %v5461_v33, %v5465_v58  ;;  %v5468_v22 = vld [vmem:[%s15081_s11 + $0x1a40] sm:$0xff]  ;;  %v5501_v33 = vld [vmem:[%s15081_s11 + $0x1b48] sm:$0xff] }
 0x3fc   : > { %11352 = vmatprep.subr.bf16.mxu1 %v13571_v35  ;;  %v5472_v35 = vld [vmem:[%s15081_s11 + $0x1a60] sm:$0xff]  ;;  %v5505_v58 = vld [vmem:[%s15081_s11 + $0x1b68] sm:$0xff] }
 0x3fd   : > { %v13616_v0 = vcombine.low %v5468_v22, %v5472_v35  ;;  %v5504_v10 = vld [vmem:[%s15081_s11 + $0x1b60] sm:$0xff] }
 0x3fe   : > { %11025 = vmatpush1.bf16.msra.mxu0 %v13568_v8  ;;  %v13617_v8 = vcombine.high %v5468_v22, %v5472_v35  ;;  %v5508_v22 = vld [vmem:[%s15081_s11 + $0x1b80] sm:$0xff] }
 0x3ff   : > { %11353 = vmatpush1.bf16.msra.mxu1 %v13570_v61  ;;  %11026 = vmatprep.subr.bf16.mxu0 %v13577_v26  ;;  %v13619_v61 = vcombine.high %v5469_v45, %v5473_v51  ;;  %v5476_v26 = vld [vmem:[%s15081_s11 + $0x1a80] sm:$0xff]  ;;  %v4347_v45 = vrot.slane %v15725_v44, %v15059_v32  ;;  %v5509_v51 = vld [vmem:[%s15081_s11 + $0x1b88] sm:$0xff] }
 0x400   : > { %11354 = vmatprep.subr.bf16.mxu1 %v13579_v3  ;;  %v5480_v3 = vld [vmem:[%s15081_s11 + $0x1aa0] sm:$0xff] }
 0x401   : > { %v5512_v35 = vld [vmem:[%s15081_s11 + $0x1ba0] sm:$0xff]  ;;  %v4427_v32 = vrot.slane %v4347_v45, %v14822_v28  ;;  %v5549_v45 = vld [vmem:[%s15081_s11 + $0x1cc8] sm:$0xff] }
 0x402   : > { %11027 = vmatpush1.bf16.msra.mxu0 %v13576_v40  ;;  %v13625_v40 = vcombine.high %v5476_v26, %v5480_v3  ;;  %v5528_v28 = vld [vmem:[%s15081_s11 + $0x1c20] sm:$0xff] }
 0x403   : > { %11355 = vmatpush1.bf16.msra.mxu1 %v13578_v2  ;;  %11028 = vmatprep.subr.bf16.mxu0 %v13585_v5  ;;  %v13627_v2 = vcombine.high %v5477_v4, %v5481_v62  ;;  %v5484_v5 = vld [vmem:[%s15081_s11 + $0x1ac0] sm:$0xff] }
 0x404   : > { %11356 = vmatprep.subr.bf16.mxu1 %v13587_v7  ;;  %v5488_v7 = vld [vmem:[%s15081_s11 + $0x1ae0] sm:$0xff] }
 0x405   : > { %v13632_v63 = vcombine.low %v5484_v5, %v5488_v7 }
 0x406   : > { %11029 = vmatpush1.bf16.msra.mxu0 %v13584_v30  ;;  %v13624_v30 = vcombine.low %v5476_v26, %v5480_v3  ;;  %v5516_v3 = vld [vmem:[%s15081_s11 + $0x1bc0] sm:$0xff] }
 0x407   : > { %11357 = vmatpush1.bf16.msra.mxu1 %v13586_v46  ;;  %11030 = vmatprep.subr.bf16.mxu0 %v13593_v17  ;;  %v13626_v46 = vcombine.low %v5477_v4, %v5481_v62  ;;  %v13633_v17 = vcombine.high %v5484_v5, %v5488_v7  ;;  %v5520_v4 = vld [vmem:[%s15081_s11 + $0x1be0] sm:$0xff]  ;;  %v5517_v62 = vld [vmem:[%s15081_s11 + $0x1bc8] sm:$0xff] }
 0x408   : > { %11358 = vmatprep.subr.bf16.mxu1 %v13595_v24  ;;  %v13635_v24 = vcombine.high %v5485_v9, %v5489_v16  ;;  %v13665_v7 = vcombine.high %v5516_v3, %v5520_v4 }
 0x40a   : > { %11031 = vmatpush1.bf16.msra.mxu0 %v13592_v18  ;;  %v1005_v18 = vrot.slane %v925_v57, %v14807_v13  ;;  %v13640_v13 = vcombine.low %v5492_v38, %v5496_v27 }
 0x40b   : > { %11359 = vmatpush1.bf16.msra.mxu1 %v13594_v34  ;;  %11032 = vmatprep.subr.bf16.mxu0 %v13601_v29  ;;  %v13634_v34 = vcombine.low %v5485_v9, %v5489_v16  ;;  %v13641_v29 = vcombine.high %v5492_v38, %v5496_v27  ;;  %v5524_v16 = vld [vmem:[%s15081_s11 + $0x1c00] sm:$0xff] }
 0x40c   : > { %11360 = vmatprep.subr.bf16.mxu1 %v13603_v25  ;;  %v13643_v25 = vcombine.high %v5493_v12, %v5497_v31 }
 0x40e   : > { %11033 = vmatpush1.bf16.msra.mxu0 %v13600_v36  ;;  %v13822_v36 = vadd.f32 %v15435_v6, %v1005_v18  ;;  %v13672_v18 = vcombine.low %v5524_v16, %v5528_v28 }
 0x40f   : > { %11361 = vmatpush1.bf16.msra.mxu1 %v13602_v39  ;;  %11034 = vmatprep.subr.bf16.mxu0 %v13609_v42  ;;  %v13642_v39 = vcombine.low %v5493_v12, %v5497_v31  ;;  %v13649_v42 = vcombine.high %v5500_v15, %v5504_v10  ;;  %v5532_v12 = vld [vmem:[%s15081_s11 + $0x1c40] sm:$0xff] }
 0x410   : > { %11362 = vmatprep.subr.bf16.mxu1 %v13611_v43  ;;  %v13651_v43 = vcombine.high %v5501_v33, %v5505_v58  ;;  %v4267_v6 = vmul.f32 0.3, %v13822_v36  ;;  %vm4251_vm15 = vcmp.gt.f32.partialorder %v13822_v36, 0.0  ;;  %v5536_v31 = vld [vmem:[%s15081_s11 + $0x1c60] sm:$0xff] }
 0x412   : > { %11035 = vmatpush1.bf16.msra.mxu0 %v13608_v54  ;;  %v5513_v54 = vld [vmem:[%s15081_s11 + $0x1ba8] sm:$0xff] }
 0x413   : > { %11363 = vmatpush1.bf16.msra.mxu1 %v13610_v55  ;;  %11036 = vmatprep.subr.bf16.mxu0 %v13617_v8  ;;  %v13648_v55 = vcombine.low %v5500_v15, %v5504_v10  ;;  %v13650_v8 = vcombine.low %v5501_v33, %v5505_v58  ;;  %v13659_v26 = vcombine.high %v5509_v51, %v5513_v54  ;;  %v5540_v15 = vld [vmem:[%s15081_s11 + $0x1c80] sm:$0xff] }
 0x414   : > { %11364 = vmatprep.subr.bf16.mxu1 %v13619_v61  ;;  %v13657_v61 = vcombine.high %v5508_v22, %v5512_v35  ;;  %v13658_v5 = vcombine.low %v5509_v51, %v5513_v54  ;;  %v5544_v10 = vld [vmem:[%s15081_s11 + $0x1ca0] sm:$0xff]  ;;  %v5553_v51 = vld [vmem:[%s15081_s11 + $0x1ce8] sm:$0xff] }
 0x415   : > { %v13688_v54 = vcombine.low %v5540_v15, %v5544_v10 }
 0x416   : > { %11037 = vmatpush1.bf16.msra.mxu0 %v13616_v0  ;;  %v5521_v0 = vld [vmem:[%s15081_s11 + $0x1be8] sm:$0xff] }
 0x417   : > { %11365 = vmatpush1.bf16.msra.mxu1 %v13618_v1  ;;  %11038 = vmatprep.subr.bf16.mxu0 %v13625_v40  ;;  %v4507_v1 = vrot.slane %v15725_v44, %v15071_v49  ;;  %v4283_v40 = vsel %vm4251_vm15, %v13822_v36, %v4267_v6  ;;  %v13667_v9 = vcombine.high %v5517_v62, %v5521_v0  ;;  %v5541_v36 = vld [vmem:[%s15081_s11 + $0x1c88] sm:$0xff] }
 0x418   : > { %11366 = vmatprep.subr.bf16.mxu1 %v13627_v2  ;;  %v13656_v2 = vcombine.low %v5508_v22, %v5512_v35  ;;  %v4443_v57 = vmul.f32 %v4427_v32, %v4283_v40  ;;  %v13664_v44 = vcombine.low %v5516_v3, %v5520_v4  ;;  %v5548_v22 = vld [vmem:[%s15081_s11 + $0x1cc0] sm:$0xff]  ;;  %v5557_v3 = vld [vmem:[%s15081_s11 + $0x1d08] sm:$0xff] }
 0x419   : > { %v4587_v49 = vrot.slane %v4507_v1, %v14841_v50  ;;  %v15763_v50 = vpack.c.bf16 %v15451_v56, %v15451_v56  ;;  %v13680_v56 = vcombine.low %v5532_v12, %v5536_v31  ;;  %v5552_v35 = vld [vmem:[%s15081_s11 + $0x1ce0] sm:$0xff]  ;;  %v5561_v4 = vld [vmem:[%s15081_s11 + $0x1d28] sm:$0xff] }
 0x41a   : > { %11039 = vmatpush1.bf16.msra.mxu0 %v13624_v30  ;;  %v5525_v30 = vld [vmem:[%s15081_s11 + $0x1c08] sm:$0xff]  ;;  %v13696_v32 = vcombine.low %v5548_v22, %v5552_v35  ;;  %v13707_v1 = vcombine.high %v5557_v3, %v5561_v4  ;;  %v5564_v40 = vld [vmem:[%s15081_s11 + $0x1d40] sm:$0xff] }
 0x41b   : > { %11367 = vmatpush1.bf16.msra.mxu1 %v13626_v46  ;;  %11040 = vmatprep.subr.bf16.mxu0 %v13633_v17  ;;  %v5529_v46 = vld [vmem:[%s15081_s11 + $0x1c28] sm:$0xff]  ;;  %v13666_v17 = vcombine.low %v5517_v62, %v5521_v0  ;;  %v4603_v27 = vadd.f32 %v4587_v49, %v4443_v57  ;;  %v13698_v62 = vcombine.low %v5549_v45, %v5553_v51 }
 0x41c   : > { %11368 = vmatprep.subr.bf16.mxu1 %v13635_v24  ;;  %v13673_v24 = vcombine.high %v5524_v16, %v5528_v28  ;;  %v13675_v38 = vcombine.high %v5525_v30, %v5529_v46  ;;  %v13706_v16 = vcombine.low %v5557_v3, %v5561_v4  ;;  %v5573_v49 = vld [vmem:[%s15081_s11 + $0x1d88] sm:$0xff] }
 0x41d   : > { %v15768_v33 = vpack.c.bf16 %v4603_v27, %v4603_v27  ;;  %v5605_v3 = vld [vmem:[%s15081_s11 + $0x1e88] sm:$0xff] }
 0x41e   : > { %11041 = vmatpush1.bf16.msra.mxu0 %v13632_v63  ;;  %v5533_v63 = vld [vmem:[%s15081_s11 + $0x1c48] sm:$0xff] }
 0x41f   : > { %11369 = vmatpush1.bf16.msra.mxu1 %v13634_v34  ;;  %11042 = vmatprep.subr.bf16.mxu0 %v13641_v29  ;;  %v5537_v34 = vld [vmem:[%s15081_s11 + $0x1c68] sm:$0xff]  ;;  %v13674_v29 = vcombine.low %v5525_v30, %v5529_v46  ;;  %v5572_v30 = vld [vmem:[%s15081_s11 + $0x1d80] sm:$0xff] }
 0x420   : > { %11370 = vmatprep.subr.bf16.mxu1 %v13643_v25  ;;  %v13681_v25 = vcombine.high %v5532_v12, %v5536_v31  ;;  %v13683_v58 = vcombine.high %v5533_v63, %v5537_v34  ;;  %v5576_v46 = vld [vmem:[%s15081_s11 + $0x1da0] sm:$0xff]  ;;  %v5609_v4 = vld [vmem:[%s15081_s11 + $0x1ea8] sm:$0xff] }
 0x421   : > { %v5580_v12 = vld [vmem:[%s15081_s11 + $0x1dc0] sm:$0xff] }
 0x422   : > { %11043 = vmatpush1.bf16.msra.mxu0 %v13640_v13  ;;  %v5545_v13 = vld [vmem:[%s15081_s11 + $0x1ca8] sm:$0xff]  ;;  %v5584_v31 = vld [vmem:[%s15081_s11 + $0x1de0] sm:$0xff] }
 0x423   : > { %11371 = vmatpush1.bf16.msra.mxu1 %v13642_v39  ;;  %11044 = vmatprep.subr.bf16.mxu0 %v13649_v42  ;;  %v13682_v39 = vcombine.low %v5533_v63, %v5537_v34  ;;  %v13689_v42 = vcombine.high %v5540_v15, %v5544_v10  ;;  %v13690_v6 = vcombine.low %v5541_v36, %v5545_v13  ;;  %v5585_v63 = vld [vmem:[%s15081_s11 + $0x1de8] sm:$0xff]  ;;  %v5588_v10 = vld [vmem:[%s15081_s11 + $0x1e00] sm:$0xff] }
 0x424   : > { %11372 = vmatprep.subr.bf16.mxu1 %v13651_v43  ;;  %v13691_v43 = vcombine.high %v5541_v36, %v5545_v13  ;;  %v13720_v34 = vcombine.low %v5572_v30, %v5576_v46  ;;  %v5589_v36 = vld [vmem:[%s15081_s11 + $0x1e08] sm:$0xff] }
 0x425   : > { %v5593_v13 = vld [vmem:[%s15081_s11 + $0x1e28] sm:$0xff] }
 0x426   : > { %11045 = vmatpush1.bf16.msra.mxu0 %v13648_v55  ;;  %v13697_v55 = vcombine.high %v5548_v22, %v5552_v35  ;;  %v5596_v22 = vld [vmem:[%s15081_s11 + $0x1e40] sm:$0xff] }
 0x427   : > { %11373 = vmatpush1.bf16.msra.mxu1 %v13650_v8  ;;  %11046 = vmatprep.subr.bf16.mxu0 %v13657_v61  ;;  %v13699_v8 = vcombine.high %v5549_v45, %v5553_v51  ;;  %v5556_v61 = vld [vmem:[%s15081_s11 + $0x1d00] sm:$0xff]  ;;  %v5597_v45 = vld [vmem:[%s15081_s11 + $0x1e48] sm:$0xff] }
 0x428   : > { %11374 = vmatprep.subr.bf16.mxu1 %v13659_v26  ;;  %v5560_v26 = vld [vmem:[%s15081_s11 + $0x1d20] sm:$0xff]  ;;  %v5601_v51 = vld [vmem:[%s15081_s11 + $0x1e68] sm:$0xff] }
 0x429   : > { %v13705_v0 = vcombine.high %v5556_v61, %v5560_v26  ;;  %v5600_v35 = vld [vmem:[%s15081_s11 + $0x1e60] sm:$0xff] }
 0x42a   : > { %11047 = vmatpush1.bf16.msra.mxu0 %v13656_v2  ;;  %v5568_v2 = vld [vmem:[%s15081_s11 + $0x1d60] sm:$0xff] }
 0x42b   : > { %11375 = vmatpush1.bf16.msra.mxu1 %v13658_v5  ;;  %11048 = vmatprep.subr.bf16.mxu0 %v13665_v7  ;;  %v5565_v5 = vld [vmem:[%s15081_s11 + $0x1d48] sm:$0xff]  ;;  %v13713_v28 = vcombine.high %v5564_v40, %v5568_v2 }
 0x42c   : > { %11376 = vmatprep.subr.bf16.mxu1 %v13667_v9  ;;  %v5569_v7 = vld [vmem:[%s15081_s11 + $0x1d68] sm:$0xff]  ;;  %v13704_v9 = vcombine.low %v5556_v61, %v5560_v26  ;;  %v5604_v61 = vld [vmem:[%s15081_s11 + $0x1e80] sm:$0xff] }
 0x42d   : > { %v13715_v57 = vcombine.high %v5565_v5, %v5569_v7  ;;  %v5608_v26 = vld [vmem:[%s15081_s11 + $0x1ea0] sm:$0xff] }
 0x42e   : > { %11049 = vmatpush1.bf16.msra.mxu0 %v13664_v44  ;;  %v5577_v44 = vld [vmem:[%s15081_s11 + $0x1da8] sm:$0xff] }
 0x42f   : > { %11377 = vmatpush1.bf16.msra.mxu1 %v13666_v17  ;;  %11059 = vmatprep.subr.bf16.mxu0 %v13673_v24  ;;  %v13712_v17 = vcombine.low %v5564_v40, %v5568_v2  ;;  %v13714_v24 = vcombine.low %v5565_v5, %v5569_v7  ;;  %v13723_v27 = vcombine.high %v5573_v49, %v5577_v44  ;;  %v5612_v40 = vld [vmem:[%s15081_s11 + $0x1ec0] sm:$0xff]  ;;  %v5613_v5 = vld [vmem:[%s15081_s11 + $0x1ec8] sm:$0xff] }
 0x430   : > { %11387 = vmatprep.subr.bf16.mxu1 %v13675_v38  ;;  %v13721_v38 = vcombine.high %v5572_v30, %v5576_v46  ;;  %v5616_v2 = vld [vmem:[%s15081_s11 + $0x1ee0] sm:$0xff]  ;;  %v5617_v7 = vld [vmem:[%s15081_s11 + $0x1ee8] sm:$0xff] }
 0x431   : > { %11051 = vmatmul.mubr.bf16.vlgmr.msra.gmra.mrb[16].mxu0 %v15763_v50  ;;  %v5620_v30 = vld [vmem:[%s15081_s11 + $0x1f00] sm:$0xff] }
 0x432   : > { %11379 = vmatmul.mubr.bf16.vlgmr.msra.gmra.mrb[16].mxu1 %v15763_v50  ;;  %11060 = vmatpush1.bf16.msra.mxu0 %v13672_v18  ;;  %v5581_v18 = vld [vmem:[%s15081_s11 + $0x1dc8] sm:$0xff]  ;;  %v5624_v46 = vld [vmem:[%s15081_s11 + $0x1f20] sm:$0xff] }
 0x433   : > { %11091 = vmatprep.mubr.bf16.mxu0 %v15768_v33  ;;  %11388 = vmatpush1.bf16.msra.mxu1 %v13674_v29  ;;  %v13722_v29 = vcombine.low %v5573_v49, %v5577_v44  ;;  %v13731_v15 = vcombine.high %v5581_v18, %v5585_v63  ;;  %v5621_v49 = vld [vmem:[%s15081_s11 + $0x1f08] sm:$0xff] }
 0x434   : > { %11419 = vmatprep.mubr.bf16.mxu1 %v15768_v33  ;;  %11061 = vmatprep.subr.bf16.mxu0 %v13681_v25  ;;  %v13729_v25 = vcombine.high %v5580_v12, %v5584_v31  ;;  %v5625_v44 = vld [vmem:[%s15081_s11 + $0x1f28] sm:$0xff] }
 0x435   : > { %11389 = vmatprep.subr.bf16.mxu1 %v13683_v58  ;;  %v5592_v58 = vld [vmem:[%s15081_s11 + $0x1e20] sm:$0xff] }
 0x436   : > { %11062 = vmatpush1.bf16.msra.mxu0 %v13680_v56  ;;  %v13728_v56 = vcombine.low %v5580_v12, %v5584_v31  ;;  %v5628_v12 = vld [vmem:[%s15081_s11 + $0x1f40] sm:$0xff] }
 0x437   : > { %11390 = vmatpush1.bf16.msra.mxu1 %v13682_v39  ;;  %11063 = vmatprep.subr.bf16.mxu0 %v13689_v42  ;;  %v13730_v39 = vcombine.low %v5581_v18, %v5585_v63  ;;  %v13737_v42 = vcombine.high %v5588_v10, %v5592_v58  ;;  %v5632_v31 = vld [vmem:[%s15081_s11 + $0x1f60] sm:$0xff]  ;;  %v5629_v18 = vld [vmem:[%s15081_s11 + $0x1f48] sm:$0xff] }
 0x438   : > { %11391 = vmatprep.subr.bf16.mxu1 %v13691_v43  ;;  %v13739_v43 = vcombine.high %v5589_v36, %v5593_v13  ;;  %v5633_v63 = vld [vmem:[%s15081_s11 + $0x1f68] sm:$0xff] }
 0x43a   : > { %11064 = vmatpush1.bf16.msra.mxu0 %v13688_v54  ;;  %v13736_v54 = vcombine.low %v5588_v10, %v5592_v58  ;;  %v5636_v10 = vld [vmem:[%s15081_s11 + $0x1f80] sm:$0xff] }
 0x43b   : > { %11392 = vmatpush1.bf16.msra.mxu1 %v13690_v6  ;;  %11065 = vmatprep.subr.bf16.mxu0 %v13697_v55  ;;  %v13738_v6 = vcombine.low %v5589_v36, %v5593_v13  ;;  %v13745_v55 = vcombine.high %v5596_v22, %v5600_v35  ;;  %v5640_v58 = vld [vmem:[%s15081_s11 + $0x1fa0] sm:$0xff]  ;;  %v5637_v36 = vld [vmem:[%s15081_s11 + $0x1f88] sm:$0xff] }
 0x43c   : > { %11393 = vmatprep.subr.bf16.mxu1 %v13699_v8  ;;  %v13747_v8 = vcombine.high %v5597_v45, %v5601_v51  ;;  %v5641_v13 = vld [vmem:[%s15081_s11 + $0x1fa8] sm:$0xff] }
 0x43e   : > { %11066 = vmatpush1.bf16.msra.mxu0 %v13696_v32  ;;  %v13744_v32 = vcombine.low %v5596_v22, %v5600_v35  ;;  %v5644_v22 = vld [vmem:[%s15081_s11 + $0x1fc0] sm:$0xff] }
 0x43f   : > { %11394 = vmatpush1.bf16.msra.mxu1 %v13698_v62  ;;  %11067 = vmatprep.subr.bf16.mxu0 %v13705_v0  ;;  %v13746_v62 = vcombine.low %v5597_v45, %v5601_v51  ;;  %v13753_v0 = vcombine.high %v5604_v61, %v5608_v26  ;;  %v5648_v35 = vld [vmem:[%s15081_s11 + $0x1fe0] sm:$0xff]  ;;  %v5645_v45 = vld [vmem:[%s15081_s11 + $0x1fc8] sm:$0xff] }
 0x440   : > { %11395 = vmatprep.subr.bf16.mxu1 %v13707_v1  ;;  %v13755_v1 = vcombine.high %v5605_v3, %v5609_v4  ;;  %v5649_v51 = vld [vmem:[%s15081_s11 + $0x1fe8] sm:$0xff] }
 0x442   : > { %11068 = vmatpush1.bf16.msra.mxu0 %v13704_v9  ;;  %v13752_v9 = vcombine.low %v5604_v61, %v5608_v26  ;;  %v4630_v61 = vld [vmem:[%s15081_s11 + $0x10] sm:$0xff] }
 0x443   : > { %11396 = vmatpush1.bf16.msra.mxu1 %v13706_v16  ;;  %11069 = vmatprep.subr.bf16.mxu0 %v13713_v28  ;;  %v13754_v16 = vcombine.low %v5605_v3, %v5609_v4  ;;  %v13761_v28 = vcombine.high %v5612_v40, %v5616_v2  ;;  %v4634_v26 = vld [vmem:[%s15081_s11 + $0x30] sm:$0xff]  ;;  %v4631_v3 = vld [vmem:[%s15081_s11 + $0x18] sm:$0xff] }
 0x444   : > { %11397 = vmatprep.subr.bf16.mxu1 %v13715_v57  ;;  %v13763_v57 = vcombine.high %v5613_v5, %v5617_v7  ;;  %v4635_v4 = vld [vmem:[%s15081_s11 + $0x38] sm:$0xff] }
 0x446   : > { %11070 = vmatpush1.bf16.msra.mxu0 %v13712_v17  ;;  %v13760_v17 = vcombine.low %v5612_v40, %v5616_v2  ;;  %v4638_v40 = vld [vmem:[%s15081_s11 + $0x50] sm:$0xff] }
 0x447   : > { %11398 = vmatpush1.bf16.msra.mxu1 %v13714_v24  ;;  %11071 = vmatprep.subr.bf16.mxu0 %v13721_v38  ;;  %v13762_v24 = vcombine.low %v5613_v5, %v5617_v7  ;;  %v13769_v38 = vcombine.high %v5620_v30, %v5624_v46  ;;  %v4642_v2 = vld [vmem:[%s15081_s11 + $0x70] sm:$0xff]  ;;  %v12780_v5 = vcombine.low %v4630_v61, %v4634_v26  ;;  %v4639_v7 = vld [vmem:[%s15081_s11 + $0x58] sm:$0xff] }
 0x448   : > { %11399 = vmatprep.subr.bf16.mxu1 %v13723_v27  ;;  %v13771_v27 = vcombine.high %v5621_v49, %v5625_v44 }
 0x44a   : > { %11072 = vmatpush1.bf16.msra.mxu0 %v13720_v34  ;;  %v13768_v34 = vcombine.low %v5620_v30, %v5624_v46  ;;  %v4646_v30 = vld [vmem:[%s15081_s11 + $0x90] sm:$0xff] }
 0x44b   : > { %11400 = vmatpush1.bf16.msra.mxu1 %v13722_v29  ;;  %11073 = vmatprep.subr.bf16.mxu0 %v13729_v25  ;;  %v13770_v29 = vcombine.low %v5621_v49, %v5625_v44  ;;  %v13777_v25 = vcombine.high %v5628_v12, %v5632_v31  ;;  %v4650_v46 = vld [vmem:[%s15081_s11 + $0xb0] sm:$0xff]  ;;  %v4647_v44 = vld [vmem:[%s15081_s11 + $0x98] sm:$0xff] }
 0x44c   : > { %11401 = vmatprep.subr.bf16.mxu1 %v13731_v15  ;;  %v13779_v15 = vcombine.high %v5629_v18, %v5633_v63 }
 0x44e   : > { %11074 = vmatpush1.bf16.msra.mxu0 %v13728_v56  ;;  %v13776_v56 = vcombine.low %v5628_v12, %v5632_v31  ;;  %v4654_v12 = vld [vmem:[%s15081_s11 + $0xd0] sm:$0xff] }
 0x44f   : > { %11402 = vmatpush1.bf16.msra.mxu1 %v13730_v39  ;;  %11075 = vmatprep.subr.bf16.mxu0 %v13737_v42  ;;  %v13778_v39 = vcombine.low %v5629_v18, %v5633_v63  ;;  %v13785_v42 = vcombine.high %v5636_v10, %v5640_v58  ;;  %v4658_v31 = vld [vmem:[%s15081_s11 + $0xf0] sm:$0xff]  ;;  %v4655_v18 = vld [vmem:[%s15081_s11 + $0xd8] sm:$0xff] }
 0x450   : > { %11403 = vmatprep.subr.bf16.mxu1 %v13739_v43  ;;  %v13787_v43 = vcombine.high %v5637_v36, %v5641_v13  ;;  %v4659_v63 = vld [vmem:[%s15081_s11 + $0xf8] sm:$0xff] }
 0x452   : > { %11076 = vmatpush1.bf16.msra.mxu0 %v13736_v54  ;;  %v13784_v54 = vcombine.low %v5636_v10, %v5640_v58  ;;  %v4666_v10 = vld [vmem:[%s15081_s11 + $0x130] sm:$0xff]  ;;  %v4663_v58 = vld [vmem:[%s15081_s11 + $0x118] sm:$0xff] }
 0x453   : > { %11404 = vmatpush1.bf16.msra.mxu1 %v13738_v6  ;;  %11077 = vmatprep.subr.bf16.mxu0 %v13745_v55  ;;  %v13786_v6 = vcombine.low %v5637_v36, %v5641_v13  ;;  %v13793_v55 = vcombine.high %v5644_v22, %v5648_v35  ;;  %v4667_v36 = vld [vmem:[%s15081_s11 + $0x138] sm:$0xff]  ;;  %v12804_v13 = vcombine.low %v4654_v12, %v4658_v31 }
 0x454   : > { %11405 = vmatprep.subr.bf16.mxu1 %v13747_v8  ;;  %v13795_v8 = vcombine.high %v5645_v45, %v5649_v51 }
 0x456   : > { %11078 = vmatpush1.bf16.msra.mxu0 %v13744_v32  ;;  %v13792_v32 = vcombine.low %v5644_v22, %v5648_v35  ;;  %v4674_v22 = vld [vmem:[%s15081_s11 + $0x170] sm:$0xff]  ;;  %v4671_v35 = vld [vmem:[%s15081_s11 + $0x158] sm:$0xff] }
 0x457   : > { %11406 = vmatpush1.bf16.msra.mxu1 %v13746_v62  ;;  %11079 = vmatprep.subr.bf16.mxu0 %v13753_v0  ;;  %v13794_v62 = vcombine.low %v5645_v45, %v5649_v51  ;;  %v12781_v0 = vcombine.high %v4630_v61, %v4634_v26  ;;  %v4675_v45 = vld [vmem:[%s15081_s11 + $0x178] sm:$0xff]  ;;  %v4682_v61 = vld [vmem:[%s15081_s11 + $0x1b0] sm:$0xff] }
 0x458   : > { %11407 = vmatprep.subr.bf16.mxu1 %v13755_v1  ;;  %v12783_v1 = vcombine.high %v4631_v3, %v4635_v4  ;;  %v4679_v26 = vld [vmem:[%s15081_s11 + $0x198] sm:$0xff] }
 0x45a   : > { %11080 = vmatpush1.bf16.msra.mxu0 %v13752_v9  ;;  %v4643_v9 = vld [vmem:[%s15081_s11 + $0x78] sm:$0xff] }
 0x45b   : > { %11408 = vmatpush1.bf16.msra.mxu1 %v13754_v16  ;;  %11081 = vmatprep.subr.bf16.mxu0 %v13761_v28  ;;  %v15837_v16 = vpack.c.bf16 %v15453_v59, %v15453_v59  ;;  %v12782_v28 = vcombine.low %v4631_v3, %v4635_v4  ;;  %v12791_v49 = vcombine.high %v4639_v7, %v4643_v9  ;;  %v4683_v3 = vld [vmem:[%s15081_s11 + $0x1b8] sm:$0xff] }
 0x45c   : > { %11409 = vmatprep.subr.bf16.mxu1 %v13763_v57  ;;  %v12789_v57 = vcombine.high %v4638_v40, %v4642_v2  ;;  %v12788_v59 = vcombine.low %v4638_v40, %v4642_v2  ;;  %v4690_v40 = vld [vmem:[%s15081_s11 + $0x1f0] sm:$0xff]  ;;  %v4687_v2 = vld [vmem:[%s15081_s11 + $0x1d8] sm:$0xff] }
 0x45e   : > { %11082 = vmatpush1.bf16.msra.mxu0 %v13760_v17  ;;  %v4651_v17 = vld [vmem:[%s15081_s11 + $0xb8] sm:$0xff] }
 0x45f   : > { %11410 = vmatpush1.bf16.msra.mxu1 %v13762_v24  ;;  %11083 = vmatprep.subr.bf16.mxu0 %v13769_v38  ;;  %v12790_v24 = vcombine.low %v4639_v7, %v4643_v9  ;;  %v12797_v38 = vcombine.high %v4646_v30, %v4650_v46  ;;  %v12830_v9 = vcombine.low %v4679_v26, %v4683_v3 }
 0x460   : > { %11411 = vmatprep.subr.bf16.mxu1 %v13771_v27  ;;  %v12799_v27 = vcombine.high %v4647_v44, %v4651_v17 }
 0x462   : > { %11084 = vmatpush1.bf16.msra.mxu0 %v13768_v34  ;;  %v12796_v34 = vcombine.low %v4646_v30, %v4650_v46  ;;  %v4694_v30 = vld [vmem:[%s15081_s11 + $0x210] sm:$0xff] }
 0x463   : > { %11412 = vmatpush1.bf16.msra.mxu1 %v13770_v29  ;;  %11085 = vmatprep.subr.bf16.mxu0 %v13777_v25  ;;  %v12798_v29 = vcombine.low %v4647_v44, %v4651_v17  ;;  %v12805_v25 = vcombine.high %v4654_v12, %v4658_v31  ;;  %v4698_v46 = vld [vmem:[%s15081_s11 + $0x230] sm:$0xff]  ;;  %v4699_v44 = vld [vmem:[%s15081_s11 + $0x238] sm:$0xff] }
 0x464   : > { %11413 = vmatprep.subr.bf16.mxu1 %v13779_v15  ;;  %v4662_v15 = vld [vmem:[%s15081_s11 + $0x110] sm:$0xff]  ;;  %v4703_v31 = vld [vmem:[%s15081_s11 + $0x258] sm:$0xff] }
 0x465   : > { %v12812_v51 = vcombine.low %v4662_v15, %v4666_v10  ;;  %v4706_v12 = vld [vmem:[%s15081_s11 + $0x270] sm:$0xff] }
 0x466   : > { %11086 = vmatpush1.bf16.msra.mxu0 %v13776_v56  ;;  %v12806_v56 = vcombine.low %v4655_v18, %v4659_v63 }
 0x467   : > { %11414 = vmatpush1.bf16.msra.mxu1 %v13778_v39  ;;  %11087 = vmatprep.subr.bf16.mxu0 %v13785_v42  ;;  %v12813_v39 = vcombine.high %v4662_v15, %v4666_v10  ;;  %v12815_v42 = vcombine.high %v4663_v58, %v4667_v36  ;;  %v4714_v15 = vld [vmem:[%s15081_s11 + $0x2b0] sm:$0xff]  ;;  %v4711_v10 = vld [vmem:[%s15081_s11 + $0x298] sm:$0xff] }
 0x468   : > { %11415 = vmatprep.subr.bf16.mxu1 %v13787_v43  ;;  %v4670_v43 = vld [vmem:[%s15081_s11 + $0x150] sm:$0xff] }
 0x469   : > { %v12820_v4 = vcombine.low %v4670_v43, %v4674_v22 }
 0x46a   : > { %11088 = vmatpush1.bf16.msra.mxu0 %v13784_v54  ;;  %v12814_v54 = vcombine.low %v4663_v58, %v4667_v36  ;;  %v4715_v58 = vld [vmem:[%s15081_s11 + $0x2b8] sm:$0xff] }
 0x46b   : > { %11416 = vmatpush1.bf16.msra.mxu1 %v13786_v6  ;;  %11089 = vmatprep.subr.bf16.mxu0 %v13793_v55  ;;  %v12821_v6 = vcombine.high %v4670_v43, %v4674_v22  ;;  %v12823_v55 = vcombine.high %v4671_v35, %v4675_v45  ;;  %v4722_v43 = vld [vmem:[%s15081_s11 + $0x2f0] sm:$0xff]  ;;  %v4719_v22 = vld [vmem:[%s15081_s11 + $0x2d8] sm:$0xff] }
 0x46c   : > { %11417 = vmatprep.subr.bf16.mxu1 %v13795_v8  ;;  %v4678_v8 = vld [vmem:[%s15081_s11 + $0x190] sm:$0xff] }
 0x46d   : > { %v12828_v7 = vcombine.low %v4678_v8, %v4682_v61 }
 0x46e   : > { %11090 = vmatpush1.bf16.msra.mxu0 %v13792_v32  ;;  %v12822_v32 = vcombine.low %v4671_v35, %v4675_v45  ;;  %v4723_v35 = vld [vmem:[%s15081_s11 + $0x2f8] sm:$0xff] }
 0x46f   : > { %11418 = vmatpush1.bf16.msra.mxu1 %v13794_v62  ;;  %11428 = vmatprep.subr.bf16.mxu0 %v12781_v0  ;;  %v12829_v62 = vcombine.high %v4678_v8, %v4682_v61  ;;  %v12831_v0 = vcombine.high %v4679_v26, %v4683_v3  ;;  %v4730_v8 = vld [vmem:[%s15081_s11 + $0x330] sm:$0xff]  ;;  %v4727_v61 = vld [vmem:[%s15081_s11 + $0x318] sm:$0xff] }
 0x470   : > { %11756 = vmatprep.subr.bf16.mxu1 %v12783_v1  ;;  %v4686_v1 = vld [vmem:[%s15081_s11 + $0x1d0] sm:$0xff]  ;;  %v4731_v26 = vld [vmem:[%s15081_s11 + $0x338] sm:$0xff] }
 0x471   : > { %11092 = vmatmul.mubr.bf16.vlgmr.msra.gmra.mrb[16].mxu0 %v15837_v16  ;;  %v12836_v17 = vcombine.low %v4686_v1, %v4690_v40 }
 0x472   : > { %11420 = vmatmul.mubr.bf16.vlgmr.msra.gmra.mrb[16].mxu1 %v15837_v16  ;;  %11429 = vmatpush1.bf16.msra.mxu0 %v12780_v5  ;;  %v4691_v5 = vld [vmem:[%s15081_s11 + $0x1f8] sm:$0xff] }
 0x473   : > { %11460 = vmatprep.mubr.bf16.mxu0 %v15095_v19  ;;  %11757 = vmatpush1.bf16.msra.mxu1 %v12782_v28  ;;  %v12837_v28 = vcombine.high %v4686_v1, %v4690_v40  ;;  %v4738_v1 = vld [vmem:[%s15081_s11 + $0x370] sm:$0xff]  ;;  %v4735_v40 = vld [vmem:[%s15081_s11 + $0x358] sm:$0xff] }
 0x474   : > { %11788 = vmatprep.mubr.bf16.mxu1 %v15095_v19  ;;  %11430 = vmatprep.subr.bf16.mxu0 %v12789_v57  ;;  %v12807_v19 = vcombine.high %v4655_v18, %v4659_v63  ;;  %v12839_v57 = vcombine.high %v4687_v2, %v4691_v5  ;;  %v4707_v18 = vld [vmem:[%s15081_s11 + $0x278] sm:$0xff]  ;;  %v12844_v63 = vcombine.low %v4694_v30, %v4698_v46 }
 0x475   : > { %11758 = vmatprep.subr.bf16.mxu1 %v12791_v49  ;;  %v4695_v49 = vld [vmem:[%s15081_s11 + $0x218] sm:$0xff] }
 0x476   : > { %11431 = vmatpush1.bf16.msra.mxu0 %v12788_v59  ;;  %v12838_v59 = vcombine.low %v4687_v2, %v4691_v5  ;;  %v4739_v2 = vld [vmem:[%s15081_s11 + $0x378] sm:$0xff] }
 0x477   : > { %11759 = vmatpush1.bf16.msra.mxu1 %v12790_v24  ;;  %11432 = vmatprep.subr.bf16.mxu0 %v12797_v38  ;;  %v12845_v24 = vcombine.high %v4694_v30, %v4698_v46  ;;  %v12847_v38 = vcombine.high %v4695_v49, %v4699_v44  ;;  %v4746_v30 = vld [vmem:[%s15081_s11 + $0x3b0] sm:$0xff]  ;;  %v4743_v46 = vld [vmem:[%s15081_s11 + $0x398] sm:$0xff] }
 0x478   : > { %11760 = vmatprep.subr.bf16.mxu1 %v12799_v27  ;;  %v4702_v27 = vld [vmem:[%s15081_s11 + $0x250] sm:$0xff] }
 0x479   : > { %v12852_v36 = vcombine.low %v4702_v27, %v4706_v12 }
 0x47a   : > { %11433 = vmatpush1.bf16.msra.mxu0 %v12796_v34  ;;  %v12846_v34 = vcombine.low %v4695_v49, %v4699_v44  ;;  %v4747_v49 = vld [vmem:[%s15081_s11 + $0x3b8] sm:$0xff] }
 0x47b   : > { %11761 = vmatpush1.bf16.msra.mxu1 %v12798_v29  ;;  %11434 = vmatprep.subr.bf16.mxu0 %v12805_v25  ;;  %v12853_v29 = vcombine.high %v4702_v27, %v4706_v12  ;;  %v12855_v25 = vcombine.high %v4703_v31, %v4707_v18  ;;  %v4754_v27 = vld [vmem:[%s15081_s11 + $0x3f0] sm:$0xff]  ;;  %v4751_v12 = vld [vmem:[%s15081_s11 + $0x3d8] sm:$0xff] }
 0x47c   : > { %11762 = vmatprep.subr.bf16.mxu1 %v12807_v19  ;;  %v4710_v19 = vld [vmem:[%s15081_s11 + $0x290] sm:$0xff] }
 0x47d   : > { %v12860_v45 = vcombine.low %v4710_v19, %v4714_v15 }
 0x47e   : > { %11435 = vmatpush1.bf16.msra.mxu0 %v12804_v13  ;;  %v12854_v13 = vcombine.low %v4703_v31, %v4707_v18  ;;  %v4755_v31 = vld [vmem:[%s15081_s11 + $0x3f8] sm:$0xff] }
 0x47f   : > { %11763 = vmatpush1.bf16.msra.mxu1 %v12806_v56  ;;  %11436 = vmatprep.subr.bf16.mxu0 %v12813_v39  ;;  %v12861_v56 = vcombine.high %v4710_v19, %v4714_v15  ;;  %v12863_v39 = vcombine.high %v4711_v10, %v4715_v58  ;;  %v4762_v19 = vld [vmem:[%s15081_s11 + $0x430] sm:$0xff]  ;;  %v4759_v15 = vld [vmem:[%s15081_s11 + $0x418] sm:$0xff] }
 0x480   : > { %11764 = vmatprep.subr.bf16.mxu1 %v12815_v42  ;;  %v4718_v42 = vld [vmem:[%s15081_s11 + $0x2d0] sm:$0xff] }
 0x481   : > { %v12868_v3 = vcombine.low %v4718_v42, %v4722_v43 }
 0x482   : > { %11437 = vmatpush1.bf16.msra.mxu0 %v12812_v51  ;;  %v12862_v51 = vcombine.low %v4711_v10, %v4715_v58  ;;  %v4763_v10 = vld [vmem:[%s15081_s11 + $0x438] sm:$0xff] }
 0x483   : > { %11765 = vmatpush1.bf16.msra.mxu1 %v12814_v54  ;;  %11438 = vmatprep.subr.bf16.mxu0 %v12821_v6  ;;  %v12869_v54 = vcombine.high %v4718_v42, %v4722_v43  ;;  %v12871_v6 = vcombine.high %v4719_v22, %v4723_v35  ;;  %v4770_v42 = vld [vmem:[%s15081_s11 + $0x470] sm:$0xff] }
 0x484   : > { %11766 = vmatprep.subr.bf16.mxu1 %v12823_v55  ;;  %v4726_v55 = vld [vmem:[%s15081_s11 + $0x310] sm:$0xff] }
 0x485   : > { %v12876_v5 = vcombine.low %v4726_v55, %v4730_v8 }
 0x486   : > { %11439 = vmatpush1.bf16.msra.mxu0 %v12820_v4  ;;  %v12870_v4 = vcombine.low %v4719_v22, %v4723_v35  ;;  %v4767_v22 = vld [vmem:[%s15081_s11 + $0x458] sm:$0xff] }
 0x487   : > { %11767 = vmatpush1.bf16.msra.mxu1 %v12822_v32  ;;  %11440 = vmatprep.subr.bf16.mxu0 %v12829_v62  ;;  %v12877_v32 = vcombine.high %v4726_v55, %v4730_v8  ;;  %v12879_v62 = vcombine.high %v4727_v61, %v4731_v26  ;;  %v4771_v35 = vld [vmem:[%s15081_s11 + $0x478] sm:$0xff] }
 0x488   : > { %11768 = vmatprep.subr.bf16.mxu1 %v12831_v0  ;;  %v4734_v0 = vld [vmem:[%s15081_s11 + $0x350] sm:$0xff]  ;;  %v12919_v55 = vcombine.high %v4767_v22, %v4771_v35  ;;  %v4775_v8 = vld [vmem:[%s15081_s11 + $0x498] sm:$0xff] }
 0x489   : > { %v12884_v44 = vcombine.low %v4734_v0, %v4738_v1 }
 0x48a   : > { %11441 = vmatpush1.bf16.msra.mxu0 %v12828_v7  ;;  %v12878_v7 = vcombine.low %v4727_v61, %v4731_v26  ;;  %v4779_v61 = vld [vmem:[%s15081_s11 + $0x4b8] sm:$0xff] }
 0x48b   : > { %11769 = vmatpush1.bf16.msra.mxu1 %v12830_v9  ;;  %11442 = vmatprep.subr.bf16.mxu0 %v12837_v28  ;;  %v12885_v9 = vcombine.high %v4734_v0, %v4738_v1  ;;  %v12887_v28 = vcombine.high %v4735_v40, %v4739_v2  ;;  %v4786_v0 = vld [vmem:[%s15081_s11 + $0x4f0] sm:$0xff]  ;;  %v4783_v1 = vld [vmem:[%s15081_s11 + $0x4d8] sm:$0xff] }
 0x48c   : > { %11770 = vmatprep.subr.bf16.mxu1 %v12839_v57  ;;  %v4742_v57 = vld [vmem:[%s15081_s11 + $0x390] sm:$0xff] }
 0x48d   : > { %v12892_v18 = vcombine.low %v4742_v57, %v4746_v30 }
 0x48e   : > { %11443 = vmatpush1.bf16.msra.mxu0 %v12836_v17  ;;  %v12886_v17 = vcombine.low %v4735_v40, %v4739_v2  ;;  %v12926_v2 = vcombine.low %v4775_v8, %v4779_v61 }
 0x48f   : > { %11771 = vmatpush1.bf16.msra.mxu1 %v12838_v59  ;;  %11444 = vmatprep.subr.bf16.mxu0 %v12845_v24  ;;  %v12893_v59 = vcombine.high %v4742_v57, %v4746_v30  ;;  %v12895_v24 = vcombine.high %v4743_v46, %v4747_v49  ;;  %v4795_v57 = vld [vmem:[%s15081_s11 + $0x538] sm:$0xff] }
 0x490   : > { %11772 = vmatprep.subr.bf16.mxu1 %v12847_v38  ;;  %v4750_v38 = vld [vmem:[%s15081_s11 + $0x3d0] sm:$0xff] }
 0x491   : > { %v12900_v58 = vcombine.low %v4750_v38, %v4754_v27 }
 0x492   : > { %11445 = vmatpush1.bf16.msra.mxu0 %v12844_v63  ;;  %v12894_v63 = vcombine.low %v4743_v46, %v4747_v49 }
 0x493   : > { %11773 = vmatpush1.bf16.msra.mxu1 %v12846_v34  ;;  %11446 = vmatprep.subr.bf16.mxu0 %v12853_v29  ;;  %v12901_v34 = vcombine.high %v4750_v38, %v4754_v27  ;;  %v12903_v29 = vcombine.high %v4751_v12, %v4755_v31  ;;  %v4803_v38 = vld [vmem:[%s15081_s11 + $0x578] sm:$0xff] }
 0x494   : > { %11774 = vmatprep.subr.bf16.mxu1 %v12855_v25  ;;  %v4758_v25 = vld [vmem:[%s15081_s11 + $0x410] sm:$0xff] }
 0x495   : > { %v12908_v43 = vcombine.low %v4758_v25, %v4762_v19 }
 0x496   : > { %11447 = vmatpush1.bf16.msra.mxu0 %v12852_v36  ;;  %v12902_v36 = vcombine.low %v4751_v12, %v4755_v31 }
 0x497   : > { %11775 = vmatpush1.bf16.msra.mxu1 %v12854_v13  ;;  %11448 = vmatprep.subr.bf16.mxu0 %v12861_v56  ;;  %v12909_v13 = vcombine.high %v4758_v25, %v4762_v19  ;;  %v12911_v56 = vcombine.high %v4759_v15, %v4763_v10  ;;  %v4811_v25 = vld [vmem:[%s15081_s11 + $0x5b8] sm:$0xff] }
 0x498   : > { %11776 = vmatprep.subr.bf16.mxu1 %v12863_v39  ;;  %v4766_v39 = vld [vmem:[%s15081_s11 + $0x450] sm:$0xff] }
 0x499   : > { %v12916_v26 = vcombine.low %v4766_v39, %v4770_v42 }
 0x49a   : > { %11449 = vmatpush1.bf16.msra.mxu0 %v12860_v45  ;;  %v12910_v45 = vcombine.low %v4759_v15, %v4763_v10 }
 0x49b   : > { %11777 = vmatpush1.bf16.msra.mxu1 %v12862_v51  ;;  %11450 = vmatprep.subr.bf16.mxu0 %v12869_v54  ;;  %v12917_v51 = vcombine.high %v4766_v39, %v4770_v42  ;;  %v4774_v54 = vld [vmem:[%s15081_s11 + $0x490] sm:$0xff]  ;;  %v4819_v39 = vld [vmem:[%s15081_s11 + $0x5f8] sm:$0xff] }
 0x49c   : > { %11778 = vmatprep.subr.bf16.mxu1 %v12871_v6  ;;  %v4778_v6 = vld [vmem:[%s15081_s11 + $0x4b0] sm:$0xff] }
 0x49d   : > { %v12924_v40 = vcombine.low %v4774_v54, %v4778_v6 }
 0x49e   : > { %11451 = vmatpush1.bf16.msra.mxu0 %v12868_v3  ;;  %v12918_v3 = vcombine.low %v4767_v22, %v4771_v35 }
 0x49f   : > { %11779 = vmatpush1.bf16.msra.mxu1 %v12870_v4  ;;  %11452 = vmatprep.subr.bf16.mxu0 %v12877_v32  ;;  %v12925_v4 = vcombine.high %v4774_v54, %v4778_v6  ;;  %v12927_v32 = vcombine.high %v4775_v8, %v4779_v61  ;;  %v4823_v54 = vld [vmem:[%s15081_s11 + $0x618] sm:$0xff] }
 0x4a0   : > { %11780 = vmatprep.subr.bf16.mxu1 %v12879_v62  ;;  %v4782_v62 = vld [vmem:[%s15081_s11 + $0x4d0] sm:$0xff]  ;;  %v4827_v6 = vld [vmem:[%s15081_s11 + $0x638] sm:$0xff] }
 0x4a1   : > { %v12932_v30 = vcombine.low %v4782_v62, %v4786_v0 }
 0x4a2   : > { %11453 = vmatpush1.bf16.msra.mxu0 %v12876_v5  ;;  %v12933_v5 = vcombine.high %v4782_v62, %v4786_v0  ;;  %v4835_v62 = vld [vmem:[%s15081_s11 + $0x678] sm:$0xff] }
 0x4a3   : > { %11781 = vmatpush1.bf16.msra.mxu1 %v12878_v7  ;;  %11454 = vmatprep.subr.bf16.mxu0 %v12885_v9  ;;  %v4790_v7 = vld [vmem:[%s15081_s11 + $0x510] sm:$0xff] }
 0x4a4   : > { %11782 = vmatprep.subr.bf16.mxu1 %v12887_v28  ;;  %v4794_v9 = vld [vmem:[%s15081_s11 + $0x530] sm:$0xff]  ;;  %v4791_v28 = vld [vmem:[%s15081_s11 + $0x518] sm:$0xff] }
 0x4a5   : > { %v12941_v49 = vcombine.high %v4790_v7, %v4794_v9  ;;  %v12940_v27 = vcombine.low %v4790_v7, %v4794_v9  ;;  %v12942_v12 = vcombine.low %v4791_v28, %v4795_v57  ;;  %v4843_v7 = vld [vmem:[%s15081_s11 + $0x6b8] sm:$0xff] }
 0x4a6   : > { %11455 = vmatpush1.bf16.msra.mxu0 %v12884_v44  ;;  %v12943_v44 = vcombine.high %v4791_v28, %v4795_v57 }
 0x4a7   : > { %11783 = vmatpush1.bf16.msra.mxu1 %v12886_v17  ;;  %11456 = vmatprep.subr.bf16.mxu0 %v12893_v59  ;;  %v4798_v17 = vld [vmem:[%s15081_s11 + $0x550] sm:$0xff] }
 0x4a8   : > { %11784 = vmatprep.subr.bf16.mxu1 %v12895_v24  ;;  %v4802_v59 = vld [vmem:[%s15081_s11 + $0x570] sm:$0xff]  ;;  %v4799_v24 = vld [vmem:[%s15081_s11 + $0x558] sm:$0xff] }
 0x4a9   : > { %v12949_v31 = vcombine.high %v4798_v17, %v4802_v59  ;;  %v12948_v19 = vcombine.low %v4798_v17, %v4802_v59  ;;  %v12950_v15 = vcombine.low %v4799_v24, %v4803_v38  ;;  %v4851_v17 = vld [vmem:[%s15081_s11 + $0x6f8] sm:$0xff] }
 0x4aa   : > { %11457 = vmatpush1.bf16.msra.mxu0 %v12892_v18  ;;  %v12951_v18 = vcombine.high %v4799_v24, %v4803_v38 }
 0x4ab   : > { %11785 = vmatpush1.bf16.msra.mxu1 %v12894_v63  ;;  %11458 = vmatprep.subr.bf16.mxu0 %v12901_v34  ;;  %v4806_v63 = vld [vmem:[%s15081_s11 + $0x590] sm:$0xff] }
 0x4ac   : > { %11786 = vmatprep.subr.bf16.mxu1 %v12903_v29  ;;  %v4810_v34 = vld [vmem:[%s15081_s11 + $0x5b0] sm:$0xff]  ;;  %v4807_v29 = vld [vmem:[%s15081_s11 + $0x598] sm:$0xff] }
 0x4ad   : > { %v12957_v10 = vcombine.high %v4806_v63, %v4810_v34  ;;  %v12956_v42 = vcombine.low %v4806_v63, %v4810_v34  ;;  %v4859_v63 = vld [vmem:[%s15081_s11 + $0x738] sm:$0xff] }
 0x4ae   : > { %11459 = vmatpush1.bf16.msra.mxu0 %v12900_v58  ;;  %v12959_v58 = vcombine.high %v4807_v29, %v4811_v25 }
 0x4af   : > { %11787 = vmatpush1.bf16.msra.mxu1 %v12902_v36  ;;  %11469 = vmatprep.subr.bf16.mxu0 %v12909_v13  ;;  %v4814_v36 = vld [vmem:[%s15081_s11 + $0x5d0] sm:$0xff] }
 0x4b0   : > { %11797 = vmatprep.subr.bf16.mxu1 %v12911_v56  ;;  %v4818_v13 = vld [vmem:[%s15081_s11 + $0x5f0] sm:$0xff]  ;;  %v4815_v56 = vld [vmem:[%s15081_s11 + $0x5d8] sm:$0xff] }
 0x4b1   : > { %11461 = vmatmul.mubr.bf16.vlgmr.msra.gmra.mrb[20].mxu0 %v15177_v11  ;;  %v12965_v22 = vcombine.high %v4814_v36, %v4818_v13  ;;  %v12967_v35 = vcombine.high %v4815_v56, %v4819_v39  ;;  %v12966_v8 = vcombine.low %v4815_v56, %v4819_v39 }
 0x4b2   : > { %11789 = vmatmul.mubr.bf16.vlgmr.msra.gmra.mrb[20].mxu1 %v15177_v11  ;;  %11470 = vmatpush1.bf16.msra.mxu0 %v12908_v43  ;;  %v4787_v11 = vld [vmem:[%s15081_s11 + $0x4f8] sm:$0xff]  ;;  %v12958_v43 = vcombine.low %v4807_v29, %v4811_v25 }
 0x4b3   : > { %11501 = vmatprep.mubr.bf16.mxu0 %v15182_v23  ;;  %11798 = vmatpush1.bf16.msra.mxu1 %v12910_v45  ;;  %v12934_v46 = vcombine.low %v4783_v1, %v4787_v11  ;;  %v4822_v45 = vld [vmem:[%s15081_s11 + $0x610] sm:$0xff] }
 0x4b4   : > { %11829 = vmatprep.mubr.bf16.mxu1 %v15182_v23  ;;  %11471 = vmatprep.subr.bf16.mxu0 %v12917_v51  ;;  %v12935_v23 = vcombine.high %v4783_v1, %v4787_v11  ;;  %v4826_v51 = vld [vmem:[%s15081_s11 + $0x630] sm:$0xff]  ;;  %v12974_v1 = vcombine.low %v4823_v54, %v4827_v6 }
 0x4b5   : > { %11799 = vmatprep.subr.bf16.mxu1 %v12919_v55  ;;  %v12964_v55 = vcombine.low %v4814_v36, %v4818_v13  ;;  %v12973_v61 = vcombine.high %v4822_v45, %v4826_v51  ;;  %v12972_v0 = vcombine.low %v4822_v45, %v4826_v51  ;;  %v4867_v36 = vld [vmem:[%s15081_s11 + $0x778] sm:$0xff] }
 0x4b6   : > { %11472 = vmatpush1.bf16.msra.mxu0 %v12916_v26  ;;  %v12975_v26 = vcombine.high %v4823_v54, %v4827_v6  ;;  %v4875_v45 = vld [vmem:[%s15081_s11 + $0x7b8] sm:$0xff] }
 0x4b7   : > { %11800 = vmatpush1.bf16.msra.mxu1 %v12918_v3  ;;  %11473 = vmatprep.subr.bf16.mxu0 %v12925_v4  ;;  %v4830_v3 = vld [vmem:[%s15081_s11 + $0x650] sm:$0xff] }
 0x4b8   : > { %11801 = vmatprep.subr.bf16.mxu1 %v12927_v32  ;;  %v4834_v4 = vld [vmem:[%s15081_s11 + $0x670] sm:$0xff]  ;;  %v4831_v32 = vld [vmem:[%s15081_s11 + $0x658] sm:$0xff] }
 0x4b9   : > { %v12981_v11 = vcombine.high %v4830_v3, %v4834_v4  ;;  %v12980_v9 = vcombine.low %v4830_v3, %v4834_v4  ;;  %v12982_v28 = vcombine.low %v4831_v32, %v4835_v62  ;;  %v4883_v3 = vld [vmem:[%s15081_s11 + $0x7f8] sm:$0xff] }
 0x4ba   : > { %11474 = vmatpush1.bf16.msra.mxu0 %v12924_v40  ;;  %v12983_v40 = vcombine.high %v4831_v32, %v4835_v62 }
 0x4bb   : > { %11802 = vmatpush1.bf16.msra.mxu1 %v12926_v2  ;;  %11475 = vmatprep.subr.bf16.mxu0 %v12933_v5  ;;  %v4838_v2 = vld [vmem:[%s15081_s11 + $0x690] sm:$0xff] }
 0x4bc   : > { %11803 = vmatprep.subr.bf16.mxu1 %v12935_v23  ;;  %v4842_v5 = vld [vmem:[%s15081_s11 + $0x6b0] sm:$0xff]  ;;  %v4839_v23 = vld [vmem:[%s15081_s11 + $0x698] sm:$0xff] }
 0x4bd   : > { %v12989_v57 = vcombine.high %v4838_v2, %v4842_v5  ;;  %v12988_v59 = vcombine.low %v4838_v2, %v4842_v5  ;;  %v12990_v24 = vcombine.low %v4839_v23, %v4843_v7  ;;  %v4891_v2 = vld [vmem:[%s15081_s11 + $0x838] sm:$0xff] }
 0x4be   : > { %11476 = vmatpush1.bf16.msra.mxu0 %v12932_v30  ;;  %v12991_v30 = vcombine.high %v4839_v23, %v4843_v7 }
 0x4bf   : > { %11804 = vmatpush1.bf16.msra.mxu1 %v12934_v46  ;;  %11477 = vmatprep.subr.bf16.mxu0 %v12941_v49  ;;  %v4846_v46 = vld [vmem:[%s15081_s11 + $0x6d0] sm:$0xff] }
 0x4c0   : > { %11805 = vmatprep.subr.bf16.mxu1 %v12943_v44  ;;  %v4850_v49 = vld [vmem:[%s15081_s11 + $0x6f0] sm:$0xff]  ;;  %v4847_v44 = vld [vmem:[%s15081_s11 + $0x6d8] sm:$0xff] }
 0x4c1   : > { %v12997_v38 = vcombine.high %v4846_v46, %v4850_v49  ;;  %v12996_v34 = vcombine.low %v4846_v46, %v4850_v49  ;;  %v12998_v29 = vcombine.low %v4847_v44, %v4851_v17  ;;  %v4895_v46 = vld [vmem:[%s15081_s11 + $0x858] sm:$0xff] }
 0x4c2   : > { %11478 = vmatpush1.bf16.msra.mxu0 %v12940_v27  ;;  %v12999_v27 = vcombine.high %v4847_v44, %v4851_v17  ;;  %v4899_v49 = vld [vmem:[%s15081_s11 + $0x878] sm:$0xff] }
 0x4c3   : > { %11806 = vmatpush1.bf16.msra.mxu1 %v12942_v12  ;;  %11479 = vmatprep.subr.bf16.mxu0 %v12949_v31  ;;  %v4854_v12 = vld [vmem:[%s15081_s11 + $0x710] sm:$0xff] }
 0x4c4   : > { %11807 = vmatprep.subr.bf16.mxu1 %v12951_v18  ;;  %v4858_v31 = vld [vmem:[%s15081_s11 + $0x730] sm:$0xff]  ;;  %v4855_v18 = vld [vmem:[%s15081_s11 + $0x718] sm:$0xff] }
 0x4c5   : > { %v13005_v25 = vcombine.high %v4854_v12, %v4858_v31  ;;  %v13004_v13 = vcombine.low %v4854_v12, %v4858_v31  ;;  %v13006_v56 = vcombine.low %v4855_v18, %v4859_v63  ;;  %v4907_v12 = vld [vmem:[%s15081_s11 + $0x8b8] sm:$0xff] }
 0x4c6   : > { %11480 = vmatpush1.bf16.msra.mxu0 %v12948_v19  ;;  %v13007_v19 = vcombine.high %v4855_v18, %v4859_v63  ;;  %v13046_v18 = vcombine.low %v4895_v46, %v4899_v49 }
 0x4c7   : > { %11808 = vmatpush1.bf16.msra.mxu1 %v12950_v15  ;;  %11481 = vmatprep.subr.bf16.mxu0 %v12957_v10  ;;  %v4862_v15 = vld [vmem:[%s15081_s11 + $0x750] sm:$0xff] }
 0x4c8   : > { %11809 = vmatprep.subr.bf16.mxu1 %v12959_v58  ;;  %v4866_v10 = vld [vmem:[%s15081_s11 + $0x770] sm:$0xff]  ;;  %v4863_v58 = vld [vmem:[%s15081_s11 + $0x758] sm:$0xff] }
 0x4c9   : > { %v13013_v39 = vcombine.high %v4862_v15, %v4866_v10  ;;  %v13012_v51 = vcombine.low %v4862_v15, %v4866_v10  ;;  %v13014_v54 = vcombine.low %v4863_v58, %v4867_v36 }
 0x4ca   : > { %11482 = vmatpush1.bf16.msra.mxu0 %v12956_v42  ;;  %v13015_v42 = vcombine.high %v4863_v58, %v4867_v36  ;;  %v4918_v36 = vld [vmem:[%s15081_s11 + $0x910] sm:$0xff] }
 0x4cb   : > { %11810 = vmatpush1.bf16.msra.mxu1 %v12958_v43  ;;  %11483 = vmatprep.subr.bf16.mxu0 %v12965_v22  ;;  %v4870_v43 = vld [vmem:[%s15081_s11 + $0x790] sm:$0xff] }
 0x4cc   : > { %11811 = vmatprep.subr.bf16.mxu1 %v12967_v35  ;;  %v4874_v22 = vld [vmem:[%s15081_s11 + $0x7b0] sm:$0xff]  ;;  %v4871_v35 = vld [vmem:[%s15081_s11 + $0x798] sm:$0xff] }
 0x4cd   : > { %v13021_v6 = vcombine.high %v4870_v43, %v4874_v22  ;;  %v13020_v4 = vcombine.low %v4870_v43, %v4874_v22  ;;  %v13022_v32 = vcombine.low %v4871_v35, %v4875_v45 }
 0x4ce   : > { %11484 = vmatpush1.bf16.msra.mxu0 %v12964_v55  ;;  %v13023_v55 = vcombine.high %v4871_v35, %v4875_v45  ;;  %v4926_v45 = vld [vmem:[%s15081_s11 + $0x950] sm:$0xff] }
 0x4cf   : > { %11812 = vmatpush1.bf16.msra.mxu1 %v12966_v8  ;;  %11485 = vmatprep.subr.bf16.mxu0 %v12973_v61  ;;  %v4878_v8 = vld [vmem:[%s15081_s11 + $0x7d0] sm:$0xff] }
 0x4d0   : > { %11813 = vmatprep.subr.bf16.mxu1 %v12975_v26  ;;  %v4882_v61 = vld [vmem:[%s15081_s11 + $0x7f0] sm:$0xff]  ;;  %v4879_v26 = vld [vmem:[%s15081_s11 + $0x7d8] sm:$0xff] }
 0x4d1   : > { %v13029_v62 = vcombine.high %v4878_v8, %v4882_v61  ;;  %v13028_v5 = vcombine.low %v4878_v8, %v4882_v61  ;;  %v13030_v23 = vcombine.low %v4879_v26, %v4883_v3 }
 0x4d2   : > { %11486 = vmatpush1.bf16.msra.mxu0 %v12972_v0  ;;  %v13031_v0 = vcombine.high %v4879_v26, %v4883_v3  ;;  %v4934_v3 = vld [vmem:[%s15081_s11 + $0x990] sm:$0xff] }
 0x4d3   : > { %11814 = vmatpush1.bf16.msra.mxu1 %v12974_v1  ;;  %11487 = vmatprep.subr.bf16.mxu0 %v12981_v11  ;;  %v4886_v1 = vld [vmem:[%s15081_s11 + $0x810] sm:$0xff] }
 0x4d4   : > { %11815 = vmatprep.subr.bf16.mxu1 %v12983_v40  ;;  %v4890_v11 = vld [vmem:[%s15081_s11 + $0x830] sm:$0xff]  ;;  %v4887_v40 = vld [vmem:[%s15081_s11 + $0x818] sm:$0xff] }
 0x4d5   : > { %v13037_v7 = vcombine.high %v4886_v1, %v4890_v11  ;;  %v13038_v44 = vcombine.low %v4887_v40, %v4891_v2 }
 0x4d6   : > { %11488 = vmatpush1.bf16.msra.mxu0 %v12980_v9  ;;  %v13039_v9 = vcombine.high %v4887_v40, %v4891_v2  ;;  %v4942_v2 = vld [vmem:[%s15081_s11 + $0x9d0] sm:$0xff] }
 0x4d7   : > { %11816 = vmatpush1.bf16.msra.mxu1 %v12982_v28  ;;  %11489 = vmatprep.subr.bf16.mxu0 %v12989_v57  ;;  %v4894_v28 = vld [vmem:[%s15081_s11 + $0x850] sm:$0xff] }
 0x4d8   : > { %11817 = vmatprep.subr.bf16.mxu1 %v12991_v30  ;;  %v4898_v57 = vld [vmem:[%s15081_s11 + $0x870] sm:$0xff]  ;;  %v13036_v30 = vcombine.low %v4886_v1, %v4890_v11 }
 0x4d9   : > { %v13045_v17 = vcombine.high %v4894_v28, %v4898_v57  ;;  %v13044_v31 = vcombine.low %v4894_v28, %v4898_v57 }
 0x4da   : > { %11490 = vmatpush1.bf16.msra.mxu0 %v12988_v59  ;;  %v4902_v59 = vld [vmem:[%s15081_s11 + $0x890] sm:$0xff] }
 0x4db   : > { %11818 = vmatpush1.bf16.msra.mxu1 %v12990_v24  ;;  %11491 = vmatprep.subr.bf16.mxu0 %v12997_v38  ;;  %v4906_v24 = vld [vmem:[%s15081_s11 + $0x8b0] sm:$0xff]  ;;  %v13047_v38 = vcombine.high %v4895_v46, %v4899_v49 }
 0x4dc   : > { %11819 = vmatprep.subr.bf16.mxu1 %v12999_v27  ;;  %v4903_v27 = vld [vmem:[%s15081_s11 + $0x898] sm:$0xff]  ;;  %v13053_v63 = vcombine.high %v4902_v59, %v4906_v24  ;;  %v13052_v15 = vcombine.low %v4902_v59, %v4906_v24  ;;  %v4950_v46 = vld [vmem:[%s15081_s11 + $0xa10] sm:$0xff] }
 0x4dd   : > { %v13054_v10 = vcombine.low %v4903_v27, %v4907_v12  ;;  %v4954_v49 = vld [vmem:[%s15081_s11 + $0xa30] sm:$0xff] }
 0x4de   : > { %11492 = vmatpush1.bf16.msra.mxu0 %v12996_v34  ;;  %v13055_v34 = vcombine.high %v4903_v27, %v4907_v12  ;;  %v4958_v12 = vld [vmem:[%s15081_s11 + $0xa50] sm:$0xff] }
 0x4df   : > { %11820 = vmatpush1.bf16.msra.mxu1 %v12998_v29  ;;  %11493 = vmatprep.subr.bf16.mxu0 %v13005_v25  ;;  %v4910_v29 = vld [vmem:[%s15081_s11 + $0x8d0] sm:$0xff] }
 0x4e0   : > { %11821 = vmatprep.subr.bf16.mxu1 %v13007_v19  ;;  %v4914_v25 = vld [vmem:[%s15081_s11 + $0x8f0] sm:$0xff]  ;;  %v4911_v19 = vld [vmem:[%s15081_s11 + $0x8d8] sm:$0xff] }
 0x4e1   : > { %v13061_v58 = vcombine.high %v4910_v29, %v4914_v25 }
 0x4e2   : > { %11494 = vmatpush1.bf16.msra.mxu0 %v13004_v13  ;;  %v4922_v13 = vld [vmem:[%s15081_s11 + $0x930] sm:$0xff] }
 0x4e3   : > { %11822 = vmatpush1.bf16.msra.mxu1 %v13006_v56  ;;  %11495 = vmatprep.subr.bf16.mxu0 %v13013_v39  ;;  %v4919_v56 = vld [vmem:[%s15081_s11 + $0x918] sm:$0xff]  ;;  %v13069_v22 = vcombine.high %v4918_v36, %v4922_v13 }
 0x4e4   : > { %11823 = vmatprep.subr.bf16.mxu1 %v13015_v42  ;;  %v4923_v39 = vld [vmem:[%s15081_s11 + $0x938] sm:$0xff]  ;;  %v13060_v42 = vcombine.low %v4910_v29, %v4914_v25 }
 0x4e5   : > { %v13071_v35 = vcombine.high %v4919_v56, %v4923_v39  ;;  %v13070_v8 = vcombine.low %v4919_v56, %v4923_v39  ;;  %v4974_v39 = vld [vmem:[%s15081_s11 + $0xad0] sm:$0xff] }
 0x4e6   : > { %11496 = vmatpush1.bf16.msra.mxu0 %v13012_v51  ;;  %v4930_v51 = vld [vmem:[%s15081_s11 + $0x970] sm:$0xff] }
 0x4e7   : > { %11824 = vmatpush1.bf16.msra.mxu1 %v13014_v54  ;;  %11497 = vmatprep.subr.bf16.mxu0 %v13021_v6  ;;  %v4927_v54 = vld [vmem:[%s15081_s11 + $0x958] sm:$0xff]  ;;  %v13077_v61 = vcombine.high %v4926_v45, %v4930_v51 }
 0x4e8   : > { %11825 = vmatprep.subr.bf16.mxu1 %v13023_v55  ;;  %v4931_v6 = vld [vmem:[%s15081_s11 + $0x978] sm:$0xff]  ;;  %v13068_v55 = vcombine.low %v4918_v36, %v4922_v13 }
 0x4e9   : > { %v13079_v26 = vcombine.high %v4927_v54, %v4931_v6  ;;  %v13078_v1 = vcombine.low %v4927_v54, %v4931_v6  ;;  %v4982_v6 = vld [vmem:[%s15081_s11 + $0xb10] sm:$0xff] }
 0x4ea   : > { %11498 = vmatpush1.bf16.msra.mxu0 %v13020_v4  ;;  %v4938_v4 = vld [vmem:[%s15081_s11 + $0x9b0] sm:$0xff] }
 0x4eb   : > { %11826 = vmatpush1.bf16.msra.mxu1 %v13022_v32  ;;  %11499 = vmatprep.subr.bf16.mxu0 %v13029_v62  ;;  %v4935_v32 = vld [vmem:[%s15081_s11 + $0x998] sm:$0xff]  ;;  %v13085_v11 = vcombine.high %v4934_v3, %v4938_v4 }
 0x4ec   : > { %11827 = vmatprep.subr.bf16.mxu1 %v13031_v0  ;;  %v4939_v62 = vld [vmem:[%s15081_s11 + $0x9b8] sm:$0xff]  ;;  %v13076_v0 = vcombine.low %v4926_v45, %v4930_v51 }
 0x4ed   : > { %v13087_v40 = vcombine.high %v4935_v32, %v4939_v62  ;;  %v13086_v28 = vcombine.low %v4935_v32, %v4939_v62  ;;  %v4990_v62 = vld [vmem:[%s15081_s11 + $0xb50] sm:$0xff] }
 0x4ee   : > { %11500 = vmatpush1.bf16.msra.mxu0 %v13028_v5  ;;  %v4946_v5 = vld [vmem:[%s15081_s11 + $0x9f0] sm:$0xff] }
 0x4ef   : > { %11828 = vmatpush1.bf16.msra.mxu1 %v13030_v23  ;;  %11510 = vmatprep.subr.bf16.mxu0 %v13037_v7  ;;  %v4943_v23 = vld [vmem:[%s15081_s11 + $0x9d8] sm:$0xff]  ;;  %v13093_v57 = vcombine.high %v4942_v2, %v4946_v5  ;;  %v13092_v59 = vcombine.low %v4942_v2, %v4946_v5 }
 0x4f0   : > { %11838 = vmatprep.subr.bf16.mxu1 %v13039_v9  ;;  %v4947_v7 = vld [vmem:[%s15081_s11 + $0x9f8] sm:$0xff]  ;;  %v13084_v9 = vcombine.low %v4934_v3, %v4938_v4 }
 0x4f1   : > { %11502 = vmatmul.mubr.bf16.vlgmr.msra.gmra.mrb[20].mxu0 %v15296_v48  ;;  %v13094_v24 = vcombine.low %v4943_v23, %v4947_v7 }
 0x4f2   : > { %11830 = vmatmul.mubr.bf16.vlgmr.msra.gmra.mrb[20].mxu1 %v15296_v48  ;;  %11511 = vmatpush1.bf16.msra.mxu0 %v13036_v30  ;;  %v4915_v48 = vld [vmem:[%s15081_s11 + $0x8f8] sm:$0xff]  ;;  %v13095_v30 = vcombine.high %v4943_v23, %v4947_v7  ;;  %v4998_v7 = vld [vmem:[%s15081_s11 + $0xb90] sm:$0xff] }
 0x4f3   : > { %11542 = vmatprep.mubr.bf16.mxu0 %v15301_v21  ;;  %11839 = vmatpush1.bf16.msra.mxu1 %v13038_v44  ;;  %v13062_v43 = vcombine.low %v4911_v19, %v4915_v48  ;;  %v4951_v44 = vld [vmem:[%s15081_s11 + $0xa18] sm:$0xff] }
 0x4f4   : > { %11870 = vmatprep.mubr.bf16.mxu1 %v15301_v21  ;;  %11512 = vmatprep.subr.bf16.mxu0 %v13045_v17  ;;  %v13063_v21 = vcombine.high %v4911_v19, %v4915_v48  ;;  %v4955_v17 = vld [vmem:[%s15081_s11 + $0xa38] sm:$0xff]  ;;  %v4966_v48 = vld [vmem:[%s15081_s11 + $0xa90] sm:$0xff] }
 0x4f5   : > { %11840 = vmatprep.subr.bf16.mxu1 %v13047_v38  ;;  %v13101_v38 = vcombine.high %v4950_v46, %v4954_v49  ;;  %v13103_v27 = vcombine.high %v4951_v44, %v4955_v17  ;;  %v13102_v29 = vcombine.low %v4951_v44, %v4955_v17  ;;  %v5006_v17 = vld [vmem:[%s15081_s11 + $0xbd0] sm:$0xff] }
 0x4f6   : > { %11513 = vmatpush1.bf16.msra.mxu0 %v13044_v31  ;;  %v4962_v31 = vld [vmem:[%s15081_s11 + $0xa70] sm:$0xff] }
 0x4f7   : > { %11841 = vmatpush1.bf16.msra.mxu1 %v13046_v18  ;;  %11514 = vmatprep.subr.bf16.mxu0 %v13053_v63  ;;  %v4959_v18 = vld [vmem:[%s15081_s11 + $0xa58] sm:$0xff]  ;;  %v13109_v25 = vcombine.high %v4958_v12, %v4962_v31 }
 0x4f8   : > { %11842 = vmatprep.subr.bf16.mxu1 %v13055_v34  ;;  %v4963_v63 = vld [vmem:[%s15081_s11 + $0xa78] sm:$0xff]  ;;  %v13100_v34 = vcombine.low %v4950_v46, %v4954_v49 }
 0x4f9   : > { %v13111_v19 = vcombine.high %v4959_v18, %v4963_v63  ;;  %v13110_v36 = vcombine.low %v4959_v18, %v4963_v63  ;;  %v5014_v63 = vld [vmem:[%s15081_s11 + $0xc10] sm:$0xff] }
 0x4fa   : > { %11515 = vmatpush1.bf16.msra.mxu0 %v13052_v15  ;;  %v4970_v15 = vld [vmem:[%s15081_s11 + $0xab0] sm:$0xff] }
 0x4fb   : > { %11843 = vmatpush1.bf16.msra.mxu1 %v13054_v10  ;;  %11516 = vmatprep.subr.bf16.mxu0 %v13061_v58  ;;  %v4967_v10 = vld [vmem:[%s15081_s11 + $0xa98] sm:$0xff]  ;;  %v13117_v13 = vcombine.high %v4966_v48, %v4970_v15 }
 0x4fc   : > { %11844 = vmatprep.subr.bf16.mxu1 %v13063_v21  ;;  %v4971_v58 = vld [vmem:[%s15081_s11 + $0xab8] sm:$0xff]  ;;  %v13108_v21 = vcombine.low %v4958_v12, %v4962_v31 }
 0x4fd   : > { %v13119_v56 = vcombine.high %v4967_v10, %v4971_v58  ;;  %v13118_v45 = vcombine.low %v4967_v10, %v4971_v58  ;;  %v5022_v58 = vld [vmem:[%s15081_s11 + $0xc50] sm:$0xff] }
 0x4fe   : > { %11517 = vmatpush1.bf16.msra.mxu0 %v13060_v42  ;;  %v4978_v42 = vld [vmem:[%s15081_s11 + $0xaf0] sm:$0xff] }
 0x4ff   : > { %11845 = vmatpush1.bf16.msra.mxu1 %v13062_v43  ;;  %11518 = vmatprep.subr.bf16.mxu0 %v13069_v22  ;;  %v4975_v43 = vld [vmem:[%s15081_s11 + $0xad8] sm:$0xff]  ;;  %v13125_v51 = vcombine.high %v4974_v39, %v4978_v42 }
 0x500   : > { %11846 = vmatprep.subr.bf16.mxu1 %v13071_v35  ;;  %v4979_v22 = vld [vmem:[%s15081_s11 + $0xaf8] sm:$0xff]  ;;  %v13116_v35 = vcombine.low %v4966_v48, %v4970_v15 }
 0x501   : > { %v13127_v54 = vcombine.high %v4975_v43, %v4979_v22  ;;  %v13126_v3 = vcombine.low %v4975_v43, %v4979_v22  ;;  %v5030_v43 = vld [vmem:[%s15081_s11 + $0xc90] sm:$0xff] }
 0x502   : > { %11519 = vmatpush1.bf16.msra.mxu0 %v13068_v55  ;;  %v4986_v55 = vld [vmem:[%s15081_s11 + $0xb30] sm:$0xff] }
 0x503   : > { %11847 = vmatpush1.bf16.msra.mxu1 %v13070_v8  ;;  %11520 = vmatprep.subr.bf16.mxu0 %v13077_v61  ;;  %v4983_v8 = vld [vmem:[%s15081_s11 + $0xb18] sm:$0xff]  ;;  %v13133_v4 = vcombine.high %v4982_v6, %v4986_v55  ;;  %v5034_v22 = vld [vmem:[%s15081_s11 + $0xcb0] sm:$0xff] }
 0x504   : > { %11848 = vmatprep.subr.bf16.mxu1 %v13079_v26  ;;  %v4987_v61 = vld [vmem:[%s15081_s11 + $0xb38] sm:$0xff]  ;;  %v13124_v26 = vcombine.low %v4974_v39, %v4978_v42 }
 0x505   : > { %v13135_v32 = vcombine.high %v4983_v8, %v4987_v61  ;;  %v13134_v2 = vcombine.low %v4983_v8, %v4987_v61  ;;  %v5038_v61 = vld [vmem:[%s15081_s11 + $0xcd0] sm:$0xff] }
 0x506   : > { %11521 = vmatpush1.bf16.msra.mxu0 %v13076_v0  ;;  %v4994_v0 = vld [vmem:[%s15081_s11 + $0xb70] sm:$0xff] }
 0x507   : > { %11849 = vmatpush1.bf16.msra.mxu1 %v13078_v1  ;;  %11522 = vmatprep.subr.bf16.mxu0 %v13085_v11  ;;  %v4991_v1 = vld [vmem:[%s15081_s11 + $0xb58] sm:$0xff]  ;;  %v13141_v5 = vcombine.high %v4990_v62, %v4994_v0 }
 0x508   : > { %11850 = vmatprep.subr.bf16.mxu1 %v13087_v40  ;;  %v4995_v11 = vld [vmem:[%s15081_s11 + $0xb78] sm:$0xff]  ;;  %v13132_v40 = vcombine.low %v4982_v6, %v4986_v55  ;;  %v13181_v55 = vcombine.high %v5030_v43, %v5034_v22 }
 0x509   : > { %v13143_v23 = vcombine.high %v4991_v1, %v4995_v11  ;;  %v13142_v46 = vcombine.low %v4991_v1, %v4995_v11  ;;  %v5050_v1 = vld [vmem:[%s15081_s11 + $0xd30] sm:$0xff]  ;;  %v5047_v11 = vld [vmem:[%s15081_s11 + $0xd18] sm:$0xff] }
 0x50a   : > { %11523 = vmatpush1.bf16.msra.mxu0 %v13084_v9  ;;  %v5002_v9 = vld [vmem:[%s15081_s11 + $0xbb0] sm:$0xff] }
 0x50b   : > { %11851 = vmatpush1.bf16.msra.mxu1 %v13086_v28  ;;  %11524 = vmatprep.subr.bf16.mxu0 %v13093_v57  ;;  %v4999_v28 = vld [vmem:[%s15081_s11 + $0xb98] sm:$0xff]  ;;  %v13149_v49 = vcombine.high %v4998_v7, %v5002_v9 }
 0x50c   : > { %11852 = vmatprep.subr.bf16.mxu1 %v13095_v30  ;;  %v5003_v57 = vld [vmem:[%s15081_s11 + $0xbb8] sm:$0xff]  ;;  %v13140_v30 = vcombine.low %v4990_v62, %v4994_v0  ;;  %v5046_v0 = vld [vmem:[%s15081_s11 + $0xd10] sm:$0xff] }
 0x50d   : > { %v13151_v44 = vcombine.high %v4999_v28, %v5003_v57  ;;  %v13150_v12 = vcombine.low %v4999_v28, %v5003_v57  ;;  %v5058_v28 = vld [vmem:[%s15081_s11 + $0xd70] sm:$0xff]  ;;  %v5055_v57 = vld [vmem:[%s15081_s11 + $0xd58] sm:$0xff] }
 0x50e   : > { %11525 = vmatpush1.bf16.msra.mxu0 %v13092_v59  ;;  %v5010_v59 = vld [vmem:[%s15081_s11 + $0xbf0] sm:$0xff] }
 0x50f   : > { %11853 = vmatpush1.bf16.msra.mxu1 %v13094_v24  ;;  %11526 = vmatprep.subr.bf16.mxu0 %v13101_v38  ;;  %v5007_v24 = vld [vmem:[%s15081_s11 + $0xbd8] sm:$0xff]  ;;  %v13157_v31 = vcombine.high %v5006_v17, %v5010_v59 }
 0x510   : > { %11854 = vmatprep.subr.bf16.mxu1 %v13103_v27  ;;  %v5011_v38 = vld [vmem:[%s15081_s11 + $0xbf8] sm:$0xff]  ;;  %v13148_v27 = vcombine.low %v4998_v7, %v5002_v9  ;;  %v5054_v9 = vld [vmem:[%s15081_s11 + $0xd50] sm:$0xff] }
 0x511   : > { %v13159_v18 = vcombine.high %v5007_v24, %v5011_v38  ;;  %v13158_v48 = vcombine.low %v5007_v24, %v5011_v38  ;;  %v5066_v24 = vld [vmem:[%s15081_s11 + $0xdb0] sm:$0xff]  ;;  %v5063_v38 = vld [vmem:[%s15081_s11 + $0xd98] sm:$0xff] }
 0x512   : > { %11527 = vmatpush1.bf16.msra.mxu0 %v13100_v34  ;;  %v5018_v34 = vld [vmem:[%s15081_s11 + $0xc30] sm:$0xff] }
 0x513   : > { %11855 = vmatpush1.bf16.msra.mxu1 %v13102_v29  ;;  %11528 = vmatprep.subr.bf16.mxu0 %v13109_v25  ;;  %v5015_v29 = vld [vmem:[%s15081_s11 + $0xc18] sm:$0xff]  ;;  %v13165_v15 = vcombine.high %v5014_v63, %v5018_v34 }
 0x514   : > { %11856 = vmatprep.subr.bf16.mxu1 %v13111_v19  ;;  %v5019_v25 = vld [vmem:[%s15081_s11 + $0xc38] sm:$0xff]  ;;  %v13156_v19 = vcombine.low %v5006_v17, %v5010_v59  ;;  %v5062_v59 = vld [vmem:[%s15081_s11 + $0xd90] sm:$0xff] }
 0x515   : > { %v13167_v10 = vcombine.high %v5015_v29, %v5019_v25  ;;  %v13166_v39 = vcombine.low %v5015_v29, %v5019_v25  ;;  %v5070_v29 = vld [vmem:[%s15081_s11 + $0xdd0] sm:$0xff] }
 0x516   : > { %11529 = vmatpush1.bf16.msra.mxu0 %v13108_v21  ;;  %v5026_v21 = vld [vmem:[%s15081_s11 + $0xc70] sm:$0xff] }
 0x517   : > { %11857 = vmatpush1.bf16.msra.mxu1 %v13110_v36  ;;  %11530 = vmatprep.subr.bf16.mxu0 %v13117_v13  ;;  %v13164_v36 = vcombine.low %v5014_v63, %v5018_v34  ;;  %v5023_v13 = vld [vmem:[%s15081_s11 + $0xc58] sm:$0xff]  ;;  %v13173_v42 = vcombine.high %v5022_v58, %v5026_v21  ;;  %v5074_v25 = vld [vmem:[%s15081_s11 + $0xdf0] sm:$0xff] }
 0x518   : > { %11858 = vmatprep.subr.bf16.mxu1 %v13119_v56  ;;  %v5027_v56 = vld [vmem:[%s15081_s11 + $0xc78] sm:$0xff] }
 0x519   : > { %v13174_v6 = vcombine.low %v5023_v13, %v5027_v56 }
 0x51a   : > { %11531 = vmatpush1.bf16.msra.mxu0 %v13116_v35  ;;  %v13175_v35 = vcombine.high %v5023_v13, %v5027_v56 }
 0x51b   : > { %11859 = vmatpush1.bf16.msra.mxu1 %v13118_v45  ;;  %11532 = vmatprep.subr.bf16.mxu0 %v13125_v51  ;;  %v5031_v45 = vld [vmem:[%s15081_s11 + $0xc98] sm:$0xff] }
 0x51c   : > { %11860 = vmatprep.subr.bf16.mxu1 %v13127_v54  ;;  %v5035_v51 = vld [vmem:[%s15081_s11 + $0xcb8] sm:$0xff]  ;;  %v13172_v54 = vcombine.low %v5022_v58, %v5026_v21 }
 0x51d   : > { %v13183_v8 = vcombine.high %v5031_v45, %v5035_v51 }
 0x51e   : > { %11533 = vmatpush1.bf16.msra.mxu0 %v13124_v26  ;;  %v5042_v26 = vld [vmem:[%s15081_s11 + $0xcf0] sm:$0xff] }
 0x51f   : > { %11861 = vmatpush1.bf16.msra.mxu1 %v13126_v3  ;;  %11534 = vmatprep.subr.bf16.mxu0 %v13133_v4  ;;  %v5043_v3 = vld [vmem:[%s15081_s11 + $0xcf8] sm:$0xff]  ;;  %v13180_v4 = vcombine.low %v5030_v43, %v5034_v22  ;;  %v13189_v62 = vcombine.high %v5038_v61, %v5042_v26 }
 0x520   : > { %11862 = vmatprep.subr.bf16.mxu1 %v13135_v32  ;;  %v13182_v32 = vcombine.low %v5031_v45, %v5035_v51  ;;  %v5082_v45 = vld [vmem:[%s15081_s11 + $0xe30] sm:$0xff]  ;;  %v5079_v51 = vld [vmem:[%s15081_s11 + $0xe18] sm:$0xff] }
 0x522   : > { %11535 = vmatpush1.bf16.msra.mxu0 %v13132_v40  ;;  %v5051_v40 = vld [vmem:[%s15081_s11 + $0xd38] sm:$0xff] }
 0x523   : > { %11863 = vmatpush1.bf16.msra.mxu1 %v13134_v2  ;;  %11536 = vmatprep.subr.bf16.mxu0 %v13141_v5  ;;  %v13188_v2 = vcombine.low %v5038_v61, %v5042_v26  ;;  %v13199_v7 = vcombine.high %v5047_v11, %v5051_v40  ;;  %v5086_v26 = vld [vmem:[%s15081_s11 + $0xe50] sm:$0xff] }
 0x524   : > { %11864 = vmatprep.subr.bf16.mxu1 %v13143_v23  ;;  %v13197_v23 = vcombine.high %v5046_v0, %v5050_v1 }
 0x526   : > { %11537 = vmatpush1.bf16.msra.mxu0 %v13140_v30  ;;  %v5059_v30 = vld [vmem:[%s15081_s11 + $0xd78] sm:$0xff] }
 0x527   : > { %11865 = vmatpush1.bf16.msra.mxu1 %v13142_v46  ;;  %11538 = vmatprep.subr.bf16.mxu0 %v13149_v49  ;;  %v13196_v46 = vcombine.low %v5046_v0, %v5050_v1  ;;  %v13198_v49 = vcombine.low %v5047_v11, %v5051_v40  ;;  %v13207_v17 = vcombine.high %v5055_v57, %v5059_v30  ;;  %v5094_v1 = vld [vmem:[%s15081_s11 + $0xe90] sm:$0xff]  ;;  %v5095_v40 = vld [vmem:[%s15081_s11 + $0xe98] sm:$0xff] }
 0x528   : > { %11866 = vmatprep.subr.bf16.mxu1 %v13151_v44  ;;  %v13205_v44 = vcombine.high %v5054_v9, %v5058_v28  ;;  %v5098_v11 = vld [vmem:[%s15081_s11 + $0xeb0] sm:$0xff] }
 0x52a   : > { %11539 = vmatpush1.bf16.msra.mxu0 %v13148_v27  ;;  %v5067_v27 = vld [vmem:[%s15081_s11 + $0xdb8] sm:$0xff] }
 0x52b   : > { %11867 = vmatpush1.bf16.msra.mxu1 %v13150_v12  ;;  %11540 = vmatprep.subr.bf16.mxu0 %v13157_v31  ;;  %v13204_v12 = vcombine.low %v5054_v9, %v5058_v28  ;;  %v13206_v31 = vcombine.low %v5055_v57, %v5059_v30  ;;  %v13215_v34 = vcombine.high %v5063_v38, %v5067_v27  ;;  %v5102_v28 = vld [vmem:[%s15081_s11 + $0xed0] sm:$0xff]  ;;  %v5103_v30 = vld [vmem:[%s15081_s11 + $0xed8] sm:$0xff] }
 0x52c   : > { %11868 = vmatprep.subr.bf16.mxu1 %v13159_v18  ;;  %v13213_v18 = vcombine.high %v5062_v59, %v5066_v24  ;;  %v5106_v57 = vld [vmem:[%s15081_s11 + $0xef0] sm:$0xff] }
 0x52e   : > { %11541 = vmatpush1.bf16.msra.mxu0 %v13156_v19 }
 0x52f   : > { %11869 = vmatpush1.bf16.msra.mxu1 %v13158_v48  ;;  %11551 = vmatprep.subr.bf16.mxu0 %v13165_v15  ;;  %v5071_v15 = vld [vmem:[%s15081_s11 + $0xdd8] sm:$0xff] }
 0x530   : > { %11879 = vmatprep.subr.bf16.mxu1 %v13167_v10  ;;  %v5075_v10 = vld [vmem:[%s15081_s11 + $0xdf8] sm:$0xff] }
 0x531   : > { %11543 = vmatmul.mubr.bf16.vlgmr.msra.gmra.mrb[20].mxu0 %v15383_v52  ;;  %v13223_v22 = vcombine.high %v5071_v15, %v5075_v10 }
 0x532   : > { %11871 = vmatmul.mubr.bf16.vlgmr.msra.gmra.mrb[20].mxu1 %v15383_v52  ;;  %11552 = vmatpush1.bf16.msra.mxu0 %v13164_v36  ;;  %v5039_v52 = vld [vmem:[%s15081_s11 + $0xcd8] sm:$0xff]  ;;  %v13212_v36 = vcombine.low %v5062_v59, %v5066_v24  ;;  %v5110_v24 = vld [vmem:[%s15081_s11 + $0xf10] sm:$0xff] }
 0x533   : > { %11583 = vmatprep.mubr.bf16.mxu0 %v15388_v60  ;;  %11880 = vmatpush1.bf16.msra.mxu1 %v13166_v39  ;;  %v13190_v5 = vcombine.low %v5039_v52, %v5043_v3  ;;  %v13214_v39 = vcombine.low %v5063_v38, %v5067_v27  ;;  %v5114_v38 = vld [vmem:[%s15081_s11 + $0xf30] sm:$0xff]  ;;  %v5111_v27 = vld [vmem:[%s15081_s11 + $0xf18] sm:$0xff] }
 0x534   : > { %11911 = vmatprep.mubr.bf16.mxu1 %v15388_v60  ;;  %11553 = vmatprep.subr.bf16.mxu0 %v13173_v42  ;;  %v13191_v60 = vcombine.high %v5039_v52, %v5043_v3  ;;  %v13221_v42 = vcombine.high %v5070_v29, %v5074_v25  ;;  %v5090_v52 = vld [vmem:[%s15081_s11 + $0xe70] sm:$0xff]  ;;  %v5087_v3 = vld [vmem:[%s15081_s11 + $0xe58] sm:$0xff] }
 0x535   : > { %11881 = vmatprep.subr.bf16.mxu1 %v13175_v35  ;;  %v5078_v35 = vld [vmem:[%s15081_s11 + $0xe10] sm:$0xff] }
 0x536   : > { %11554 = vmatpush1.bf16.msra.mxu0 %v13172_v54  ;;  %v5083_v54 = vld [vmem:[%s15081_s11 + $0xe38] sm:$0xff] }
 0x537   : > { %11882 = vmatpush1.bf16.msra.mxu1 %v13174_v6  ;;  %11555 = vmatprep.subr.bf16.mxu0 %v13181_v55  ;;  %v13220_v6 = vcombine.low %v5070_v29, %v5074_v25  ;;  %v13222_v55 = vcombine.low %v5071_v15, %v5075_v10  ;;  %v13231_v61 = vcombine.high %v5079_v51, %v5083_v54  ;;  %v5118_v29 = vld [vmem:[%s15081_s11 + $0xf50] sm:$0xff] }
 0x538   : > { %11883 = vmatprep.subr.bf16.mxu1 %v13183_v8  ;;  %v13229_v8 = vcombine.high %v5078_v35, %v5082_v45  ;;  %v5122_v25 = vld [vmem:[%s15081_s11 + $0xf70] sm:$0xff]  ;;  %v13260_v15 = vcombine.low %v5110_v24, %v5114_v38 }
 0x53a   : > { %11556 = vmatpush1.bf16.msra.mxu0 %v13180_v4  ;;  %v5091_v4 = vld [vmem:[%s15081_s11 + $0xe78] sm:$0xff] }
 0x53b   : > { %11884 = vmatpush1.bf16.msra.mxu1 %v13182_v32  ;;  %11557 = vmatprep.subr.bf16.mxu0 %v13189_v62  ;;  %v13228_v32 = vcombine.low %v5078_v35, %v5082_v45  ;;  %v13230_v62 = vcombine.low %v5079_v51, %v5083_v54  ;;  %v13239_v0 = vcombine.high %v5087_v3, %v5091_v4  ;;  %v5134_v45 = vld [vmem:[%s15081_s11 + $0xfd0] sm:$0xff]  ;;  %v5135_v54 = vld [vmem:[%s15081_s11 + $0xfd8] sm:$0xff] }
 0x53c   : > { %11885 = vmatprep.subr.bf16.mxu1 %v13191_v60  ;;  %v13237_v60 = vcombine.high %v5086_v26, %v5090_v52  ;;  %v5138_v51 = vld [vmem:[%s15081_s11 + $0xff0] sm:$0xff] }
 0x53e   : > { %11558 = vmatpush1.bf16.msra.mxu0 %v13188_v2  ;;  %v5099_v2 = vld [vmem:[%s15081_s11 + $0xeb8] sm:$0xff] }
 0x53f   : > { %11886 = vmatpush1.bf16.msra.mxu1 %v13190_v5  ;;  %11559 = vmatprep.subr.bf16.mxu0 %v13197_v23  ;;  %v13236_v5 = vcombine.low %v5086_v26, %v5090_v52  ;;  %v13238_v23 = vcombine.low %v5087_v3, %v5091_v4  ;;  %v13247_v9 = vcombine.high %v5095_v40, %v5099_v2  ;;  %v5142_v52 = vld [vmem:[%s15081_s11 + $0x1010] sm:$0xff]  ;;  %v5143_v4 = vld [vmem:[%s15081_s11 + $0x1018] sm:$0xff] }
 0x540   : > { %11887 = vmatprep.subr.bf16.mxu1 %v13199_v7  ;;  %v13245_v7 = vcombine.high %v5094_v1, %v5098_v11  ;;  %v5146_v3 = vld [vmem:[%s15081_s11 + $0x1030] sm:$0xff] }
 0x542   : > { %11560 = vmatpush1.bf16.msra.mxu0 %v13196_v46  ;;  %v5107_v46 = vld [vmem:[%s15081_s11 + $0xef8] sm:$0xff] }
 0x543   : > { %11888 = vmatpush1.bf16.msra.mxu1 %v13198_v49  ;;  %11561 = vmatprep.subr.bf16.mxu0 %v13205_v44  ;;  %v13244_v49 = vcombine.low %v5094_v1, %v5098_v11  ;;  %v13246_v44 = vcombine.low %v5095_v40, %v5099_v2  ;;  %v13255_v59 = vcombine.high %v5103_v30, %v5107_v46  ;;  %v5150_v11 = vld [vmem:[%s15081_s11 + $0x1050] sm:$0xff] }
 0x544   : > { %v11093_v63 = vpop.f32.mrb[16].mxu0  ;;  %11889 = vmatprep.subr.bf16.mxu1 %v13207_v17  ;;  %v13253_v17 = vcombine.high %v5102_v28, %v5106_v57  ;;  %v5154_v40 = vld [vmem:[%s15081_s11 + $0x1070] sm:$0xff]  ;;  %v13292_v2 = vcombine.low %v5142_v52, %v5146_v3 }
 0x545   : > { %12111 = vst [vmem:[%s16072_s29] sm:$0xff] %v11093_v63  ;;  %v11421_v19 = vpop.f32.mrb[16].mxu1  ;;  %v11095_v48 = vpop.f32.mrb[17].mxu0  ;;  %v13261_v63 = vcombine.high %v5110_v24, %v5114_v38  ;;  %v5166_v38 = vld [vmem:[%s15081_s11 + $0x10d0] sm:$0xff] }
 0x546   : > { %12113 = vst [vmem:[%s16072_s29 + $0x10] sm:$0xff] %v11421_v19  ;;  %12112 = vst [vmem:[%s16072_s29 + $0x8] sm:$0xff] %v11095_v48  ;;  %v11423_v58 = vpop.f32.mrb[17].mxu1  ;;  %v11097_v21 = vpop.f32.mrb[18].mxu0  ;;  %11562 = vmatpush1.bf16.msra.mxu0 %v13204_v12  ;;  %v5115_v12 = vld [vmem:[%s15081_s11 + $0xf38] sm:$0xff] }
 0x547   : > { %12114 = vst [vmem:[%s16072_s29 + $0x18] sm:$0xff] %v11423_v58  ;;  %v11425_v13 = vpop.f32.mrb[18].mxu1  ;;  %11890 = vmatpush1.bf16.msra.mxu1 %v13206_v31  ;;  %v11098_v56 = vpop.f32.mrb[19].mxu0  ;;  %11563 = vmatprep.subr.bf16.mxu0 %v13213_v18  ;;  %v13252_v31 = vcombine.low %v5102_v28, %v5106_v57  ;;  %v13254_v18 = vcombine.low %v5103_v30, %v5107_v46  ;;  %v5119_v19 = vld [vmem:[%s15081_s11 + $0xf58] sm:$0xff]  ;;  %v5158_v28 = vld [vmem:[%s15081_s11 + $0x1090] sm:$0xff] }
 0x548   : > { %v11426_v43 = vpop.f32.mrb[19].mxu1  ;;  %11891 = vmatprep.subr.bf16.mxu1 %v13215_v34  ;;  %v13263_v34 = vcombine.high %v5111_v27, %v5115_v12  ;;  %v5123_v48 = vld [vmem:[%s15081_s11 + $0xf78] sm:$0xff]  ;;  %v13262_v10 = vcombine.low %v5111_v27, %v5115_v12  ;;  %v13269_v58 = vcombine.high %v5118_v29, %v5122_v25  ;;  %v5130_v13 = vld [vmem:[%s15081_s11 + $0xfb0] sm:$0xff] }
 0x549   : > { %v13271_v21 = vcombine.high %v5119_v19, %v5123_v48  ;;  %v5127_v56 = vld [vmem:[%s15081_s11 + $0xf98] sm:$0xff]  ;;  %v13270_v43 = vcombine.low %v5119_v19, %v5123_v48  ;;  %v5162_v57 = vld [vmem:[%s15081_s11 + $0x10b0] sm:$0xff] }
 0x54a   : > { %11564 = vmatpush1.bf16.msra.mxu0 %v13212_v36  ;;  %v5126_v36 = vld [vmem:[%s15081_s11 + $0xf90] sm:$0xff]  ;;  %v5159_v46 = vld [vmem:[%s15081_s11 + $0x1098] sm:$0xff] }
 0x54b   : > { %11892 = vmatpush1.bf16.msra.mxu1 %v13214_v39  ;;  %11565 = vmatprep.subr.bf16.mxu0 %v13221_v42  ;;  %v5131_v39 = vld [vmem:[%s15081_s11 + $0xfb8] sm:$0xff]  ;;  %v13268_v42 = vcombine.low %v5118_v29, %v5122_v25  ;;  %v5170_v27 = vld [vmem:[%s15081_s11 + $0x10f0] sm:$0xff] }
 0x54c   : > { %11893 = vmatprep.subr.bf16.mxu1 %v13223_v22  ;;  %v13277_v22 = vcombine.high %v5126_v36, %v5130_v13  ;;  %v13279_v35 = vcombine.high %v5127_v56, %v5131_v39  ;;  %v5167_v12 = vld [vmem:[%s15081_s11 + $0x10d8] sm:$0xff]  ;;  %v5178_v29 = vld [vmem:[%s15081_s11 + $0x1130] sm:$0xff]  ;;  %v13316_v48 = vcombine.low %v5166_v38, %v5170_v27 }
 0x54d   : > { %v5175_v25 = vld [vmem:[%s15081_s11 + $0x1118] sm:$0xff] }
 0x54e   : > { %11566 = vmatpush1.bf16.msra.mxu0 %v13220_v6  ;;  %v5139_v6 = vld [vmem:[%s15081_s11 + $0xff8] sm:$0xff] }
 0x54f   : > { %11894 = vmatpush1.bf16.msra.mxu1 %v13222_v55  ;;  %11567 = vmatprep.subr.bf16.mxu0 %v13229_v8  ;;  %v13276_v55 = vcombine.low %v5126_v36, %v5130_v13  ;;  %v13278_v8 = vcombine.low %v5127_v56, %v5131_v39  ;;  %v13287_v26 = vcombine.high %v5135_v54, %v5139_v6  ;;  %v5179_v19 = vld [vmem:[%s15081_s11 + $0x1138] sm:$0xff]  ;;  %v5186_v36 = vld [vmem:[%s15081_s11 + $0x1170] sm:$0xff] }
 0x550   : > { %11895 = vmatprep.subr.bf16.mxu1 %v13231_v61  ;;  %v13285_v61 = vcombine.high %v5134_v45, %v5138_v51  ;;  %v5183_v13 = vld [vmem:[%s15081_s11 + $0x1158] sm:$0xff] }
 0x551   : > { %v5187_v56 = vld [vmem:[%s15081_s11 + $0x1178] sm:$0xff] }
 0x552   : > { %11568 = vmatpush1.bf16.msra.mxu0 %v13228_v32  ;;  %v5147_v32 = vld [vmem:[%s15081_s11 + $0x1038] sm:$0xff] }
 0x553   : > { %11896 = vmatpush1.bf16.msra.mxu1 %v13230_v62  ;;  %11569 = vmatprep.subr.bf16.mxu0 %v13237_v60  ;;  %v13284_v62 = vcombine.low %v5134_v45, %v5138_v51  ;;  %v13286_v60 = vcombine.low %v5135_v54, %v5139_v6  ;;  %v13295_v1 = vcombine.high %v5143_v4, %v5147_v32  ;;  %v5194_v45 = vld [vmem:[%s15081_s11 + $0x11b0] sm:$0xff]  ;;  %v5191_v51 = vld [vmem:[%s15081_s11 + $0x1198] sm:$0xff] }
 0x554   : > { %11897 = vmatprep.subr.bf16.mxu1 %v13239_v0  ;;  %v13293_v0 = vcombine.high %v5142_v52, %v5146_v3  ;;  %v5195_v54 = vld [vmem:[%s15081_s11 + $0x11b8] sm:$0xff]  ;;  %v5202_v52 = vld [vmem:[%s15081_s11 + $0x11f0] sm:$0xff] }
 0x555   : > { %v5199_v3 = vld [vmem:[%s15081_s11 + $0x11d8] sm:$0xff] }
 0x556   : > { %11570 = vmatpush1.bf16.msra.mxu0 %v13236_v5  ;;  %v5151_v5 = vld [vmem:[%s15081_s11 + $0x1058] sm:$0xff] }
 0x557   : > { %11898 = vmatpush1.bf16.msra.mxu1 %v13238_v23  ;;  %11571 = vmatprep.subr.bf16.mxu0 %v13245_v7  ;;  %v5155_v23 = vld [vmem:[%s15081_s11 + $0x1078] sm:$0xff]  ;;  %v13294_v7 = vcombine.low %v5143_v4, %v5147_v32 }
 0x558   : > { %11899 = vmatprep.subr.bf16.mxu1 %v13247_v9  ;;  %v13301_v9 = vcombine.high %v5150_v11, %v5154_v40  ;;  %v13303_v30 = vcombine.high %v5151_v5, %v5155_v23  ;;  %v5203_v4 = vld [vmem:[%s15081_s11 + $0x11f8] sm:$0xff] }
 0x55a   : > { %11572 = vmatpush1.bf16.msra.mxu0 %v13244_v49  ;;  %v5163_v49 = vld [vmem:[%s15081_s11 + $0x10b8] sm:$0xff] }
 0x55b   : > { %11900 = vmatpush1.bf16.msra.mxu1 %v13246_v44  ;;  %11573 = vmatprep.subr.bf16.mxu0 %v13253_v17  ;;  %v13300_v44 = vcombine.low %v5150_v11, %v5154_v40  ;;  %v13302_v17 = vcombine.low %v5151_v5, %v5155_v23  ;;  %v13311_v24 = vcombine.high %v5159_v46, %v5163_v49  ;;  %v5210_v11 = vld [vmem:[%s15081_s11 + $0x1230] sm:$0xff]  ;;  %v5207_v40 = vld [vmem:[%s15081_s11 + $0x1218] sm:$0xff] }
 0x55c   : > { %11901 = vmatprep.subr.bf16.mxu1 %v13255_v59  ;;  %v13309_v59 = vcombine.high %v5158_v28, %v5162_v57  ;;  %v13350_v23 = vcombine.low %v5199_v3, %v5203_v4 }
 0x55e   : > { %11574 = vmatpush1.bf16.msra.mxu0 %v13252_v31  ;;  %v13308_v31 = vcombine.low %v5158_v28, %v5162_v57  ;;  %v5214_v28 = vld [vmem:[%s15081_s11 + $0x1250] sm:$0xff] }
 0x55f   : > { %11902 = vmatpush1.bf16.msra.mxu1 %v13254_v18  ;;  %11575 = vmatprep.subr.bf16.mxu0 %v13261_v63  ;;  %v13310_v18 = vcombine.low %v5159_v46, %v5163_v49  ;;  %v13317_v63 = vcombine.high %v5166_v38, %v5170_v27  ;;  %v5218_v57 = vld [vmem:[%s15081_s11 + $0x1270] sm:$0xff]  ;;  %v5219_v46 = vld [vmem:[%s15081_s11 + $0x1278] sm:$0xff] }
 0x560   : > { %11903 = vmatprep.subr.bf16.mxu1 %v13263_v34  ;;  %v5174_v34 = vld [vmem:[%s15081_s11 + $0x1110] sm:$0xff]  ;;  %v5223_v27 = vld [vmem:[%s15081_s11 + $0x1298] sm:$0xff] }
 0x561   : > { %v13324_v39 = vcombine.low %v5174_v34, %v5178_v29  ;;  %v5226_v38 = vld [vmem:[%s15081_s11 + $0x12b0] sm:$0xff] }
 0x562   : > { %11576 = vmatpush1.bf16.msra.mxu0 %v13260_v15 }
 0x563   : > { %11904 = vmatpush1.bf16.msra.mxu1 %v13262_v10  ;;  %11577 = vmatprep.subr.bf16.mxu0 %v13269_v58  ;;  %v13325_v10 = vcombine.high %v5174_v34, %v5178_v29  ;;  %v13327_v58 = vcombine.high %v5175_v25, %v5179_v19  ;;  %v5234_v34 = vld [vmem:[%s15081_s11 + $0x12f0] sm:$0xff]  ;;  %v5231_v29 = vld [vmem:[%s15081_s11 + $0x12d8] sm:$0xff] }
 0x564   : > { %11905 = vmatprep.subr.bf16.mxu1 %v13271_v21  ;;  %v5182_v21 = vld [vmem:[%s15081_s11 + $0x1150] sm:$0xff] }
 0x565   : > { %v13332_v6 = vcombine.low %v5182_v21, %v5186_v36 }
 0x566   : > { %11578 = vmatpush1.bf16.msra.mxu0 %v13268_v42  ;;  %v13326_v42 = vcombine.low %v5175_v25, %v5179_v19  ;;  %v5235_v25 = vld [vmem:[%s15081_s11 + $0x12f8] sm:$0xff] }
 0x567   : > { %11906 = vmatpush1.bf16.msra.mxu1 %v13270_v43  ;;  %11579 = vmatprep.subr.bf16.mxu0 %v13277_v22  ;;  %v13333_v43 = vcombine.high %v5182_v21, %v5186_v36  ;;  %v13335_v22 = vcombine.high %v5183_v13, %v5187_v56  ;;  %v5242_v21 = vld [vmem:[%s15081_s11 + $0x1330] sm:$0xff]  ;;  %v5239_v36 = vld [vmem:[%s15081_s11 + $0x1318] sm:$0xff] }
 0x568   : > { %11907 = vmatprep.subr.bf16.mxu1 %v13279_v35  ;;  %v5190_v35 = vld [vmem:[%s15081_s11 + $0x1190] sm:$0xff] }
 0x569   : > { %v13340_v32 = vcombine.low %v5190_v35, %v5194_v45 }
 0x56a   : > { %11580 = vmatpush1.bf16.msra.mxu0 %v13276_v55  ;;  %v13334_v55 = vcombine.low %v5183_v13, %v5187_v56  ;;  %v5243_v13 = vld [vmem:[%s15081_s11 + $0x1338] sm:$0xff] }
 0x56b   : > { %11908 = vmatpush1.bf16.msra.mxu1 %v13278_v8  ;;  %11581 = vmatprep.subr.bf16.mxu0 %v13285_v61  ;;  %v13341_v8 = vcombine.high %v5190_v35, %v5194_v45  ;;  %v13343_v61 = vcombine.high %v5191_v51, %v5195_v54  ;;  %v5250_v35 = vld [vmem:[%s15081_s11 + $0x1370] sm:$0xff]  ;;  %v5247_v45 = vld [vmem:[%s15081_s11 + $0x1358] sm:$0xff] }
 0x56c   : > { %11909 = vmatprep.subr.bf16.mxu1 %v13287_v26  ;;  %v5198_v26 = vld [vmem:[%s15081_s11 + $0x11d0] sm:$0xff] }
 0x56d   : > { %v13348_v5 = vcombine.low %v5198_v26, %v5202_v52 }
 0x56e   : > { %11582 = vmatpush1.bf16.msra.mxu0 %v13284_v62  ;;  %v13342_v62 = vcombine.low %v5191_v51, %v5195_v54  ;;  %v5251_v51 = vld [vmem:[%s15081_s11 + $0x1378] sm:$0xff] }
 0x56f   : > { %11910 = vmatpush1.bf16.msra.mxu1 %v13286_v60  ;;  %11592 = vmatprep.subr.bf16.mxu0 %v13293_v0  ;;  %v13349_v60 = vcombine.high %v5198_v26, %v5202_v52  ;;  %v13351_v0 = vcombine.high %v5199_v3, %v5203_v4  ;;  %v5258_v26 = vld [vmem:[%s15081_s11 + $0x13b0] sm:$0xff]  ;;  %v5255_v52 = vld [vmem:[%s15081_s11 + $0x1398] sm:$0xff] }
 0x570   : > { %11920 = vmatprep.subr.bf16.mxu1 %v13295_v1  ;;  %v5206_v1 = vld [vmem:[%s15081_s11 + $0x1210] sm:$0xff]  ;;  %v5259_v3 = vld [vmem:[%s15081_s11 + $0x13b8] sm:$0xff] }
 0x571   : > { %11584 = vmatmul.mubr.bf16.vlgmr.msra.gmra.mrb[20].mxu0 %v15502_v41  ;;  %v13356_v49 = vcombine.low %v5206_v1, %v5210_v11 }
 0x572   : > { %11912 = vmatmul.mubr.bf16.vlgmr.msra.gmra.mrb[20].mxu1 %v15502_v41  ;;  %11593 = vmatpush1.bf16.msra.mxu0 %v13292_v2  ;;  %v5171_v41 = vld [vmem:[%s15081_s11 + $0x10f8] sm:$0xff] }
 0x573   : > { %11624 = vmatprep.mubr.bf16.mxu0 %v15507_v47  ;;  %11921 = vmatpush1.bf16.msra.mxu1 %v13294_v7  ;;  %v13318_v15 = vcombine.low %v5167_v12, %v5171_v41  ;;  %v5211_v2 = vld [vmem:[%s15081_s11 + $0x1238] sm:$0xff]  ;;  %v13357_v7 = vcombine.high %v5206_v1, %v5210_v11  ;;  %v5266_v1 = vld [vmem:[%s15081_s11 + $0x13f0] sm:$0xff] }
 0x574   : > { %11952 = vmatprep.mubr.bf16.mxu1 %v15507_v47  ;;  %11594 = vmatprep.subr.bf16.mxu0 %v13301_v9  ;;  %v13319_v47 = vcombine.high %v5167_v12, %v5171_v41  ;;  %v13359_v9 = vcombine.high %v5207_v40, %v5211_v2  ;;  %v5227_v12 = vld [vmem:[%s15081_s11 + $0x12b8] sm:$0xff]  ;;  %v13364_v41 = vcombine.low %v5214_v28, %v5218_v57 }
 0x575   : > { %11922 = vmatprep.subr.bf16.mxu1 %v13303_v30  ;;  %v5215_v30 = vld [vmem:[%s15081_s11 + $0x1258] sm:$0xff] }
 0x576   : > { %11595 = vmatpush1.bf16.msra.mxu0 %v13300_v44  ;;  %v13358_v44 = vcombine.low %v5207_v40, %v5211_v2  ;;  %v5263_v11 = vld [vmem:[%s15081_s11 + $0x13d8] sm:$0xff] }
 0x577   : > { %11923 = vmatpush1.bf16.msra.mxu1 %v13302_v17  ;;  %11596 = vmatprep.subr.bf16.mxu0 %v13309_v59  ;;  %v13365_v17 = vcombine.high %v5214_v28, %v5218_v57  ;;  %v13367_v59 = vcombine.high %v5215_v30, %v5219_v46  ;;  %v5267_v40 = vld [vmem:[%s15081_s11 + $0x13f8] sm:$0xff]  ;;  %v5274_v28 = vld [vmem:[%s15081_s11 + $0x1430] sm:$0xff] }
 0x578   : > { %11924 = vmatprep.subr.bf16.mxu1 %v13311_v24  ;;  %v5222_v24 = vld [vmem:[%s15081_s11 + $0x1290] sm:$0xff]  ;;  %v5271_v57 = vld [vmem:[%s15081_s11 + $0x1418] sm:$0xff] }
 0x579   : > { %v13372_v19 = vcombine.low %v5222_v24, %v5226_v38 }
 0x57a   : > { %11597 = vmatpush1.bf16.msra.mxu0 %v13308_v31  ;;  %v13366_v31 = vcombine.low %v5215_v30, %v5219_v46  ;;  %v5275_v30 = vld [vmem:[%s15081_s11 + $0x1438] sm:$0xff] }
 0x57b   : > { %11925 = vmatpush1.bf16.msra.mxu1 %v13310_v18  ;;  %11598 = vmatprep.subr.bf16.mxu0 %v13317_v63  ;;  %v13373_v18 = vcombine.high %v5222_v24, %v5226_v38  ;;  %v13375_v63 = vcombine.high %v5223_v27, %v5227_v12  ;;  %v5282_v24 = vld [vmem:[%s15081_s11 + $0x1470] sm:$0xff] }
 0x57c   : > { %11926 = vmatprep.subr.bf16.mxu1 %v13319_v47  ;;  %v5230_v47 = vld [vmem:[%s15081_s11 + $0x12d0] sm:$0xff] }
 0x57d   : > { %v13380_v56 = vcombine.low %v5230_v47, %v5234_v34 }
 0x57e   : > { %11599 = vmatpush1.bf16.msra.mxu0 %v13316_v48  ;;  %v13374_v48 = vcombine.low %v5223_v27, %v5227_v12  ;;  %v5279_v27 = vld [vmem:[%s15081_s11 + $0x1458] sm:$0xff] }
 0x57f   : > { %11927 = vmatpush1.bf16.msra.mxu1 %v13318_v15  ;;  %11600 = vmatprep.subr.bf16.mxu0 %v13325_v10  ;;  %v13381_v15 = vcombine.high %v5230_v47, %v5234_v34  ;;  %v13383_v10 = vcombine.high %v5231_v29, %v5235_v25  ;;  %v5283_v12 = vld [vmem:[%s15081_s11 + $0x1478] sm:$0xff] }
 0x580   : > { %11928 = vmatprep.subr.bf16.mxu1 %v13327_v58  ;;  %v5238_v58 = vld [vmem:[%s15081_s11 + $0x1310] sm:$0xff]  ;;  %v13431_v47 = vcombine.high %v5279_v27, %v5283_v12  ;;  %v5287_v34 = vld [vmem:[%s15081_s11 + $0x1498] sm:$0xff] }
 0x581   : > { %v13388_v54 = vcombine.low %v5238_v58, %v5242_v21 }
 0x582   : > { %11601 = vmatpush1.bf16.msra.mxu0 %v13324_v39  ;;  %v13382_v39 = vcombine.low %v5231_v29, %v5235_v25  ;;  %v5291_v29 = vld [vmem:[%s15081_s11 + $0x14b8] sm:$0xff] }
 0x583   : > { %11929 = vmatpush1.bf16.msra.mxu1 %v13326_v42  ;;  %11602 = vmatprep.subr.bf16.mxu0 %v13333_v43  ;;  %v13389_v42 = vcombine.high %v5238_v58, %v5242_v21  ;;  %v13391_v43 = vcombine.high %v5239_v36, %v5243_v13  ;;  %v5298_v58 = vld [vmem:[%s15081_s11 + $0x14f0] sm:$0xff]  ;;  %v5295_v21 = vld [vmem:[%s15081_s11 + $0x14d8] sm:$0xff] }
 0x584   : > { %11930 = vmatprep.subr.bf16.mxu1 %v13335_v22  ;;  %v5246_v22 = vld [vmem:[%s15081_s11 + $0x1350] sm:$0xff] }
 0x585   : > { %v13396_v4 = vcombine.low %v5246_v22, %v5250_v35 }
 0x586   : > { %11603 = vmatpush1.bf16.msra.mxu0 %v13332_v6  ;;  %v13390_v6 = vcombine.low %v5239_v36, %v5243_v13  ;;  %v13438_v13 = vcombine.low %v5287_v34, %v5291_v29 }
 0x587   : > { %11931 = vmatpush1.bf16.msra.mxu1 %v13334_v55  ;;  %11604 = vmatprep.subr.bf16.mxu0 %v13341_v8  ;;  %v13397_v55 = vcombine.high %v5246_v22, %v5250_v35  ;;  %v13399_v8 = vcombine.high %v5247_v45, %v5251_v51  ;;  %v5307_v22 = vld [vmem:[%s15081_s11 + $0x1538] sm:$0xff] }
 0x588   : > { %11932 = vmatprep.subr.bf16.mxu1 %v13343_v61  ;;  %v5254_v61 = vld [vmem:[%s15081_s11 + $0x1390] sm:$0xff] }
 0x589   : > { %v13404_v2 = vcombine.low %v5254_v61, %v5258_v26 }
 0x58a   : > { %11605 = vmatpush1.bf16.msra.mxu0 %v13340_v32  ;;  %v13398_v32 = vcombine.low %v5247_v45, %v5251_v51 }
 0x58b   : > { %11933 = vmatpush1.bf16.msra.mxu1 %v13342_v62  ;;  %11606 = vmatprep.subr.bf16.mxu0 %v13349_v60  ;;  %v13405_v62 = vcombine.high %v5254_v61, %v5258_v26  ;;  %v13407_v60 = vcombine.high %v5255_v52, %v5259_v3  ;;  %v5315_v61 = vld [vmem:[%s15081_s11 + $0x1578] sm:$0xff] }
 0x58c   : > { %11934 = vmatprep.subr.bf16.mxu1 %v13351_v0  ;;  %v5262_v0 = vld [vmem:[%s15081_s11 + $0x13d0] sm:$0xff] }
 0x58d   : > { %v13412_v46 = vcombine.low %v5262_v0, %v5266_v1 }
 0x58e   : > { %11607 = vmatpush1.bf16.msra.mxu0 %v13348_v5  ;;  %v13406_v5 = vcombine.low %v5255_v52, %v5259_v3 }
 0x58f   : > { %11935 = vmatpush1.bf16.msra.mxu1 %v13350_v23  ;;  %11608 = vmatprep.subr.bf16.mxu0 %v13357_v7  ;;  %v13413_v23 = vcombine.high %v5262_v0, %v5266_v1  ;;  %v13415_v7 = vcombine.high %v5263_v11, %v5267_v40  ;;  %v5323_v0 = vld [vmem:[%s15081_s11 + $0x15b8] sm:$0xff] }
 0x590   : > { %11936 = vmatprep.subr.bf16.mxu1 %v13359_v9  ;;  %v5270_v9 = vld [vmem:[%s15081_s11 + $0x1410] sm:$0xff] }
 0x591   : > { %v13420_v38 = vcombine.low %v5270_v9, %v5274_v28 }
 0x592   : > { %11609 = vmatpush1.bf16.msra.mxu0 %v13356_v49  ;;  %v13414_v49 = vcombine.low %v5263_v11, %v5267_v40 }
 0x593   : > { %11937 = vmatpush1.bf16.msra.mxu1 %v13358_v44  ;;  %11610 = vmatprep.subr.bf16.mxu0 %v13365_v17  ;;  %v13421_v44 = vcombine.high %v5270_v9, %v5274_v28  ;;  %v13423_v17 = vcombine.high %v5271_v57, %v5275_v30  ;;  %v5331_v9 = vld [vmem:[%s15081_s11 + $0x15f8] sm:$0xff] }
 0x594   : > { %11938 = vmatprep.subr.bf16.mxu1 %v13367_v59  ;;  %v5278_v59 = vld [vmem:[%s15081_s11 + $0x1450] sm:$0xff] }
 0x595   : > { %v13428_v25 = vcombine.low %v5278_v59, %v5282_v24 }
 0x596   : > { %11611 = vmatpush1.bf16.msra.mxu0 %v13364_v41  ;;  %v13422_v41 = vcombine.low %v5271_v57, %v5275_v30 }
 0x597   : > { %11939 = vmatpush1.bf16.msra.mxu1 %v13366_v31  ;;  %11612 = vmatprep.subr.bf16.mxu0 %v13373_v18  ;;  %v13429_v31 = vcombine.high %v5278_v59, %v5282_v24  ;;  %v5286_v18 = vld [vmem:[%s15081_s11 + $0x1490] sm:$0xff]  ;;  %v5339_v59 = vld [vmem:[%s15081_s11 + $0x1638] sm:$0xff] }
 0x598   : > { %11940 = vmatprep.subr.bf16.mxu1 %v13375_v63  ;;  %v5290_v63 = vld [vmem:[%s15081_s11 + $0x14b0] sm:$0xff] }
 0x599   : > { %v13436_v36 = vcombine.low %v5286_v18, %v5290_v63 }
 0x59a   : > { %11613 = vmatpush1.bf16.msra.mxu0 %v13372_v19  ;;  %v13430_v19 = vcombine.low %v5279_v27, %v5283_v12 }
 0x59b   : > { %11941 = vmatpush1.bf16.msra.mxu1 %v13374_v48  ;;  %11614 = vmatprep.subr.bf16.mxu0 %v13381_v15  ;;  %v13437_v48 = vcombine.high %v5286_v18, %v5290_v63  ;;  %v13439_v15 = vcombine.high %v5287_v34, %v5291_v29  ;;  %v5343_v18 = vld [vmem:[%s15081_s11 + $0x1658] sm:$0xff] }
 0x59c   : > { %11942 = vmatprep.subr.bf16.mxu1 %v13383_v10  ;;  %v5294_v10 = vld [vmem:[%s15081_s11 + $0x14d0] sm:$0xff]  ;;  %v5347_v63 = vld [vmem:[%s15081_s11 + $0x1678] sm:$0xff] }
 0x59d   : > { %v13444_v35 = vcombine.low %v5294_v10, %v5298_v58 }
 0x59e   : > { %11615 = vmatpush1.bf16.msra.mxu0 %v13380_v56  ;;  %v13445_v56 = vcombine.high %v5294_v10, %v5298_v58  ;;  %v5355_v10 = vld [vmem:[%s15081_s11 + $0x16b8] sm:$0xff] }
 0x59f   : > { %11943 = vmatpush1.bf16.msra.mxu1 %v13382_v39  ;;  %11616 = vmatprep.subr.bf16.mxu0 %v13389_v42  ;;  %v5302_v39 = vld [vmem:[%s15081_s11 + $0x1510] sm:$0xff] }
 0x5a0   : > { %11944 = vmatprep.subr.bf16.mxu1 %v13391_v43  ;;  %v5306_v42 = vld [vmem:[%s15081_s11 + $0x1530] sm:$0xff]  ;;  %v5303_v43 = vld [vmem:[%s15081_s11 + $0x1518] sm:$0xff] }
 0x5a1   : > { %v13453_v51 = vcombine.high %v5302_v39, %v5306_v42  ;;  %v13452_v26 = vcombine.low %v5302_v39, %v5306_v42  ;;  %v13454_v52 = vcombine.low %v5303_v43, %v5307_v22  ;;  %v5363_v39 = vld [vmem:[%s15081_s11 + $0x16f8] sm:$0xff] }
 0x5a2   : > { %11617 = vmatpush1.bf16.msra.mxu0 %v13388_v54  ;;  %v13455_v54 = vcombine.high %v5303_v43, %v5307_v22 }
 0x5a3   : > { %11945 = vmatpush1.bf16.msra.mxu1 %v13390_v6  ;;  %11618 = vmatprep.subr.bf16.mxu0 %v13397_v55  ;;  %v5310_v6 = vld [vmem:[%s15081_s11 + $0x1550] sm:$0xff] }
 0x5a4   : > { %11946 = vmatprep.subr.bf16.mxu1 %v13399_v8  ;;  %v5314_v55 = vld [vmem:[%s15081_s11 + $0x1570] sm:$0xff]  ;;  %v5311_v8 = vld [vmem:[%s15081_s11 + $0x1558] sm:$0xff] }
 0x5a5   : > { %v13461_v3 = vcombine.high %v5310_v6, %v5314_v55  ;;  %v13460_v1 = vcombine.low %v5310_v6, %v5314_v55  ;;  %v13462_v11 = vcombine.low %v5311_v8, %v5315_v61  ;;  %v5371_v6 = vld [vmem:[%s15081_s11 + $0x1738] sm:$0xff] }
 0x5a6   : > { %11619 = vmatpush1.bf16.msra.mxu0 %v13396_v4  ;;  %v13463_v4 = vcombine.high %v5311_v8, %v5315_v61 }
 0x5a7   : > { %11947 = vmatpush1.bf16.msra.mxu1 %v13398_v32  ;;  %11620 = vmatprep.subr.bf16.mxu0 %v13405_v62  ;;  %v5318_v32 = vld [vmem:[%s15081_s11 + $0x1590] sm:$0xff] }
 0x5a8   : > { %11948 = vmatprep.subr.bf16.mxu1 %v13407_v60  ;;  %v5322_v62 = vld [vmem:[%s15081_s11 + $0x15b0] sm:$0xff]  ;;  %v5319_v60 = vld [vmem:[%s15081_s11 + $0x1598] sm:$0xff] }
 0x5a9   : > { %v13469_v40 = vcombine.high %v5318_v32, %v5322_v62  ;;  %v13468_v28 = vcombine.low %v5318_v32, %v5322_v62  ;;  %v13470_v57 = vcombine.low %v5319_v60, %v5323_v0  ;;  %v5379_v32 = vld [vmem:[%s15081_s11 + $0x1778] sm:$0xff] }
 0x5aa   : > { %11621 = vmatpush1.bf16.msra.mxu0 %v13404_v2  ;;  %v13471_v2 = vcombine.high %v5319_v60, %v5323_v0 }
 0x5ab   : > { %11949 = vmatpush1.bf16.msra.mxu1 %v13406_v5  ;;  %11622 = vmatprep.subr.bf16.mxu0 %v13413_v23  ;;  %v5326_v5 = vld [vmem:[%s15081_s11 + $0x15d0] sm:$0xff] }
 0x5ac   : > { %11950 = vmatprep.subr.bf16.mxu1 %v13415_v7  ;;  %v5330_v23 = vld [vmem:[%s15081_s11 + $0x15f0] sm:$0xff]  ;;  %v5327_v7 = vld [vmem:[%s15081_s11 + $0x15d8] sm:$0xff] }
 0x5ad   : > { %v13477_v30 = vcombine.high %v5326_v5, %v5330_v23  ;;  %v13476_v24 = vcombine.low %v5326_v5, %v5330_v23  ;;  %v5387_v5 = vld [vmem:[%s15081_s11 + $0x17b8] sm:$0xff] }
 0x5ae   : > { %11623 = vmatpush1.bf16.msra.mxu0 %v13412_v46  ;;  %v13479_v46 = vcombine.high %v5327_v7, %v5331_v9 }
 0x5af   : > { %11951 = vmatpush1.bf16.msra.mxu1 %v13414_v49  ;;  %11633 = vmatprep.subr.bf16.mxu0 %v13421_v44  ;;  %v5334_v49 = vld [vmem:[%s15081_s11 + $0x1610] sm:$0xff] }
 0x5b0   : > { %11961 = vmatprep.subr.bf16.mxu1 %v13423_v17  ;;  %v5338_v44 = vld [vmem:[%s15081_s11 + $0x1630] sm:$0xff]  ;;  %v5335_v17 = vld [vmem:[%s15081_s11 + $0x1618] sm:$0xff] }
 0x5b1   : > { %11625 = vmatmul.mubr.bf16.vlgmr.msra.gmra.mrb[20].mxu0 %v15589_v37  ;;  %v13485_v27 = vcombine.high %v5334_v49, %v5338_v44  ;;  %v13487_v12 = vcombine.high %v5335_v17, %v5339_v59  ;;  %v13486_v34 = vcombine.low %v5335_v17, %v5339_v59 }
 0x5b2   : > { %11953 = vmatmul.mubr.bf16.vlgmr.msra.gmra.mrb[20].mxu1 %v15589_v37  ;;  %11634 = vmatpush1.bf16.msra.mxu0 %v13420_v38  ;;  %v5299_v37 = vld [vmem:[%s15081_s11 + $0x14f8] sm:$0xff]  ;;  %v13478_v38 = vcombine.low %v5327_v7, %v5331_v9 }
 0x5b3   : > { %11665 = vmatprep.mubr.bf16.mxu0 %v15594_v53  ;;  %11962 = vmatpush1.bf16.msra.mxu1 %v13422_v41  ;;  %v13446_v45 = vcombine.low %v5295_v21, %v5299_v37  ;;  %v5342_v41 = vld [vmem:[%s15081_s11 + $0x1650] sm:$0xff] }
 0x5b4   : > { %11993 = vmatprep.mubr.bf16.mxu1 %v15594_v53  ;;  %11635 = vmatprep.subr.bf16.mxu0 %v13429_v31  ;;  %v13447_v53 = vcombine.high %v5295_v21, %v5299_v37  ;;  %v5346_v31 = vld [vmem:[%s15081_s11 + $0x1670] sm:$0xff]  ;;  %v13494_v21 = vcombine.low %v5343_v18, %v5347_v63 }
 0x5b5   : > { %11963 = vmatprep.subr.bf16.mxu1 %v13431_v47  ;;  %v13484_v47 = vcombine.low %v5334_v49, %v5338_v44  ;;  %v13493_v29 = vcombine.high %v5342_v41, %v5346_v31  ;;  %v13492_v58 = vcombine.low %v5342_v41, %v5346_v31  ;;  %v5395_v49 = vld [vmem:[%s15081_s11 + $0x17f8] sm:$0xff] }
 0x5b6   : > { %11636 = vmatpush1.bf16.msra.mxu0 %v13428_v25  ;;  %v13495_v25 = vcombine.high %v5343_v18, %v5347_v63  ;;  %v5403_v41 = vld [vmem:[%s15081_s11 + $0x1838] sm:$0xff] }
 0x5b7   : > { %11964 = vmatpush1.bf16.msra.mxu1 %v13430_v19  ;;  %11637 = vmatprep.subr.bf16.mxu0 %v13437_v48  ;;  %v5350_v19 = vld [vmem:[%s15081_s11 + $0x1690] sm:$0xff] }
 0x5b8   : > { %11965 = vmatprep.subr.bf16.mxu1 %v13439_v15  ;;  %v5354_v48 = vld [vmem:[%s15081_s11 + $0x16b0] sm:$0xff]  ;;  %v5351_v15 = vld [vmem:[%s15081_s11 + $0x1698] sm:$0xff] }
 0x5b9   : > { %v13501_v37 = vcombine.high %v5350_v19, %v5354_v48  ;;  %v13500_v42 = vcombine.low %v5350_v19, %v5354_v48  ;;  %v13502_v43 = vcombine.low %v5351_v15, %v5355_v10  ;;  %v5407_v19 = vld [vmem:[%s15081_s11 + $0x1858] sm:$0xff] }
 0x5ba   : > { %11638 = vmatpush1.bf16.msra.mxu0 %v13436_v36  ;;  %v13503_v36 = vcombine.high %v5351_v15, %v5355_v10  ;;  %v5411_v48 = vld [vmem:[%s15081_s11 + $0x1878] sm:$0xff] }
 0x5bb   : > { %11966 = vmatpush1.bf16.msra.mxu1 %v13438_v13  ;;  %11639 = vmatprep.subr.bf16.mxu0 %v13445_v56  ;;  %v5358_v13 = vld [vmem:[%s15081_s11 + $0x16d0] sm:$0xff] }
 0x5bc   : > { %11967 = vmatprep.subr.bf16.mxu1 %v13447_v53  ;;  %v5362_v56 = vld [vmem:[%s15081_s11 + $0x16f0] sm:$0xff]  ;;  %v5359_v53 = vld [vmem:[%s15081_s11 + $0x16d8] sm:$0xff] }
 0x5bd   : > { %v13509_v22 = vcombine.high %v5358_v13, %v5362_v56  ;;  %v13508_v55 = vcombine.low %v5358_v13, %v5362_v56  ;;  %v13510_v8 = vcombine.low %v5359_v53, %v5363_v39  ;;  %v5419_v13 = vld [vmem:[%s15081_s11 + $0x18b8] sm:$0xff] }
 0x5be   : > { %11640 = vmatpush1.bf16.msra.mxu0 %v13444_v35  ;;  %v13511_v35 = vcombine.high %v5359_v53, %v5363_v39  ;;  %v13558_v53 = vcombine.low %v5407_v19, %v5411_v48 }
 0x5bf   : > { %11968 = vmatpush1.bf16.msra.mxu1 %v13446_v45  ;;  %11641 = vmatprep.subr.bf16.mxu0 %v13453_v51  ;;  %v5366_v45 = vld [vmem:[%s15081_s11 + $0x1710] sm:$0xff] }
 0x5c0   : > { %11969 = vmatprep.subr.bf16.mxu1 %v13455_v54  ;;  %v5370_v51 = vld [vmem:[%s15081_s11 + $0x1730] sm:$0xff]  ;;  %v5367_v54 = vld [vmem:[%s15081_s11 + $0x1718] sm:$0xff] }
 0x5c1   : > { %v13517_v61 = vcombine.high %v5366_v45, %v5370_v51  ;;  %v13516_v62 = vcombine.low %v5366_v45, %v5370_v51  ;;  %v13518_v60 = vcombine.low %v5367_v54, %v5371_v6 }
 0x5c2   : > { %11642 = vmatpush1.bf16.msra.mxu0 %v13452_v26  ;;  %v13519_v26 = vcombine.high %v5367_v54, %v5371_v6  ;;  %v5430_v6 = vld [vmem:[%s15081_s11 + $0x1910] sm:$0xff] }
 0x5c3   : > { %11970 = vmatpush1.bf16.msra.mxu1 %v13454_v52  ;;  %11643 = vmatprep.subr.bf16.mxu0 %v13461_v3  ;;  %v5374_v52 = vld [vmem:[%s15081_s11 + $0x1750] sm:$0xff] }
 0x5c4   : > { %11971 = vmatprep.subr.bf16.mxu1 %v13463_v4  ;;  %v5378_v3 = vld [vmem:[%s15081_s11 + $0x1770] sm:$0xff]  ;;  %v5375_v4 = vld [vmem:[%s15081_s11 + $0x1758] sm:$0xff] }
 0x5c5   : > { %v13525_v0 = vcombine.high %v5374_v52, %v5378_v3  ;;  %v13524_v23 = vcombine.low %v5374_v52, %v5378_v3  ;;  %v13526_v7 = vcombine.low %v5375_v4, %v5379_v32 }
 0x5c6   : > { %11644 = vmatpush1.bf16.msra.mxu0 %v13460_v1  ;;  %v13527_v1 = vcombine.high %v5375_v4, %v5379_v32  ;;  %v5438_v32 = vld [vmem:[%s15081_s11 + $0x1950] sm:$0xff] }
 0x5c7   : > { %11972 = vmatpush1.bf16.msra.mxu1 %v13462_v11  ;;  %11645 = vmatprep.subr.bf16.mxu0 %v13469_v40  ;;  %v5382_v11 = vld [vmem:[%s15081_s11 + $0x1790] sm:$0xff] }
 0x5c8   : > { %11973 = vmatprep.subr.bf16.mxu1 %v13471_v2  ;;  %v5386_v40 = vld [vmem:[%s15081_s11 + $0x17b0] sm:$0xff]  ;;  %v5383_v2 = vld [vmem:[%s15081_s11 + $0x1798] sm:$0xff] }
 0x5c9   : > { %v13533_v9 = vcombine.high %v5382_v11, %v5386_v40  ;;  %v13532_v44 = vcombine.low %v5382_v11, %v5386_v40  ;;  %v13534_v17 = vcombine.low %v5383_v2, %v5387_v5 }
 0x5ca   : > { %11646 = vmatpush1.bf16.msra.mxu0 %v13468_v28  ;;  %v13535_v28 = vcombine.high %v5383_v2, %v5387_v5  ;;  %v5446_v5 = vld [vmem:[%s15081_s11 + $0x1990] sm:$0xff] }
 0x5cb   : > { %11974 = vmatpush1.bf16.msra.mxu1 %v13470_v57  ;;  %11647 = vmatprep.subr.bf16.mxu0 %v13477_v30  ;;  %v5390_v57 = vld [vmem:[%s15081_s11 + $0x17d0] sm:$0xff] }
 0x5cc   : > { %11975 = vmatprep.subr.bf16.mxu1 %v13479_v46  ;;  %v5394_v30 = vld [vmem:[%s15081_s11 + $0x17f0] sm:$0xff]  ;;  %v5391_v46 = vld [vmem:[%s15081_s11 + $0x17d8] sm:$0xff] }
 0x5cd   : > { %v13541_v59 = vcombine.high %v5390_v57, %v5394_v30  ;;  %v13540_v31 = vcombine.low %v5390_v57, %v5394_v30  ;;  %v13542_v18 = vcombine.low %v5391_v46, %v5395_v49 }
 0x5ce   : > { %11648 = vmatpush1.bf16.msra.mxu0 %v13476_v24  ;;  %v13543_v24 = vcombine.high %v5391_v46, %v5395_v49  ;;  %v5454_v49 = vld [vmem:[%s15081_s11 + $0x19d0] sm:$0xff] }
 0x5cf   : > { %11976 = vmatpush1.bf16.msra.mxu1 %v13478_v38  ;;  %11649 = vmatprep.subr.bf16.mxu0 %v13485_v27  ;;  %v5398_v38 = vld [vmem:[%s15081_s11 + $0x1810] sm:$0xff] }
 0x5d0   : > { %11977 = vmatprep.subr.bf16.mxu1 %v13487_v12  ;;  %v5402_v27 = vld [vmem:[%s15081_s11 + $0x1830] sm:$0xff]  ;;  %v5399_v12 = vld [vmem:[%s15081_s11 + $0x1818] sm:$0xff] }
 0x5d1   : > { %v13549_v63 = vcombine.high %v5398_v38, %v5402_v27  ;;  %v13550_v15 = vcombine.low %v5399_v12, %v5403_v41 }
 0x5d2   : > { %11650 = vmatpush1.bf16.msra.mxu0 %v13484_v47  ;;  %v13551_v47 = vcombine.high %v5399_v12, %v5403_v41  ;;  %v5462_v41 = vld [vmem:[%s15081_s11 + $0x1a10] sm:$0xff] }
 0x5d3   : > { %11978 = vmatpush1.bf16.msra.mxu1 %v13486_v34  ;;  %11651 = vmatprep.subr.bf16.mxu0 %v13493_v29  ;;  %v5406_v34 = vld [vmem:[%s15081_s11 + $0x1850] sm:$0xff] }
 0x5d4   : > { %11979 = vmatprep.subr.bf16.mxu1 %v13495_v25  ;;  %v5410_v29 = vld [vmem:[%s15081_s11 + $0x1870] sm:$0xff]  ;;  %v13548_v25 = vcombine.low %v5398_v38, %v5402_v27 }
 0x5d5   : > { %v13557_v10 = vcombine.high %v5406_v34, %v5410_v29  ;;  %v13556_v56 = vcombine.low %v5406_v34, %v5410_v29 }
 0x5d6   : > { %11652 = vmatpush1.bf16.msra.mxu0 %v13492_v58  ;;  %v5414_v58 = vld [vmem:[%s15081_s11 + $0x1890] sm:$0xff] }
 0x5d7   : > { %11980 = vmatpush1.bf16.msra.mxu1 %v13494_v21  ;;  %11653 = vmatprep.subr.bf16.mxu0 %v13501_v37  ;;  %v5418_v21 = vld [vmem:[%s15081_s11 + $0x18b0] sm:$0xff]  ;;  %v13559_v37 = vcombine.high %v5407_v19, %v5411_v48 }
 0x5d8   : > { %11981 = vmatprep.subr.bf16.mxu1 %v13503_v36  ;;  %v5415_v36 = vld [vmem:[%s15081_s11 + $0x1898] sm:$0xff]  ;;  %v13565_v39 = vcombine.high %v5414_v58, %v5418_v21  ;;  %v13564_v45 = vcombine.low %v5414_v58, %v5418_v21  ;;  %v5470_v19 = vld [vmem:[%s15081_s11 + $0x1a50] sm:$0xff] }
 0x5d9   : > { %v13566_v51 = vcombine.low %v5415_v36, %v5419_v13  ;;  %v5474_v48 = vld [vmem:[%s15081_s11 + $0x1a70] sm:$0xff] }
 0x5da   : > { %11654 = vmatpush1.bf16.msra.mxu0 %v13500_v42  ;;  %v13567_v42 = vcombine.high %v5415_v36, %v5419_v13  ;;  %v5478_v13 = vld [vmem:[%s15081_s11 + $0x1a90] sm:$0xff] }
 0x5db   : > { %11982 = vmatpush1.bf16.msra.mxu1 %v13502_v43  ;;  %11655 = vmatprep.subr.bf16.mxu0 %v13509_v22  ;;  %v5422_v43 = vld [vmem:[%s15081_s11 + $0x18d0] sm:$0xff] }
 0x5dc   : > { %11983 = vmatprep.subr.bf16.mxu1 %v13511_v35  ;;  %v5426_v22 = vld [vmem:[%s15081_s11 + $0x18f0] sm:$0xff]  ;;  %v5423_v35 = vld [vmem:[%s15081_s11 + $0x18d8] sm:$0xff] }
 0x5dd   : > { %v13573_v54 = vcombine.high %v5422_v43, %v5426_v22 }
 0x5de   : > { %11656 = vmatpush1.bf16.msra.mxu0 %v13508_v55  ;;  %v5434_v55 = vld [vmem:[%s15081_s11 + $0x1930] sm:$0xff] }
 0x5df   : > { %11984 = vmatpush1.bf16.msra.mxu1 %v13510_v8  ;;  %11657 = vmatprep.subr.bf16.mxu0 %v13517_v61  ;;  %v5431_v8 = vld [vmem:[%s15081_s11 + $0x1918] sm:$0xff]  ;;  %v13581_v3 = vcombine.high %v5430_v6, %v5434_v55 }
 0x5e0   : > { %11985 = vmatprep.subr.bf16.mxu1 %v13519_v26  ;;  %v5435_v61 = vld [vmem:[%s15081_s11 + $0x1938] sm:$0xff]  ;;  %v13572_v26 = vcombine.low %v5422_v43, %v5426_v22 }
 0x5e1   : > { %v13583_v4 = vcombine.high %v5431_v8, %v5435_v61  ;;  %v13582_v11 = vcombine.low %v5431_v8, %v5435_v61  ;;  %v5494_v61 = vld [vmem:[%s15081_s11 + $0x1b10] sm:$0xff] }
 0x5e2   : > { %11658 = vmatpush1.bf16.msra.mxu0 %v13516_v62  ;;  %v5442_v62 = vld [vmem:[%s15081_s11 + $0x1970] sm:$0xff] }
 0x5e3   : > { %11986 = vmatpush1.bf16.msra.mxu1 %v13518_v60  ;;  %11659 = vmatprep.subr.bf16.mxu0 %v13525_v0  ;;  %v5439_v60 = vld [vmem:[%s15081_s11 + $0x1958] sm:$0xff]  ;;  %v13589_v40 = vcombine.high %v5438_v32, %v5442_v62 }
 0x5e4   : > { %11987 = vmatprep.subr.bf16.mxu1 %v13527_v1  ;;  %v5443_v0 = vld [vmem:[%s15081_s11 + $0x1978] sm:$0xff]  ;;  %v13580_v1 = vcombine.low %v5430_v6, %v5434_v55 }
 0x5e5   : > { %v13591_v2 = vcombine.high %v5439_v60, %v5443_v0  ;;  %v13590_v57 = vcombine.low %v5439_v60, %v5443_v0  ;;  %v5502_v0 = vld [vmem:[%s15081_s11 + $0x1b50] sm:$0xff] }
 0x5e6   : > { %11660 = vmatpush1.bf16.msra.mxu0 %v13524_v23  ;;  %v5450_v23 = vld [vmem:[%s15081_s11 + $0x19b0] sm:$0xff] }
 0x5e7   : > { %11988 = vmatpush1.bf16.msra.mxu1 %v13526_v7  ;;  %11661 = vmatprep.subr.bf16.mxu0 %v13533_v9  ;;  %v5447_v7 = vld [vmem:[%s15081_s11 + $0x1998] sm:$0xff]  ;;  %v13597_v30 = vcombine.high %v5446_v5, %v5450_v23 }
 0x5e8   : > { %11989 = vmatprep.subr.bf16.mxu1 %v13535_v28  ;;  %v5451_v9 = vld [vmem:[%s15081_s11 + $0x19b8] sm:$0xff]  ;;  %v13588_v28 = vcombine.low %v5438_v32, %v5442_v62 }
 0x5e9   : > { %v13599_v46 = vcombine.high %v5447_v7, %v5451_v9  ;;  %v13598_v38 = vcombine.low %v5447_v7, %v5451_v9  ;;  %v5510_v9 = vld [vmem:[%s15081_s11 + $0x1b90] sm:$0xff] }
 0x5ea   : > { %11662 = vmatpush1.bf16.msra.mxu0 %v13532_v44  ;;  %v5458_v44 = vld [vmem:[%s15081_s11 + $0x19f0] sm:$0xff] }
 0x5eb   : > { %11990 = vmatpush1.bf16.msra.mxu1 %v13534_v17  ;;  %11663 = vmatprep.subr.bf16.mxu0 %v13541_v59  ;;  %v5455_v17 = vld [vmem:[%s15081_s11 + $0x19d8] sm:$0xff]  ;;  %v13605_v27 = vcombine.high %v5454_v49, %v5458_v44 }
 0x5ec   : > { %11991 = vmatprep.subr.bf16.mxu1 %v13543_v24  ;;  %v5459_v59 = vld [vmem:[%s15081_s11 + $0x19f8] sm:$0xff]  ;;  %v13596_v24 = vcombine.low %v5446_v5, %v5450_v23 }
 0x5ed   : > { %v13607_v12 = vcombine.high %v5455_v17, %v5459_v59  ;;  %v13606_v34 = vcombine.low %v5455_v17, %v5459_v59  ;;  %v5518_v59 = vld [vmem:[%s15081_s11 + $0x1bd0] sm:$0xff] }
 0x5ee   : > { %11664 = vmatpush1.bf16.msra.mxu0 %v13540_v31  ;;  %v5466_v31 = vld [vmem:[%s15081_s11 + $0x1a30] sm:$0xff] }
 0x5ef   : > { %11992 = vmatpush1.bf16.msra.mxu1 %v13542_v18  ;;  %11674 = vmatprep.subr.bf16.mxu0 %v13549_v63  ;;  %v5463_v18 = vld [vmem:[%s15081_s11 + $0x1a18] sm:$0xff]  ;;  %v13613_v29 = vcombine.high %v5462_v41, %v5466_v31  ;;  %v13612_v58 = vcombine.low %v5462_v41, %v5466_v31 }
 0x5f0   : > { %12002 = vmatprep.subr.bf16.mxu1 %v13551_v47  ;;  %v5467_v63 = vld [vmem:[%s15081_s11 + $0x1a38] sm:$0xff]  ;;  %v13604_v47 = vcombine.low %v5454_v49, %v5458_v44 }
 0x5f1   : > { %11666 = vmatmul.mubr.bf16.vlgmr.msra.gmra.mrb[20].mxu0 %v15676_v20  ;;  %v13614_v21 = vcombine.low %v5463_v18, %v5467_v63 }
 0x5f2   : > { %11994 = vmatmul.mubr.bf16.vlgmr.msra.gmra.mrb[20].mxu1 %v15676_v20  ;;  %11675 = vmatpush1.bf16.msra.mxu0 %v13548_v25  ;;  %v5427_v20 = vld [vmem:[%s15081_s11 + $0x18f8] sm:$0xff]  ;;  %v13615_v25 = vcombine.high %v5463_v18, %v5467_v63  ;;  %v5526_v63 = vld [vmem:[%s15081_s11 + $0x1c10] sm:$0xff] }
 0x5f3   : > { %11706 = vmatprep.mubr.bf16.mxu0 %v15681_v14  ;;  %12003 = vmatpush1.bf16.msra.mxu1 %v13550_v15  ;;  %v13574_v52 = vcombine.low %v5423_v35, %v5427_v20  ;;  %v5471_v15 = vld [vmem:[%s15081_s11 + $0x1a58] sm:$0xff] }
 0x5f4   : > { %12034 = vmatprep.mubr.bf16.mxu1 %v15681_v14  ;;  %11676 = vmatprep.subr.bf16.mxu0 %v13557_v10  ;;  %v13575_v14 = vcombine.high %v5423_v35, %v5427_v20  ;;  %v5475_v10 = vld [vmem:[%s15081_s11 + $0x1a78] sm:$0xff]  ;;  %v5486_v20 = vld [vmem:[%s15081_s11 + $0x1ad0] sm:$0xff] }
 0x5f5   : > { %12004 = vmatprep.subr.bf16.mxu1 %v13559_v37  ;;  %v13621_v37 = vcombine.high %v5470_v19, %v5474_v48  ;;  %v13623_v36 = vcombine.high %v5471_v15, %v5475_v10  ;;  %v13622_v43 = vcombine.low %v5471_v15, %v5475_v10  ;;  %v5534_v10 = vld [vmem:[%s15081_s11 + $0x1c50] sm:$0xff] }
 0x5f6   : > { %11677 = vmatpush1.bf16.msra.mxu0 %v13556_v56  ;;  %v5482_v56 = vld [vmem:[%s15081_s11 + $0x1ab0] sm:$0xff] }
 0x5f7   : > { %12005 = vmatpush1.bf16.msra.mxu1 %v13558_v53  ;;  %11678 = vmatprep.subr.bf16.mxu0 %v13565_v39  ;;  %v5479_v53 = vld [vmem:[%s15081_s11 + $0x1a98] sm:$0xff]  ;;  %v13629_v22 = vcombine.high %v5478_v13, %v5482_v56 }
 0x5f8   : > { %12006 = vmatprep.subr.bf16.mxu1 %v13567_v42  ;;  %v5483_v39 = vld [vmem:[%s15081_s11 + $0x1ab8] sm:$0xff]  ;;  %v13620_v42 = vcombine.low %v5470_v19, %v5474_v48 }
 0x5f9   : > { %v13631_v35 = vcombine.high %v5479_v53, %v5483_v39  ;;  %v13630_v6 = vcombine.low %v5479_v53, %v5483_v39  ;;  %v5542_v53 = vld [vmem:[%s15081_s11 + $0x1c90] sm:$0xff] }
 0x5fa   : > { %11679 = vmatpush1.bf16.msra.mxu0 %v13564_v45  ;;  %v5490_v45 = vld [vmem:[%s15081_s11 + $0x1af0] sm:$0xff] }
 0x5fb   : > { %12007 = vmatpush1.bf16.msra.mxu1 %v13566_v51  ;;  %11680 = vmatprep.subr.bf16.mxu0 %v13573_v54  ;;  %v5487_v51 = vld [vmem:[%s15081_s11 + $0x1ad8] sm:$0xff]  ;;  %v13637_v55 = vcombine.high %v5486_v20, %v5490_v45  ;;  %v5546_v39 = vld [vmem:[%s15081_s11 + $0x1cb0] sm:$0xff] }
 0x5fc   : > { %12008 = vmatprep.subr.bf16.mxu1 %v13575_v14  ;;  %v5491_v54 = vld [vmem:[%s15081_s11 + $0x1af8] sm:$0xff]  ;;  %v13628_v14 = vcombine.low %v5478_v13, %v5482_v56 }
 0x5fd   : > { %v13639_v8 = vcombine.high %v5487_v51, %v5491_v54  ;;  %v13638_v32 = vcombine.low %v5487_v51, %v5491_v54  ;;  %v5550_v54 = vld [vmem:[%s15081_s11 + $0x1cd0] sm:$0xff] }
 0x5fe   : > { %11681 = vmatpush1.bf16.msra.mxu0 %v13572_v26  ;;  %v5498_v26 = vld [vmem:[%s15081_s11 + $0x1b30] sm:$0xff] }
 0x5ff   : > { %12009 = vmatpush1.bf16.msra.mxu1 %v13574_v52  ;;  %11682 = vmatprep.subr.bf16.mxu0 %v13581_v3  ;;  %v5495_v52 = vld [vmem:[%s15081_s11 + $0x1b18] sm:$0xff]  ;;  %v13645_v62 = vcombine.high %v5494_v61, %v5498_v26 }
 0x600   : > { %12010 = vmatprep.subr.bf16.mxu1 %v13583_v4  ;;  %v5499_v3 = vld [vmem:[%s15081_s11 + $0x1b38] sm:$0xff]  ;;  %v13636_v4 = vcombine.low %v5486_v20, %v5490_v45  ;;  %v13693_v45 = vcombine.high %v5542_v53, %v5546_v39 }
 0x601   : > { %v13647_v60 = vcombine.high %v5495_v52, %v5499_v3  ;;  %v13646_v5 = vcombine.low %v5495_v52, %v5499_v3  ;;  %v5562_v52 = vld [vmem:[%s15081_s11 + $0x1d30] sm:$0xff]  ;;  %v5559_v3 = vld [vmem:[%s15081_s11 + $0x1d18] sm:$0xff] }
 0x602   : > { %11683 = vmatpush1.bf16.msra.mxu0 %v13580_v1  ;;  %v5506_v1 = vld [vmem:[%s15081_s11 + $0x1b70] sm:$0xff] }
 0x603   : > { %12011 = vmatpush1.bf16.msra.mxu1 %v13582_v11  ;;  %11684 = vmatprep.subr.bf16.mxu0 %v13589_v40  ;;  %v5503_v11 = vld [vmem:[%s15081_s11 + $0x1b58] sm:$0xff]  ;;  %v13653_v23 = vcombine.high %v5502_v0, %v5506_v1 }
 0x604   : > { %12012 = vmatprep.subr.bf16.mxu1 %v13591_v2  ;;  %v5507_v40 = vld [vmem:[%s15081_s11 + $0x1b78] sm:$0xff]  ;;  %v13644_v2 = vcombine.low %v5494_v61, %v5498_v26  ;;  %v5558_v26 = vld [vmem:[%s15081_s11 + $0x1d10] sm:$0xff] }
 0x605   : > { %v13655_v7 = vcombine.high %v5503_v11, %v5507_v40  ;;  %v13654_v49 = vcombine.low %v5503_v11, %v5507_v40  ;;  %v5570_v11 = vld [vmem:[%s15081_s11 + $0x1d70] sm:$0xff]  ;;  %v5567_v40 = vld [vmem:[%s15081_s11 + $0x1d58] sm:$0xff] }
 0x606   : > { %11685 = vmatpush1.bf16.msra.mxu0 %v13588_v28  ;;  %v5514_v28 = vld [vmem:[%s15081_s11 + $0x1bb0] sm:$0xff] }
 0x607   : > { %12013 = vmatpush1.bf16.msra.mxu1 %v13590_v57  ;;  %11686 = vmatprep.subr.bf16.mxu0 %v13597_v30  ;;  %v5511_v57 = vld [vmem:[%s15081_s11 + $0x1b98] sm:$0xff]  ;;  %v13661_v44 = vcombine.high %v5510_v9, %v5514_v28 }
 0x608   : > { %12014 = vmatprep.subr.bf16.mxu1 %v13599_v46  ;;  %v5515_v30 = vld [vmem:[%s15081_s11 + $0x1bb8] sm:$0xff]  ;;  %v13652_v46 = vcombine.low %v5502_v0, %v5506_v1  ;;  %v5566_v1 = vld [vmem:[%s15081_s11 + $0x1d50] sm:$0xff] }
 0x609   : > { %v13663_v17 = vcombine.high %v5511_v57, %v5515_v30  ;;  %v13662_v41 = vcombine.low %v5511_v57, %v5515_v30  ;;  %v5578_v57 = vld [vmem:[%s15081_s11 + $0x1db0] sm:$0xff]  ;;  %v5575_v30 = vld [vmem:[%s15081_s11 + $0x1d98] sm:$0xff] }
 0x60a   : > { %11687 = vmatpush1.bf16.msra.mxu0 %v13596_v24  ;;  %v5522_v24 = vld [vmem:[%s15081_s11 + $0x1bf0] sm:$0xff] }
 0x60b   : > { %12015 = vmatpush1.bf16.msra.mxu1 %v13598_v38  ;;  %11688 = vmatprep.subr.bf16.mxu0 %v13605_v27  ;;  %v5519_v38 = vld [vmem:[%s15081_s11 + $0x1bd8] sm:$0xff]  ;;  %v13669_v31 = vcombine.high %v5518_v59, %v5522_v24 }
 0x60c   : > { %12016 = vmatprep.subr.bf16.mxu1 %v13607_v12  ;;  %v5523_v27 = vld [vmem:[%s15081_s11 + $0x1bf8] sm:$0xff]  ;;  %v13660_v12 = vcombine.low %v5510_v9, %v5514_v28  ;;  %v5574_v28 = vld [vmem:[%s15081_s11 + $0x1d90] sm:$0xff] }
 0x60d   : > { %v13671_v18 = vcombine.high %v5519_v38, %v5523_v27  ;;  %v13670_v19 = vcombine.low %v5519_v38, %v5523_v27  ;;  %v5586_v38 = vld [vmem:[%s15081_s11 + $0x1df0] sm:$0xff]  ;;  %v5583_v27 = vld [vmem:[%s15081_s11 + $0x1dd8] sm:$0xff] }
 0x60e   : > { %11689 = vmatpush1.bf16.msra.mxu0 %v13604_v47  ;;  %v5530_v47 = vld [vmem:[%s15081_s11 + $0x1c30] sm:$0xff] }
 0x60f   : > { %12017 = vmatpush1.bf16.msra.mxu1 %v13606_v34  ;;  %11690 = vmatprep.subr.bf16.mxu0 %v13613_v29  ;;  %v5527_v34 = vld [vmem:[%s15081_s11 + $0x1c18] sm:$0xff]  ;;  %v13677_v48 = vcombine.high %v5526_v63, %v5530_v47 }
 0x610   : > { %12018 = vmatprep.subr.bf16.mxu1 %v13615_v25  ;;  %v5531_v29 = vld [vmem:[%s15081_s11 + $0x1c38] sm:$0xff]  ;;  %v13668_v25 = vcombine.low %v5518_v59, %v5522_v24  ;;  %v5582_v24 = vld [vmem:[%s15081_s11 + $0x1dd0] sm:$0xff] }
 0x611   : > { %v13679_v15 = vcombine.high %v5527_v34, %v5531_v29  ;;  %v13678_v13 = vcombine.low %v5527_v34, %v5531_v29  ;;  %v5594_v34 = vld [vmem:[%s15081_s11 + $0x1e30] sm:$0xff]  ;;  %v5591_v29 = vld [vmem:[%s15081_s11 + $0x1e18] sm:$0xff] }
 0x612   : > { %11691 = vmatpush1.bf16.msra.mxu0 %v13612_v58  ;;  %v5538_v58 = vld [vmem:[%s15081_s11 + $0x1c70] sm:$0xff] }
 0x613   : > { %12019 = vmatpush1.bf16.msra.mxu1 %v13614_v21  ;;  %11692 = vmatprep.subr.bf16.mxu0 %v13621_v37  ;;  %v13676_v21 = vcombine.low %v5526_v63, %v5530_v47  ;;  %v5535_v37 = vld [vmem:[%s15081_s11 + $0x1c58] sm:$0xff]  ;;  %v13685_v56 = vcombine.high %v5534_v10, %v5538_v58  ;;  %v5590_v47 = vld [vmem:[%s15081_s11 + $0x1e10] sm:$0xff] }
 0x614   : > { %12020 = vmatprep.subr.bf16.mxu1 %v13623_v36  ;;  %v5539_v36 = vld [vmem:[%s15081_s11 + $0x1c78] sm:$0xff] }
 0x615   : > { %v13686_v20 = vcombine.low %v5535_v37, %v5539_v36 }
 0x616   : > { %11693 = vmatpush1.bf16.msra.mxu0 %v13620_v42  ;;  %v13687_v42 = vcombine.high %v5535_v37, %v5539_v36  ;;  %v5599_v37 = vld [vmem:[%s15081_s11 + $0x1e58] sm:$0xff] }
 0x617   : > { %12021 = vmatpush1.bf16.msra.mxu1 %v13622_v43  ;;  %11694 = vmatprep.subr.bf16.mxu0 %v13629_v22  ;;  %v5543_v43 = vld [vmem:[%s15081_s11 + $0x1c98] sm:$0xff] }
 0x618   : > { %12022 = vmatprep.subr.bf16.mxu1 %v13631_v35  ;;  %v5547_v22 = vld [vmem:[%s15081_s11 + $0x1cb8] sm:$0xff]  ;;  %v13684_v35 = vcombine.low %v5534_v10, %v5538_v58  ;;  %v5598_v58 = vld [vmem:[%s15081_s11 + $0x1e50] sm:$0xff] }
 0x619   : > { %v13695_v51 = vcombine.high %v5543_v43, %v5547_v22  ;;  %v5603_v36 = vld [vmem:[%s15081_s11 + $0x1e78] sm:$0xff] }
 0x61a   : > { %11695 = vmatpush1.bf16.msra.mxu0 %v13628_v14  ;;  %v5554_v14 = vld [vmem:[%s15081_s11 + $0x1cf0] sm:$0xff] }
 0x61b   : > { %12023 = vmatpush1.bf16.msra.mxu1 %v13630_v6  ;;  %11696 = vmatprep.subr.bf16.mxu0 %v13637_v55  ;;  %v5551_v6 = vld [vmem:[%s15081_s11 + $0x1cd8] sm:$0xff]  ;;  %v13692_v55 = vcombine.low %v5542_v53, %v5546_v39  ;;  %v13701_v61 = vcombine.high %v5550_v54, %v5554_v14  ;;  %v13751_v39 = vcombine.high %v5599_v37, %v5603_v36 }
 0x61c   : > { %12024 = vmatprep.subr.bf16.mxu1 %v13639_v8  ;;  %v13694_v8 = vcombine.low %v5543_v43, %v5547_v22  ;;  %v5610_v43 = vld [vmem:[%s15081_s11 + $0x1eb0] sm:$0xff]  ;;  %v5607_v22 = vld [vmem:[%s15081_s11 + $0x1e98] sm:$0xff] }
 0x61e   : > { %11697 = vmatpush1.bf16.msra.mxu0 %v13636_v4  ;;  %v5563_v4 = vld [vmem:[%s15081_s11 + $0x1d38] sm:$0xff] }
 0x61f   : > { %12025 = vmatpush1.bf16.msra.mxu1 %v13638_v32  ;;  %11698 = vmatprep.subr.bf16.mxu0 %v13645_v62  ;;  %v13700_v32 = vcombine.low %v5550_v54, %v5554_v14  ;;  %v13711_v0 = vcombine.high %v5559_v3, %v5563_v4  ;;  %v5614_v14 = vld [vmem:[%s15081_s11 + $0x1ed0] sm:$0xff] }
 0x620   : > { %12026 = vmatprep.subr.bf16.mxu1 %v13647_v60  ;;  %v13709_v60 = vcombine.high %v5558_v26, %v5562_v52 }
 0x622   : > { %11699 = vmatpush1.bf16.msra.mxu0 %v13644_v2  ;;  %v5571_v2 = vld [vmem:[%s15081_s11 + $0x1d78] sm:$0xff] }
 0x623   : > { %12027 = vmatpush1.bf16.msra.mxu1 %v13646_v5  ;;  %11700 = vmatprep.subr.bf16.mxu0 %v13653_v23  ;;  %v13708_v5 = vcombine.low %v5558_v26, %v5562_v52  ;;  %v13710_v23 = vcombine.low %v5559_v3, %v5563_v4  ;;  %v13719_v9 = vcombine.high %v5567_v40, %v5571_v2  ;;  %v5622_v52 = vld [vmem:[%s15081_s11 + $0x1f10] sm:$0xff]  ;;  %v5623_v4 = vld [vmem:[%s15081_s11 + $0x1f18] sm:$0xff] }
 0x624   : > { %12028 = vmatprep.subr.bf16.mxu1 %v13655_v7  ;;  %v13717_v7 = vcombine.high %v5566_v1, %v5570_v11  ;;  %v5626_v3 = vld [vmem:[%s15081_s11 + $0x1f30] sm:$0xff] }
 0x626   : > { %11701 = vmatpush1.bf16.msra.mxu0 %v13652_v46  ;;  %v5579_v46 = vld [vmem:[%s15081_s11 + $0x1db8] sm:$0xff] }
 0x627   : > { %12029 = vmatpush1.bf16.msra.mxu1 %v13654_v49  ;;  %11702 = vmatprep.subr.bf16.mxu0 %v13661_v44  ;;  %v13716_v49 = vcombine.low %v5566_v1, %v5570_v11  ;;  %v13718_v44 = vcombine.low %v5567_v40, %v5571_v2  ;;  %v13727_v59 = vcombine.high %v5575_v30, %v5579_v46  ;;  %v5630_v11 = vld [vmem:[%s15081_s11 + $0x1f50] sm:$0xff]  ;;  %v5631_v2 = vld [vmem:[%s15081_s11 + $0x1f58] sm:$0xff] }
 0x628   : > { %12030 = vmatprep.subr.bf16.mxu1 %v13663_v17  ;;  %v13725_v17 = vcombine.high %v5574_v28, %v5578_v57  ;;  %v5634_v40 = vld [vmem:[%s15081_s11 + $0x1f70] sm:$0xff] }
 0x62a   : > { %11703 = vmatpush1.bf16.msra.mxu0 %v13660_v12  ;;  %v5587_v12 = vld [vmem:[%s15081_s11 + $0x1df8] sm:$0xff] }
 0x62b   : > { %12031 = vmatpush1.bf16.msra.mxu1 %v13662_v41  ;;  %11704 = vmatprep.subr.bf16.mxu0 %v13669_v31  ;;  %v13724_v41 = vcombine.low %v5574_v28, %v5578_v57  ;;  %v13726_v31 = vcombine.low %v5575_v30, %v5579_v46  ;;  %v13735_v63 = vcombine.high %v5583_v27, %v5587_v12  ;;  %v5638_v57 = vld [vmem:[%s15081_s11 + $0x1f90] sm:$0xff]  ;;  %v5639_v46 = vld [vmem:[%s15081_s11 + $0x1f98] sm:$0xff] }
 0x62c   : > { %12032 = vmatprep.subr.bf16.mxu1 %v13671_v18  ;;  %v13733_v18 = vcombine.high %v5582_v24, %v5586_v38  ;;  %v5642_v30 = vld [vmem:[%s15081_s11 + $0x1fb0] sm:$0xff] }
 0x62e   : > { %11705 = vmatpush1.bf16.msra.mxu0 %v13668_v25  ;;  %v5595_v25 = vld [vmem:[%s15081_s11 + $0x1e38] sm:$0xff] }
 0x62f   : > { %12033 = vmatpush1.bf16.msra.mxu1 %v13670_v19  ;;  %11715 = vmatprep.subr.bf16.mxu0 %v13677_v48  ;;  %v13732_v19 = vcombine.low %v5582_v24, %v5586_v38  ;;  %v13734_v48 = vcombine.low %v5583_v27, %v5587_v12  ;;  %v13743_v10 = vcombine.high %v5591_v29, %v5595_v25  ;;  %v5646_v38 = vld [vmem:[%s15081_s11 + $0x1fd0] sm:$0xff]  ;;  %v5647_v12 = vld [vmem:[%s15081_s11 + $0x1fd8] sm:$0xff] }
 0x630   : > { %12043 = vmatprep.subr.bf16.mxu1 %v13679_v15  ;;  %v13741_v15 = vcombine.high %v5590_v47, %v5594_v34  ;;  %v5650_v27 = vld [vmem:[%s15081_s11 + $0x1ff0] sm:$0xff] }
 0x631   : > { %11707 = vmatmul.mubr.bf16.vlgmr.msra.gmra.mrb[20].mxu0 %v15763_v50 }
 0x632   : > { %12035 = vmatmul.mubr.bf16.vlgmr.msra.gmra.mrb[20].mxu1 %v15763_v50  ;;  %11716 = vmatpush1.bf16.msra.mxu0 %v13676_v21  ;;  %v5555_v50 = vld [vmem:[%s15081_s11 + $0x1cf8] sm:$0xff]  ;;  %v5602_v21 = vld [vmem:[%s15081_s11 + $0x1e70] sm:$0xff] }
 0x633   : > { %11747 = vmatprep.mubr.bf16.mxu0 %v15768_v33  ;;  %12044 = vmatpush1.bf16.msra.mxu1 %v13678_v13  ;;  %v13702_v62 = vcombine.low %v5551_v6, %v5555_v50  ;;  %v13740_v13 = vcombine.low %v5590_v47, %v5594_v34  ;;  %v13749_v53 = vcombine.high %v5598_v58, %v5602_v21 }
 0x634   : > { %12075 = vmatprep.mubr.bf16.mxu1 %v15768_v33  ;;  %11717 = vmatprep.subr.bf16.mxu0 %v13685_v56  ;;  %v13703_v33 = vcombine.high %v5551_v6, %v5555_v50  ;;  %v13742_v56 = vcombine.low %v5591_v29, %v5595_v25  ;;  %v5618_v6 = vld [vmem:[%s15081_s11 + $0x1ef0] sm:$0xff]  ;;  %v5615_v50 = vld [vmem:[%s15081_s11 + $0x1ed8] sm:$0xff]  ;;  %v13796_v34 = vcombine.low %v5646_v38, %v5650_v27 }
 0x635   : > { %12045 = vmatprep.subr.bf16.mxu1 %v13687_v42  ;;  %v5606_v42 = vld [vmem:[%s15081_s11 + $0x1e90] sm:$0xff] }
 0x636   : > { %11718 = vmatpush1.bf16.msra.mxu0 %v13684_v35  ;;  %v5611_v35 = vld [vmem:[%s15081_s11 + $0x1eb8] sm:$0xff] }
 0x637   : > { %12046 = vmatpush1.bf16.msra.mxu1 %v13686_v20  ;;  %11719 = vmatprep.subr.bf16.mxu0 %v13693_v45  ;;  %v13748_v20 = vcombine.low %v5598_v58, %v5602_v21  ;;  %v13750_v45 = vcombine.low %v5599_v37, %v5603_v36  ;;  %v13759_v54 = vcombine.high %v5607_v22, %v5611_v35 }
 0x638   : > { %12047 = vmatprep.subr.bf16.mxu1 %v13695_v51  ;;  %v13757_v51 = vcombine.high %v5606_v42, %v5610_v43 }
 0x63a   : > { %11720 = vmatpush1.bf16.msra.mxu0 %v13692_v55  ;;  %v5619_v55 = vld [vmem:[%s15081_s11 + $0x1ef8] sm:$0xff] }
 0x63b   : > { %12048 = vmatpush1.bf16.msra.mxu1 %v13694_v8  ;;  %11721 = vmatprep.subr.bf16.mxu0 %v13701_v61  ;;  %v13756_v8 = vcombine.low %v5606_v42, %v5610_v43  ;;  %v13758_v61 = vcombine.low %v5607_v22, %v5611_v35  ;;  %v13767_v26 = vcombine.high %v5615_v50, %v5619_v55 }
 0x63c   : > { %12049 = vmatprep.subr.bf16.mxu1 %v13703_v33  ;;  %v13765_v33 = vcombine.high %v5614_v14, %v5618_v6 }
 0x63e   : > { %11722 = vmatpush1.bf16.msra.mxu0 %v13700_v32  ;;  %v5627_v32 = vld [vmem:[%s15081_s11 + $0x1f38] sm:$0xff] }
 0x63f   : > { %12050 = vmatpush1.bf16.msra.mxu1 %v13702_v62  ;;  %11723 = vmatprep.subr.bf16.mxu0 %v13709_v60  ;;  %v13764_v62 = vcombine.low %v5614_v14, %v5618_v6  ;;  %v13766_v60 = vcombine.low %v5615_v50, %v5619_v55  ;;  %v13775_v1 = vcombine.high %v5623_v4, %v5627_v32 }
 0x640   : > { %12051 = vmatprep.subr.bf16.mxu1 %v13711_v0  ;;  %v13773_v0 = vcombine.high %v5622_v52, %v5626_v3 }
 0x642   : > { %11724 = vmatpush1.bf16.msra.mxu0 %v13708_v5  ;;  %v5635_v5 = vld [vmem:[%s15081_s11 + $0x1f78] sm:$0xff] }
 0x643   : > { %12052 = vmatpush1.bf16.msra.mxu1 %v13710_v23  ;;  %11725 = vmatprep.subr.bf16.mxu0 %v13717_v7  ;;  %v13772_v23 = vcombine.low %v5622_v52, %v5626_v3  ;;  %v13774_v7 = vcombine.low %v5623_v4, %v5627_v32  ;;  %v13783_v28 = vcombine.high %v5631_v2, %v5635_v5 }
 0x644   : > { %12053 = vmatprep.subr.bf16.mxu1 %v13719_v9  ;;  %v13781_v9 = vcombine.high %v5630_v11, %v5634_v40 }
 0x646   : > { %11726 = vmatpush1.bf16.msra.mxu0 %v13716_v49  ;;  %v5643_v49 = vld [vmem:[%s15081_s11 + $0x1fb8] sm:$0xff] }
 0x647   : > { %12054 = vmatpush1.bf16.msra.mxu1 %v13718_v44  ;;  %11727 = vmatprep.subr.bf16.mxu0 %v13725_v17  ;;  %v13780_v44 = vcombine.low %v5630_v11, %v5634_v40  ;;  %v13782_v17 = vcombine.low %v5631_v2, %v5635_v5  ;;  %v13791_v24 = vcombine.high %v5639_v46, %v5643_v49 }
 0x648   : > { %12055 = vmatprep.subr.bf16.mxu1 %v13727_v59  ;;  %v13789_v59 = vcombine.high %v5638_v57, %v5642_v30 }
 0x64a   : > { %11728 = vmatpush1.bf16.msra.mxu0 %v13724_v41  ;;  %v5651_v41 = vld [vmem:[%s15081_s11 + $0x1ff8] sm:$0xff] }
 0x64b   : > { %12056 = vmatpush1.bf16.msra.mxu1 %v13726_v31  ;;  %11729 = vmatprep.subr.bf16.mxu0 %v13733_v18  ;;  %v13788_v31 = vcombine.low %v5638_v57, %v5642_v30  ;;  %v13790_v18 = vcombine.low %v5639_v46, %v5643_v49  ;;  %v13799_v47 = vcombine.high %v5647_v12, %v5651_v41 }
 0x64c   : > { %12057 = vmatprep.subr.bf16.mxu1 %v13735_v63  ;;  %v13797_v63 = vcombine.high %v5646_v38, %v5650_v27  ;;  %v13798_v29 = vcombine.low %v5647_v12, %v5651_v41 }
 0x64e   : > { %11730 = vmatpush1.bf16.msra.mxu0 %v13732_v19 }
 0x64f   : > { %12058 = vmatpush1.bf16.msra.mxu1 %v13734_v48  ;;  %11731 = vmatprep.subr.bf16.mxu0 %v13741_v15 }
 0x650   : > { %12059 = vmatprep.subr.bf16.mxu1 %v13743_v10 }
 0x652   : > { %11732 = vmatpush1.bf16.msra.mxu0 %v13740_v13 }
 0x653   : > { %12060 = vmatpush1.bf16.msra.mxu1 %v13742_v56  ;;  %11733 = vmatprep.subr.bf16.mxu0 %v13749_v53 }
 0x654   : > { %12061 = vmatprep.subr.bf16.mxu1 %v13751_v39 }
 0x656   : > { %11734 = vmatpush1.bf16.msra.mxu0 %v13748_v20 }
 0x657   : > { %12062 = vmatpush1.bf16.msra.mxu1 %v13750_v45  ;;  %11735 = vmatprep.subr.bf16.mxu0 %v13757_v51 }
 0x658   : > { %12063 = vmatprep.subr.bf16.mxu1 %v13759_v54 }
 0x65a   : > { %11736 = vmatpush1.bf16.msra.mxu0 %v13756_v8 }
 0x65b   : > { %12064 = vmatpush1.bf16.msra.mxu1 %v13758_v61  ;;  %11737 = vmatprep.subr.bf16.mxu0 %v13765_v33 }
 0x65c   : > { %12065 = vmatprep.subr.bf16.mxu1 %v13767_v26 }
 0x65e   : > { %11738 = vmatpush1.bf16.msra.mxu0 %v13764_v62 }
 0x65f   : > { %12066 = vmatpush1.bf16.msra.mxu1 %v13766_v60  ;;  %11739 = vmatprep.subr.bf16.mxu0 %v13773_v0 }
 0x660   : > { %12067 = vmatprep.subr.bf16.mxu1 %v13775_v1 }
 0x662   : > { %11740 = vmatpush1.bf16.msra.mxu0 %v13772_v23 }
 0x663   : > { %12068 = vmatpush1.bf16.msra.mxu1 %v13774_v7  ;;  %11741 = vmatprep.subr.bf16.mxu0 %v13781_v9 }
 0x664   : > { %12069 = vmatprep.subr.bf16.mxu1 %v13783_v28 }
 0x666   : > { %11742 = vmatpush1.bf16.msra.mxu0 %v13780_v44 }
 0x667   : > { %12070 = vmatpush1.bf16.msra.mxu1 %v13782_v17  ;;  %11743 = vmatprep.subr.bf16.mxu0 %v13789_v59 }
 0x668   : > { %12071 = vmatprep.subr.bf16.mxu1 %v13791_v24 }
 0x66a   : > { %11744 = vmatpush1.bf16.msra.mxu0 %v13788_v31 }
 0x66b   : > { %12072 = vmatpush1.bf16.msra.mxu1 %v13790_v18  ;;  %11745 = vmatprep.subr.bf16.mxu0 %v13797_v63 }
 0x66c   : > { %12073 = vmatprep.subr.bf16.mxu1 %v13799_v47 }
 0x66e   : > { %11746 = vmatpush1.bf16.msra.mxu0 %v13796_v34 }
 0x66f   : > { %12074 = vmatpush1.bf16.msra.mxu1 %v13798_v29 }
 0x671   : > { %11748 = vmatmul.mubr.bf16.vlgmr.msra.gmra.mrb[20].mxu0 %v15837_v16 }
 0x672   : > { %12076 = vmatmul.mubr.bf16.vlgmr.msra.gmra.mrb[20].mxu1 %v15837_v16 }
 0x744   : > { %v11749_v25 = vpop.f32.mrb[20].mxu0 }
 0x745   : > { %12115 = vst [vmem:[%s16072_s29 + $0x20] sm:$0xff] %v11749_v25  ;;  %v12077_v19 = vpop.f32.mrb[20].mxu1  ;;  %v11751_v48 = vpop.f32.mrb[21].mxu0 }
 0x746   : > { %12117 = vst [vmem:[%s16072_s29 + $0x30] sm:$0xff] %v12077_v19  ;;  %12116 = vst [vmem:[%s16072_s29 + $0x28] sm:$0xff] %v11751_v48  ;;  %v12079_v15 = vpop.f32.mrb[21].mxu1  ;;  %v11753_v10 = vpop.f32.mrb[22].mxu0 }
 0x747   : > { %12118 = vst [vmem:[%s16072_s29 + $0x38] sm:$0xff] %v12079_v15  ;;  %v12081_v58 = vpop.f32.mrb[22].mxu1  ;;  %v11754_v21 = vpop.f32.mrb[23].mxu0 }
 0x748   : > { %v12082_v37 = vpop.f32.mrb[23].mxu1 }
 0x749 PF: > { %s20_s20 = sadd.s32 1, %s14192_s20   ;;  %s16424_s15 = smov %s14176_s16 }
 0x74a   : > { %p17_p1 = scmp.ge.s32.totalorder %s20_s20, 4   ;;  %s16425_s16 = smov %s14180_s17 }
 0x74b   : > { %s16426_s17 = smov %s14273_s26  ;;  %s16427_s18 = smov %s14188_s19 }
 0x74c   : > { %s16428_s19 = smov %s16430_s22  ;;  %19 = sbr.rel (!%p17_p1) target bundleno = 6 (0x6), region = 108 }
 0x753   :  { %12140 = vsyncpa [#allocation4], 1 }
 0x754   :  { %12142 = vsyncpa [#allocation4 + $0x1], 1 }
 0x755   :  { %12143 = vsyncpa [#allocation6], 1 }
 0x756   :  { %12145 = vsyncpa [#allocation6 + $0x1], 1 }

</bundles_post_ra>
